<compile_context>
chip_gen: v7x
topology: tpu7x:2x2x1
jax: 0.10.0
libtpu: 0.0.40
codegen_flags: <defaults>
</compile_context>

<pallas_src>
import jax
import jax.numpy as jnp
from jax import lax
from jax.experimental import pallas as pl
from jax.experimental.pallas import tpu as pltpu


# --------------------------------------------------------------------------
# Fused kernel: LSTM stack + FCN + FC, everything resident in VMEM.
# --------------------------------------------------------------------------
def _make_lstm_fcn_kernel(num_layers):
    def kernel(*refs):
        it = iter(refs)
        x_ref = next(it)                                   # (T, B, Dp) time-major
        lstm_w = [(next(it), next(it), next(it)) for _ in range(num_layers)]
        xbt_ref = next(it)                                 # (B, T) conv input
        w1m, s1, t1 = next(it), next(it), next(it)
        w2m, s2, t2 = next(it), next(it), next(it)
        w3m, s3, t3 = next(it), next(it), next(it)
        fwl, fwcp, fb = next(it), next(it), next(it)
        out_ref = next(it)
        xw_scr = next(it)                                  # (T, B, 4*Hp)
        y_scr = next(it)                                   # (T, B, Hp)

        T, B, Dp = x_ref.shape
        Hp = y_scr.shape[-1]

        # ---------------- LSTM stack ----------------
        h_last = None
        for layer, (wih, whh, b) in enumerate(lstm_w):
            if layer == 0:
                x_in = x_ref[...].reshape(T * B, Dp)
            else:
                x_in = y_scr[...].reshape(T * B, Hp)

            # Hoisted input projection for ALL timesteps (one MXU matmul,
            # off the serial critical path); bias folded in.
            xw_scr[...] = (
                jnp.dot(x_in, wih[...], preferred_element_type=jnp.float32)
                + b[...]).reshape(T, B, 4 * Hp)

            write_seq = layer < num_layers - 1             # top layer: no seq write

            def step(t, carry, _whh=whh, _write=write_seq):
                h, c = carry
                gates = xw_scr[t] + jnp.dot(
                    h, _whh[...], preferred_element_type=jnp.float32)
                # Gate blocks are padded to 128-lane multiples -> lane-aligned
                # slices (no sub-lane extraction).  PyTorch order (i, f, g, o).
                i = jax.nn.sigmoid(gates[:, 0 * Hp:1 * Hp])
                f = jax.nn.sigmoid(gates[:, 1 * Hp:2 * Hp])
                g = jnp.tanh(gates[:, 2 * Hp:3 * Hp])
                o = jax.nn.sigmoid(gates[:, 3 * Hp:4 * Hp])
                c = f * c + i * g
                h = o * jnp.tanh(c)
                if _write:
                    y_scr[t] = h
                return h, c

            zeros = jnp.zeros((B, Hp), jnp.float32)
            h_last, _ = lax.fori_loop(0, T, step, (zeros, zeros), unroll=True)

        # ---------------- FCN branch ----------------
        # Each valid conv (+ folded BN + ReLU) is a single MXU matmul on the
        # flat channels-last layout (B, L*C).
        x_bt = xbt_ref[...]                                # (B, T), C_in = 1
        a1 = jnp.maximum(
            jnp.dot(x_bt, w1m[...], preferred_element_type=jnp.float32)
            * s1[...] + t1[...], 0.0)
        a2 = jnp.maximum(
            jnp.dot(a1, w2m[...], preferred_element_type=jnp.float32)
            * s2[...] + t2[...], 0.0)
        a3 = jnp.maximum(
            jnp.dot(a2, w3m[...], preferred_element_type=jnp.float32)
            * s3[...] + t3[...], 0.0)

        # Final Linear; AdaptiveAvgPool1d(1) is folded into fwcp.
        # NOTE: (B, 2) output is lane-masked; fine at these toy sizes.
        out_ref[...] = (
            jnp.dot(h_last, fwl[...], preferred_element_type=jnp.float32)
            + jnp.dot(a3, fwcp[...], preferred_element_type=jnp.float32)
            + fb[...])

    return kernel


# --------------------------------------------------------------------------
# Wrapper: parameter re-layout (glue, done once) + single kernel call
# --------------------------------------------------------------------------
def lstm_fcn_forward(x, params):
    """x: (B, T, 1) float32 -> logits (B, 2)."""
    x = jnp.asarray(x, jnp.float32)
    B, T, Din = x.shape
    assert Din == 1, "LSTMFCN uses a single input feature"

    lstm_params = params["lstm"]
    num_layers = len(lstm_params)
    H = lstm_params[0][1].shape[1]
    LANE = 128
    Hp = ((H + LANE - 1) // LANE) * LANE       # lane-align each gate block
    Dp = 8                                     # sublane-pad the 1-wide input

    # ---- LSTM weights: per-gate lane padding, PyTorch (i, f, g, o) order ----
    def pack_lstm(w_ih, w_hh, b_ih, b_hh, din_p):
        din = w_ih.shape[1]
        b_sum = b_ih + b_hh
        wih_b, whh_b, b_b = [], [], []
        for g in range(4):
            rows = slice(g * H, (g + 1) * H)
            wih_b.append(jnp.pad(w_ih[rows].T, ((0, din_p - din), (0, Hp - H))))
            whh_b.append(jnp.pad(w_hh[rows].T, ((0, Hp - H), (0, Hp - H))))
            b_b.append(jnp.pad(b_sum[rows], (0, Hp - H)))
        return (jnp.concatenate(wih_b, axis=1),            # (din_p, 4*Hp)
                jnp.concatenate(whh_b, axis=1),             # (Hp,    4*Hp)
                jnp.concatenate(b_b)[None, :])              # (1,     4*Hp)

    lstm_inputs = []
    for layer, lp in enumerate(lstm_params):
        lstm_inputs.extend(pack_lstm(*lp, din_p=Dp if layer == 0 else Hp))

    # ---- convs: dense Toeplitz matmul matrices + folded eval-mode BN ----
    eps = 1e-5

    def fold_bn(bias, gamma, beta, mean, var):
        scale = gamma / jnp.sqrt(var + eps)
        shift = (bias - mean) * scale + beta
        return scale, shift

    def conv_to_matmul(w, L_in):
        """PyTorch Conv1d weight (C_out, C_in, K), valid conv, channels-last
        flat layout: returns W with (x_flat @ W) == conv, x_flat (B, L_in*C_in),
        output (B, L_out*C_out) with flat index l*C_out + c."""
        C_out, C_in, K = w.shape
        L_out = L_in - K + 1
        wt = jnp.transpose(w, (2, 1, 0)).astype(jnp.float32)     # (K, C_in, C_out)
        t_idx = jnp.arange(L_in)[:, None]
        l_idx = jnp.arange(L_out)[None, :]
        k = t_idx - l_idx                                        # (L_in, L_out)
        valid = (k >= 0) & (k < K)
        gathered = wt[jnp.clip(k, 0, K - 1)]                     # (L_in, L_out, C_in, C_out)
        W4 = jnp.where(valid[:, :, None, None], gathered, 0.0)
        W4 = jnp.transpose(W4, (0, 2, 1, 3))                     # (L_in, C_in, L_out, C_out)
        return W4.reshape(L_in * C_in, L_out * C_out), L_out

    conv_inputs = []
    L_in = T
    L_out = T
    for name in ("conv1", "conv2", "conv3"):
        w, bias, gamma, beta, mean, var = params[name]
        K = w.shape[2]
        if L_in < K:
            raise ValueError(
                f"sequence too short for the conv stack at {name}: L={L_in}, K={K}")
        Wm, L_out = conv_to_matmul(w, L_in)
        scale, shift = fold_bn(bias, gamma, beta, mean, var)
        conv_inputs.extend([Wm,
                            jnp.tile(scale, L_out)[None, :],    # (1, L_out*C_out)
                            jnp.tile(shift, L_out)[None, :]])
        L_in = L_out
    # TODO(synk): nn.Dropout omitted (identity in eval/inference mode).

    # ---- FC: LSTM half (lane-padded) + conv half with avg-pool folded in ----
    fc_w, fc_b = params["fc"]                              # (2, H + C3), (2,)
    fwl = jnp.pad(fc_w[:, :H].T, ((0, Hp - H), (0, 0)))    # (Hp, 2)
    fwc = fc_w[:, H:].T                                    # (C3, 2)
    fwc_pool = jnp.tile(fwc / L_out, (L_out, 1))           # (L3*C3, 2)
    fb = fc_b[None, :]                                     # (1, 2)

    # ---- kernel inputs ----
    x_tm = jnp.pad(jnp.transpose(x, (1, 0, 2)),
                   ((0, 0), (0, 0), (0, Dp - Din)))        # (T, B, Dp)
    x_bt = x[:, :, 0]                                      # (B, T)

    inputs = [x_tm] + lstm_inputs + [x_bt] + conv_inputs + [fwl, fwc_pool, fb]

    # No grid: every operand is VMEM-resident (tiny shapes).  For long
    # sequences, grid over T (LSTM, axis 'arbitrary' with carried h/c) and
    # over L (convs), and raise vmem_limit_bytes as needed.
    return pl.pallas_call(
        _make_lstm_fcn_kernel(num_layers),
        out_shape=jax.ShapeDtypeStruct((B, 2), jnp.float32),
        scratch_shapes=[pltpu.VMEM((T, B, 4 * Hp), jnp.float32),
                        pltpu.VMEM((T, B, Hp), jnp.float32)],
    )(*inputs)


# --------------------------------------------------------------------------
# Deterministic parameter init (PyTorch-shaped) + pure-JAX reference
# --------------------------------------------------------------------------
def init_params(key, lstm_size, filter_sizes, kernel_sizes, num_layers):
    H = lstm_size
    keys = iter(jax.random.split(key, 64))

    def u(k, shape, bound):
        return jax.random.uniform(k, shape, jnp.float32, -bound, bound)

    lstm = []
    d_in = 1
    for _ in range(num_layers):
        bound = 1.0 / float(H) ** 0.5
        lstm.append((u(next(keys), (4 * H, d_in), bound),
                     u(next(keys), (4 * H, H), bound),
                     u(next(keys), (4 * H,), bound),
                     u(next(keys), (4 * H,), bound)))
        d_in = H

    convs = []
    c_in = 1
    for c_out, k in zip(filter_sizes, kernel_sizes):
        bound = 1.0 / float(c_in * k) ** 0.5
        convs.append((u(next(keys), (c_out, c_in, k), bound),
                      u(next(keys), (c_out,), bound),
                      jnp.ones((c_out,), jnp.float32),    # BN gamma
                      jnp.zeros((c_out,), jnp.float32),   # BN beta
                      jnp.zeros((c_out,), jnp.float32),   # BN running mean
                      jnp.ones((c_out,), jnp.float32)))   # BN running var
        c_in = c_out

    fc_in = H + filter_sizes[-1]
    bound = 1.0 / float(fc_in) ** 0.5
    fc = (u(next(keys), (2, fc_in), bound), u(next(keys), (2,), bound))
    return {"lstm": lstm, "conv1": convs[0], "conv2": convs[1],
            "conv3": convs[2], "fc": fc}


def ref_forward(x, params):
    """Pure-JAX reference matching the PyTorch forward (eval mode)."""
    B, T, _ = x.shape
    seq = x
    for (w_ih, w_hh, b_ih, b_hh) in params["lstm"]:
        H = w_hh.shape[1]
        h = jnp.zeros((B, H), jnp.float32)
        c = jnp.zeros((B, H), jnp.float32)
        outs = []
        for t in range(T):
            g = seq[:, t, :] @ w_ih.T + b_ih + h @ w_hh.T + b_hh
            i = jax.nn.sigmoid(g[:, :H])
            f = jax.nn.sigmoid(g[:, H:2 * H])
            gg = jnp.tanh(g[:, 2 * H:3 * H])
            o = jax.nn.sigmoid(g[:, 3 * H:])
            c = f * c + i * gg
            h = o * jnp.tanh(c)
            outs.append(h)
        seq = jnp.stack(outs, axis=1)
    lstm_last = seq[:, -1, :]

    eps = 1e-5

    def conv_bn_relu(a, w, b, gamma, beta, mean, var):
        Cout, Cin, K = w.shape
        Lo = a.shape[1] - K + 1
        acc = jnp.zeros((a.shape[0], Lo, Cout), jnp.float32)
        for k in range(K):
            acc = acc + a[:, k:k + Lo, :] @ w[:, :, k].T
        acc = acc + b[None, None, :]
        y = (acc - mean) / jnp.sqrt(var + eps) * gamma + beta
        return jnp.maximum(y, 0.0)

    a = x                                              # (B, T, 1) channels-last
    a = conv_bn_relu(a, *params["conv1"])
    a = conv_bn_relu(a, *params["conv2"])
    a = conv_bn_relu(a, *params["conv3"])
    pooled = jnp.mean(a, axis=1)
    combined = jnp.concatenate([lstm_last, pooled], axis=-1)
    fc_w, fc_b = params["fc"]
    return combined @ fc_w.T + fc_b


if __name__ == "__main__":
    B, T = 2, 16
    lstm_size = 32
    filter_sizes = (8, 16, 8)
    kernel_sizes = (5, 3, 3)
    num_layers = 2
    dropout = 0.3  # identity at inference

    key = jax.random.PRNGKey(0)
    kx, kp = jax.random.split(key)
    x = jax.random.normal(kx, (B, T, 1), jnp.float32)
    params = init_params(kp, lstm_size, filter_sizes, kernel_sizes, num_layers)

    out = jax.block_until_ready(lstm_fcn_forward(x, params))
    ref = jax.block_until_ready(ref_forward(x, params))

    assert out.shape == (B, 2), out.shape
    if not jnp.allclose(out, ref, atol=1e-3, rtol=1e-3):
        raise AssertionError(f"kernel/reference mismatch:\n{out}\n{ref}")
    print("KERNEL_OK")
</pallas_src>

<mosaic_0001>
module attributes {stable_mosaic.version = 11 : i64} {
  func.func @kernel(%arg0: memref<16x2x8xf32, #tpu.memory_space<vmem>>, %arg1: memref<8x512xf32, #tpu.memory_space<vmem>>, %arg2: memref<128x512xf32, #tpu.memory_space<vmem>>, %arg3: memref<1x512xf32, #tpu.memory_space<vmem>>, %arg4: memref<128x512xf32, #tpu.memory_space<vmem>>, %arg5: memref<128x512xf32, #tpu.memory_space<vmem>>, %arg6: memref<1x512xf32, #tpu.memory_space<vmem>>, %arg7: memref<2x16xf32, #tpu.memory_space<vmem>>, %arg8: memref<16x96xf32, #tpu.memory_space<vmem>>, %arg9: memref<1x96xf32, #tpu.memory_space<vmem>>, %arg10: memref<1x96xf32, #tpu.memory_space<vmem>>, %arg11: memref<96x160xf32, #tpu.memory_space<vmem>>, %arg12: memref<1x160xf32, #tpu.memory_space<vmem>>, %arg13: memref<1x160xf32, #tpu.memory_space<vmem>>, %arg14: memref<160x64xf32, #tpu.memory_space<vmem>>, %arg15: memref<1x64xf32, #tpu.memory_space<vmem>>, %arg16: memref<1x64xf32, #tpu.memory_space<vmem>>, %arg17: memref<128x2xf32, #tpu.memory_space<vmem>>, %arg18: memref<64x2xf32, #tpu.memory_space<vmem>>, %arg19: memref<1x2xf32, #tpu.memory_space<vmem>>, %arg20: memref<2x2xf32, #tpu.memory_space<vmem>>, %arg21: memref<16x2x512xf32, #tpu.memory_space<vmem>>, %arg22: memref<16x2x128xf32, #tpu.memory_space<vmem>>) attributes {dimension_semantics = [], scalar_prefetch = 0 : i64, scratch_operands = 2 : i64, tpu.core_type = #tpu.core_type<tc>} {
    %c0 = arith.constant 0 : index
    %c0_0 = arith.constant 0 : index
    %c0_1 = arith.constant 0 : index
    %0 = vector.load %arg0[%c0, %c0_0, %c0_1] : memref<16x2x8xf32, #tpu.memory_space<vmem>>, vector<16x2x8xf32>
    %1 = vector.shape_cast %0 : vector<16x2x8xf32> to vector<32x8xf32>
    %c0_2 = arith.constant 0 : index
    %c0_3 = arith.constant 0 : index
    %2 = vector.load %arg1[%c0_2, %c0_3] : memref<8x512xf32, #tpu.memory_space<vmem>>, vector<8x512xf32>
    %cst = arith.constant dense<0.000000e+00> : vector<32x512xf32>
    %3 = tpu.matmul %1, %2, %cst {dimension_numbers = #tpu.dot_dimension_numbers<[1], [0], [0], [1], [0, 0, 1, 1], [], []>} : vector<32x8xf32>, vector<8x512xf32>, vector<32x512xf32> -> vector<32x512xf32>
    %c0_4 = arith.constant 0 : index
    %c0_5 = arith.constant 0 : index
    %4 = vector.load %arg3[%c0_4, %c0_5] : memref<1x512xf32, #tpu.memory_space<vmem>>, vector<1x512xf32>
    %5 = vector.broadcast %4 : vector<1x512xf32> to vector<32x512xf32>
    %6 = arith.addf %3, %5 : vector<32x512xf32>
    %7 = vector.shape_cast %6 : vector<32x512xf32> to vector<16x2x512xf32>
    %c0_6 = arith.constant 0 : index
    %c0_7 = arith.constant 0 : index
    %c0_8 = arith.constant 0 : index
    %8 = vector.load %arg21[%c0_6, %c0_7, %c0_8] : memref<16x2x512xf32, #tpu.memory_space<vmem>>, vector<16x2x512xf32>
    tpu.vector_store %arg21[%c0_6, %c0_7, %c0_8], %7 {strides = array<i32>} : memref<16x2x512xf32, #tpu.memory_space<vmem>>, vector<16x2x512xf32>,
    %cst_9 = arith.constant 0.000000e+00 : f32
    %9 = vector.broadcast %cst_9 : f32 to vector<2x128xf32>
    %c0_i32 = arith.constant 0 : i32
    %10 = arith.index_cast %c0_i32 : i32 to index
    %c0_10 = arith.constant 0 : index
    %c0_11 = arith.constant 0 : index
    %11 = vector.load %arg21[%10, %c0_10, %c0_11] : memref<16x2x512xf32, #tpu.memory_space<vmem>>, vector<1x2x512xf32>
    %12 = vector.shape_cast %11 : vector<1x2x512xf32> to vector<2x512xf32>
    %c0_12 = arith.constant 0 : index
    %c0_13 = arith.constant 0 : index
    %13 = vector.load %arg2[%c0_12, %c0_13] : memref<128x512xf32, #tpu.memory_space<vmem>>, vector<128x512xf32>
    %cst_14 = arith.constant dense<0.000000e+00> : vector<2x512xf32>
    %14 = tpu.matmul %9, %13, %cst_14 {dimension_numbers = #tpu.dot_dimension_numbers<[1], [0], [0], [1], [0, 0, 1, 1], [], []>} : vector<2x128xf32>, vector<128x512xf32>, vector<2x512xf32> -> vector<2x512xf32>
    %15 = arith.addf %12, %14 : vector<2x512xf32>
    %16 = vector.extract_strided_slice %15 {offsets = [0, 0], sizes = [2, 128], strides = [1, 1]} : vector<2x512xf32> to vector<2x128xf32>
    %17 = arith.negf %16 : vector<2x128xf32>
    %18 = math.exp %17 : vector<2x128xf32>
    %cst_15 = arith.constant 1.000000e+00 : f32
    %19 = vector.broadcast %cst_15 : f32 to vector<2x128xf32>
    %20 = arith.addf %19, %18 : vector<2x128xf32>
    %21 = arith.divf %19, %20 : vector<2x128xf32>
    %22 = vector.extract_strided_slice %15 {offsets = [0, 128], sizes = [2, 128], strides = [1, 1]} : vector<2x512xf32> to vector<2x128xf32>
    %23 = arith.negf %22 : vector<2x128xf32>
    %24 = math.exp %23 : vector<2x128xf32>
    %cst_16 = arith.constant 1.000000e+00 : f32
    %25 = vector.broadcast %cst_16 : f32 to vector<2x128xf32>
    %26 = arith.addf %25, %24 : vector<2x128xf32>
    %27 = arith.divf %25, %26 : vector<2x128xf32>
    %28 = vector.extract_strided_slice %15 {offsets = [0, 256], sizes = [2, 128], strides = [1, 1]} : vector<2x512xf32> to vector<2x128xf32>
    %29 = math.tanh %28 : vector<2x128xf32>
    %30 = vector.extract_strided_slice %15 {offsets = [0, 384], sizes = [2, 128], strides = [1, 1]} : vector<2x512xf32> to vector<2x128xf32>
    %31 = arith.negf %30 : vector<2x128xf32>
    %32 = math.exp %31 : vector<2x128xf32>
    %cst_17 = arith.constant 1.000000e+00 : f32
    %33 = vector.broadcast %cst_17 : f32 to vector<2x128xf32>
    %34 = arith.addf %33, %32 : vector<2x128xf32>
    %35 = arith.divf %33, %34 : vector<2x128xf32>
    %36 = arith.mulf %27, %9 : vector<2x128xf32>
    %37 = arith.mulf %21, %29 : vector<2x128xf32>
    %38 = arith.addf %36, %37 : vector<2x128xf32>
    %39 = math.tanh %38 : vector<2x128xf32>
    %40 = arith.mulf %35, %39 : vector<2x128xf32>
    %41 = arith.index_cast %c0_i32 : i32 to index
    %c0_18 = arith.constant 0 : index
    %c0_19 = arith.constant 0 : index
    %42 = vector.load %arg22[%41, %c0_18, %c0_19] : memref<16x2x128xf32, #tpu.memory_space<vmem>>, vector<1x2x128xf32>
    %43 = vector.shape_cast %42 : vector<1x2x128xf32> to vector<2x128xf32>
    %44 = vector.shape_cast %40 : vector<2x128xf32> to vector<1x2x128xf32>
    tpu.vector_store %arg22[%41, %c0_18, %c0_19], %44 {strides = array<i32>} : memref<16x2x128xf32, #tpu.memory_space<vmem>>, vector<1x2x128xf32>,
    %c1_i32 = arith.constant 1 : i32
    %45 = arith.index_cast %c1_i32 : i32 to index
    %c0_20 = arith.constant 0 : index
    %c0_21 = arith.constant 0 : index
    %46 = vector.load %arg21[%45, %c0_20, %c0_21] : memref<16x2x512xf32, #tpu.memory_space<vmem>>, vector<1x2x512xf32>
    %47 = vector.shape_cast %46 : vector<1x2x512xf32> to vector<2x512xf32>
    %c0_22 = arith.constant 0 : index
    %c0_23 = arith.constant 0 : index
    %48 = vector.load %arg2[%c0_22, %c0_23] : memref<128x512xf32, #tpu.memory_space<vmem>>, vector<128x512xf32>
    %cst_24 = arith.constant dense<0.000000e+00> : vector<2x512xf32>
    %49 = tpu.matmul %40, %48, %cst_24 {dimension_numbers = #tpu.dot_dimension_numbers<[1], [0], [0], [1], [0, 0, 1, 1], [], []>} : vector<2x128xf32>, vector<128x512xf32>, vector<2x512xf32> -> vector<2x512xf32>
    %50 = arith.addf %47, %49 : vector<2x512xf32>
    %51 = vector.extract_strided_slice %50 {offsets = [0, 0], sizes = [2, 128], strides = [1, 1]} : vector<2x512xf32> to vector<2x128xf32>
    %52 = arith.negf %51 : vector<2x128xf32>
    %53 = math.exp %52 : vector<2x128xf32>
    %cst_25 = arith.constant 1.000000e+00 : f32
    %54 = vector.broadcast %cst_25 : f32 to vector<2x128xf32>
    %55 = arith.addf %54, %53 : vector<2x128xf32>
    %56 = arith.divf %54, %55 : vector<2x128xf32>
    %57 = vector.extract_strided_slice %50 {offsets = [0, 128], sizes = [2, 128], strides = [1, 1]} : vector<2x512xf32> to vector<2x128xf32>
    %58 = arith.negf %57 : vector<2x128xf32>
    %59 = math.exp %58 : vector<2x128xf32>
    %cst_26 = arith.constant 1.000000e+00 : f32
    %60 = vector.broadcast %cst_26 : f32 to vector<2x128xf32>
    %61 = arith.addf %60, %59 : vector<2x128xf32>
    %62 = arith.divf %60, %61 : vector<2x128xf32>
    %63 = vector.extract_strided_slice %50 {offsets = [0, 256], sizes = [2, 128], strides = [1, 1]} : vector<2x512xf32> to vector<2x128xf32>
    %64 = math.tanh %63 : vector<2x128xf32>
    %65 = vector.extract_strided_slice %50 {offsets = [0, 384], sizes = [2, 128], strides = [1, 1]} : vector<2x512xf32> to vector<2x128xf32>
    %66 = arith.negf %65 : vector<2x128xf32>
    %67 = math.exp %66 : vector<2x128xf32>
    %cst_27 = arith.constant 1.000000e+00 : f32
    %68 = vector.broadcast %cst_27 : f32 to vector<2x128xf32>
    %69 = arith.addf %68, %67 : vector<2x128xf32>
    %70 = arith.divf %68, %69 : vector<2x128xf32>
    %71 = arith.mulf %62, %38 : vector<2x128xf32>
    %72 = arith.mulf %56, %64 : vector<2x128xf32>
    %73 = arith.addf %71, %72 : vector<2x128xf32>
    %74 = math.tanh %73 : vector<2x128xf32>
    %75 = arith.mulf %70, %74 : vector<2x128xf32>
    %76 = arith.index_cast %c1_i32 : i32 to index
    %c0_28 = arith.constant 0 : index
    %c0_29 = arith.constant 0 : index
    %77 = vector.load %arg22[%76, %c0_28, %c0_29] : memref<16x2x128xf32, #tpu.memory_space<vmem>>, vector<1x2x128xf32>
    %78 = vector.shape_cast %77 : vector<1x2x128xf32> to vector<2x128xf32>
    %79 = vector.shape_cast %75 : vector<2x128xf32> to vector<1x2x128xf32>
    tpu.vector_store %arg22[%76, %c0_28, %c0_29], %79 {strides = array<i32>} : memref<16x2x128xf32, #tpu.memory_space<vmem>>, vector<1x2x128xf32>,
    %c2_i32 = arith.constant 2 : i32
    %80 = arith.index_cast %c2_i32 : i32 to index
    %c0_30 = arith.constant 0 : index
    %c0_31 = arith.constant 0 : index
    %81 = vector.load %arg21[%80, %c0_30, %c0_31] : memref<16x2x512xf32, #tpu.memory_space<vmem>>, vector<1x2x512xf32>
    %82 = vector.shape_cast %81 : vector<1x2x512xf32> to vector<2x512xf32>
    %c0_32 = arith.constant 0 : index
    %c0_33 = arith.constant 0 : index
    %83 = vector.load %arg2[%c0_32, %c0_33] : memref<128x512xf32, #tpu.memory_space<vmem>>, vector<128x512xf32>
    %cst_34 = arith.constant dense<0.000000e+00> : vector<2x512xf32>
    %84 = tpu.matmul %75, %83, %cst_34 {dimension_numbers = #tpu.dot_dimension_numbers<[1], [0], [0], [1], [0, 0, 1, 1], [], []>} : vector<2x128xf32>, vector<128x512xf32>, vector<2x512xf32> -> vector<2x512xf32>
    %85 = arith.addf %82, %84 : vector<2x512xf32>
    %86 = vector.extract_strided_slice %85 {offsets = [0, 0], sizes = [2, 128], strides = [1, 1]} : vector<2x512xf32> to vector<2x128xf32>
    %87 = arith.negf %86 : vector<2x128xf32>
    %88 = math.exp %87 : vector<2x128xf32>
    %cst_35 = arith.constant 1.000000e+00 : f32
    %89 = vector.broadcast %cst_35 : f32 to vector<2x128xf32>
    %90 = arith.addf %89, %88 : vector<2x128xf32>
    %91 = arith.divf %89, %90 : vector<2x128xf32>
    %92 = vector.extract_strided_slice %85 {offsets = [0, 128], sizes = [2, 128], strides = [1, 1]} : vector<2x512xf32> to vector<2x128xf32>
    %93 = arith.negf %92 : vector<2x128xf32>
    %94 = math.exp %93 : vector<2x128xf32>
    %cst_36 = arith.constant 1.000000e+00 : f32
    %95 = vector.broadcast %cst_36 : f32 to vector<2x128xf32>
    %96 = arith.addf %95, %94 : vector<2x128xf32>
    %97 = arith.divf %95, %96 : vector<2x128xf32>
    %98 = vector.extract_strided_slice %85 {offsets = [0, 256], sizes = [2, 128], strides = [1, 1]} : vector<2x512xf32> to vector<2x128xf32>
    %99 = math.tanh %98 : vector<2x128xf32>
    %100 = vector.extract_strided_slice %85 {offsets = [0, 384], sizes = [2, 128], strides = [1, 1]} : vector<2x512xf32> to vector<2x128xf32>
    %101 = arith.negf %100 : vector<2x128xf32>
    %102 = math.exp %101 : vector<2x128xf32>
    %cst_37 = arith.constant 1.000000e+00 : f32
    %103 = vector.broadcast %cst_37 : f32 to vector<2x128xf32>
    %104 = arith.addf %103, %102 : vector<2x128xf32>
    %105 = arith.divf %103, %104 : vector<2x128xf32>
    %106 = arith.mulf %97, %73 : vector<2x128xf32>
    %107 = arith.mulf %91, %99 : vector<2x128xf32>
    %108 = arith.addf %106, %107 : vector<2x128xf32>
    %109 = math.tanh %108 : vector<2x128xf32>
    %110 = arith.mulf %105, %109 : vector<2x128xf32>
    %111 = arith.index_cast %c2_i32 : i32 to index
    %c0_38 = arith.constant 0 : index
    %c0_39 = arith.constant 0 : index
    %112 = vector.load %arg22[%111, %c0_38, %c0_39] : memref<16x2x128xf32, #tpu.memory_space<vmem>>, vector<1x2x128xf32>
    %113 = vector.shape_cast %112 : vector<1x2x128xf32> to vector<2x128xf32>
    %114 = vector.shape_cast %110 : vector<2x128xf32> to vector<1x2x128xf32>
    tpu.vector_store %arg22[%111, %c0_38, %c0_39], %114 {strides = array<i32>} : memref<16x2x128xf32, #tpu.memory_space<vmem>>, vector<1x2x128xf32>,
    %c3_i32 = arith.constant 3 : i32
    %115 = arith.index_cast %c3_i32 : i32 to index
    %c0_40 = arith.constant 0 : index
    %c0_41 = arith.constant 0 : index
    %116 = vector.load %arg21[%115, %c0_40, %c0_41] : memref<16x2x512xf32, #tpu.memory_space<vmem>>, vector<1x2x512xf32>
    %117 = vector.shape_cast %116 : vector<1x2x512xf32> to vector<2x512xf32>
    %c0_42 = arith.constant 0 : index
    %c0_43 = arith.constant 0 : index
    %118 = vector.load %arg2[%c0_42, %c0_43] : memref<128x512xf32, #tpu.memory_space<vmem>>, vector<128x512xf32>
    %cst_44 = arith.constant dense<0.000000e+00> : vector<2x512xf32>
    %119 = tpu.matmul %110, %118, %cst_44 {dimension_numbers = #tpu.dot_dimension_numbers<[1], [0], [0], [1], [0, 0, 1, 1], [], []>} : vector<2x128xf32>, vector<128x512xf32>, vector<2x512xf32> -> vector<2x512xf32>
    %120 = arith.addf %117, %119 : vector<2x512xf32>
    %121 = vector.extract_strided_slice %120 {offsets = [0, 0], sizes = [2, 128], strides = [1, 1]} : vector<2x512xf32> to vector<2x128xf32>
    %122 = arith.negf %121 : vector<2x128xf32>
    %123 = math.exp %122 : vector<2x128xf32>
    %cst_45 = arith.constant 1.000000e+00 : f32
    %124 = vector.broadcast %cst_45 : f32 to vector<2x128xf32>
    %125 = arith.addf %124, %123 : vector<2x128xf32>
    %126 = arith.divf %124, %125 : vector<2x128xf32>
    %127 = vector.extract_strided_slice %120 {offsets = [0, 128], sizes = [2, 128], strides = [1, 1]} : vector<2x512xf32> to vector<2x128xf32>
    %128 = arith.negf %127 : vector<2x128xf32>
    %129 = math.exp %128 : vector<2x128xf32>
    %cst_46 = arith.constant 1.000000e+00 : f32
    %130 = vector.broadcast %cst_46 : f32 to vector<2x128xf32>
    %131 = arith.addf %130, %129 : vector<2x128xf32>
    %132 = arith.divf %130, %131 : vector<2x128xf32>
    %133 = vector.extract_strided_slice %120 {offsets = [0, 256], sizes = [2, 128], strides = [1, 1]} : vector<2x512xf32> to vector<2x128xf32>
    %134 = math.tanh %133 : vector<2x128xf32>
    %135 = vector.extract_strided_slice %120 {offsets = [0, 384], sizes = [2, 128], strides = [1, 1]} : vector<2x512xf32> to vector<2x128xf32>
    %136 = arith.negf %135 : vector<2x128xf32>
    %137 = math.exp %136 : vector<2x128xf32>
    %cst_47 = arith.constant 1.000000e+00 : f32
    %138 = vector.broadcast %cst_47 : f32 to vector<2x128xf32>
    %139 = arith.addf %138, %137 : vector<2x128xf32>
    %140 = arith.divf %138, %139 : vector<2x128xf32>
    %141 = arith.mulf %132, %108 : vector<2x128xf32>
    %142 = arith.mulf %126, %134 : vector<2x128xf32>
    %143 = arith.addf %141, %142 : vector<2x128xf32>
    %144 = math.tanh %143 : vector<2x128xf32>
    %145 = arith.mulf %140, %144 : vector<2x128xf32>
    %146 = arith.index_cast %c3_i32 : i32 to index
    %c0_48 = arith.constant 0 : index
    %c0_49 = arith.constant 0 : index
    %147 = vector.load %arg22[%146, %c0_48, %c0_49] : memref<16x2x128xf32, #tpu.memory_space<vmem>>, vector<1x2x128xf32>
    %148 = vector.shape_cast %147 : vector<1x2x128xf32> to vector<2x128xf32>
    %149 = vector.shape_cast %145 : vector<2x128xf32> to vector<1x2x128xf32>
    tpu.vector_store %arg22[%146, %c0_48, %c0_49], %149 {strides = array<i32>} : memref<16x2x128xf32, #tpu.memory_space<vmem>>, vector<1x2x128xf32>,
    %c4_i32 = arith.constant 4 : i32
    %150 = arith.index_cast %c4_i32 : i32 to index
    %c0_50 = arith.constant 0 : index
    %c0_51 = arith.constant 0 : index
    %151 = vector.load %arg21[%150, %c0_50, %c0_51] : memref<16x2x512xf32, #tpu.memory_space<vmem>>, vector<1x2x512xf32>
    %152 = vector.shape_cast %151 : vector<1x2x512xf32> to vector<2x512xf32>
    %c0_52 = arith.constant 0 : index
    %c0_53 = arith.constant 0 : index
    %153 = vector.load %arg2[%c0_52, %c0_53] : memref<128x512xf32, #tpu.memory_space<vmem>>, vector<128x512xf32>
    %cst_54 = arith.constant dense<0.000000e+00> : vector<2x512xf32>
    %154 = tpu.matmul %145, %153, %cst_54 {dimension_numbers = #tpu.dot_dimension_numbers<[1], [0], [0], [1], [0, 0, 1, 1], [], []>} : vector<2x128xf32>, vector<128x512xf32>, vector<2x512xf32> -> vector<2x512xf32>
    %155 = arith.addf %152, %154 : vector<2x512xf32>
    %156 = vector.extract_strided_slice %155 {offsets = [0, 0], sizes = [2, 128], strides = [1, 1]} : vector<2x512xf32> to vector<2x128xf32>
    %157 = arith.negf %156 : vector<2x128xf32>
    %158 = math.exp %157 : vector<2x128xf32>
    %cst_55 = arith.constant 1.000000e+00 : f32
    %159 = vector.broadcast %cst_55 : f32 to vector<2x128xf32>
    %160 = arith.addf %159, %158 : vector<2x128xf32>
    %161 = arith.divf %159, %160 : vector<2x128xf32>
    %162 = vector.extract_strided_slice %155 {offsets = [0, 128], sizes = [2, 128], strides = [1, 1]} : vector<2x512xf32> to vector<2x128xf32>
    %163 = arith.negf %162 : vector<2x128xf32>
    %164 = math.exp %163 : vector<2x128xf32>
    %cst_56 = arith.constant 1.000000e+00 : f32
    %165 = vector.broadcast %cst_56 : f32 to vector<2x128xf32>
    %166 = arith.addf %165, %164 : vector<2x128xf32>
    %167 = arith.divf %165, %166 : vector<2x128xf32>
    %168 = vector.extract_strided_slice %155 {offsets = [0, 256], sizes = [2, 128], strides = [1, 1]} : vector<2x512xf32> to vector<2x128xf32>
    %169 = math.tanh %168 : vector<2x128xf32>
    %170 = vector.extract_strided_slice %155 {offsets = [0, 384], sizes = [2, 128], strides = [1, 1]} : vector<2x512xf32> to vector<2x128xf32>
    %171 = arith.negf %170 : vector<2x128xf32>
    %172 = math.exp %171 : vector<2x128xf32>
    %cst_57 = arith.constant 1.000000e+00 : f32
    %173 = vector.broadcast %cst_57 : f32 to vector<2x128xf32>
    %174 = arith.addf %173, %172 : vector<2x128xf32>
    %175 = arith.divf %173, %174 : vector<2x128xf32>
    %176 = arith.mulf %167, %143 : vector<2x128xf32>
    %177 = arith.mulf %161, %169 : vector<2x128xf32>
    %178 = arith.addf %176, %177 : vector<2x128xf32>
    %179 = math.tanh %178 : vector<2x128xf32>
    %180 = arith.mulf %175, %179 : vector<2x128xf32>
    %181 = arith.index_cast %c4_i32 : i32 to index
    %c0_58 = arith.constant 0 : index
    %c0_59 = arith.constant 0 : index
    %182 = vector.load %arg22[%181, %c0_58, %c0_59] : memref<16x2x128xf32, #tpu.memory_space<vmem>>, vector<1x2x128xf32>
    %183 = vector.shape_cast %182 : vector<1x2x128xf32> to vector<2x128xf32>
    %184 = vector.shape_cast %180 : vector<2x128xf32> to vector<1x2x128xf32>
    tpu.vector_store %arg22[%181, %c0_58, %c0_59], %184 {strides = array<i32>} : memref<16x2x128xf32, #tpu.memory_space<vmem>>, vector<1x2x128xf32>,
    %c5_i32 = arith.constant 5 : i32
    %185 = arith.index_cast %c5_i32 : i32 to index
    %c0_60 = arith.constant 0 : index
    %c0_61 = arith.constant 0 : index
    %186 = vector.load %arg21[%185, %c0_60, %c0_61] : memref<16x2x512xf32, #tpu.memory_space<vmem>>, vector<1x2x512xf32>
    %187 = vector.shape_cast %186 : vector<1x2x512xf32> to vector<2x512xf32>
    %c0_62 = arith.constant 0 : index
    %c0_63 = arith.constant 0 : index
    %188 = vector.load %arg2[%c0_62, %c0_63] : memref<128x512xf32, #tpu.memory_space<vmem>>, vector<128x512xf32>
    %cst_64 = arith.constant dense<0.000000e+00> : vector<2x512xf32>
    %189 = tpu.matmul %180, %188, %cst_64 {dimension_numbers = #tpu.dot_dimension_numbers<[1], [0], [0], [1], [0, 0, 1, 1], [], []>} : vector<2x128xf32>, vector<128x512xf32>, vector<2x512xf32> -> vector<2x512xf32>
    %190 = arith.addf %187, %189 : vector<2x512xf32>
    %191 = vector.extract_strided_slice %190 {offsets = [0, 0], sizes = [2, 128], strides = [1, 1]} : vector<2x512xf32> to vector<2x128xf32>
    %192 = arith.negf %191 : vector<2x128xf32>
    %193 = math.exp %192 : vector<2x128xf32>
    %cst_65 = arith.constant 1.000000e+00 : f32
    %194 = vector.broadcast %cst_65 : f32 to vector<2x128xf32>
    %195 = arith.addf %194, %193 : vector<2x128xf32>
    %196 = arith.divf %194, %195 : vector<2x128xf32>
    %197 = vector.extract_strided_slice %190 {offsets = [0, 128], sizes = [2, 128], strides = [1, 1]} : vector<2x512xf32> to vector<2x128xf32>
    %198 = arith.negf %197 : vector<2x128xf32>
    %199 = math.exp %198 : vector<2x128xf32>
    %cst_66 = arith.constant 1.000000e+00 : f32
    %200 = vector.broadcast %cst_66 : f32 to vector<2x128xf32>
    %201 = arith.addf %200, %199 : vector<2x128xf32>
    %202 = arith.divf %200, %201 : vector<2x128xf32>
    %203 = vector.extract_strided_slice %190 {offsets = [0, 256], sizes = [2, 128], strides = [1, 1]} : vector<2x512xf32> to vector<2x128xf32>
    %204 = math.tanh %203 : vector<2x128xf32>
    %205 = vector.extract_strided_slice %190 {offsets = [0, 384], sizes = [2, 128], strides = [1, 1]} : vector<2x512xf32> to vector<2x128xf32>
    %206 = arith.negf %205 : vector<2x128xf32>
    %207 = math.exp %206 : vector<2x128xf32>
    %cst_67 = arith.constant 1.000000e+00 : f32
    %208 = vector.broadcast %cst_67 : f32 to vector<2x128xf32>
    %209 = arith.addf %208, %207 : vector<2x128xf32>
    %210 = arith.divf %208, %209 : vector<2x128xf32>
    %211 = arith.mulf %202, %178 : vector<2x128xf32>
    %212 = arith.mulf %196, %204 : vector<2x128xf32>
    %213 = arith.addf %211, %212 : vector<2x128xf32>
    %214 = math.tanh %213 : vector<2x128xf32>
    %215 = arith.mulf %210, %214 : vector<2x128xf32>
    %216 = arith.index_cast %c5_i32 : i32 to index
    %c0_68 = arith.constant 0 : index
    %c0_69 = arith.constant 0 : index
    %217 = vector.load %arg22[%216, %c0_68, %c0_69] : memref<16x2x128xf32, #tpu.memory_space<vmem>>, vector<1x2x128xf32>
    %218 = vector.shape_cast %217 : vector<1x2x128xf32> to vector<2x128xf32>
    %219 = vector.shape_cast %215 : vector<2x128xf32> to vector<1x2x128xf32>
    tpu.vector_store %arg22[%216, %c0_68, %c0_69], %219 {strides = array<i32>} : memref<16x2x128xf32, #tpu.memory_space<vmem>>, vector<1x2x128xf32>,
    %c6_i32 = arith.constant 6 : i32
    %220 = arith.index_cast %c6_i32 : i32 to index
    %c0_70 = arith.constant 0 : index
    %c0_71 = arith.constant 0 : index
    %221 = vector.load %arg21[%220, %c0_70, %c0_71] : memref<16x2x512xf32, #tpu.memory_space<vmem>>, vector<1x2x512xf32>
    %222 = vector.shape_cast %221 : vector<1x2x512xf32> to vector<2x512xf32>
    %c0_72 = arith.constant 0 : index
    %c0_73 = arith.constant 0 : index
    %223 = vector.load %arg2[%c0_72, %c0_73] : memref<128x512xf32, #tpu.memory_space<vmem>>, vector<128x512xf32>
    %cst_74 = arith.constant dense<0.000000e+00> : vector<2x512xf32>
    %224 = tpu.matmul %215, %223, %cst_74 {dimension_numbers = #tpu.dot_dimension_numbers<[1], [0], [0], [1], [0, 0, 1, 1], [], []>} : vector<2x128xf32>, vector<128x512xf32>, vector<2x512xf32> -> vector<2x512xf32>
    %225 = arith.addf %222, %224 : vector<2x512xf32>
    %226 = vector.extract_strided_slice %225 {offsets = [0, 0], sizes = [2, 128], strides = [1, 1]} : vector<2x512xf32> to vector<2x128xf32>
    %227 = arith.negf %226 : vector<2x128xf32>
    %228 = math.exp %227 : vector<2x128xf32>
    %cst_75 = arith.constant 1.000000e+00 : f32
    %229 = vector.broadcast %cst_75 : f32 to vector<2x128xf32>
    %230 = arith.addf %229, %228 : vector<2x128xf32>
    %231 = arith.divf %229, %230 : vector<2x128xf32>
    %232 = vector.extract_strided_slice %225 {offsets = [0, 128], sizes = [2, 128], strides = [1, 1]} : vector<2x512xf32> to vector<2x128xf32>
    %233 = arith.negf %232 : vector<2x128xf32>
    %234 = math.exp %233 : vector<2x128xf32>
    %cst_76 = arith.constant 1.000000e+00 : f32
    %235 = vector.broadcast %cst_76 : f32 to vector<2x128xf32>
    %236 = arith.addf %235, %234 : vector<2x128xf32>
    %237 = arith.divf %235, %236 : vector<2x128xf32>
    %238 = vector.extract_strided_slice %225 {offsets = [0, 256], sizes = [2, 128], strides = [1, 1]} : vector<2x512xf32> to vector<2x128xf32>
    %239 = math.tanh %238 : vector<2x128xf32>
    %240 = vector.extract_strided_slice %225 {offsets = [0, 384], sizes = [2, 128], strides = [1, 1]} : vector<2x512xf32> to vector<2x128xf32>
    %241 = arith.negf %240 : vector<2x128xf32>
    %242 = math.exp %241 : vector<2x128xf32>
    %cst_77 = arith.constant 1.000000e+00 : f32
    %243 = vector.broadcast %cst_77 : f32 to vector<2x128xf32>
    %244 = arith.addf %243, %242 : vector<2x128xf32>
    %245 = arith.divf %243, %244 : vector<2x128xf32>
    %246 = arith.mulf %237, %213 : vector<2x128xf32>
    %247 = arith.mulf %231, %239 : vector<2x128xf32>
    %248 = arith.addf %246, %247 : vector<2x128xf32>
    %249 = math.tanh %248 : vector<2x128xf32>
    %250 = arith.mulf %245, %249 : vector<2x128xf32>
    %251 = arith.index_cast %c6_i32 : i32 to index
    %c0_78 = arith.constant 0 : index
    %c0_79 = arith.constant 0 : index
    %252 = vector.load %arg22[%251, %c0_78, %c0_79] : memref<16x2x128xf32, #tpu.memory_space<vmem>>, vector<1x2x128xf32>
    %253 = vector.shape_cast %252 : vector<1x2x128xf32> to vector<2x128xf32>
    %254 = vector.shape_cast %250 : vector<2x128xf32> to vector<1x2x128xf32>
    tpu.vector_store %arg22[%251, %c0_78, %c0_79], %254 {strides = array<i32>} : memref<16x2x128xf32, #tpu.memory_space<vmem>>, vector<1x2x128xf32>,
    %c7_i32 = arith.constant 7 : i32
    %255 = arith.index_cast %c7_i32 : i32 to index
    %c0_80 = arith.constant 0 : index
    %c0_81 = arith.constant 0 : index
    %256 = vector.load %arg21[%255, %c0_80, %c0_81] : memref<16x2x512xf32, #tpu.memory_space<vmem>>, vector<1x2x512xf32>
    %257 = vector.shape_cast %256 : vector<1x2x512xf32> to vector<2x512xf32>
    %c0_82 = arith.constant 0 : index
    %c0_83 = arith.constant 0 : index
    %258 = vector.load %arg2[%c0_82, %c0_83] : memref<128x512xf32, #tpu.memory_space<vmem>>, vector<128x512xf32>
    %cst_84 = arith.constant dense<0.000000e+00> : vector<2x512xf32>
    %259 = tpu.matmul %250, %258, %cst_84 {dimension_numbers = #tpu.dot_dimension_numbers<[1], [0], [0], [1], [0, 0, 1, 1], [], []>} : vector<2x128xf32>, vector<128x512xf32>, vector<2x512xf32> -> vector<2x512xf32>
    %260 = arith.addf %257, %259 : vector<2x512xf32>
    %261 = vector.extract_strided_slice %260 {offsets = [0, 0], sizes = [2, 128], strides = [1, 1]} : vector<2x512xf32> to vector<2x128xf32>
    %262 = arith.negf %261 : vector<2x128xf32>
    %263 = math.exp %262 : vector<2x128xf32>
    %cst_85 = arith.constant 1.000000e+00 : f32
    %264 = vector.broadcast %cst_85 : f32 to vector<2x128xf32>
    %265 = arith.addf %264, %263 : vector<2x128xf32>
    %266 = arith.divf %264, %265 : vector<2x128xf32>
    %267 = vector.extract_strided_slice %260 {offsets = [0, 128], sizes = [2, 128], strides = [1, 1]} : vector<2x512xf32> to vector<2x128xf32>
    %268 = arith.negf %267 : vector<2x128xf32>
    %269 = math.exp %268 : vector<2x128xf32>
    %cst_86 = arith.constant 1.000000e+00 : f32
    %270 = vector.broadcast %cst_86 : f32 to vector<2x128xf32>
    %271 = arith.addf %270, %269 : vector<2x128xf32>
    %272 = arith.divf %270, %271 : vector<2x128xf32>
    %273 = vector.extract_strided_slice %260 {offsets = [0, 256], sizes = [2, 128], strides = [1, 1]} : vector<2x512xf32> to vector<2x128xf32>
    %274 = math.tanh %273 : vector<2x128xf32>
    %275 = vector.extract_strided_slice %260 {offsets = [0, 384], sizes = [2, 128], strides = [1, 1]} : vector<2x512xf32> to vector<2x128xf32>
    %276 = arith.negf %275 : vector<2x128xf32>
    %277 = math.exp %276 : vector<2x128xf32>
    %cst_87 = arith.constant 1.000000e+00 : f32
    %278 = vector.broadcast %cst_87 : f32 to vector<2x128xf32>
    %279 = arith.addf %278, %277 : vector<2x128xf32>
    %280 = arith.divf %278, %279 : vector<2x128xf32>
    %281 = arith.mulf %272, %248 : vector<2x128xf32>
    %282 = arith.mulf %266, %274 : vector<2x128xf32>
    %283 = arith.addf %281, %282 : vector<2x128xf32>
    %284 = math.tanh %283 : vector<2x128xf32>
    %285 = arith.mulf %280, %284 : vector<2x128xf32>
    %286 = arith.index_cast %c7_i32 : i32 to index
    %c0_88 = arith.constant 0 : index
    %c0_89 = arith.constant 0 : index
    %287 = vector.load %arg22[%286, %c0_88, %c0_89] : memref<16x2x128xf32, #tpu.memory_space<vmem>>, vector<1x2x128xf32>
    %288 = vector.shape_cast %287 : vector<1x2x128xf32> to vector<2x128xf32>
    %289 = vector.shape_cast %285 : vector<2x128xf32> to vector<1x2x128xf32>
    tpu.vector_store %arg22[%286, %c0_88, %c0_89], %289 {strides = array<i32>} : memref<16x2x128xf32, #tpu.memory_space<vmem>>, vector<1x2x128xf32>,
    %c8_i32 = arith.constant 8 : i32
    %290 = arith.index_cast %c8_i32 : i32 to index
    %c0_90 = arith.constant 0 : index
    %c0_91 = arith.constant 0 : index
    %291 = vector.load %arg21[%290, %c0_90, %c0_91] : memref<16x2x512xf32, #tpu.memory_space<vmem>>, vector<1x2x512xf32>
    %292 = vector.shape_cast %291 : vector<1x2x512xf32> to vector<2x512xf32>
    %c0_92 = arith.constant 0 : index
    %c0_93 = arith.constant 0 : index
    %293 = vector.load %arg2[%c0_92, %c0_93] : memref<128x512xf32, #tpu.memory_space<vmem>>, vector<128x512xf32>
    %cst_94 = arith.constant dense<0.000000e+00> : vector<2x512xf32>
    %294 = tpu.matmul %285, %293, %cst_94 {dimension_numbers = #tpu.dot_dimension_numbers<[1], [0], [0], [1], [0, 0, 1, 1], [], []>} : vector<2x128xf32>, vector<128x512xf32>, vector<2x512xf32> -> vector<2x512xf32>
    %295 = arith.addf %292, %294 : vector<2x512xf32>
    %296 = vector.extract_strided_slice %295 {offsets = [0, 0], sizes = [2, 128], strides = [1, 1]} : vector<2x512xf32> to vector<2x128xf32>
    %297 = arith.negf %296 : vector<2x128xf32>
    %298 = math.exp %297 : vector<2x128xf32>
    %cst_95 = arith.constant 1.000000e+00 : f32
    %299 = vector.broadcast %cst_95 : f32 to vector<2x128xf32>
    %300 = arith.addf %299, %298 : vector<2x128xf32>
    %301 = arith.divf %299, %300 : vector<2x128xf32>
    %302 = vector.extract_strided_slice %295 {offsets = [0, 128], sizes = [2, 128], strides = [1, 1]} : vector<2x512xf32> to vector<2x128xf32>
    %303 = arith.negf %302 : vector<2x128xf32>
    %304 = math.exp %303 : vector<2x128xf32>
    %cst_96 = arith.constant 1.000000e+00 : f32
    %305 = vector.broadcast %cst_96 : f32 to vector<2x128xf32>
    %306 = arith.addf %305, %304 : vector<2x128xf32>
    %307 = arith.divf %305, %306 : vector<2x128xf32>
    %308 = vector.extract_strided_slice %295 {offsets = [0, 256], sizes = [2, 128], strides = [1, 1]} : vector<2x512xf32> to vector<2x128xf32>
    %309 = math.tanh %308 : vector<2x128xf32>
    %310 = vector.extract_strided_slice %295 {offsets = [0, 384], sizes = [2, 128], strides = [1, 1]} : vector<2x512xf32> to vector<2x128xf32>
    %311 = arith.negf %310 : vector<2x128xf32>
    %312 = math.exp %311 : vector<2x128xf32>
    %cst_97 = arith.constant 1.000000e+00 : f32
    %313 = vector.broadcast %cst_97 : f32 to vector<2x128xf32>
    %314 = arith.addf %313, %312 : vector<2x128xf32>
    %315 = arith.divf %313, %314 : vector<2x128xf32>
    %316 = arith.mulf %307, %283 : vector<2x128xf32>
    %317 = arith.mulf %301, %309 : vector<2x128xf32>
    %318 = arith.addf %316, %317 : vector<2x128xf32>
    %319 = math.tanh %318 : vector<2x128xf32>
    %320 = arith.mulf %315, %319 : vector<2x128xf32>
    %321 = arith.index_cast %c8_i32 : i32 to index
    %c0_98 = arith.constant 0 : index
    %c0_99 = arith.constant 0 : index
    %322 = vector.load %arg22[%321, %c0_98, %c0_99] : memref<16x2x128xf32, #tpu.memory_space<vmem>>, vector<1x2x128xf32>
    %323 = vector.shape_cast %322 : vector<1x2x128xf32> to vector<2x128xf32>
    %324 = vector.shape_cast %320 : vector<2x128xf32> to vector<1x2x128xf32>
    tpu.vector_store %arg22[%321, %c0_98, %c0_99], %324 {strides = array<i32>} : memref<16x2x128xf32, #tpu.memory_space<vmem>>, vector<1x2x128xf32>,
    %c9_i32 = arith.constant 9 : i32
    %325 = arith.index_cast %c9_i32 : i32 to index
    %c0_100 = arith.constant 0 : index
    %c0_101 = arith.constant 0 : index
    %326 = vector.load %arg21[%325, %c0_100, %c0_101] : memref<16x2x512xf32, #tpu.memory_space<vmem>>, vector<1x2x512xf32>
    %327 = vector.shape_cast %326 : vector<1x2x512xf32> to vector<2x512xf32>
    %c0_102 = arith.constant 0 : index
    %c0_103 = arith.constant 0 : index
    %328 = vector.load %arg2[%c0_102, %c0_103] : memref<128x512xf32, #tpu.memory_space<vmem>>, vector<128x512xf32>
    %cst_104 = arith.constant dense<0.000000e+00> : vector<2x512xf32>
    %329 = tpu.matmul %320, %328, %cst_104 {dimension_numbers = #tpu.dot_dimension_numbers<[1], [0], [0], [1], [0, 0, 1, 1], [], []>} : vector<2x128xf32>, vector<128x512xf32>, vector<2x512xf32> -> vector<2x512xf32>
    %330 = arith.addf %327, %329 : vector<2x512xf32>
    %331 = vector.extract_strided_slice %330 {offsets = [0, 0], sizes = [2, 128], strides = [1, 1]} : vector<2x512xf32> to vector<2x128xf32>
    %332 = arith.negf %331 : vector<2x128xf32>
    %333 = math.exp %332 : vector<2x128xf32>
    %cst_105 = arith.constant 1.000000e+00 : f32
    %334 = vector.broadcast %cst_105 : f32 to vector<2x128xf32>
    %335 = arith.addf %334, %333 : vector<2x128xf32>
    %336 = arith.divf %334, %335 : vector<2x128xf32>
    %337 = vector.extract_strided_slice %330 {offsets = [0, 128], sizes = [2, 128], strides = [1, 1]} : vector<2x512xf32> to vector<2x128xf32>
    %338 = arith.negf %337 : vector<2x128xf32>
    %339 = math.exp %338 : vector<2x128xf32>
    %cst_106 = arith.constant 1.000000e+00 : f32
    %340 = vector.broadcast %cst_106 : f32 to vector<2x128xf32>
    %341 = arith.addf %340, %339 : vector<2x128xf32>
    %342 = arith.divf %340, %341 : vector<2x128xf32>
    %343 = vector.extract_strided_slice %330 {offsets = [0, 256], sizes = [2, 128], strides = [1, 1]} : vector<2x512xf32> to vector<2x128xf32>
    %344 = math.tanh %343 : vector<2x128xf32>
    %345 = vector.extract_strided_slice %330 {offsets = [0, 384], sizes = [2, 128], strides = [1, 1]} : vector<2x512xf32> to vector<2x128xf32>
    %346 = arith.negf %345 : vector<2x128xf32>
    %347 = math.exp %346 : vector<2x128xf32>
    %cst_107 = arith.constant 1.000000e+00 : f32
    %348 = vector.broadcast %cst_107 : f32 to vector<2x128xf32>
    %349 = arith.addf %348, %347 : vector<2x128xf32>
    %350 = arith.divf %348, %349 : vector<2x128xf32>
    %351 = arith.mulf %342, %318 : vector<2x128xf32>
    %352 = arith.mulf %336, %344 : vector<2x128xf32>
    %353 = arith.addf %351, %352 : vector<2x128xf32>
    %354 = math.tanh %353 : vector<2x128xf32>
    %355 = arith.mulf %350, %354 : vector<2x128xf32>
    %356 = arith.index_cast %c9_i32 : i32 to index
    %c0_108 = arith.constant 0 : index
    %c0_109 = arith.constant 0 : index
    %357 = vector.load %arg22[%356, %c0_108, %c0_109] : memref<16x2x128xf32, #tpu.memory_space<vmem>>, vector<1x2x128xf32>
    %358 = vector.shape_cast %357 : vector<1x2x128xf32> to vector<2x128xf32>
    %359 = vector.shape_cast %355 : vector<2x128xf32> to vector<1x2x128xf32>
    tpu.vector_store %arg22[%356, %c0_108, %c0_109], %359 {strides = array<i32>} : memref<16x2x128xf32, #tpu.memory_space<vmem>>, vector<1x2x128xf32>,
    %c10_i32 = arith.constant 10 : i32
    %360 = arith.index_cast %c10_i32 : i32 to index
    %c0_110 = arith.constant 0 : index
    %c0_111 = arith.constant 0 : index
    %361 = vector.load %arg21[%360, %c0_110, %c0_111] : memref<16x2x512xf32, #tpu.memory_space<vmem>>, vector<1x2x512xf32>
    %362 = vector.shape_cast %361 : vector<1x2x512xf32> to vector<2x512xf32>
    %c0_112 = arith.constant 0 : index
    %c0_113 = arith.constant 0 : index
    %363 = vector.load %arg2[%c0_112, %c0_113] : memref<128x512xf32, #tpu.memory_space<vmem>>, vector<128x512xf32>
    %cst_114 = arith.constant dense<0.000000e+00> : vector<2x512xf32>
    %364 = tpu.matmul %355, %363, %cst_114 {dimension_numbers = #tpu.dot_dimension_numbers<[1], [0], [0], [1], [0, 0, 1, 1], [], []>} : vector<2x128xf32>, vector<128x512xf32>, vector<2x512xf32> -> vector<2x512xf32>
    %365 = arith.addf %362, %364 : vector<2x512xf32>
    %366 = vector.extract_strided_slice %365 {offsets = [0, 0], sizes = [2, 128], strides = [1, 1]} : vector<2x512xf32> to vector<2x128xf32>
    %367 = arith.negf %366 : vector<2x128xf32>
    %368 = math.exp %367 : vector<2x128xf32>
    %cst_115 = arith.constant 1.000000e+00 : f32
    %369 = vector.broadcast %cst_115 : f32 to vector<2x128xf32>
    %370 = arith.addf %369, %368 : vector<2x128xf32>
    %371 = arith.divf %369, %370 : vector<2x128xf32>
    %372 = vector.extract_strided_slice %365 {offsets = [0, 128], sizes = [2, 128], strides = [1, 1]} : vector<2x512xf32> to vector<2x128xf32>
    %373 = arith.negf %372 : vector<2x128xf32>
    %374 = math.exp %373 : vector<2x128xf32>
    %cst_116 = arith.constant 1.000000e+00 : f32
    %375 = vector.broadcast %cst_116 : f32 to vector<2x128xf32>
    %376 = arith.addf %375, %374 : vector<2x128xf32>
    %377 = arith.divf %375, %376 : vector<2x128xf32>
    %378 = vector.extract_strided_slice %365 {offsets = [0, 256], sizes = [2, 128], strides = [1, 1]} : vector<2x512xf32> to vector<2x128xf32>
    %379 = math.tanh %378 : vector<2x128xf32>
    %380 = vector.extract_strided_slice %365 {offsets = [0, 384], sizes = [2, 128], strides = [1, 1]} : vector<2x512xf32> to vector<2x128xf32>
    %381 = arith.negf %380 : vector<2x128xf32>
    %382 = math.exp %381 : vector<2x128xf32>
    %cst_117 = arith.constant 1.000000e+00 : f32
    %383 = vector.broadcast %cst_117 : f32 to vector<2x128xf32>
    %384 = arith.addf %383, %382 : vector<2x128xf32>
    %385 = arith.divf %383, %384 : vector<2x128xf32>
    %386 = arith.mulf %377, %353 : vector<2x128xf32>
    %387 = arith.mulf %371, %379 : vector<2x128xf32>
    %388 = arith.addf %386, %387 : vector<2x128xf32>
    %389 = math.tanh %388 : vector<2x128xf32>
    %390 = arith.mulf %385, %389 : vector<2x128xf32>
    %391 = arith.index_cast %c10_i32 : i32 to index
    %c0_118 = arith.constant 0 : index
    %c0_119 = arith.constant 0 : index
    %392 = vector.load %arg22[%391, %c0_118, %c0_119] : memref<16x2x128xf32, #tpu.memory_space<vmem>>, vector<1x2x128xf32>
    %393 = vector.shape_cast %392 : vector<1x2x128xf32> to vector<2x128xf32>
    %394 = vector.shape_cast %390 : vector<2x128xf32> to vector<1x2x128xf32>
    tpu.vector_store %arg22[%391, %c0_118, %c0_119], %394 {strides = array<i32>} : memref<16x2x128xf32, #tpu.memory_space<vmem>>, vector<1x2x128xf32>,
    %c11_i32 = arith.constant 11 : i32
    %395 = arith.index_cast %c11_i32 : i32 to index
    %c0_120 = arith.constant 0 : index
    %c0_121 = arith.constant 0 : index
    %396 = vector.load %arg21[%395, %c0_120, %c0_121] : memref<16x2x512xf32, #tpu.memory_space<vmem>>, vector<1x2x512xf32>
    %397 = vector.shape_cast %396 : vector<1x2x512xf32> to vector<2x512xf32>
    %c0_122 = arith.constant 0 : index
    %c0_123 = arith.constant 0 : index
    %398 = vector.load %arg2[%c0_122, %c0_123] : memref<128x512xf32, #tpu.memory_space<vmem>>, vector<128x512xf32>
    %cst_124 = arith.constant dense<0.000000e+00> : vector<2x512xf32>
    %399 = tpu.matmul %390, %398, %cst_124 {dimension_numbers = #tpu.dot_dimension_numbers<[1], [0], [0], [1], [0, 0, 1, 1], [], []>} : vector<2x128xf32>, vector<128x512xf32>, vector<2x512xf32> -> vector<2x512xf32>
    %400 = arith.addf %397, %399 : vector<2x512xf32>
    %401 = vector.extract_strided_slice %400 {offsets = [0, 0], sizes = [2, 128], strides = [1, 1]} : vector<2x512xf32> to vector<2x128xf32>
    %402 = arith.negf %401 : vector<2x128xf32>
    %403 = math.exp %402 : vector<2x128xf32>
    %cst_125 = arith.constant 1.000000e+00 : f32
    %404 = vector.broadcast %cst_125 : f32 to vector<2x128xf32>
    %405 = arith.addf %404, %403 : vector<2x128xf32>
    %406 = arith.divf %404, %405 : vector<2x128xf32>
    %407 = vector.extract_strided_slice %400 {offsets = [0, 128], sizes = [2, 128], strides = [1, 1]} : vector<2x512xf32> to vector<2x128xf32>
    %408 = arith.negf %407 : vector<2x128xf32>
    %409 = math.exp %408 : vector<2x128xf32>
    %cst_126 = arith.constant 1.000000e+00 : f32
    %410 = vector.broadcast %cst_126 : f32 to vector<2x128xf32>
    %411 = arith.addf %410, %409 : vector<2x128xf32>
    %412 = arith.divf %410, %411 : vector<2x128xf32>
    %413 = vector.extract_strided_slice %400 {offsets = [0, 256], sizes = [2, 128], strides = [1, 1]} : vector<2x512xf32> to vector<2x128xf32>
    %414 = math.tanh %413 : vector<2x128xf32>
    %415 = vector.extract_strided_slice %400 {offsets = [0, 384], sizes = [2, 128], strides = [1, 1]} : vector<2x512xf32> to vector<2x128xf32>
    %416 = arith.negf %415 : vector<2x128xf32>
    %417 = math.exp %416 : vector<2x128xf32>
    %cst_127 = arith.constant 1.000000e+00 : f32
    %418 = vector.broadcast %cst_127 : f32 to vector<2x128xf32>
    %419 = arith.addf %418, %417 : vector<2x128xf32>
    %420 = arith.divf %418, %419 : vector<2x128xf32>
    %421 = arith.mulf %412, %388 : vector<2x128xf32>
    %422 = arith.mulf %406, %414 : vector<2x128xf32>
    %423 = arith.addf %421, %422 : vector<2x128xf32>
    %424 = math.tanh %423 : vector<2x128xf32>
    %425 = arith.mulf %420, %424 : vector<2x128xf32>
    %426 = arith.index_cast %c11_i32 : i32 to index
    %c0_128 = arith.constant 0 : index
    %c0_129 = arith.constant 0 : index
    %427 = vector.load %arg22[%426, %c0_128, %c0_129] : memref<16x2x128xf32, #tpu.memory_space<vmem>>, vector<1x2x128xf32>
    %428 = vector.shape_cast %427 : vector<1x2x128xf32> to vector<2x128xf32>
    %429 = vector.shape_cast %425 : vector<2x128xf32> to vector<1x2x128xf32>
    tpu.vector_store %arg22[%426, %c0_128, %c0_129], %429 {strides = array<i32>} : memref<16x2x128xf32, #tpu.memory_space<vmem>>, vector<1x2x128xf32>,
    %c12_i32 = arith.constant 12 : i32
    %430 = arith.index_cast %c12_i32 : i32 to index
    %c0_130 = arith.constant 0 : index
    %c0_131 = arith.constant 0 : index
    %431 = vector.load %arg21[%430, %c0_130, %c0_131] : memref<16x2x512xf32, #tpu.memory_space<vmem>>, vector<1x2x512xf32>
    %432 = vector.shape_cast %431 : vector<1x2x512xf32> to vector<2x512xf32>
    %c0_132 = arith.constant 0 : index
    %c0_133 = arith.constant 0 : index
    %433 = vector.load %arg2[%c0_132, %c0_133] : memref<128x512xf32, #tpu.memory_space<vmem>>, vector<128x512xf32>
    %cst_134 = arith.constant dense<0.000000e+00> : vector<2x512xf32>
    %434 = tpu.matmul %425, %433, %cst_134 {dimension_numbers = #tpu.dot_dimension_numbers<[1], [0], [0], [1], [0, 0, 1, 1], [], []>} : vector<2x128xf32>, vector<128x512xf32>, vector<2x512xf32> -> vector<2x512xf32>
    %435 = arith.addf %432, %434 : vector<2x512xf32>
    %436 = vector.extract_strided_slice %435 {offsets = [0, 0], sizes = [2, 128], strides = [1, 1]} : vector<2x512xf32> to vector<2x128xf32>
    %437 = arith.negf %436 : vector<2x128xf32>
    %438 = math.exp %437 : vector<2x128xf32>
    %cst_135 = arith.constant 1.000000e+00 : f32
    %439 = vector.broadcast %cst_135 : f32 to vector<2x128xf32>
    %440 = arith.addf %439, %438 : vector<2x128xf32>
    %441 = arith.divf %439, %440 : vector<2x128xf32>
    %442 = vector.extract_strided_slice %435 {offsets = [0, 128], sizes = [2, 128], strides = [1, 1]} : vector<2x512xf32> to vector<2x128xf32>
    %443 = arith.negf %442 : vector<2x128xf32>
    %444 = math.exp %443 : vector<2x128xf32>
    %cst_136 = arith.constant 1.000000e+00 : f32
    %445 = vector.broadcast %cst_136 : f32 to vector<2x128xf32>
    %446 = arith.addf %445, %444 : vector<2x128xf32>
    %447 = arith.divf %445, %446 : vector<2x128xf32>
    %448 = vector.extract_strided_slice %435 {offsets = [0, 256], sizes = [2, 128], strides = [1, 1]} : vector<2x512xf32> to vector<2x128xf32>
    %449 = math.tanh %448 : vector<2x128xf32>
    %450 = vector.extract_strided_slice %435 {offsets = [0, 384], sizes = [2, 128], strides = [1, 1]} : vector<2x512xf32> to vector<2x128xf32>
    %451 = arith.negf %450 : vector<2x128xf32>
    %452 = math.exp %451 : vector<2x128xf32>
    %cst_137 = arith.constant 1.000000e+00 : f32
    %453 = vector.broadcast %cst_137 : f32 to vector<2x128xf32>
    %454 = arith.addf %453, %452 : vector<2x128xf32>
    %455 = arith.divf %453, %454 : vector<2x128xf32>
    %456 = arith.mulf %447, %423 : vector<2x128xf32>
    %457 = arith.mulf %441, %449 : vector<2x128xf32>
    %458 = arith.addf %456, %457 : vector<2x128xf32>
    %459 = math.tanh %458 : vector<2x128xf32>
    %460 = arith.mulf %455, %459 : vector<2x128xf32>
    %461 = arith.index_cast %c12_i32 : i32 to index
    %c0_138 = arith.constant 0 : index
    %c0_139 = arith.constant 0 : index
    %462 = vector.load %arg22[%461, %c0_138, %c0_139] : memref<16x2x128xf32, #tpu.memory_space<vmem>>, vector<1x2x128xf32>
    %463 = vector.shape_cast %462 : vector<1x2x128xf32> to vector<2x128xf32>
    %464 = vector.shape_cast %460 : vector<2x128xf32> to vector<1x2x128xf32>
    tpu.vector_store %arg22[%461, %c0_138, %c0_139], %464 {strides = array<i32>} : memref<16x2x128xf32, #tpu.memory_space<vmem>>, vector<1x2x128xf32>,
    %c13_i32 = arith.constant 13 : i32
    %465 = arith.index_cast %c13_i32 : i32 to index
    %c0_140 = arith.constant 0 : index
    %c0_141 = arith.constant 0 : index
    %466 = vector.load %arg21[%465, %c0_140, %c0_141] : memref<16x2x512xf32, #tpu.memory_space<vmem>>, vector<1x2x512xf32>
    %467 = vector.shape_cast %466 : vector<1x2x512xf32> to vector<2x512xf32>
    %c0_142 = arith.constant 0 : index
    %c0_143 = arith.constant 0 : index
    %468 = vector.load %arg2[%c0_142, %c0_143] : memref<128x512xf32, #tpu.memory_space<vmem>>, vector<128x512xf32>
    %cst_144 = arith.constant dense<0.000000e+00> : vector<2x512xf32>
    %469 = tpu.matmul %460, %468, %cst_144 {dimension_numbers = #tpu.dot_dimension_numbers<[1], [0], [0], [1], [0, 0, 1, 1], [], []>} : vector<2x128xf32>, vector<128x512xf32>, vector<2x512xf32> -> vector<2x512xf32>
    %470 = arith.addf %467, %469 : vector<2x512xf32>
    %471 = vector.extract_strided_slice %470 {offsets = [0, 0], sizes = [2, 128], strides = [1, 1]} : vector<2x512xf32> to vector<2x128xf32>
    %472 = arith.negf %471 : vector<2x128xf32>
    %473 = math.exp %472 : vector<2x128xf32>
    %cst_145 = arith.constant 1.000000e+00 : f32
    %474 = vector.broadcast %cst_145 : f32 to vector<2x128xf32>
    %475 = arith.addf %474, %473 : vector<2x128xf32>
    %476 = arith.divf %474, %475 : vector<2x128xf32>
    %477 = vector.extract_strided_slice %470 {offsets = [0, 128], sizes = [2, 128], strides = [1, 1]} : vector<2x512xf32> to vector<2x128xf32>
    %478 = arith.negf %477 : vector<2x128xf32>
    %479 = math.exp %478 : vector<2x128xf32>
    %cst_146 = arith.constant 1.000000e+00 : f32
    %480 = vector.broadcast %cst_146 : f32 to vector<2x128xf32>
    %481 = arith.addf %480, %479 : vector<2x128xf32>
    %482 = arith.divf %480, %481 : vector<2x128xf32>
    %483 = vector.extract_strided_slice %470 {offsets = [0, 256], sizes = [2, 128], strides = [1, 1]} : vector<2x512xf32> to vector<2x128xf32>
    %484 = math.tanh %483 : vector<2x128xf32>
    %485 = vector.extract_strided_slice %470 {offsets = [0, 384], sizes = [2, 128], strides = [1, 1]} : vector<2x512xf32> to vector<2x128xf32>
    %486 = arith.negf %485 : vector<2x128xf32>
    %487 = math.exp %486 : vector<2x128xf32>
    %cst_147 = arith.constant 1.000000e+00 : f32
    %488 = vector.broadcast %cst_147 : f32 to vector<2x128xf32>
    %489 = arith.addf %488, %487 : vector<2x128xf32>
    %490 = arith.divf %488, %489 : vector<2x128xf32>
    %491 = arith.mulf %482, %458 : vector<2x128xf32>
    %492 = arith.mulf %476, %484 : vector<2x128xf32>
    %493 = arith.addf %491, %492 : vector<2x128xf32>
    %494 = math.tanh %493 : vector<2x128xf32>
    %495 = arith.mulf %490, %494 : vector<2x128xf32>
    %496 = arith.index_cast %c13_i32 : i32 to index
    %c0_148 = arith.constant 0 : index
    %c0_149 = arith.constant 0 : index
    %497 = vector.load %arg22[%496, %c0_148, %c0_149] : memref<16x2x128xf32, #tpu.memory_space<vmem>>, vector<1x2x128xf32>
    %498 = vector.shape_cast %497 : vector<1x2x128xf32> to vector<2x128xf32>
    %499 = vector.shape_cast %495 : vector<2x128xf32> to vector<1x2x128xf32>
    tpu.vector_store %arg22[%496, %c0_148, %c0_149], %499 {strides = array<i32>} : memref<16x2x128xf32, #tpu.memory_space<vmem>>, vector<1x2x128xf32>,
    %c14_i32 = arith.constant 14 : i32
    %500 = arith.index_cast %c14_i32 : i32 to index
    %c0_150 = arith.constant 0 : index
    %c0_151 = arith.constant 0 : index
    %501 = vector.load %arg21[%500, %c0_150, %c0_151] : memref<16x2x512xf32, #tpu.memory_space<vmem>>, vector<1x2x512xf32>
    %502 = vector.shape_cast %501 : vector<1x2x512xf32> to vector<2x512xf32>
    %c0_152 = arith.constant 0 : index
    %c0_153 = arith.constant 0 : index
    %503 = vector.load %arg2[%c0_152, %c0_153] : memref<128x512xf32, #tpu.memory_space<vmem>>, vector<128x512xf32>
    %cst_154 = arith.constant dense<0.000000e+00> : vector<2x512xf32>
    %504 = tpu.matmul %495, %503, %cst_154 {dimension_numbers = #tpu.dot_dimension_numbers<[1], [0], [0], [1], [0, 0, 1, 1], [], []>} : vector<2x128xf32>, vector<128x512xf32>, vector<2x512xf32> -> vector<2x512xf32>
    %505 = arith.addf %502, %504 : vector<2x512xf32>
    %506 = vector.extract_strided_slice %505 {offsets = [0, 0], sizes = [2, 128], strides = [1, 1]} : vector<2x512xf32> to vector<2x128xf32>
    %507 = arith.negf %506 : vector<2x128xf32>
    %508 = math.exp %507 : vector<2x128xf32>
    %cst_155 = arith.constant 1.000000e+00 : f32
    %509 = vector.broadcast %cst_155 : f32 to vector<2x128xf32>
    %510 = arith.addf %509, %508 : vector<2x128xf32>
    %511 = arith.divf %509, %510 : vector<2x128xf32>
    %512 = vector.extract_strided_slice %505 {offsets = [0, 128], sizes = [2, 128], strides = [1, 1]} : vector<2x512xf32> to vector<2x128xf32>
    %513 = arith.negf %512 : vector<2x128xf32>
    %514 = math.exp %513 : vector<2x128xf32>
    %cst_156 = arith.constant 1.000000e+00 : f32
    %515 = vector.broadcast %cst_156 : f32 to vector<2x128xf32>
    %516 = arith.addf %515, %514 : vector<2x128xf32>
    %517 = arith.divf %515, %516 : vector<2x128xf32>
    %518 = vector.extract_strided_slice %505 {offsets = [0, 256], sizes = [2, 128], strides = [1, 1]} : vector<2x512xf32> to vector<2x128xf32>
    %519 = math.tanh %518 : vector<2x128xf32>
    %520 = vector.extract_strided_slice %505 {offsets = [0, 384], sizes = [2, 128], strides = [1, 1]} : vector<2x512xf32> to vector<2x128xf32>
    %521 = arith.negf %520 : vector<2x128xf32>
    %522 = math.exp %521 : vector<2x128xf32>
    %cst_157 = arith.constant 1.000000e+00 : f32
    %523 = vector.broadcast %cst_157 : f32 to vector<2x128xf32>
    %524 = arith.addf %523, %522 : vector<2x128xf32>
    %525 = arith.divf %523, %524 : vector<2x128xf32>
    %526 = arith.mulf %517, %493 : vector<2x128xf32>
    %527 = arith.mulf %511, %519 : vector<2x128xf32>
    %528 = arith.addf %526, %527 : vector<2x128xf32>
    %529 = math.tanh %528 : vector<2x128xf32>
    %530 = arith.mulf %525, %529 : vector<2x128xf32>
    %531 = arith.index_cast %c14_i32 : i32 to index
    %c0_158 = arith.constant 0 : index
    %c0_159 = arith.constant 0 : index
    %532 = vector.load %arg22[%531, %c0_158, %c0_159] : memref<16x2x128xf32, #tpu.memory_space<vmem>>, vector<1x2x128xf32>
    %533 = vector.shape_cast %532 : vector<1x2x128xf32> to vector<2x128xf32>
    %534 = vector.shape_cast %530 : vector<2x128xf32> to vector<1x2x128xf32>
    tpu.vector_store %arg22[%531, %c0_158, %c0_159], %534 {strides = array<i32>} : memref<16x2x128xf32, #tpu.memory_space<vmem>>, vector<1x2x128xf32>,
    %c15_i32 = arith.constant 15 : i32
    %535 = arith.index_cast %c15_i32 : i32 to index
    %c0_160 = arith.constant 0 : index
    %c0_161 = arith.constant 0 : index
    %536 = vector.load %arg21[%535, %c0_160, %c0_161] : memref<16x2x512xf32, #tpu.memory_space<vmem>>, vector<1x2x512xf32>
    %537 = vector.shape_cast %536 : vector<1x2x512xf32> to vector<2x512xf32>
    %c0_162 = arith.constant 0 : index
    %c0_163 = arith.constant 0 : index
    %538 = vector.load %arg2[%c0_162, %c0_163] : memref<128x512xf32, #tpu.memory_space<vmem>>, vector<128x512xf32>
    %cst_164 = arith.constant dense<0.000000e+00> : vector<2x512xf32>
    %539 = tpu.matmul %530, %538, %cst_164 {dimension_numbers = #tpu.dot_dimension_numbers<[1], [0], [0], [1], [0, 0, 1, 1], [], []>} : vector<2x128xf32>, vector<128x512xf32>, vector<2x512xf32> -> vector<2x512xf32>
    %540 = arith.addf %537, %539 : vector<2x512xf32>
    %541 = vector.extract_strided_slice %540 {offsets = [0, 0], sizes = [2, 128], strides = [1, 1]} : vector<2x512xf32> to vector<2x128xf32>
    %542 = arith.negf %541 : vector<2x128xf32>
    %543 = math.exp %542 : vector<2x128xf32>
    %cst_165 = arith.constant 1.000000e+00 : f32
    %544 = vector.broadcast %cst_165 : f32 to vector<2x128xf32>
    %545 = arith.addf %544, %543 : vector<2x128xf32>
    %546 = arith.divf %544, %545 : vector<2x128xf32>
    %547 = vector.extract_strided_slice %540 {offsets = [0, 128], sizes = [2, 128], strides = [1, 1]} : vector<2x512xf32> to vector<2x128xf32>
    %548 = arith.negf %547 : vector<2x128xf32>
    %549 = math.exp %548 : vector<2x128xf32>
    %cst_166 = arith.constant 1.000000e+00 : f32
    %550 = vector.broadcast %cst_166 : f32 to vector<2x128xf32>
    %551 = arith.addf %550, %549 : vector<2x128xf32>
    %552 = arith.divf %550, %551 : vector<2x128xf32>
    %553 = vector.extract_strided_slice %540 {offsets = [0, 256], sizes = [2, 128], strides = [1, 1]} : vector<2x512xf32> to vector<2x128xf32>
    %554 = math.tanh %553 : vector<2x128xf32>
    %555 = vector.extract_strided_slice %540 {offsets = [0, 384], sizes = [2, 128], strides = [1, 1]} : vector<2x512xf32> to vector<2x128xf32>
    %556 = arith.negf %555 : vector<2x128xf32>
    %557 = math.exp %556 : vector<2x128xf32>
    %cst_167 = arith.constant 1.000000e+00 : f32
    %558 = vector.broadcast %cst_167 : f32 to vector<2x128xf32>
    %559 = arith.addf %558, %557 : vector<2x128xf32>
    %560 = arith.divf %558, %559 : vector<2x128xf32>
    %561 = arith.mulf %552, %528 : vector<2x128xf32>
    %562 = arith.mulf %546, %554 : vector<2x128xf32>
    %563 = arith.addf %561, %562 : vector<2x128xf32>
    %564 = math.tanh %563 : vector<2x128xf32>
    %565 = arith.mulf %560, %564 : vector<2x128xf32>
    %566 = arith.index_cast %c15_i32 : i32 to index
    %c0_168 = arith.constant 0 : index
    %c0_169 = arith.constant 0 : index
    %567 = vector.load %arg22[%566, %c0_168, %c0_169] : memref<16x2x128xf32, #tpu.memory_space<vmem>>, vector<1x2x128xf32>
    %568 = vector.shape_cast %567 : vector<1x2x128xf32> to vector<2x128xf32>
    %569 = vector.shape_cast %565 : vector<2x128xf32> to vector<1x2x128xf32>
    tpu.vector_store %arg22[%566, %c0_168, %c0_169], %569 {strides = array<i32>} : memref<16x2x128xf32, #tpu.memory_space<vmem>>, vector<1x2x128xf32>,
    %c16_i32 = arith.constant 16 : i32
    %c0_170 = arith.constant 0 : index
    %c0_171 = arith.constant 0 : index
    %c0_172 = arith.constant 0 : index
    %570 = vector.load %arg22[%c0_170, %c0_171, %c0_172] : memref<16x2x128xf32, #tpu.memory_space<vmem>>, vector<16x2x128xf32>
    %571 = vector.shape_cast %570 : vector<16x2x128xf32> to vector<32x128xf32>
    %c0_173 = arith.constant 0 : index
    %c0_174 = arith.constant 0 : index
    %572 = vector.load %arg4[%c0_173, %c0_174] : memref<128x512xf32, #tpu.memory_space<vmem>>, vector<128x512xf32>
    %cst_175 = arith.constant dense<0.000000e+00> : vector<32x512xf32>
    %573 = tpu.matmul %571, %572, %cst_175 {dimension_numbers = #tpu.dot_dimension_numbers<[1], [0], [0], [1], [0, 0, 1, 1], [], []>} : vector<32x128xf32>, vector<128x512xf32>, vector<32x512xf32> -> vector<32x512xf32>
    %c0_176 = arith.constant 0 : index
    %c0_177 = arith.constant 0 : index
    %574 = vector.load %arg6[%c0_176, %c0_177] : memref<1x512xf32, #tpu.memory_space<vmem>>, vector<1x512xf32>
    %575 = vector.broadcast %574 : vector<1x512xf32> to vector<32x512xf32>
    %576 = arith.addf %573, %575 : vector<32x512xf32>
    %577 = vector.shape_cast %576 : vector<32x512xf32> to vector<16x2x512xf32>
    %c0_178 = arith.constant 0 : index
    %c0_179 = arith.constant 0 : index
    %c0_180 = arith.constant 0 : index
    %578 = vector.load %arg21[%c0_178, %c0_179, %c0_180] : memref<16x2x512xf32, #tpu.memory_space<vmem>>, vector<16x2x512xf32>
    tpu.vector_store %arg21[%c0_178, %c0_179, %c0_180], %577 {strides = array<i32>} : memref<16x2x512xf32, #tpu.memory_space<vmem>>, vector<16x2x512xf32>,
    %cst_181 = arith.constant 0.000000e+00 : f32
    %579 = vector.broadcast %cst_181 : f32 to vector<2x128xf32>
    %c0_i32_182 = arith.constant 0 : i32
    %580 = arith.index_cast %c0_i32_182 : i32 to index
    %c0_183 = arith.constant 0 : index
    %c0_184 = arith.constant 0 : index
    %581 = vector.load %arg21[%580, %c0_183, %c0_184] : memref<16x2x512xf32, #tpu.memory_space<vmem>>, vector<1x2x512xf32>
    %582 = vector.shape_cast %581 : vector<1x2x512xf32> to vector<2x512xf32>
    %c0_185 = arith.constant 0 : index
    %c0_186 = arith.constant 0 : index
    %583 = vector.load %arg5[%c0_185, %c0_186] : memref<128x512xf32, #tpu.memory_space<vmem>>, vector<128x512xf32>
    %cst_187 = arith.constant dense<0.000000e+00> : vector<2x512xf32>
    %584 = tpu.matmul %579, %583, %cst_187 {dimension_numbers = #tpu.dot_dimension_numbers<[1], [0], [0], [1], [0, 0, 1, 1], [], []>} : vector<2x128xf32>, vector<128x512xf32>, vector<2x512xf32> -> vector<2x512xf32>
    %585 = arith.addf %582, %584 : vector<2x512xf32>
    %586 = vector.extract_strided_slice %585 {offsets = [0, 0], sizes = [2, 128], strides = [1, 1]} : vector<2x512xf32> to vector<2x128xf32>
    %587 = arith.negf %586 : vector<2x128xf32>
    %588 = math.exp %587 : vector<2x128xf32>
    %cst_188 = arith.constant 1.000000e+00 : f32
    %589 = vector.broadcast %cst_188 : f32 to vector<2x128xf32>
    %590 = arith.addf %589, %588 : vector<2x128xf32>
    %591 = arith.divf %589, %590 : vector<2x128xf32>
    %592 = vector.extract_strided_slice %585 {offsets = [0, 128], sizes = [2, 128], strides = [1, 1]} : vector<2x512xf32> to vector<2x128xf32>
    %593 = arith.negf %592 : vector<2x128xf32>
    %594 = math.exp %593 : vector<2x128xf32>
    %cst_189 = arith.constant 1.000000e+00 : f32
    %595 = vector.broadcast %cst_189 : f32 to vector<2x128xf32>
    %596 = arith.addf %595, %594 : vector<2x128xf32>
    %597 = arith.divf %595, %596 : vector<2x128xf32>
    %598 = vector.extract_strided_slice %585 {offsets = [0, 256], sizes = [2, 128], strides = [1, 1]} : vector<2x512xf32> to vector<2x128xf32>
    %599 = math.tanh %598 : vector<2x128xf32>
    %600 = vector.extract_strided_slice %585 {offsets = [0, 384], sizes = [2, 128], strides = [1, 1]} : vector<2x512xf32> to vector<2x128xf32>
    %601 = arith.negf %600 : vector<2x128xf32>
    %602 = math.exp %601 : vector<2x128xf32>
    %cst_190 = arith.constant 1.000000e+00 : f32
    %603 = vector.broadcast %cst_190 : f32 to vector<2x128xf32>
    %604 = arith.addf %603, %602 : vector<2x128xf32>
    %605 = arith.divf %603, %604 : vector<2x128xf32>
    %606 = arith.mulf %597, %579 : vector<2x128xf32>
    %607 = arith.mulf %591, %599 : vector<2x128xf32>
    %608 = arith.addf %606, %607 : vector<2x128xf32>
    %609 = math.tanh %608 : vector<2x128xf32>
    %610 = arith.mulf %605, %609 : vector<2x128xf32>
    %c1_i32_191 = arith.constant 1 : i32
    %611 = arith.index_cast %c1_i32_191 : i32 to index
    %c0_192 = arith.constant 0 : index
    %c0_193 = arith.constant 0 : index
    %612 = vector.load %arg21[%611, %c0_192, %c0_193] : memref<16x2x512xf32, #tpu.memory_space<vmem>>, vector<1x2x512xf32>
    %613 = vector.shape_cast %612 : vector<1x2x512xf32> to vector<2x512xf32>
    %c0_194 = arith.constant 0 : index
    %c0_195 = arith.constant 0 : index
    %614 = vector.load %arg5[%c0_194, %c0_195] : memref<128x512xf32, #tpu.memory_space<vmem>>, vector<128x512xf32>
    %cst_196 = arith.constant dense<0.000000e+00> : vector<2x512xf32>
    %615 = tpu.matmul %610, %614, %cst_196 {dimension_numbers = #tpu.dot_dimension_numbers<[1], [0], [0], [1], [0, 0, 1, 1], [], []>} : vector<2x128xf32>, vector<128x512xf32>, vector<2x512xf32> -> vector<2x512xf32>
    %616 = arith.addf %613, %615 : vector<2x512xf32>
    %617 = vector.extract_strided_slice %616 {offsets = [0, 0], sizes = [2, 128], strides = [1, 1]} : vector<2x512xf32> to vector<2x128xf32>
    %618 = arith.negf %617 : vector<2x128xf32>
    %619 = math.exp %618 : vector<2x128xf32>
    %cst_197 = arith.constant 1.000000e+00 : f32
    %620 = vector.broadcast %cst_197 : f32 to vector<2x128xf32>
    %621 = arith.addf %620, %619 : vector<2x128xf32>
    %622 = arith.divf %620, %621 : vector<2x128xf32>
    %623 = vector.extract_strided_slice %616 {offsets = [0, 128], sizes = [2, 128], strides = [1, 1]} : vector<2x512xf32> to vector<2x128xf32>
    %624 = arith.negf %623 : vector<2x128xf32>
    %625 = math.exp %624 : vector<2x128xf32>
    %cst_198 = arith.constant 1.000000e+00 : f32
    %626 = vector.broadcast %cst_198 : f32 to vector<2x128xf32>
    %627 = arith.addf %626, %625 : vector<2x128xf32>
    %628 = arith.divf %626, %627 : vector<2x128xf32>
    %629 = vector.extract_strided_slice %616 {offsets = [0, 256], sizes = [2, 128], strides = [1, 1]} : vector<2x512xf32> to vector<2x128xf32>
    %630 = math.tanh %629 : vector<2x128xf32>
    %631 = vector.extract_strided_slice %616 {offsets = [0, 384], sizes = [2, 128], strides = [1, 1]} : vector<2x512xf32> to vector<2x128xf32>
    %632 = arith.negf %631 : vector<2x128xf32>
    %633 = math.exp %632 : vector<2x128xf32>
    %cst_199 = arith.constant 1.000000e+00 : f32
    %634 = vector.broadcast %cst_199 : f32 to vector<2x128xf32>
    %635 = arith.addf %634, %633 : vector<2x128xf32>
    %636 = arith.divf %634, %635 : vector<2x128xf32>
    %637 = arith.mulf %628, %608 : vector<2x128xf32>
    %638 = arith.mulf %622, %630 : vector<2x128xf32>
    %639 = arith.addf %637, %638 : vector<2x128xf32>
    %640 = math.tanh %639 : vector<2x128xf32>
    %641 = arith.mulf %636, %640 : vector<2x128xf32>
    %c2_i32_200 = arith.constant 2 : i32
    %642 = arith.index_cast %c2_i32_200 : i32 to index
    %c0_201 = arith.constant 0 : index
    %c0_202 = arith.constant 0 : index
    %643 = vector.load %arg21[%642, %c0_201, %c0_202] : memref<16x2x512xf32, #tpu.memory_space<vmem>>, vector<1x2x512xf32>
    %644 = vector.shape_cast %643 : vector<1x2x512xf32> to vector<2x512xf32>
    %c0_203 = arith.constant 0 : index
    %c0_204 = arith.constant 0 : index
    %645 = vector.load %arg5[%c0_203, %c0_204] : memref<128x512xf32, #tpu.memory_space<vmem>>, vector<128x512xf32>
    %cst_205 = arith.constant dense<0.000000e+00> : vector<2x512xf32>
    %646 = tpu.matmul %641, %645, %cst_205 {dimension_numbers = #tpu.dot_dimension_numbers<[1], [0], [0], [1], [0, 0, 1, 1], [], []>} : vector<2x128xf32>, vector<128x512xf32>, vector<2x512xf32> -> vector<2x512xf32>
    %647 = arith.addf %644, %646 : vector<2x512xf32>
    %648 = vector.extract_strided_slice %647 {offsets = [0, 0], sizes = [2, 128], strides = [1, 1]} : vector<2x512xf32> to vector<2x128xf32>
    %649 = arith.negf %648 : vector<2x128xf32>
    %650 = math.exp %649 : vector<2x128xf32>
    %cst_206 = arith.constant 1.000000e+00 : f32
    %651 = vector.broadcast %cst_206 : f32 to vector<2x128xf32>
    %652 = arith.addf %651, %650 : vector<2x128xf32>
    %653 = arith.divf %651, %652 : vector<2x128xf32>
    %654 = vector.extract_strided_slice %647 {offsets = [0, 128], sizes = [2, 128], strides = [1, 1]} : vector<2x512xf32> to vector<2x128xf32>
    %655 = arith.negf %654 : vector<2x128xf32>
    %656 = math.exp %655 : vector<2x128xf32>
    %cst_207 = arith.constant 1.000000e+00 : f32
    %657 = vector.broadcast %cst_207 : f32 to vector<2x128xf32>
    %658 = arith.addf %657, %656 : vector<2x128xf32>
    %659 = arith.divf %657, %658 : vector<2x128xf32>
    %660 = vector.extract_strided_slice %647 {offsets = [0, 256], sizes = [2, 128], strides = [1, 1]} : vector<2x512xf32> to vector<2x128xf32>
    %661 = math.tanh %660 : vector<2x128xf32>
    %662 = vector.extract_strided_slice %647 {offsets = [0, 384], sizes = [2, 128], strides = [1, 1]} : vector<2x512xf32> to vector<2x128xf32>
    %663 = arith.negf %662 : vector<2x128xf32>
    %664 = math.exp %663 : vector<2x128xf32>
    %cst_208 = arith.constant 1.000000e+00 : f32
    %665 = vector.broadcast %cst_208 : f32 to vector<2x128xf32>
    %666 = arith.addf %665, %664 : vector<2x128xf32>
    %667 = arith.divf %665, %666 : vector<2x128xf32>
    %668 = arith.mulf %659, %639 : vector<2x128xf32>
    %669 = arith.mulf %653, %661 : vector<2x128xf32>
    %670 = arith.addf %668, %669 : vector<2x128xf32>
    %671 = math.tanh %670 : vector<2x128xf32>
    %672 = arith.mulf %667, %671 : vector<2x128xf32>
    %c3_i32_209 = arith.constant 3 : i32
    %673 = arith.index_cast %c3_i32_209 : i32 to index
    %c0_210 = arith.constant 0 : index
    %c0_211 = arith.constant 0 : index
    %674 = vector.load %arg21[%673, %c0_210, %c0_211] : memref<16x2x512xf32, #tpu.memory_space<vmem>>, vector<1x2x512xf32>
    %675 = vector.shape_cast %674 : vector<1x2x512xf32> to vector<2x512xf32>
    %c0_212 = arith.constant 0 : index
    %c0_213 = arith.constant 0 : index
    %676 = vector.load %arg5[%c0_212, %c0_213] : memref<128x512xf32, #tpu.memory_space<vmem>>, vector<128x512xf32>
    %cst_214 = arith.constant dense<0.000000e+00> : vector<2x512xf32>
    %677 = tpu.matmul %672, %676, %cst_214 {dimension_numbers = #tpu.dot_dimension_numbers<[1], [0], [0], [1], [0, 0, 1, 1], [], []>} : vector<2x128xf32>, vector<128x512xf32>, vector<2x512xf32> -> vector<2x512xf32>
    %678 = arith.addf %675, %677 : vector<2x512xf32>
    %679 = vector.extract_strided_slice %678 {offsets = [0, 0], sizes = [2, 128], strides = [1, 1]} : vector<2x512xf32> to vector<2x128xf32>
    %680 = arith.negf %679 : vector<2x128xf32>
    %681 = math.exp %680 : vector<2x128xf32>
    %cst_215 = arith.constant 1.000000e+00 : f32
    %682 = vector.broadcast %cst_215 : f32 to vector<2x128xf32>
    %683 = arith.addf %682, %681 : vector<2x128xf32>
    %684 = arith.divf %682, %683 : vector<2x128xf32>
    %685 = vector.extract_strided_slice %678 {offsets = [0, 128], sizes = [2, 128], strides = [1, 1]} : vector<2x512xf32> to vector<2x128xf32>
    %686 = arith.negf %685 : vector<2x128xf32>
    %687 = math.exp %686 : vector<2x128xf32>
    %cst_216 = arith.constant 1.000000e+00 : f32
    %688 = vector.broadcast %cst_216 : f32 to vector<2x128xf32>
    %689 = arith.addf %688, %687 : vector<2x128xf32>
    %690 = arith.divf %688, %689 : vector<2x128xf32>
    %691 = vector.extract_strided_slice %678 {offsets = [0, 256], sizes = [2, 128], strides = [1, 1]} : vector<2x512xf32> to vector<2x128xf32>
    %692 = math.tanh %691 : vector<2x128xf32>
    %693 = vector.extract_strided_slice %678 {offsets = [0, 384], sizes = [2, 128], strides = [1, 1]} : vector<2x512xf32> to vector<2x128xf32>
    %694 = arith.negf %693 : vector<2x128xf32>
    %695 = math.exp %694 : vector<2x128xf32>
    %cst_217 = arith.constant 1.000000e+00 : f32
    %696 = vector.broadcast %cst_217 : f32 to vector<2x128xf32>
    %697 = arith.addf %696, %695 : vector<2x128xf32>
    %698 = arith.divf %696, %697 : vector<2x128xf32>
    %699 = arith.mulf %690, %670 : vector<2x128xf32>
    %700 = arith.mulf %684, %692 : vector<2x128xf32>
    %701 = arith.addf %699, %700 : vector<2x128xf32>
    %702 = math.tanh %701 : vector<2x128xf32>
    %703 = arith.mulf %698, %702 : vector<2x128xf32>
    %c4_i32_218 = arith.constant 4 : i32
    %704 = arith.index_cast %c4_i32_218 : i32 to index
    %c0_219 = arith.constant 0 : index
    %c0_220 = arith.constant 0 : index
    %705 = vector.load %arg21[%704, %c0_219, %c0_220] : memref<16x2x512xf32, #tpu.memory_space<vmem>>, vector<1x2x512xf32>
    %706 = vector.shape_cast %705 : vector<1x2x512xf32> to vector<2x512xf32>
    %c0_221 = arith.constant 0 : index
    %c0_222 = arith.constant 0 : index
    %707 = vector.load %arg5[%c0_221, %c0_222] : memref<128x512xf32, #tpu.memory_space<vmem>>, vector<128x512xf32>
    %cst_223 = arith.constant dense<0.000000e+00> : vector<2x512xf32>
    %708 = tpu.matmul %703, %707, %cst_223 {dimension_numbers = #tpu.dot_dimension_numbers<[1], [0], [0], [1], [0, 0, 1, 1], [], []>} : vector<2x128xf32>, vector<128x512xf32>, vector<2x512xf32> -> vector<2x512xf32>
    %709 = arith.addf %706, %708 : vector<2x512xf32>
    %710 = vector.extract_strided_slice %709 {offsets = [0, 0], sizes = [2, 128], strides = [1, 1]} : vector<2x512xf32> to vector<2x128xf32>
    %711 = arith.negf %710 : vector<2x128xf32>
    %712 = math.exp %711 : vector<2x128xf32>
    %cst_224 = arith.constant 1.000000e+00 : f32
    %713 = vector.broadcast %cst_224 : f32 to vector<2x128xf32>
    %714 = arith.addf %713, %712 : vector<2x128xf32>
    %715 = arith.divf %713, %714 : vector<2x128xf32>
    %716 = vector.extract_strided_slice %709 {offsets = [0, 128], sizes = [2, 128], strides = [1, 1]} : vector<2x512xf32> to vector<2x128xf32>
    %717 = arith.negf %716 : vector<2x128xf32>
    %718 = math.exp %717 : vector<2x128xf32>
    %cst_225 = arith.constant 1.000000e+00 : f32
    %719 = vector.broadcast %cst_225 : f32 to vector<2x128xf32>
    %720 = arith.addf %719, %718 : vector<2x128xf32>
    %721 = arith.divf %719, %720 : vector<2x128xf32>
    %722 = vector.extract_strided_slice %709 {offsets = [0, 256], sizes = [2, 128], strides = [1, 1]} : vector<2x512xf32> to vector<2x128xf32>
    %723 = math.tanh %722 : vector<2x128xf32>
    %724 = vector.extract_strided_slice %709 {offsets = [0, 384], sizes = [2, 128], strides = [1, 1]} : vector<2x512xf32> to vector<2x128xf32>
    %725 = arith.negf %724 : vector<2x128xf32>
    %726 = math.exp %725 : vector<2x128xf32>
    %cst_226 = arith.constant 1.000000e+00 : f32
    %727 = vector.broadcast %cst_226 : f32 to vector<2x128xf32>
    %728 = arith.addf %727, %726 : vector<2x128xf32>
    %729 = arith.divf %727, %728 : vector<2x128xf32>
    %730 = arith.mulf %721, %701 : vector<2x128xf32>
    %731 = arith.mulf %715, %723 : vector<2x128xf32>
    %732 = arith.addf %730, %731 : vector<2x128xf32>
    %733 = math.tanh %732 : vector<2x128xf32>
    %734 = arith.mulf %729, %733 : vector<2x128xf32>
    %c5_i32_227 = arith.constant 5 : i32
    %735 = arith.index_cast %c5_i32_227 : i32 to index
    %c0_228 = arith.constant 0 : index
    %c0_229 = arith.constant 0 : index
    %736 = vector.load %arg21[%735, %c0_228, %c0_229] : memref<16x2x512xf32, #tpu.memory_space<vmem>>, vector<1x2x512xf32>
    %737 = vector.shape_cast %736 : vector<1x2x512xf32> to vector<2x512xf32>
    %c0_230 = arith.constant 0 : index
    %c0_231 = arith.constant 0 : index
    %738 = vector.load %arg5[%c0_230, %c0_231] : memref<128x512xf32, #tpu.memory_space<vmem>>, vector<128x512xf32>
    %cst_232 = arith.constant dense<0.000000e+00> : vector<2x512xf32>
    %739 = tpu.matmul %734, %738, %cst_232 {dimension_numbers = #tpu.dot_dimension_numbers<[1], [0], [0], [1], [0, 0, 1, 1], [], []>} : vector<2x128xf32>, vector<128x512xf32>, vector<2x512xf32> -> vector<2x512xf32>
    %740 = arith.addf %737, %739 : vector<2x512xf32>
    %741 = vector.extract_strided_slice %740 {offsets = [0, 0], sizes = [2, 128], strides = [1, 1]} : vector<2x512xf32> to vector<2x128xf32>
    %742 = arith.negf %741 : vector<2x128xf32>
    %743 = math.exp %742 : vector<2x128xf32>
    %cst_233 = arith.constant 1.000000e+00 : f32
    %744 = vector.broadcast %cst_233 : f32 to vector<2x128xf32>
    %745 = arith.addf %744, %743 : vector<2x128xf32>
    %746 = arith.divf %744, %745 : vector<2x128xf32>
    %747 = vector.extract_strided_slice %740 {offsets = [0, 128], sizes = [2, 128], strides = [1, 1]} : vector<2x512xf32> to vector<2x128xf32>
    %748 = arith.negf %747 : vector<2x128xf32>
    %749 = math.exp %748 : vector<2x128xf32>
    %cst_234 = arith.constant 1.000000e+00 : f32
    %750 = vector.broadcast %cst_234 : f32 to vector<2x128xf32>
    %751 = arith.addf %750, %749 : vector<2x128xf32>
    %752 = arith.divf %750, %751 : vector<2x128xf32>
    %753 = vector.extract_strided_slice %740 {offsets = [0, 256], sizes = [2, 128], strides = [1, 1]} : vector<2x512xf32> to vector<2x128xf32>
    %754 = math.tanh %753 : vector<2x128xf32>
    %755 = vector.extract_strided_slice %740 {offsets = [0, 384], sizes = [2, 128], strides = [1, 1]} : vector<2x512xf32> to vector<2x128xf32>
    %756 = arith.negf %755 : vector<2x128xf32>
    %757 = math.exp %756 : vector<2x128xf32>
    %cst_235 = arith.constant 1.000000e+00 : f32
    %758 = vector.broadcast %cst_235 : f32 to vector<2x128xf32>
    %759 = arith.addf %758, %757 : vector<2x128xf32>
    %760 = arith.divf %758, %759 : vector<2x128xf32>
    %761 = arith.mulf %752, %732 : vector<2x128xf32>
    %762 = arith.mulf %746, %754 : vector<2x128xf32>
    %763 = arith.addf %761, %762 : vector<2x128xf32>
    %764 = math.tanh %763 : vector<2x128xf32>
    %765 = arith.mulf %760, %764 : vector<2x128xf32>
    %c6_i32_236 = arith.constant 6 : i32
    %766 = arith.index_cast %c6_i32_236 : i32 to index
    %c0_237 = arith.constant 0 : index
    %c0_238 = arith.constant 0 : index
    %767 = vector.load %arg21[%766, %c0_237, %c0_238] : memref<16x2x512xf32, #tpu.memory_space<vmem>>, vector<1x2x512xf32>
    %768 = vector.shape_cast %767 : vector<1x2x512xf32> to vector<2x512xf32>
    %c0_239 = arith.constant 0 : index
    %c0_240 = arith.constant 0 : index
    %769 = vector.load %arg5[%c0_239, %c0_240] : memref<128x512xf32, #tpu.memory_space<vmem>>, vector<128x512xf32>
    %cst_241 = arith.constant dense<0.000000e+00> : vector<2x512xf32>
    %770 = tpu.matmul %765, %769, %cst_241 {dimension_numbers = #tpu.dot_dimension_numbers<[1], [0], [0], [1], [0, 0, 1, 1], [], []>} : vector<2x128xf32>, vector<128x512xf32>, vector<2x512xf32> -> vector<2x512xf32>
    %771 = arith.addf %768, %770 : vector<2x512xf32>
    %772 = vector.extract_strided_slice %771 {offsets = [0, 0], sizes = [2, 128], strides = [1, 1]} : vector<2x512xf32> to vector<2x128xf32>
    %773 = arith.negf %772 : vector<2x128xf32>
    %774 = math.exp %773 : vector<2x128xf32>
    %cst_242 = arith.constant 1.000000e+00 : f32
    %775 = vector.broadcast %cst_242 : f32 to vector<2x128xf32>
    %776 = arith.addf %775, %774 : vector<2x128xf32>
    %777 = arith.divf %775, %776 : vector<2x128xf32>
    %778 = vector.extract_strided_slice %771 {offsets = [0, 128], sizes = [2, 128], strides = [1, 1]} : vector<2x512xf32> to vector<2x128xf32>
    %779 = arith.negf %778 : vector<2x128xf32>
    %780 = math.exp %779 : vector<2x128xf32>
    %cst_243 = arith.constant 1.000000e+00 : f32
    %781 = vector.broadcast %cst_243 : f32 to vector<2x128xf32>
    %782 = arith.addf %781, %780 : vector<2x128xf32>
    %783 = arith.divf %781, %782 : vector<2x128xf32>
    %784 = vector.extract_strided_slice %771 {offsets = [0, 256], sizes = [2, 128], strides = [1, 1]} : vector<2x512xf32> to vector<2x128xf32>
    %785 = math.tanh %784 : vector<2x128xf32>
    %786 = vector.extract_strided_slice %771 {offsets = [0, 384], sizes = [2, 128], strides = [1, 1]} : vector<2x512xf32> to vector<2x128xf32>
    %787 = arith.negf %786 : vector<2x128xf32>
    %788 = math.exp %787 : vector<2x128xf32>
    %cst_244 = arith.constant 1.000000e+00 : f32
    %789 = vector.broadcast %cst_244 : f32 to vector<2x128xf32>
    %790 = arith.addf %789, %788 : vector<2x128xf32>
    %791 = arith.divf %789, %790 : vector<2x128xf32>
    %792 = arith.mulf %783, %763 : vector<2x128xf32>
    %793 = arith.mulf %777, %785 : vector<2x128xf32>
    %794 = arith.addf %792, %793 : vector<2x128xf32>
    %795 = math.tanh %794 : vector<2x128xf32>
    %796 = arith.mulf %791, %795 : vector<2x128xf32>
    %c7_i32_245 = arith.constant 7 : i32
    %797 = arith.index_cast %c7_i32_245 : i32 to index
    %c0_246 = arith.constant 0 : index
    %c0_247 = arith.constant 0 : index
    %798 = vector.load %arg21[%797, %c0_246, %c0_247] : memref<16x2x512xf32, #tpu.memory_space<vmem>>, vector<1x2x512xf32>
    %799 = vector.shape_cast %798 : vector<1x2x512xf32> to vector<2x512xf32>
    %c0_248 = arith.constant 0 : index
    %c0_249 = arith.constant 0 : index
    %800 = vector.load %arg5[%c0_248, %c0_249] : memref<128x512xf32, #tpu.memory_space<vmem>>, vector<128x512xf32>
    %cst_250 = arith.constant dense<0.000000e+00> : vector<2x512xf32>
    %801 = tpu.matmul %796, %800, %cst_250 {dimension_numbers = #tpu.dot_dimension_numbers<[1], [0], [0], [1], [0, 0, 1, 1], [], []>} : vector<2x128xf32>, vector<128x512xf32>, vector<2x512xf32> -> vector<2x512xf32>
    %802 = arith.addf %799, %801 : vector<2x512xf32>
    %803 = vector.extract_strided_slice %802 {offsets = [0, 0], sizes = [2, 128], strides = [1, 1]} : vector<2x512xf32> to vector<2x128xf32>
    %804 = arith.negf %803 : vector<2x128xf32>
    %805 = math.exp %804 : vector<2x128xf32>
    %cst_251 = arith.constant 1.000000e+00 : f32
    %806 = vector.broadcast %cst_251 : f32 to vector<2x128xf32>
    %807 = arith.addf %806, %805 : vector<2x128xf32>
    %808 = arith.divf %806, %807 : vector<2x128xf32>
    %809 = vector.extract_strided_slice %802 {offsets = [0, 128], sizes = [2, 128], strides = [1, 1]} : vector<2x512xf32> to vector<2x128xf32>
    %810 = arith.negf %809 : vector<2x128xf32>
    %811 = math.exp %810 : vector<2x128xf32>
    %cst_252 = arith.constant 1.000000e+00 : f32
    %812 = vector.broadcast %cst_252 : f32 to vector<2x128xf32>
    %813 = arith.addf %812, %811 : vector<2x128xf32>
    %814 = arith.divf %812, %813 : vector<2x128xf32>
    %815 = vector.extract_strided_slice %802 {offsets = [0, 256], sizes = [2, 128], strides = [1, 1]} : vector<2x512xf32> to vector<2x128xf32>
    %816 = math.tanh %815 : vector<2x128xf32>
    %817 = vector.extract_strided_slice %802 {offsets = [0, 384], sizes = [2, 128], strides = [1, 1]} : vector<2x512xf32> to vector<2x128xf32>
    %818 = arith.negf %817 : vector<2x128xf32>
    %819 = math.exp %818 : vector<2x128xf32>
    %cst_253 = arith.constant 1.000000e+00 : f32
    %820 = vector.broadcast %cst_253 : f32 to vector<2x128xf32>
    %821 = arith.addf %820, %819 : vector<2x128xf32>
    %822 = arith.divf %820, %821 : vector<2x128xf32>
    %823 = arith.mulf %814, %794 : vector<2x128xf32>
    %824 = arith.mulf %808, %816 : vector<2x128xf32>
    %825 = arith.addf %823, %824 : vector<2x128xf32>
    %826 = math.tanh %825 : vector<2x128xf32>
    %827 = arith.mulf %822, %826 : vector<2x128xf32>
    %c8_i32_254 = arith.constant 8 : i32
    %828 = arith.index_cast %c8_i32_254 : i32 to index
    %c0_255 = arith.constant 0 : index
    %c0_256 = arith.constant 0 : index
    %829 = vector.load %arg21[%828, %c0_255, %c0_256] : memref<16x2x512xf32, #tpu.memory_space<vmem>>, vector<1x2x512xf32>
    %830 = vector.shape_cast %829 : vector<1x2x512xf32> to vector<2x512xf32>
    %c0_257 = arith.constant 0 : index
    %c0_258 = arith.constant 0 : index
    %831 = vector.load %arg5[%c0_257, %c0_258] : memref<128x512xf32, #tpu.memory_space<vmem>>, vector<128x512xf32>
    %cst_259 = arith.constant dense<0.000000e+00> : vector<2x512xf32>
    %832 = tpu.matmul %827, %831, %cst_259 {dimension_numbers = #tpu.dot_dimension_numbers<[1], [0], [0], [1], [0, 0, 1, 1], [], []>} : vector<2x128xf32>, vector<128x512xf32>, vector<2x512xf32> -> vector<2x512xf32>
    %833 = arith.addf %830, %832 : vector<2x512xf32>
    %834 = vector.extract_strided_slice %833 {offsets = [0, 0], sizes = [2, 128], strides = [1, 1]} : vector<2x512xf32> to vector<2x128xf32>
    %835 = arith.negf %834 : vector<2x128xf32>
    %836 = math.exp %835 : vector<2x128xf32>
    %cst_260 = arith.constant 1.000000e+00 : f32
    %837 = vector.broadcast %cst_260 : f32 to vector<2x128xf32>
    %838 = arith.addf %837, %836 : vector<2x128xf32>
    %839 = arith.divf %837, %838 : vector<2x128xf32>
    %840 = vector.extract_strided_slice %833 {offsets = [0, 128], sizes = [2, 128], strides = [1, 1]} : vector<2x512xf32> to vector<2x128xf32>
    %841 = arith.negf %840 : vector<2x128xf32>
    %842 = math.exp %841 : vector<2x128xf32>
    %cst_261 = arith.constant 1.000000e+00 : f32
    %843 = vector.broadcast %cst_261 : f32 to vector<2x128xf32>
    %844 = arith.addf %843, %842 : vector<2x128xf32>
    %845 = arith.divf %843, %844 : vector<2x128xf32>
    %846 = vector.extract_strided_slice %833 {offsets = [0, 256], sizes = [2, 128], strides = [1, 1]} : vector<2x512xf32> to vector<2x128xf32>
    %847 = math.tanh %846 : vector<2x128xf32>
    %848 = vector.extract_strided_slice %833 {offsets = [0, 384], sizes = [2, 128], strides = [1, 1]} : vector<2x512xf32> to vector<2x128xf32>
    %849 = arith.negf %848 : vector<2x128xf32>
    %850 = math.exp %849 : vector<2x128xf32>
    %cst_262 = arith.constant 1.000000e+00 : f32
    %851 = vector.broadcast %cst_262 : f32 to vector<2x128xf32>
    %852 = arith.addf %851, %850 : vector<2x128xf32>
    %853 = arith.divf %851, %852 : vector<2x128xf32>
    %854 = arith.mulf %845, %825 : vector<2x128xf32>
    %855 = arith.mulf %839, %847 : vector<2x128xf32>
    %856 = arith.addf %854, %855 : vector<2x128xf32>
    %857 = math.tanh %856 : vector<2x128xf32>
    %858 = arith.mulf %853, %857 : vector<2x128xf32>
    %c9_i32_263 = arith.constant 9 : i32
    %859 = arith.index_cast %c9_i32_263 : i32 to index
    %c0_264 = arith.constant 0 : index
    %c0_265 = arith.constant 0 : index
    %860 = vector.load %arg21[%859, %c0_264, %c0_265] : memref<16x2x512xf32, #tpu.memory_space<vmem>>, vector<1x2x512xf32>
    %861 = vector.shape_cast %860 : vector<1x2x512xf32> to vector<2x512xf32>
    %c0_266 = arith.constant 0 : index
    %c0_267 = arith.constant 0 : index
    %862 = vector.load %arg5[%c0_266, %c0_267] : memref<128x512xf32, #tpu.memory_space<vmem>>, vector<128x512xf32>
    %cst_268 = arith.constant dense<0.000000e+00> : vector<2x512xf32>
    %863 = tpu.matmul %858, %862, %cst_268 {dimension_numbers = #tpu.dot_dimension_numbers<[1], [0], [0], [1], [0, 0, 1, 1], [], []>} : vector<2x128xf32>, vector<128x512xf32>, vector<2x512xf32> -> vector<2x512xf32>
    %864 = arith.addf %861, %863 : vector<2x512xf32>
    %865 = vector.extract_strided_slice %864 {offsets = [0, 0], sizes = [2, 128], strides = [1, 1]} : vector<2x512xf32> to vector<2x128xf32>
    %866 = arith.negf %865 : vector<2x128xf32>
    %867 = math.exp %866 : vector<2x128xf32>
    %cst_269 = arith.constant 1.000000e+00 : f32
    %868 = vector.broadcast %cst_269 : f32 to vector<2x128xf32>
    %869 = arith.addf %868, %867 : vector<2x128xf32>
    %870 = arith.divf %868, %869 : vector<2x128xf32>
    %871 = vector.extract_strided_slice %864 {offsets = [0, 128], sizes = [2, 128], strides = [1, 1]} : vector<2x512xf32> to vector<2x128xf32>
    %872 = arith.negf %871 : vector<2x128xf32>
    %873 = math.exp %872 : vector<2x128xf32>
    %cst_270 = arith.constant 1.000000e+00 : f32
    %874 = vector.broadcast %cst_270 : f32 to vector<2x128xf32>
    %875 = arith.addf %874, %873 : vector<2x128xf32>
    %876 = arith.divf %874, %875 : vector<2x128xf32>
    %877 = vector.extract_strided_slice %864 {offsets = [0, 256], sizes = [2, 128], strides = [1, 1]} : vector<2x512xf32> to vector<2x128xf32>
    %878 = math.tanh %877 : vector<2x128xf32>
    %879 = vector.extract_strided_slice %864 {offsets = [0, 384], sizes = [2, 128], strides = [1, 1]} : vector<2x512xf32> to vector<2x128xf32>
    %880 = arith.negf %879 : vector<2x128xf32>
    %881 = math.exp %880 : vector<2x128xf32>
    %cst_271 = arith.constant 1.000000e+00 : f32
    %882 = vector.broadcast %cst_271 : f32 to vector<2x128xf32>
    %883 = arith.addf %882, %881 : vector<2x128xf32>
    %884 = arith.divf %882, %883 : vector<2x128xf32>
    %885 = arith.mulf %876, %856 : vector<2x128xf32>
    %886 = arith.mulf %870, %878 : vector<2x128xf32>
    %887 = arith.addf %885, %886 : vector<2x128xf32>
    %888 = math.tanh %887 : vector<2x128xf32>
    %889 = arith.mulf %884, %888 : vector<2x128xf32>
    %c10_i32_272 = arith.constant 10 : i32
    %890 = arith.index_cast %c10_i32_272 : i32 to index
    %c0_273 = arith.constant 0 : index
    %c0_274 = arith.constant 0 : index
    %891 = vector.load %arg21[%890, %c0_273, %c0_274] : memref<16x2x512xf32, #tpu.memory_space<vmem>>, vector<1x2x512xf32>
    %892 = vector.shape_cast %891 : vector<1x2x512xf32> to vector<2x512xf32>
    %c0_275 = arith.constant 0 : index
    %c0_276 = arith.constant 0 : index
    %893 = vector.load %arg5[%c0_275, %c0_276] : memref<128x512xf32, #tpu.memory_space<vmem>>, vector<128x512xf32>
    %cst_277 = arith.constant dense<0.000000e+00> : vector<2x512xf32>
    %894 = tpu.matmul %889, %893, %cst_277 {dimension_numbers = #tpu.dot_dimension_numbers<[1], [0], [0], [1], [0, 0, 1, 1], [], []>} : vector<2x128xf32>, vector<128x512xf32>, vector<2x512xf32> -> vector<2x512xf32>
    %895 = arith.addf %892, %894 : vector<2x512xf32>
    %896 = vector.extract_strided_slice %895 {offsets = [0, 0], sizes = [2, 128], strides = [1, 1]} : vector<2x512xf32> to vector<2x128xf32>
    %897 = arith.negf %896 : vector<2x128xf32>
    %898 = math.exp %897 : vector<2x128xf32>
    %cst_278 = arith.constant 1.000000e+00 : f32
    %899 = vector.broadcast %cst_278 : f32 to vector<2x128xf32>
    %900 = arith.addf %899, %898 : vector<2x128xf32>
    %901 = arith.divf %899, %900 : vector<2x128xf32>
    %902 = vector.extract_strided_slice %895 {offsets = [0, 128], sizes = [2, 128], strides = [1, 1]} : vector<2x512xf32> to vector<2x128xf32>
    %903 = arith.negf %902 : vector<2x128xf32>
    %904 = math.exp %903 : vector<2x128xf32>
    %cst_279 = arith.constant 1.000000e+00 : f32
    %905 = vector.broadcast %cst_279 : f32 to vector<2x128xf32>
    %906 = arith.addf %905, %904 : vector<2x128xf32>
    %907 = arith.divf %905, %906 : vector<2x128xf32>
    %908 = vector.extract_strided_slice %895 {offsets = [0, 256], sizes = [2, 128], strides = [1, 1]} : vector<2x512xf32> to vector<2x128xf32>
    %909 = math.tanh %908 : vector<2x128xf32>
    %910 = vector.extract_strided_slice %895 {offsets = [0, 384], sizes = [2, 128], strides = [1, 1]} : vector<2x512xf32> to vector<2x128xf32>
    %911 = arith.negf %910 : vector<2x128xf32>
    %912 = math.exp %911 : vector<2x128xf32>
    %cst_280 = arith.constant 1.000000e+00 : f32
    %913 = vector.broadcast %cst_280 : f32 to vector<2x128xf32>
    %914 = arith.addf %913, %912 : vector<2x128xf32>
    %915 = arith.divf %913, %914 : vector<2x128xf32>
    %916 = arith.mulf %907, %887 : vector<2x128xf32>
    %917 = arith.mulf %901, %909 : vector<2x128xf32>
    %918 = arith.addf %916, %917 : vector<2x128xf32>
    %919 = math.tanh %918 : vector<2x128xf32>
    %920 = arith.mulf %915, %919 : vector<2x128xf32>
    %c11_i32_281 = arith.constant 11 : i32
    %921 = arith.index_cast %c11_i32_281 : i32 to index
    %c0_282 = arith.constant 0 : index
    %c0_283 = arith.constant 0 : index
    %922 = vector.load %arg21[%921, %c0_282, %c0_283] : memref<16x2x512xf32, #tpu.memory_space<vmem>>, vector<1x2x512xf32>
    %923 = vector.shape_cast %922 : vector<1x2x512xf32> to vector<2x512xf32>
    %c0_284 = arith.constant 0 : index
    %c0_285 = arith.constant 0 : index
    %924 = vector.load %arg5[%c0_284, %c0_285] : memref<128x512xf32, #tpu.memory_space<vmem>>, vector<128x512xf32>
    %cst_286 = arith.constant dense<0.000000e+00> : vector<2x512xf32>
    %925 = tpu.matmul %920, %924, %cst_286 {dimension_numbers = #tpu.dot_dimension_numbers<[1], [0], [0], [1], [0, 0, 1, 1], [], []>} : vector<2x128xf32>, vector<128x512xf32>, vector<2x512xf32> -> vector<2x512xf32>
    %926 = arith.addf %923, %925 : vector<2x512xf32>
    %927 = vector.extract_strided_slice %926 {offsets = [0, 0], sizes = [2, 128], strides = [1, 1]} : vector<2x512xf32> to vector<2x128xf32>
    %928 = arith.negf %927 : vector<2x128xf32>
    %929 = math.exp %928 : vector<2x128xf32>
    %cst_287 = arith.constant 1.000000e+00 : f32
    %930 = vector.broadcast %cst_287 : f32 to vector<2x128xf32>
    %931 = arith.addf %930, %929 : vector<2x128xf32>
    %932 = arith.divf %930, %931 : vector<2x128xf32>
    %933 = vector.extract_strided_slice %926 {offsets = [0, 128], sizes = [2, 128], strides = [1, 1]} : vector<2x512xf32> to vector<2x128xf32>
    %934 = arith.negf %933 : vector<2x128xf32>
    %935 = math.exp %934 : vector<2x128xf32>
    %cst_288 = arith.constant 1.000000e+00 : f32
    %936 = vector.broadcast %cst_288 : f32 to vector<2x128xf32>
    %937 = arith.addf %936, %935 : vector<2x128xf32>
    %938 = arith.divf %936, %937 : vector<2x128xf32>
    %939 = vector.extract_strided_slice %926 {offsets = [0, 256], sizes = [2, 128], strides = [1, 1]} : vector<2x512xf32> to vector<2x128xf32>
    %940 = math.tanh %939 : vector<2x128xf32>
    %941 = vector.extract_strided_slice %926 {offsets = [0, 384], sizes = [2, 128], strides = [1, 1]} : vector<2x512xf32> to vector<2x128xf32>
    %942 = arith.negf %941 : vector<2x128xf32>
    %943 = math.exp %942 : vector<2x128xf32>
    %cst_289 = arith.constant 1.000000e+00 : f32
    %944 = vector.broadcast %cst_289 : f32 to vector<2x128xf32>
    %945 = arith.addf %944, %943 : vector<2x128xf32>
    %946 = arith.divf %944, %945 : vector<2x128xf32>
    %947 = arith.mulf %938, %918 : vector<2x128xf32>
    %948 = arith.mulf %932, %940 : vector<2x128xf32>
    %949 = arith.addf %947, %948 : vector<2x128xf32>
    %950 = math.tanh %949 : vector<2x128xf32>
    %951 = arith.mulf %946, %950 : vector<2x128xf32>
    %c12_i32_290 = arith.constant 12 : i32
    %952 = arith.index_cast %c12_i32_290 : i32 to index
    %c0_291 = arith.constant 0 : index
    %c0_292 = arith.constant 0 : index
    %953 = vector.load %arg21[%952, %c0_291, %c0_292] : memref<16x2x512xf32, #tpu.memory_space<vmem>>, vector<1x2x512xf32>
    %954 = vector.shape_cast %953 : vector<1x2x512xf32> to vector<2x512xf32>
    %c0_293 = arith.constant 0 : index
    %c0_294 = arith.constant 0 : index
    %955 = vector.load %arg5[%c0_293, %c0_294] : memref<128x512xf32, #tpu.memory_space<vmem>>, vector<128x512xf32>
    %cst_295 = arith.constant dense<0.000000e+00> : vector<2x512xf32>
    %956 = tpu.matmul %951, %955, %cst_295 {dimension_numbers = #tpu.dot_dimension_numbers<[1], [0], [0], [1], [0, 0, 1, 1], [], []>} : vector<2x128xf32>, vector<128x512xf32>, vector<2x512xf32> -> vector<2x512xf32>
    %957 = arith.addf %954, %956 : vector<2x512xf32>
    %958 = vector.extract_strided_slice %957 {offsets = [0, 0], sizes = [2, 128], strides = [1, 1]} : vector<2x512xf32> to vector<2x128xf32>
    %959 = arith.negf %958 : vector<2x128xf32>
    %960 = math.exp %959 : vector<2x128xf32>
    %cst_296 = arith.constant 1.000000e+00 : f32
    %961 = vector.broadcast %cst_296 : f32 to vector<2x128xf32>
    %962 = arith.addf %961, %960 : vector<2x128xf32>
    %963 = arith.divf %961, %962 : vector<2x128xf32>
    %964 = vector.extract_strided_slice %957 {offsets = [0, 128], sizes = [2, 128], strides = [1, 1]} : vector<2x512xf32> to vector<2x128xf32>
    %965 = arith.negf %964 : vector<2x128xf32>
    %966 = math.exp %965 : vector<2x128xf32>
    %cst_297 = arith.constant 1.000000e+00 : f32
    %967 = vector.broadcast %cst_297 : f32 to vector<2x128xf32>
    %968 = arith.addf %967, %966 : vector<2x128xf32>
    %969 = arith.divf %967, %968 : vector<2x128xf32>
    %970 = vector.extract_strided_slice %957 {offsets = [0, 256], sizes = [2, 128], strides = [1, 1]} : vector<2x512xf32> to vector<2x128xf32>
    %971 = math.tanh %970 : vector<2x128xf32>
    %972 = vector.extract_strided_slice %957 {offsets = [0, 384], sizes = [2, 128], strides = [1, 1]} : vector<2x512xf32> to vector<2x128xf32>
    %973 = arith.negf %972 : vector<2x128xf32>
    %974 = math.exp %973 : vector<2x128xf32>
    %cst_298 = arith.constant 1.000000e+00 : f32
    %975 = vector.broadcast %cst_298 : f32 to vector<2x128xf32>
    %976 = arith.addf %975, %974 : vector<2x128xf32>
    %977 = arith.divf %975, %976 : vector<2x128xf32>
    %978 = arith.mulf %969, %949 : vector<2x128xf32>
    %979 = arith.mulf %963, %971 : vector<2x128xf32>
    %980 = arith.addf %978, %979 : vector<2x128xf32>
    %981 = math.tanh %980 : vector<2x128xf32>
    %982 = arith.mulf %977, %981 : vector<2x128xf32>
    %c13_i32_299 = arith.constant 13 : i32
    %983 = arith.index_cast %c13_i32_299 : i32 to index
    %c0_300 = arith.constant 0 : index
    %c0_301 = arith.constant 0 : index
    %984 = vector.load %arg21[%983, %c0_300, %c0_301] : memref<16x2x512xf32, #tpu.memory_space<vmem>>, vector<1x2x512xf32>
    %985 = vector.shape_cast %984 : vector<1x2x512xf32> to vector<2x512xf32>
    %c0_302 = arith.constant 0 : index
    %c0_303 = arith.constant 0 : index
    %986 = vector.load %arg5[%c0_302, %c0_303] : memref<128x512xf32, #tpu.memory_space<vmem>>, vector<128x512xf32>
    %cst_304 = arith.constant dense<0.000000e+00> : vector<2x512xf32>
    %987 = tpu.matmul %982, %986, %cst_304 {dimension_numbers = #tpu.dot_dimension_numbers<[1], [0], [0], [1], [0, 0, 1, 1], [], []>} : vector<2x128xf32>, vector<128x512xf32>, vector<2x512xf32> -> vector<2x512xf32>
    %988 = arith.addf %985, %987 : vector<2x512xf32>
    %989 = vector.extract_strided_slice %988 {offsets = [0, 0], sizes = [2, 128], strides = [1, 1]} : vector<2x512xf32> to vector<2x128xf32>
    %990 = arith.negf %989 : vector<2x128xf32>
    %991 = math.exp %990 : vector<2x128xf32>
    %cst_305 = arith.constant 1.000000e+00 : f32
    %992 = vector.broadcast %cst_305 : f32 to vector<2x128xf32>
    %993 = arith.addf %992, %991 : vector<2x128xf32>
    %994 = arith.divf %992, %993 : vector<2x128xf32>
    %995 = vector.extract_strided_slice %988 {offsets = [0, 128], sizes = [2, 128], strides = [1, 1]} : vector<2x512xf32> to vector<2x128xf32>
    %996 = arith.negf %995 : vector<2x128xf32>
    %997 = math.exp %996 : vector<2x128xf32>
    %cst_306 = arith.constant 1.000000e+00 : f32
    %998 = vector.broadcast %cst_306 : f32 to vector<2x128xf32>
    %999 = arith.addf %998, %997 : vector<2x128xf32>
    %1000 = arith.divf %998, %999 : vector<2x128xf32>
    %1001 = vector.extract_strided_slice %988 {offsets = [0, 256], sizes = [2, 128], strides = [1, 1]} : vector<2x512xf32> to vector<2x128xf32>
    %1002 = math.tanh %1001 : vector<2x128xf32>
    %1003 = vector.extract_strided_slice %988 {offsets = [0, 384], sizes = [2, 128], strides = [1, 1]} : vector<2x512xf32> to vector<2x128xf32>
    %1004 = arith.negf %1003 : vector<2x128xf32>
    %1005 = math.exp %1004 : vector<2x128xf32>
    %cst_307 = arith.constant 1.000000e+00 : f32
    %1006 = vector.broadcast %cst_307 : f32 to vector<2x128xf32>
    %1007 = arith.addf %1006, %1005 : vector<2x128xf32>
    %1008 = arith.divf %1006, %1007 : vector<2x128xf32>
    %1009 = arith.mulf %1000, %980 : vector<2x128xf32>
    %1010 = arith.mulf %994, %1002 : vector<2x128xf32>
    %1011 = arith.addf %1009, %1010 : vector<2x128xf32>
    %1012 = math.tanh %1011 : vector<2x128xf32>
    %1013 = arith.mulf %1008, %1012 : vector<2x128xf32>
    %c14_i32_308 = arith.constant 14 : i32
    %1014 = arith.index_cast %c14_i32_308 : i32 to index
    %c0_309 = arith.constant 0 : index
    %c0_310 = arith.constant 0 : index
    %1015 = vector.load %arg21[%1014, %c0_309, %c0_310] : memref<16x2x512xf32, #tpu.memory_space<vmem>>, vector<1x2x512xf32>
    %1016 = vector.shape_cast %1015 : vector<1x2x512xf32> to vector<2x512xf32>
    %c0_311 = arith.constant 0 : index
    %c0_312 = arith.constant 0 : index
    %1017 = vector.load %arg5[%c0_311, %c0_312] : memref<128x512xf32, #tpu.memory_space<vmem>>, vector<128x512xf32>
    %cst_313 = arith.constant dense<0.000000e+00> : vector<2x512xf32>
    %1018 = tpu.matmul %1013, %1017, %cst_313 {dimension_numbers = #tpu.dot_dimension_numbers<[1], [0], [0], [1], [0, 0, 1, 1], [], []>} : vector<2x128xf32>, vector<128x512xf32>, vector<2x512xf32> -> vector<2x512xf32>
    %1019 = arith.addf %1016, %1018 : vector<2x512xf32>
    %1020 = vector.extract_strided_slice %1019 {offsets = [0, 0], sizes = [2, 128], strides = [1, 1]} : vector<2x512xf32> to vector<2x128xf32>
    %1021 = arith.negf %1020 : vector<2x128xf32>
    %1022 = math.exp %1021 : vector<2x128xf32>
    %cst_314 = arith.constant 1.000000e+00 : f32
    %1023 = vector.broadcast %cst_314 : f32 to vector<2x128xf32>
    %1024 = arith.addf %1023, %1022 : vector<2x128xf32>
    %1025 = arith.divf %1023, %1024 : vector<2x128xf32>
    %1026 = vector.extract_strided_slice %1019 {offsets = [0, 128], sizes = [2, 128], strides = [1, 1]} : vector<2x512xf32> to vector<2x128xf32>
    %1027 = arith.negf %1026 : vector<2x128xf32>
    %1028 = math.exp %1027 : vector<2x128xf32>
    %cst_315 = arith.constant 1.000000e+00 : f32
    %1029 = vector.broadcast %cst_315 : f32 to vector<2x128xf32>
    %1030 = arith.addf %1029, %1028 : vector<2x128xf32>
    %1031 = arith.divf %1029, %1030 : vector<2x128xf32>
    %1032 = vector.extract_strided_slice %1019 {offsets = [0, 256], sizes = [2, 128], strides = [1, 1]} : vector<2x512xf32> to vector<2x128xf32>
    %1033 = math.tanh %1032 : vector<2x128xf32>
    %1034 = vector.extract_strided_slice %1019 {offsets = [0, 384], sizes = [2, 128], strides = [1, 1]} : vector<2x512xf32> to vector<2x128xf32>
    %1035 = arith.negf %1034 : vector<2x128xf32>
    %1036 = math.exp %1035 : vector<2x128xf32>
    %cst_316 = arith.constant 1.000000e+00 : f32
    %1037 = vector.broadcast %cst_316 : f32 to vector<2x128xf32>
    %1038 = arith.addf %1037, %1036 : vector<2x128xf32>
    %1039 = arith.divf %1037, %1038 : vector<2x128xf32>
    %1040 = arith.mulf %1031, %1011 : vector<2x128xf32>
    %1041 = arith.mulf %1025, %1033 : vector<2x128xf32>
    %1042 = arith.addf %1040, %1041 : vector<2x128xf32>
    %1043 = math.tanh %1042 : vector<2x128xf32>
    %1044 = arith.mulf %1039, %1043 : vector<2x128xf32>
    %c15_i32_317 = arith.constant 15 : i32
    %1045 = arith.index_cast %c15_i32_317 : i32 to index
    %c0_318 = arith.constant 0 : index
    %c0_319 = arith.constant 0 : index
    %1046 = vector.load %arg21[%1045, %c0_318, %c0_319] : memref<16x2x512xf32, #tpu.memory_space<vmem>>, vector<1x2x512xf32>
    %1047 = vector.shape_cast %1046 : vector<1x2x512xf32> to vector<2x512xf32>
    %c0_320 = arith.constant 0 : index
    %c0_321 = arith.constant 0 : index
    %1048 = vector.load %arg5[%c0_320, %c0_321] : memref<128x512xf32, #tpu.memory_space<vmem>>, vector<128x512xf32>
    %cst_322 = arith.constant dense<0.000000e+00> : vector<2x512xf32>
    %1049 = tpu.matmul %1044, %1048, %cst_322 {dimension_numbers = #tpu.dot_dimension_numbers<[1], [0], [0], [1], [0, 0, 1, 1], [], []>} : vector<2x128xf32>, vector<128x512xf32>, vector<2x512xf32> -> vector<2x512xf32>
    %1050 = arith.addf %1047, %1049 : vector<2x512xf32>
    %1051 = vector.extract_strided_slice %1050 {offsets = [0, 0], sizes = [2, 128], strides = [1, 1]} : vector<2x512xf32> to vector<2x128xf32>
    %1052 = arith.negf %1051 : vector<2x128xf32>
    %1053 = math.exp %1052 : vector<2x128xf32>
    %cst_323 = arith.constant 1.000000e+00 : f32
    %1054 = vector.broadcast %cst_323 : f32 to vector<2x128xf32>
    %1055 = arith.addf %1054, %1053 : vector<2x128xf32>
    %1056 = arith.divf %1054, %1055 : vector<2x128xf32>
    %1057 = vector.extract_strided_slice %1050 {offsets = [0, 128], sizes = [2, 128], strides = [1, 1]} : vector<2x512xf32> to vector<2x128xf32>
    %1058 = arith.negf %1057 : vector<2x128xf32>
    %1059 = math.exp %1058 : vector<2x128xf32>
    %cst_324 = arith.constant 1.000000e+00 : f32
    %1060 = vector.broadcast %cst_324 : f32 to vector<2x128xf32>
    %1061 = arith.addf %1060, %1059 : vector<2x128xf32>
    %1062 = arith.divf %1060, %1061 : vector<2x128xf32>
    %1063 = vector.extract_strided_slice %1050 {offsets = [0, 256], sizes = [2, 128], strides = [1, 1]} : vector<2x512xf32> to vector<2x128xf32>
    %1064 = math.tanh %1063 : vector<2x128xf32>
    %1065 = vector.extract_strided_slice %1050 {offsets = [0, 384], sizes = [2, 128], strides = [1, 1]} : vector<2x512xf32> to vector<2x128xf32>
    %1066 = arith.negf %1065 : vector<2x128xf32>
    %1067 = math.exp %1066 : vector<2x128xf32>
    %cst_325 = arith.constant 1.000000e+00 : f32
    %1068 = vector.broadcast %cst_325 : f32 to vector<2x128xf32>
    %1069 = arith.addf %1068, %1067 : vector<2x128xf32>
    %1070 = arith.divf %1068, %1069 : vector<2x128xf32>
    %1071 = arith.mulf %1062, %1042 : vector<2x128xf32>
    %1072 = arith.mulf %1056, %1064 : vector<2x128xf32>
    %1073 = arith.addf %1071, %1072 : vector<2x128xf32>
    %1074 = math.tanh %1073 : vector<2x128xf32>
    %1075 = arith.mulf %1070, %1074 : vector<2x128xf32>
    %c16_i32_326 = arith.constant 16 : i32
    %c0_327 = arith.constant 0 : index
    %c0_328 = arith.constant 0 : index
    %1076 = vector.load %arg7[%c0_327, %c0_328] : memref<2x16xf32, #tpu.memory_space<vmem>>, vector<2x16xf32>
    %c0_329 = arith.constant 0 : index
    %c0_330 = arith.constant 0 : index
    %1077 = vector.load %arg8[%c0_329, %c0_330] : memref<16x96xf32, #tpu.memory_space<vmem>>, vector<16x96xf32>
    %cst_331 = arith.constant dense<0.000000e+00> : vector<2x96xf32>
    %1078 = tpu.matmul %1076, %1077, %cst_331 {dimension_numbers = #tpu.dot_dimension_numbers<[1], [0], [0], [1], [0, 0, 1, 1], [], []>} : vector<2x16xf32>, vector<16x96xf32>, vector<2x96xf32> -> vector<2x96xf32>
    %c0_332 = arith.constant 0 : index
    %c0_333 = arith.constant 0 : index
    %1079 = vector.load %arg9[%c0_332, %c0_333] : memref<1x96xf32, #tpu.memory_space<vmem>>, vector<1x96xf32>
    %1080 = vector.broadcast %1079 : vector<1x96xf32> to vector<2x96xf32>
    %1081 = arith.mulf %1078, %1080 : vector<2x96xf32>
    %c0_334 = arith.constant 0 : index
    %c0_335 = arith.constant 0 : index
    %1082 = vector.load %arg10[%c0_334, %c0_335] : memref<1x96xf32, #tpu.memory_space<vmem>>, vector<1x96xf32>
    %1083 = vector.broadcast %1082 : vector<1x96xf32> to vector<2x96xf32>
    %1084 = arith.addf %1081, %1083 : vector<2x96xf32>
    %cst_336 = arith.constant 0.000000e+00 : f32
    %1085 = vector.broadcast %cst_336 : f32 to vector<2x96xf32>
    %1086 = arith.maximumf %1084, %1085 : vector<2x96xf32>
    %c0_337 = arith.constant 0 : index
    %c0_338 = arith.constant 0 : index
    %1087 = vector.load %arg11[%c0_337, %c0_338] : memref<96x160xf32, #tpu.memory_space<vmem>>, vector<96x160xf32>
    %cst_339 = arith.constant dense<0.000000e+00> : vector<2x160xf32>
    %1088 = tpu.matmul %1086, %1087, %cst_339 {dimension_numbers = #tpu.dot_dimension_numbers<[1], [0], [0], [1], [0, 0, 1, 1], [], []>} : vector<2x96xf32>, vector<96x160xf32>, vector<2x160xf32> -> vector<2x160xf32>
    %c0_340 = arith.constant 0 : index
    %c0_341 = arith.constant 0 : index
    %1089 = vector.load %arg12[%c0_340, %c0_341] : memref<1x160xf32, #tpu.memory_space<vmem>>, vector<1x160xf32>
    %1090 = vector.broadcast %1089 : vector<1x160xf32> to vector<2x160xf32>
    %1091 = arith.mulf %1088, %1090 : vector<2x160xf32>
    %c0_342 = arith.constant 0 : index
    %c0_343 = arith.constant 0 : index
    %1092 = vector.load %arg13[%c0_342, %c0_343] : memref<1x160xf32, #tpu.memory_space<vmem>>, vector<1x160xf32>
    %1093 = vector.broadcast %1092 : vector<1x160xf32> to vector<2x160xf32>
    %1094 = arith.addf %1091, %1093 : vector<2x160xf32>
    %cst_344 = arith.constant 0.000000e+00 : f32
    %1095 = vector.broadcast %cst_344 : f32 to vector<2x160xf32>
    %1096 = arith.maximumf %1094, %1095 : vector<2x160xf32>
    %c0_345 = arith.constant 0 : index
    %c0_346 = arith.constant 0 : index
    %1097 = vector.load %arg14[%c0_345, %c0_346] : memref<160x64xf32, #tpu.memory_space<vmem>>, vector<160x64xf32>
    %cst_347 = arith.constant dense<0.000000e+00> : vector<2x64xf32>
    %1098 = tpu.matmul %1096, %1097, %cst_347 {dimension_numbers = #tpu.dot_dimension_numbers<[1], [0], [0], [1], [0, 0, 1, 1], [], []>} : vector<2x160xf32>, vector<160x64xf32>, vector<2x64xf32> -> vector<2x64xf32>
    %c0_348 = arith.constant 0 : index
    %c0_349 = arith.constant 0 : index
    %1099 = vector.load %arg15[%c0_348, %c0_349] : memref<1x64xf32, #tpu.memory_space<vmem>>, vector<1x64xf32>
    %1100 = vector.broadcast %1099 : vector<1x64xf32> to vector<2x64xf32>
    %1101 = arith.mulf %1098, %1100 : vector<2x64xf32>
    %c0_350 = arith.constant 0 : index
    %c0_351 = arith.constant 0 : index
    %1102 = vector.load %arg16[%c0_350, %c0_351] : memref<1x64xf32, #tpu.memory_space<vmem>>, vector<1x64xf32>
    %1103 = vector.broadcast %1102 : vector<1x64xf32> to vector<2x64xf32>
    %1104 = arith.addf %1101, %1103 : vector<2x64xf32>
    %cst_352 = arith.constant 0.000000e+00 : f32
    %1105 = vector.broadcast %cst_352 : f32 to vector<2x64xf32>
    %1106 = arith.maximumf %1104, %1105 : vector<2x64xf32>
    %c0_353 = arith.constant 0 : index
    %c0_354 = arith.constant 0 : index
    %1107 = vector.load %arg17[%c0_353, %c0_354] : memref<128x2xf32, #tpu.memory_space<vmem>>, vector<128x2xf32>
    %cst_355 = arith.constant dense<0.000000e+00> : vector<2x2xf32>
    %1108 = tpu.matmul %1075, %1107, %cst_355 {dimension_numbers = #tpu.dot_dimension_numbers<[1], [0], [0], [1], [0, 0, 1, 1], [], []>} : vector<2x128xf32>, vector<128x2xf32>, vector<2x2xf32> -> vector<2x2xf32>
    %c0_356 = arith.constant 0 : index
    %c0_357 = arith.constant 0 : index
    %1109 = vector.load %arg18[%c0_356, %c0_357] : memref<64x2xf32, #tpu.memory_space<vmem>>, vector<64x2xf32>
    %cst_358 = arith.constant dense<0.000000e+00> : vector<2x2xf32>
    %1110 = tpu.matmul %1106, %1109, %cst_358 {dimension_numbers = #tpu.dot_dimension_numbers<[1], [0], [0], [1], [0, 0, 1, 1], [], []>} : vector<2x64xf32>, vector<64x2xf32>, vector<2x2xf32> -> vector<2x2xf32>
    %1111 = arith.addf %1108, %1110 : vector<2x2xf32>
    %c0_359 = arith.constant 0 : index
    %c0_360 = arith.constant 0 : index
    %1112 = vector.load %arg19[%c0_359, %c0_360] : memref<1x2xf32, #tpu.memory_space<vmem>>, vector<1x2xf32>
    %1113 = vector.broadcast %1112 : vector<1x2xf32> to vector<2x2xf32>
    %1114 = arith.addf %1111, %1113 : vector<2x2xf32>
    %c0_361 = arith.constant 0 : index
    %c0_362 = arith.constant 0 : index
    %1115 = vector.load %arg20[%c0_361, %c0_362] : memref<2x2xf32, #tpu.memory_space<vmem>>, vector<2x2xf32>
    tpu.vector_store %arg20[%c0_361, %c0_362], %1114 {strides = array<i32>} : memref<2x2xf32, #tpu.memory_space<vmem>>, vector<2x2xf32>,
    return
  }
}

</mosaic_0001>

<bundles_post_ra>
// kernel: tpu_custom_call.1
= control target key start
LH: loop header
LB: loop body
LE: loop exit
PB: predicated region body
PF: predicated region fallthrough
CT: control target
= control target key end

     0   :  { %s15479_s0 = inlined_call_operand.vmem [shape: f32[16,2,8], index: 0, kind: input, shape index: {}]   ;;  %s15480_s1 = inlined_call_operand.vmem [shape: f32[8,512], index: 1, kind: input, shape index: {}]   ;;  %s15481_s2 = inlined_call_operand.vmem [shape: f32[128,512], index: 2, kind: input, shape index: {}]   ;;  %s15482_s3 = inlined_call_operand.vmem [shape: f32[1,512], index: 3, kind: input, shape index: {}]   ;;  %s15483_s4 = inlined_call_operand.hbm [shape: f32[128,512], index: 4, kind: input, shape index: {}]   ;;  %s15484_s5 = inlined_call_operand.hbm [shape: f32[128,512], index: 5, kind: input, shape index: {}]   ;;  %s15485_s6 = inlined_call_operand.vmem [shape: f32[1,512], index: 6, kind: input, shape index: {}]   ;;  %s15486_s7 = inlined_call_operand.vmem [shape: f32[2,16], index: 7, kind: input, shape index: {}]   ;;  %s15487_s8 = inlined_call_operand.vmem [shape: f32[16,96], index: 8, kind: input, shape index: {}]   ;;  %s15488_s9 = inlined_call_operand.vmem [shape: f32[1,96], index: 9, kind: input, shape index: {}]   ;;  %s15489_s10 = inlined_call_operand.vmem [shape: f32[1,96], index: 10, kind: input, shape index: {}]   ;;  %s15490_s11 = inlined_call_operand.vmem [shape: f32[96,160], index: 11, kind: input, shape index: {}]   ;;  %s15491_s12 = inlined_call_operand.vmem [shape: f32[1,160], index: 12, kind: input, shape index: {}]   ;;  %s15492_s13 = inlined_call_operand.vmem [shape: f32[1,160], index: 13, kind: input, shape index: {}]   ;;  %s15493_s14 = inlined_call_operand.vmem [shape: f32[160,64], index: 14, kind: input, shape index: {}]   ;;  %s15494_s15 = inlined_call_operand.vmem [shape: f32[1,64], index: 15, kind: input, shape index: {}]   ;;  %s15495_s16 = inlined_call_operand.vmem [shape: f32[1,64], index: 16, kind: input, shape index: {}]   ;;  %s15496_s17 = inlined_call_operand.vmem [shape: f32[128,2], index: 17, kind: input, shape index: {}]   ;;  %s15497_s18 = inlined_call_operand.vmem [shape: f32[64,2], index: 18, kind: input, shape index: {}]   ;;  %s15498_s19 = inlined_call_operand.vmem [shape: f32[1,2], index: 19, kind: input, shape index: {}]   ;;  %s15499_s20 = inlined_call_operand.hbm [shape: f32[2,2], index: 20, kind: output, shape index: {}]  }
   0x1   :  { %15531 = sst [smem:[#allocation20_spill]] %s15479_s0 }
   0x2   :  { %15532 = sst [smem:[#allocation21_spill]] %s15480_s1 }
   0x3   :  { %15533 = sst [smem:[#allocation22_spill]] %s15481_s2 }
   0x4   :  { %15534 = sst [smem:[#allocation23_spill]] %s15482_s3 }
   0x5   :  { %15535 = sst [smem:[#allocation24_spill]] %s15483_s4 }
   0x6   :  { %15536 = sst [smem:[#allocation25_spill]] %s15499_s20 }
   0x7   :  { %25 = vsyncpa [#allocation5], 0 }
   0x8   :  { %26 = vsyncpa [#allocation8], 0 }
   0x9   :  { %27 = vsyncpa [#allocation6], 0  ;;  %s12126_s1 = smov [#allocation4]   ;;  %s15537_s2 = sld [smem:[#allocation24_spill]] }
   0xa   :  { %s41_s22 = sshll.u32 %s12126_s1, 4  ;;  %s42_s22 = int_to_ptr.vmem [resolvable:$true] %s41_s22 }
   0xf   :  { %s12054_s25 = scalar_lea.hbm %s15537_s2, 8192 }
  0x10   :  { %p12055_p0 = scmp.ne.s32.totalorder %s15537_s2, %s12054_s25  ;;  %p12058_p1 = scmp.lt.u32.totalorder %s12054_s25, %s15537_s2 }
  0x12   :  { %p12060_p2 = pnand %p12058_p1, %p12055_p0 }
  0x14   :  { %12063 = shalt.err (!%p12060_p2)
}
  0x15   :  { %s12064_s4 = scalar_lea.vmem %s42_s22, 8192  ;;  %p12069_p4 = scmp.lt.s32.totalorder %s42_s22, %s42_s22 }
  0x16   :  { %p12065_p3 = scmp.ne.s32.totalorder %s42_s22, %s12064_s4  ;;  %p12070_p5 = scmp.lt.s32.totalorder %s12064_s4, %s12064_s4 }
  0x18   :  { %p12071_p6 = por %p12070_p5, %p12069_p4 }
  0x1a   :  { %p12072_p7 = pnand %p12071_p6, %p12065_p3 }
  0x1c   :  { %12075 = shalt.err (!%p12072_p7)
}
  0x1d   :  { %s12127_s29 = smov 512   ;;  %s12128_s30 = smov 32  }
  0x1e   :  { %47 = dma.hbm_to_vmem [thread:$0]  %s15537_s2, 8192, %s42_s22, [#allocation5], %s12127_s29, %s12127_s29, %s12128_s30  }
  0x1f   :  { %s12129_s1 = smov [#allocation7]   ;;  %s12076_s3 = scalar_lea.hbm %s15484_s5, 8192 }
  0x20   :  { %s53_s23 = sshll.u32 %s12129_s1, 4  ;;  %p12077_p8 = scmp.ne.s32.totalorder %s15484_s5, %s12076_s3  ;;  %s54_s23 = int_to_ptr.vmem [resolvable:$true] %s53_s23 }
  0x21   :  { %p12080_p9 = scmp.lt.u32.totalorder %s12076_s3, %s15484_s5 }
  0x23   :  { %p12082_p10 = pnand %p12080_p9, %p12077_p8 }
  0x25   :  { %12085 = shalt.err (!%p12082_p10)
}
  0x26   :  { %s12086_s20 = scalar_lea.vmem %s54_s23, 8192  ;;  %p12091_p12 = scmp.lt.s32.totalorder %s54_s23, %s54_s23 }
  0x27   :  { %p12087_p11 = scmp.ne.s32.totalorder %s54_s23, %s12086_s20  ;;  %p12092_p13 = scmp.lt.s32.totalorder %s12086_s20, %s12086_s20 }
  0x29   :  { %p12093_p0 = por %p12092_p13, %p12091_p12 }
  0x2b   :  { %p12094_p1 = pnand %p12093_p0, %p12087_p11 }
  0x2d   :  { %12097 = shalt.err (!%p12094_p1)
}
  0x2e   :  { %59 = dma.hbm_to_vmem [thread:$0]  %s15484_s5, 8192, %s54_s23, [#allocation8], %s12127_s29, %s12127_s29, %s12128_s30  }
  0x2f   :  { %12120 = dma.done.wait [#allocation5], 8192  }
  0x30   :  { %12121 = vsyncadd [#allocation5], 4294959104 }
  0x31   :  { %12122 = dma.done.wait [#allocation8], 8192  }
  0x32   :  { %12123 = vsyncadd [#allocation8], 4294959104  ;;  %v15507_v0 = vmov 0.0   ;;  %v116_v1 = vlaneseq  ;;  %v12131_v2 = vmov 1983009808   ;;  %s15539_s21 = sld [smem:[#allocation21_spill]] }
  0x33   :  { %293 = vmatprep.mubr.f32.mxu0 %v15507_v0  ;;  %382 = vmatprep.mubr.f32.mxu1 %v15507_v0  ;;  %v155_v3 = vunpack.c.l.s4 %v12131_v2  ;;  %s15540_s26 = sld [smem:[#allocation22_spill]]  ;;  %s15541_s5 = sld [smem:[#allocation20_spill]]  ;;  %vm220_vm0 = vcmask 64512   ;;  %vm12133_vm1 = vmmov 0   ;;  %vm8600_vm2 = vcmask 130048  }
  0x34   :  { %v12266_v4 = vshrl.u32 %v116_v1, 7  ;;  %s15543_s29 = sld [smem:[#allocation23_spill]]  ;;  %vm8715_vm3 = vcmask 785408   ;;  %vm8840_vm4 = vcmask 261120   ;;  %vm8955_vm5 = vcmask 523264   ;;  %s12134_s1 = smov [#allocation9]  }
  0x35   :  { %v156_v5 = vunpack.c.0.s8 %v155_v3  ;;  %vm9107_vm6 = vcmask 9216  }
  0x36   :  { %15538 = vst [vmem:[#allocation13_spill] sm:$0xff] %v12266_v4 }
  0x37   :  { %v12298_v16 = vsub.s32 %v156_v5, %v12266_v4 }
  0x38   :  { %v111_v6 = vld [vmem:[%s15539_s21 + $0x8] sm:$0xff]  ;;  %v113_v7 = vld [vmem:[%s15539_s21 + $0x18] sm:$0xff]  ;;  %v110_v8 = vld [vmem:[%s15539_s21] sm:$0xff] }
  0x39   :  { %229 = vmatprep.subr.mxu0 %v111_v6  ;;  %318 = vmatprep.subr.mxu1 %v113_v7  ;;  %v112_v9 = vld [vmem:[%s15539_s21 + $0x10] sm:$0xff]  ;;  %v601_v10 = vld [vmem:[%s15540_s26 + $0x8] sm:$0xff]  ;;  %v603_v13 = vld [vmem:[%s15540_s26 + $0x18] sm:$0xff] }
  0x3a   :  { %v605_v11 = vld [vmem:[%s15540_s26 + $0x28] sm:$0xff]  ;;  %230 = vmatpush1.msra.mxu0 %v110_v8  ;;  %319 = vmatpush1.msra.mxu1 %v112_v9  ;;  %v607_v14 = vld [vmem:[%s15540_s26 + $0x38] sm:$0xff]  ;;  %v94_v15 = vld [vmem:[%s15541_s5] sm:$0x3] }
  0x3b   :  { %v12286_v12 = vpack.c.bf16 %v605_v11, %v601_v10  ;;  %v12300_v17 = vpack.c.bf16 %v607_v14, %v603_v13  ;;  %v95_v18 = vld [vmem:[%s15541_s5 + $0x2] sm:$0x3]  ;;  %v96_v19 = vld [vmem:[%s15541_s5 + $0x4] sm:$0x3]  ;;  %v97_v20 = vld [vmem:[%s15541_s5 + $0x6] sm:$0x3] }
  0x3c   :  { %v152_v21 = vcombine.low %v94_v15, %v95_v18  ;;  %v153_v22 = vcombine.low %v96_v19, %v97_v20  ;;  %v600_v23 = vld [vmem:[%s15540_s26] sm:$0xff]  ;;  %v602_v25 = vld [vmem:[%s15540_s26 + $0x10] sm:$0xff]  ;;  %v609_v27 = vld [vmem:[%s15540_s26 + $0x48] sm:$0xff] }
  0x3d   :  { %9329 = vmatprep.subr.bf16.mxu0 %v12286_v12  ;;  %v604_v24 = vld [vmem:[%s15540_s26 + $0x20] sm:$0xff]  ;;  %9361 = vmatprep.subr.bf16.mxu1 %v12300_v17  ;;  %v606_v26 = vld [vmem:[%s15540_s26 + $0x30] sm:$0xff]  ;;  %v613_v28 = vld [vmem:[%s15540_s26 + $0x68] sm:$0xff] }
  0x3e   :  { %v160_v29 = vrot.slane %v152_v21, %v12298_v16  ;;  %v167_v30 = vrot.slane %v153_v22, %v12298_v16  ;;  %v611_v31 = vld [vmem:[%s15540_s26 + $0x58] sm:$0xff]  ;;  %v12339_v33 = vpack.c.bf16 %v604_v24, %v600_v23  ;;  %v12341_v34 = vpack.c.bf16 %v606_v26, %v602_v25  ;;  %v608_v35 = vld [vmem:[%s15540_s26 + $0x40] sm:$0xff]  ;;  %v610_v40 = vld [vmem:[%s15540_s26 + $0x50] sm:$0xff] }
  0x3f   :  { %v615_v32 = vld [vmem:[%s15540_s26 + $0x78] sm:$0xff]  ;;  %v612_v36 = vld [vmem:[%s15540_s26 + $0x60] sm:$0xff]  ;;  %v12349_v38 = vpack.c.bf16 %v613_v28, %v609_v27  ;;  %v614_v41 = vld [vmem:[%s15540_s26 + $0x70] sm:$0xff] }
  0x40   :  { %v168_v37 = vcombine.low %v160_v29, %v167_v30  ;;  %v12351_v39 = vpack.c.bf16 %v615_v32, %v611_v31  ;;  %v617_v42 = vld [vmem:[%s15540_s26 + $0x88] sm:$0xff]  ;;  %v619_v44 = vld [vmem:[%s15540_s26 + $0x98] sm:$0xff]  ;;  %v12375_v46 = vpack.c.bf16 %v612_v36, %v608_v35  ;;  %v12377_v47 = vpack.c.bf16 %v614_v41, %v610_v40  ;;  %v616_v48 = vld [vmem:[%s15540_s26 + $0x80] sm:$0xff] }
  0x41   :  { %v621_v43 = vld [vmem:[%s15540_s26 + $0xa8] sm:$0xff]  ;;  %v623_v45 = vld [vmem:[%s15540_s26 + $0xb8] sm:$0xff]  ;;  %v620_v49 = vld [vmem:[%s15540_s26 + $0xa0] sm:$0xff] }
  0x42   :  { %9125 = vmatmul.mubr.msk.f32.vlgmr.msra.gmra.mrb[0].mxu0 %vm220_vm0, %v168_v37  ;;  %9129 = vmatmul.mubr.msk.f32.vlgmr.msra.gmra.mrb[0].mxu1 %vm220_vm0, %v168_v37  ;;  %v12387_v50 = vpack.c.bf16 %v621_v43, %v617_v42  ;;  %v12389_v51 = vpack.c.bf16 %v623_v45, %v619_v44  ;;  %v618_v52 = vld [vmem:[%s15540_s26 + $0x90] sm:$0xff]  ;;  %v625_v54 = vld [vmem:[%s15540_s26 + $0xc8] sm:$0xff]  ;;  %v627_v56 = vld [vmem:[%s15540_s26 + $0xd8] sm:$0xff]  ;;  %v12422_v61 = vpack.c.bf16 %v620_v49, %v616_v48 }
  0x43   :  { %9331 = vmatpush1.bf16.msra.mxu0 %v12339_v33  ;;  %9363 = vmatpush1.bf16.msra.mxu1 %v12341_v34  ;;  %v622_v53 = vld [vmem:[%s15540_s26 + $0xb0] sm:$0xff]  ;;  %v629_v55 = vld [vmem:[%s15540_s26 + $0xe8] sm:$0xff]  ;;  %v631_v57 = vld [vmem:[%s15540_s26 + $0xf8] sm:$0xff] }
  0x44   :  { %9333 = vmatprep.subr.bf16.mxu0 %v12349_v38  ;;  %9365 = vmatprep.subr.bf16.mxu1 %v12351_v39  ;;  %v624_v58 = vld [vmem:[%s15540_s26 + $0xc0] sm:$0xff]  ;;  %v626_v60 = vld [vmem:[%s15540_s26 + $0xd0] sm:$0xff]  ;;  %v12424_v62 = vpack.c.bf16 %v622_v53, %v618_v52  ;;  %v633_v1 = vld [vmem:[%s15540_s26 + $0x108] sm:$0xff]  ;;  %v12437_v3 = vpack.c.bf16 %v629_v55, %v625_v54  ;;  %v12439_v5 = vpack.c.bf16 %v631_v57, %v627_v56 }
  0x45   :  { %299 = vmatprep.mubr.f32.mxu0 %v15507_v0  ;;  %388 = vmatprep.mubr.f32.mxu1 %v15507_v0  ;;  %v628_v59 = vld [vmem:[%s15540_s26 + $0xe0] sm:$0xff]  ;;  %v630_v63 = vld [vmem:[%s15540_s26 + $0xf0] sm:$0xff]  ;;  %v637_v2 = vld [vmem:[%s15540_s26 + $0x128] sm:$0xff] }
  0x46   :  { %v98_v6 = vld [vmem:[%s15541_s5 + $0x8] sm:$0x3]  ;;  %v99_v7 = vld [vmem:[%s15541_s5 + $0xa] sm:$0x3]  ;;  %v100_v8 = vld [vmem:[%s15541_s5 + $0xc] sm:$0x3]  ;;  %v12470_v20 = vpack.c.bf16 %v628_v59, %v624_v58  ;;  %v12472_v21 = vpack.c.bf16 %v630_v63, %v626_v60  ;;  %v12486_v26 = vpack.c.bf16 %v637_v2, %v633_v1 }
  0x47   :  { %9335 = vmatpush1.bf16.msra.mxu0 %v12375_v46  ;;  %9367 = vmatpush1.bf16.msra.mxu1 %v12377_v47  ;;  %v635_v9 = vld [vmem:[%s15540_s26 + $0x118] sm:$0xff]  ;;  %v101_v11 = vld [vmem:[%s15541_s5 + $0xe] sm:$0x3]  ;;  %v169_v13 = vcombine.low %v98_v6, %v99_v7  ;;  %v632_v14 = vld [vmem:[%s15540_s26 + $0x100] sm:$0xff] }
  0x48   :  { %9337 = vmatprep.subr.bf16.mxu0 %v12387_v50  ;;  %9369 = vmatprep.subr.bf16.mxu1 %v12389_v51  ;;  %v639_v10 = vld [vmem:[%s15540_s26 + $0x138] sm:$0xff]  ;;  %v636_v15 = vld [vmem:[%s15540_s26 + $0x120] sm:$0xff]  ;;  %v634_v18 = vld [vmem:[%s15540_s26 + $0x110] sm:$0xff]  ;;  %v170_v19 = vcombine.low %v100_v8, %v101_v11 }
  0x49   :  { %v638_v22 = vld [vmem:[%s15540_s26 + $0x130] sm:$0xff]  ;;  %v177_v23 = vrot.slane %v169_v13, %v12298_v16  ;;  %v641_v24 = vld [vmem:[%s15540_s26 + $0x148] sm:$0xff]  ;;  %v12488_v27 = vpack.c.bf16 %v639_v10, %v635_v9  ;;  %v643_v32 = vld [vmem:[%s15540_s26 + $0x158] sm:$0xff]  ;;  %v12520_v45 = vpack.c.bf16 %v636_v15, %v632_v14 }
  0x4a   :  { %v645_v25 = vld [vmem:[%s15540_s26 + $0x168] sm:$0xff]  ;;  %v184_v28 = vrot.slane %v170_v19, %v12298_v16  ;;  %v102_v29 = vld [vmem:[%s15541_s5 + $0x10] sm:$0x3]  ;;  %v103_v30 = vld [vmem:[%s15541_s5 + $0x12] sm:$0x3]  ;;  %v12522_v48 = vpack.c.bf16 %v638_v22, %v634_v18 }
  0x4b   :  { %9339 = vmatpush1.bf16.msra.mxu0 %v12422_v61  ;;  %9371 = vmatpush1.bf16.msra.mxu1 %v12424_v62  ;;  %v104_v31 = vld [vmem:[%s15541_s5 + $0x14] sm:$0x3]  ;;  %v647_v35 = vld [vmem:[%s15540_s26 + $0x178] sm:$0xff]  ;;  %v105_v36 = vld [vmem:[%s15541_s5 + $0x16] sm:$0x3]  ;;  %v186_v37 = vcombine.low %v102_v29, %v103_v30  ;;  %v12536_v55 = vpack.c.bf16 %v645_v25, %v641_v24 }
  0x4c   :  { %9341 = vmatprep.subr.bf16.mxu0 %v12437_v3  ;;  %9373 = vmatprep.subr.bf16.mxu1 %v12439_v5  ;;  %v185_v40 = vcombine.low %v177_v23, %v184_v28  ;;  %v640_v41 = vld [vmem:[%s15540_s26 + $0x140] sm:$0xff]  ;;  %v642_v43 = vld [vmem:[%s15540_s26 + $0x150] sm:$0xff]  ;;  %v187_v44 = vcombine.low %v104_v31, %v105_v36  ;;  %v649_v53 = vld [vmem:[%s15540_s26 + $0x188] sm:$0xff]  ;;  %v12538_v56 = vpack.c.bf16 %v647_v35, %v643_v32 }
  0x4d   :  { %v644_v42 = vld [vmem:[%s15540_s26 + $0x160] sm:$0xff]  ;;  %v646_v49 = vld [vmem:[%s15540_s26 + $0x170] sm:$0xff]  ;;  %v194_v52 = vrot.slane %v186_v37, %v12298_v16  ;;  %v653_v54 = vld [vmem:[%s15540_s26 + $0x1a8] sm:$0xff] }
  0x4e   :  { %v201_v57 = vrot.slane %v187_v44, %v12298_v16  ;;  %v106_v58 = vld [vmem:[%s15541_s5 + $0x18] sm:$0x3]  ;;  %v107_v59 = vld [vmem:[%s15541_s5 + $0x1a] sm:$0x3]  ;;  %v108_v60 = vld [vmem:[%s15541_s5 + $0x1c] sm:$0x3]  ;;  %9126 = vmatmul.mubr.msk.f32.gmra.mrb[2].mxu0 %vm220_vm0, %v185_v40  ;;  %9130 = vmatmul.mubr.msk.f32.gmra.mrb[2].mxu1 %vm220_vm0, %v185_v40  ;;  %v12565_v9 = vpack.c.bf16 %v644_v42, %v640_v41  ;;  %v12567_v10 = vpack.c.bf16 %v646_v49, %v642_v43 }
  0x4f   :  { %9343 = vmatpush1.bf16.msra.mxu0 %v12470_v20  ;;  %9375 = vmatpush1.bf16.msra.mxu1 %v12472_v21  ;;  %v651_v63 = vld [vmem:[%s15540_s26 + $0x198] sm:$0xff]  ;;  %v203_v6 = vcombine.low %v106_v58, %v107_v59  ;;  %v648_v11 = vld [vmem:[%s15540_s26 + $0x180] sm:$0xff]  ;;  %v12578_v15 = vpack.c.bf16 %v653_v54, %v649_v53  ;;  %v650_v19 = vld [vmem:[%s15540_s26 + $0x190] sm:$0xff]  ;;  %v12682_v49 = vsub.s32 0, %v12266_v4  ;;  %v12689_v54 = vsub.s32 1, %v12266_v4 }
  0x50   :  { %9345 = vmatprep.subr.bf16.mxu0 %v12486_v26  ;;  %9377 = vmatprep.subr.bf16.mxu1 %v12488_v27  ;;  %v655_v1 = vld [vmem:[%s15540_s26 + $0x1b8] sm:$0xff]  ;;  %v202_v7 = vcombine.low %v194_v52, %v201_v57  ;;  %v652_v13 = vld [vmem:[%s15540_s26 + $0x1a0] sm:$0xff]  ;;  %v654_v22 = vld [vmem:[%s15540_s26 + $0x1b0] sm:$0xff]  ;;  %v15506_v52 = vsub.s32 2, %v12266_v4  ;;  %v15505_v57 = vsub.s32 3, %v12266_v4 }
  0x51   :  { %v109_v2 = vld [vmem:[%s15541_s5 + $0x1e] sm:$0x3]  ;;  %305 = vmatprep.mubr.f32.mxu0 %v15507_v0  ;;  %394 = vmatprep.mubr.f32.mxu1 %v15507_v0  ;;  %v211_v14 = vrot.slane %v203_v6, %v12298_v16  ;;  %v12580_v18 = vpack.c.bf16 %v655_v1, %v651_v63  ;;  %v657_v24 = vld [vmem:[%s15540_s26 + $0x1c8] sm:$0xff]  ;;  %v12607_v31 = vpack.c.bf16 %v652_v13, %v648_v11  ;;  %v656_v35 = vld [vmem:[%s15540_s26 + $0x1c0] sm:$0xff] }
  0x52   :  { %v204_v8 = vcombine.low %v108_v60, %v109_v2  ;;  %9127 = vmatmul.mubr.msk.f32.gmra.mrb[4].mxu0 %vm220_vm0, %v202_v7  ;;  %9131 = vmatmul.mubr.msk.f32.gmra.mrb[4].mxu1 %vm220_vm0, %v202_v7  ;;  %v661_v25 = vld [vmem:[%s15540_s26 + $0x1e8] sm:$0xff]  ;;  %v659_v28 = vld [vmem:[%s15540_s26 + $0x1d8] sm:$0xff]  ;;  %v12609_v32 = vpack.c.bf16 %v654_v22, %v650_v19  ;;  %v660_v40 = vld [vmem:[%s15540_s26 + $0x1e0] sm:$0xff]  ;;  %15542 = vst [vmem:[#allocation14_spill] sm:$0xff] %v12682_v49 }
  0x53   :  { %9347 = vmatpush1.bf16.msra.mxu0 %v12520_v45  ;;  %9379 = vmatpush1.bf16.msra.mxu1 %v12522_v48  ;;  %v663_v29 = vld [vmem:[%s15540_s26 + $0x1f8] sm:$0xff]  ;;  %v12616_v36 = vpack.c.bf16 %v661_v25, %v657_v24  ;;  %v658_v41 = vld [vmem:[%s15540_s26 + $0x1d0] sm:$0xff]  ;;  %v12635_v43 = vpack.c.bf16 %v660_v40, %v656_v35  ;;  %v114_v53 = vld [vmem:[%s15543_s29] sm:$0xf]  ;;  %15544 = vst [vmem:[#allocation15_spill] sm:$0xff] %v12689_v54 }
  0x54   :  { %9349 = vmatprep.subr.bf16.mxu0 %v12536_v55  ;;  %9381 = vmatprep.subr.bf16.mxu1 %v12538_v56  ;;  %v218_v23 = vrot.slane %v204_v8, %v12298_v16  ;;  %v12618_v37 = vpack.c.bf16 %v663_v29, %v659_v28  ;;  %v662_v42 = vld [vmem:[%s15540_s26 + $0x1f0] sm:$0xff]  ;;  %v119_v58 = vrot.slane %v114_v53, %v12682_v49 }
  0x55   :  { %311 = vmatprep.mubr.f32.mxu0 %v15507_v0  ;;  %400 = vmatprep.mubr.f32.mxu1 %v15507_v0  ;;  %v12637_v44 = vpack.c.bf16 %v662_v42, %v658_v41  ;;  %v131_v59 = vrot.slane %v114_v53, %v15505_v57 }
  0x56   :  { %v219_v30 = vcombine.low %v211_v14, %v218_v23 }
  0x57   :  { %9351 = vmatpush1.bf16.msra.mxu0 %v12565_v9  ;;  %9383 = vmatpush1.bf16.msra.mxu1 %v12567_v10 }
  0x58   :  { %9353 = vmatprep.subr.bf16.mxu0 %v12578_v15  ;;  %9385 = vmatprep.subr.bf16.mxu1 %v12580_v18 }
  0x59   :  { %9128 = vmatmul.mubr.msk.f32.gmra.mrb[6].mxu0 %vm220_vm0, %v219_v30  ;;  %9132 = vmatmul.mubr.msk.f32.gmra.mrb[6].mxu1 %vm220_vm0, %v219_v30 }
  0x5a   :  { %728 = vmatprep.mubr.f32.mxu0 %v15507_v0  ;;  %799 = vmatprep.mubr.f32.mxu1 %v15507_v0 }
  0x5b   :  { %9355 = vmatpush1.bf16.msra.mxu0 %v12607_v31  ;;  %9387 = vmatpush1.bf16.msra.mxu1 %v12609_v32 }
  0x5c   :  { %9357 = vmatprep.subr.bf16.mxu0 %v12616_v36  ;;  %9389 = vmatprep.subr.bf16.mxu1 %v12618_v37 }
  0x5f   :  { %9359 = vmatpush1.bf16.msra.mxu0 %v12635_v43  ;;  %9391 = vmatpush1.bf16.msra.mxu1 %v12637_v44 }
  0x60   :  { %9393 = vmatprep.subr.bf16.mxu0 %v12286_v12  ;;  %9425 = vmatprep.subr.bf16.mxu1 %v12300_v17 }
  0x62   :  { %729 = vmatmul.mubr.f32.vlgmr.msra.gmra.mrb[8].mxu0 %v15507_v0  ;;  %800 = vmatmul.mubr.f32.vlgmr.msra.gmra.mrb[8].mxu1 %v15507_v0 }
  0x63   :  { %9395 = vmatpush1.bf16.msra.mxu0 %v12339_v33  ;;  %9427 = vmatpush1.bf16.msra.mxu1 %v12341_v34 }
  0x64   :  { %9397 = vmatprep.subr.bf16.mxu0 %v12349_v38  ;;  %9429 = vmatprep.subr.bf16.mxu1 %v12351_v39 }
  0x65   :  { %991 = vmatprep.mubr.f32.mxu0 %v15507_v0  ;;  %1062 = vmatprep.mubr.f32.mxu1 %v15507_v0 }
  0x67   :  { %9399 = vmatpush1.bf16.msra.mxu0 %v12375_v46  ;;  %9431 = vmatpush1.bf16.msra.mxu1 %v12377_v47 }
  0x68   :  { %9401 = vmatprep.subr.bf16.mxu0 %v12387_v50  ;;  %9433 = vmatprep.subr.bf16.mxu1 %v12389_v51 }
  0x6b   :  { %9403 = vmatpush1.bf16.msra.mxu0 %v12422_v61  ;;  %9435 = vmatpush1.bf16.msra.mxu1 %v12424_v62 }
  0x6c   :  { %9405 = vmatprep.subr.bf16.mxu0 %v12437_v3  ;;  %9437 = vmatprep.subr.bf16.mxu1 %v12439_v5 }
  0x6f   :  { %9407 = vmatpush1.bf16.msra.mxu0 %v12470_v20  ;;  %9439 = vmatpush1.bf16.msra.mxu1 %v12472_v21 }
  0x70   :  { %9409 = vmatprep.subr.bf16.mxu0 %v12486_v26  ;;  %9441 = vmatprep.subr.bf16.mxu1 %v12488_v27 }
  0x73   :  { %9411 = vmatpush1.bf16.msra.mxu0 %v12520_v45  ;;  %9443 = vmatpush1.bf16.msra.mxu1 %v12522_v48 }
  0x74   :  { %9413 = vmatprep.subr.bf16.mxu0 %v12536_v55  ;;  %9445 = vmatprep.subr.bf16.mxu1 %v12538_v56 }
  0x77   :  { %9415 = vmatpush1.bf16.msra.mxu0 %v12565_v9  ;;  %9447 = vmatpush1.bf16.msra.mxu1 %v12567_v10 }
  0x78   :  { %9417 = vmatprep.subr.bf16.mxu0 %v12578_v15  ;;  %9449 = vmatprep.subr.bf16.mxu1 %v12580_v18 }
  0x7b   :  { %9419 = vmatpush1.bf16.msra.mxu0 %v12607_v31  ;;  %9451 = vmatpush1.bf16.msra.mxu1 %v12609_v32 }
  0x7c   :  { %9421 = vmatprep.subr.bf16.mxu0 %v12616_v36  ;;  %9453 = vmatprep.subr.bf16.mxu1 %v12618_v37 }
  0x7f   :  { %9423 = vmatpush1.bf16.msra.mxu0 %v12635_v43  ;;  %9455 = vmatpush1.bf16.msra.mxu1 %v12637_v44 }
  0x80   :  { %9457 = vmatprep.subr.bf16.mxu0 %v12286_v12  ;;  %9489 = vmatprep.subr.bf16.mxu1 %v12300_v17  ;;  %v127_v12 = vrot.slane %v114_v53, %v15506_v52  ;;  %v123_v17 = vrot.slane %v114_v53, %v12689_v54 }
 0x115   :  { %v295_v60 = vpop.f32.mrb[0].mxu0  ;;  %v384_v63 = vpop.f32.mrb[0].mxu1 }
 0x116   :  { %v296_v1 = vadd.f32 %v295_v60, %v119_v58  ;;  %v385_v2 = vadd.f32 %v384_v63, %v127_v12  ;;  %v297_v6 = vpop.f32.mrb[1].mxu0  ;;  %v386_v7 = vpop.f32.mrb[1].mxu1 }
 0x117   :  { %v298_v8 = vadd.f32 %v297_v6, %v123_v17  ;;  %v387_v11 = vadd.f32 %v386_v7, %v131_v59 }
 0x119   :  { %v423_v13 = vcombine.low %v296_v1, %v298_v8  ;;  %v424_v14 = vcombine.high %v296_v1, %v298_v8  ;;  %v425_v19 = vcombine.low %v385_v2, %v387_v11  ;;  %v426_v22 = vcombine.high %v385_v2, %v387_v11 }
 0x11b   :  { %v12699_v23 = vrot.slane %v423_v13, %v12298_v16  ;;  %v12702_v24 = vrot.slane %v424_v14, %v12298_v16  ;;  %v12705_v25 = vrot.slane %v425_v19, %v12298_v16  ;;  %v12708_v28 = vrot.slane %v426_v22, %v12298_v16 }
 0x121   :  { %v301_v41 = vpop.f32.mrb[2].mxu0  ;;  %v390_v42 = vpop.f32.mrb[2].mxu1 }
 0x122   :  { %v302_v53 = vadd.f32 %v301_v41, %v119_v58  ;;  %v391_v60 = vadd.f32 %v390_v42, %v127_v12  ;;  %v303_v63 = vpop.f32.mrb[3].mxu0  ;;  %v392_v1 = vpop.f32.mrb[3].mxu1 }
 0x123   :  { %v304_v2 = vadd.f32 %v303_v63, %v123_v17  ;;  %v393_v6 = vadd.f32 %v392_v1, %v131_v59 }
 0x125   :  { %v459_v7 = vcombine.low %v302_v53, %v304_v2  ;;  %v460_v8 = vcombine.high %v302_v53, %v304_v2  ;;  %v461_v11 = vcombine.low %v391_v60, %v393_v6  ;;  %v462_v13 = vcombine.high %v391_v60, %v393_v6  ;;  %v307_v14 = vpop.f32.mrb[4].mxu0  ;;  %v396_v19 = vpop.f32.mrb[4].mxu1 }
 0x126   :  { %v308_v22 = vadd.f32 %v307_v14, %v119_v58  ;;  %v397_v57 = vadd.f32 %v396_v19, %v127_v12  ;;  %v309_v52 = vpop.f32.mrb[5].mxu0  ;;  %v398_v35 = vpop.f32.mrb[5].mxu1 }
 0x127   :  { %v12719_v40 = vrot.slane %v459_v7, %v12298_v16  ;;  %v12722_v41 = vrot.slane %v460_v8, %v12298_v16  ;;  %v12725_v42 = vrot.slane %v461_v11, %v12298_v16  ;;  %v12728_v63 = vrot.slane %v462_v13, %v12298_v16 }
 0x128   :  { %v310_v53 = vadd.f32 %v309_v52, %v123_v17  ;;  %v399_v60 = vadd.f32 %v398_v35, %v131_v59 }
 0x12a   :  { %v495_v14 = vcombine.low %v308_v22, %v310_v53  ;;  %v496_v19 = vcombine.high %v308_v22, %v310_v53  ;;  %v497_v13 = vcombine.low %v397_v57, %v399_v60  ;;  %v498_v30 = vcombine.high %v397_v57, %v399_v60 }
 0x12c   :  { %v313_v8 = vpop.f32.mrb[6].mxu0  ;;  %v402_v11 = vpop.f32.mrb[6].mxu1  ;;  %v12739_v2 = vrot.slane %v495_v14, %v12298_v16  ;;  %v12742_v6 = vrot.slane %v496_v19, %v12298_v16  ;;  %v12745_v7 = vrot.slane %v497_v13, %v12298_v16  ;;  %v12748_v4 = vrot.slane %v498_v30, %v12298_v16 }
 0x12d   :  { %v315_v52 = vpop.f32.mrb[7].mxu0  ;;  %v404_v35 = vpop.f32.mrb[7].mxu1  ;;  %v314_v0 = vadd.f32 %v313_v8, %v119_v58  ;;  %v403_v29 = vadd.f32 %v402_v11, %v127_v12 }
 0x12e   :  { %v316_v1 = vadd.f32 %v315_v52, %v123_v17  ;;  %v405_v54 = vadd.f32 %v404_v35, %v131_v59 }
 0x130   :  { %v531_v22 = vcombine.low %v314_v0, %v316_v1  ;;  %v532_v57 = vcombine.high %v314_v0, %v316_v1  ;;  %v533_v53 = vcombine.low %v403_v29, %v405_v54  ;;  %v534_v60 = vcombine.high %v403_v29, %v405_v54 }
 0x131   :  { %v15548_v1 = vcombine.low %v12699_v23, %v12705_v25 }
 0x132   :  { %v12759_v8 = vrot.slane %v531_v22, %v12298_v16  ;;  %v12762_v30 = vrot.slane %v532_v57, %v12298_v16  ;;  %v12765_v0 = vrot.slane %v533_v53, %v12298_v16  ;;  %v12768_v54 = vrot.slane %v534_v60, %v12298_v16 }
 0x134   :  { %15545 = vst [vmem:[#allocation16_spill] sm:$0xff] %v12762_v30  ;;  %15546 = vst [vmem:[#allocation17_spill] sm:$0xff] %v12765_v0 }
 0x135   :  { %15547 = vst [vmem:[#allocation18_spill] sm:$0xff] %v12768_v54  ;;  %v730_v19 = vpop.f32.mrb[8].mxu0  ;;  %v801_v13 = vpop.f32.mrb[8].mxu1 }
 0x136   :  { %v732_v52 = vpop.f32.mrb[9].mxu0  ;;  %v803_v35 = vpop.f32.mrb[9].mxu1 }
 0x137   :  { %v810_v22 = vcombine.low %v730_v19, %v732_v52  ;;  %v811_v57 = vcombine.low %v801_v13, %v803_v35 }
 0x139   :  { %v818_v53 = vrot.slane %v810_v22, %v12298_v16  ;;  %v825_v60 = vrot.slane %v811_v57, %v12298_v16 }
 0x13b   :  { %v826_v29 = vcombine.low %v818_v53, %v825_v60  ;;  %v1394_v60 = vld [vmem:[%s15540_s26 + $0x18] sm:$0xff] }
 0x13d   :  { %v828_v59 = vadd.f32 %v826_v29, %v15548_v1 }
 0x13f   :  { %v9133_v17 = vmul.f32 -1.442695, %v828_v59  ;;  %v836_v11 = vrot.slane %v828_v59, 2  ;;  %v847_v14 = vrot.slane %v828_v59, 6  ;;  %v844_v54 = vrot.slane %v828_v59, 4 }
 0x141   :  { %11542 = vpow2.f32 %v9133_v17  ;;  %v9134_v12 = vmul.f32 -1.442695, %v836_v11  ;;  %v9135_v58 = vmul.f32 -1.442695, %v847_v14  ;;  %v1396_v14 = vld [vmem:[%s15540_s26 + $0x28] sm:$0xff] }
 0x143   :  { %11544 = vpow2.f32 %v9134_v12 }
 0x144   :  { %11546 = vpow2.f32 %v9135_v58  ;;  %v15549_v58 = vmov 0.0  }
 0x14b   :  { %v11543_v49 = vpop.eup %11542 }
 0x14c   :  { %v832_v19 = vadd.f32 1.0, %v11543_v49 }
 0x14d   :  { %v11545_v13 = vpop.eup %11544 }
 0x14e   :  { %11548 = vrcp.f32 %v832_v19  ;;  %v841_v52 = vadd.f32 1.0, %v11545_v13  ;;  %v11547_v35 = vpop.eup %11546  ;;  %v1398_v13 = vld [vmem:[%s15540_s26 + $0x38] sm:$0xff] }
 0x14f   :  { %11550 = vtanh.f32 %v844_v54  ;;  %v852_v1 = vadd.f32 1.0, %v11547_v35  ;;  %v1392_v54 = vld [vmem:[%s15540_s26 + $0x8] sm:$0xff]  ;;  %v1395_v35 = vld [vmem:[%s15540_s26 + $0x20] sm:$0xff] }
 0x150   :  { %11552 = vrcp.f32 %v841_v52  ;;  %v12838_v19 = vpack.c.bf16 %v1396_v14, %v1392_v54  ;;  %v1391_v52 = vld [vmem:[%s15540_s26] sm:$0xff]  ;;  %v1428_v54 = vld [vmem:[%s15540_s26 + $0x128] sm:$0xff]  ;;  %v1426_v14 = vld [vmem:[%s15540_s26 + $0x118] sm:$0xff] }
 0x151   :  { %11554 = vrcp.f32 %v852_v1  ;;  %v1397_v1 = vld [vmem:[%s15540_s26 + $0x30] sm:$0xff] }
 0x158   :  { %v11549_v22 = vpop.eup %11548 }
 0x159   :  { %v11551_v57 = vpop.eup %11550 }
 0x15a   :  { %v11553_v29 = vpop.eup %11552  ;;  %v856_v17 = vmul.f32 %v11551_v57, %v11549_v22  ;;  %v12849_v22 = vpack.c.bf16 %v1398_v13, %v1394_v60  ;;  %v12851_v57 = vpack.c.bf16 %v1395_v35, %v1391_v52  ;;  %v1430_v52 = vld [vmem:[%s15540_s26 + $0x138] sm:$0xff]  ;;  %v1423_v35 = vld [vmem:[%s15540_s26 + $0x100] sm:$0xff] }
 0x15b   :  { %v855_v53 = vmul.f32 0.0, %v11553_v29  ;;  %v11555_v12 = vpop.eup %11554  ;;  %v1393_v29 = vld [vmem:[%s15540_s26 + $0x10] sm:$0xff] }
 0x15d   :  { %v12783_v11 = vadd.f32 %v856_v17, %v855_v53  ;;  %v12860_v53 = vpack.c.bf16 %v1397_v1, %v1393_v29  ;;  %v1400_v17 = vld [vmem:[%s15540_s26 + $0x48] sm:$0xff]  ;;  %v1427_v29 = vld [vmem:[%s15540_s26 + $0x120] sm:$0xff]  ;;  %v12991_v1 = vpack.c.bf16 %v1430_v52, %v1426_v14 }
 0x15e   :  { %v1448_v14 = vld [vmem:[%s15540_s26 + $0x1c8] sm:$0xff] }
 0x15f   :  { %11556 = vtanh.f32 %v12783_v11  ;;  %v1452_v52 = vld [vmem:[%s15540_s26 + $0x1e8] sm:$0xff] }
 0x169   :  { %v11557_v49 = vpop.eup %11556 }
 0x16a   :  { %v859_v59 = vmul.f32 %v11557_v49, %v11555_v12  ;;  %v1402_v12 = vld [vmem:[%s15540_s26 + $0x58] sm:$0xff] }
 0x16c   :  { %860 = vst [vmem:[#allocation3] sm:$0x3] %v859_v59  ;;  %992 = vmatmul.mubr.f32.vlgmr.msra.gmra.mrb[10].mxu0 %v859_v59  ;;  %1063 = vmatmul.mubr.f32.vlgmr.msra.gmra.mrb[10].mxu1 %v859_v59  ;;  %v1406_v59 = vld [vmem:[%s15540_s26 + $0x78] sm:$0xff] }
 0x16d   :  { %9459 = vmatpush1.bf16.msra.mxu0 %v12339_v33  ;;  %9491 = vmatpush1.bf16.msra.mxu1 %v12341_v34 }
 0x16e   :  { %9461 = vmatprep.subr.bf16.mxu0 %v12349_v38  ;;  %9493 = vmatprep.subr.bf16.mxu1 %v12351_v39 }
 0x16f   :  { %1255 = vmatprep.mubr.f32.mxu0 %v15549_v58  ;;  %1326 = vmatprep.mubr.f32.mxu1 %v15549_v58 }
 0x171   :  { %9463 = vmatpush1.bf16.msra.mxu0 %v12375_v46  ;;  %9495 = vmatpush1.bf16.msra.mxu1 %v12377_v47 }
 0x172   :  { %9465 = vmatprep.subr.bf16.mxu0 %v12387_v50  ;;  %9497 = vmatprep.subr.bf16.mxu1 %v12389_v51 }
 0x175   :  { %9467 = vmatpush1.bf16.msra.mxu0 %v12422_v61  ;;  %9499 = vmatpush1.bf16.msra.mxu1 %v12424_v62  ;;  %v15550_v62 = vcombine.high %v12699_v23, %v12705_v25 }
 0x176   :  { %9469 = vmatprep.subr.bf16.mxu0 %v12437_v3  ;;  %9501 = vmatprep.subr.bf16.mxu1 %v12439_v5 }
 0x179   :  { %9471 = vmatpush1.bf16.msra.mxu0 %v12470_v20  ;;  %9503 = vmatpush1.bf16.msra.mxu1 %v12472_v21 }
 0x17a   :  { %9473 = vmatprep.subr.bf16.mxu0 %v12486_v26  ;;  %9505 = vmatprep.subr.bf16.mxu1 %v12488_v27 }
 0x17d   :  { %9475 = vmatpush1.bf16.msra.mxu0 %v12520_v45  ;;  %9507 = vmatpush1.bf16.msra.mxu1 %v12522_v48 }
 0x17e   :  { %9477 = vmatprep.subr.bf16.mxu0 %v12536_v55  ;;  %9509 = vmatprep.subr.bf16.mxu1 %v12538_v56 }
 0x181   :  { %9479 = vmatpush1.bf16.msra.mxu0 %v12565_v9  ;;  %9511 = vmatpush1.bf16.msra.mxu1 %v12567_v10 }
 0x182   :  { %9481 = vmatprep.subr.bf16.mxu0 %v12578_v15  ;;  %9513 = vmatprep.subr.bf16.mxu1 %v12580_v18 }
 0x185   :  { %9483 = vmatpush1.bf16.msra.mxu0 %v12607_v31  ;;  %9515 = vmatpush1.bf16.msra.mxu1 %v12609_v32 }
 0x186   :  { %9485 = vmatprep.subr.bf16.mxu0 %v12616_v36  ;;  %9517 = vmatprep.subr.bf16.mxu1 %v12618_v37 }
 0x189   :  { %9487 = vmatpush1.bf16.msra.mxu0 %v12635_v43  ;;  %9519 = vmatpush1.bf16.msra.mxu1 %v12637_v44 }
 0x18a   :  { %9521 = vmatprep.subr.bf16.mxu0 %v12838_v19  ;;  %9553 = vmatprep.subr.bf16.mxu1 %v12849_v22 }
 0x23f   :  { %v993_v33 = vpop.f32.mrb[10].mxu0  ;;  %v1064_v34 = vpop.f32.mrb[10].mxu1 }
 0x240   :  { %v995_v38 = vpop.f32.mrb[11].mxu0  ;;  %v1066_v39 = vpop.f32.mrb[11].mxu1 }
 0x241   :  { %v1073_v46 = vcombine.low %v993_v33, %v995_v38  ;;  %v1074_v47 = vcombine.low %v1064_v34, %v1066_v39  ;;  %v1399_v33 = vld [vmem:[%s15540_s26 + $0x40] sm:$0xff]  ;;  %v12885_v38 = vpack.c.bf16 %v1406_v59, %v1402_v12  ;;  %v1432_v12 = vld [vmem:[%s15540_s26 + $0x148] sm:$0xff] }
 0x242   :  { %v1403_v34 = vld [vmem:[%s15540_s26 + $0x60] sm:$0xff]  ;;  %v1436_v59 = vld [vmem:[%s15540_s26 + $0x168] sm:$0xff] }
 0x243   :  { %v1081_v50 = vrot.slane %v1073_v46, %v12298_v16  ;;  %v1088_v51 = vrot.slane %v1074_v47, %v12298_v16  ;;  %v12887_v39 = vpack.c.bf16 %v1403_v34, %v1399_v33  ;;  %v1401_v46 = vld [vmem:[%s15540_s26 + $0x50] sm:$0xff]  ;;  %v1434_v33 = vld [vmem:[%s15540_s26 + $0x158] sm:$0xff] }
 0x244   :  { %v1405_v47 = vld [vmem:[%s15540_s26 + $0x70] sm:$0xff]  ;;  %v1438_v34 = vld [vmem:[%s15540_s26 + $0x178] sm:$0xff] }
 0x245   :  { %v1089_v61 = vcombine.low %v1081_v50, %v1088_v51  ;;  %v1408_v50 = vld [vmem:[%s15540_s26 + $0x88] sm:$0xff]  ;;  %v12899_v51 = vpack.c.bf16 %v1405_v47, %v1401_v46  ;;  %v13012_v46 = vpack.c.bf16 %v1427_v29, %v1423_v35  ;;  %v1450_v35 = vld [vmem:[%s15540_s26 + $0x1d8] sm:$0xff] }
 0x246   :  { %v1454_v29 = vld [vmem:[%s15540_s26 + $0x1f8] sm:$0xff] }
 0x247   :  { %v1091_v3 = vadd.f32 %v1089_v61, %v15550_v62  ;;  %v1412_v61 = vld [vmem:[%s15540_s26 + $0xa8] sm:$0xff]  ;;  %v1410_v62 = vld [vmem:[%s15540_s26 + $0x98] sm:$0xff] }
 0x249   :  { %v9136_v5 = vmul.f32 -1.442695, %v1091_v3  ;;  %v1099_v20 = vrot.slane %v1091_v3, 2  ;;  %v1110_v26 = vrot.slane %v1091_v3, 6  ;;  %v1107_v48 = vrot.slane %v1091_v3, 4  ;;  %v1414_v3 = vld [vmem:[%s15540_s26 + $0xb8] sm:$0xff] }
 0x24b   :  { %11558 = vpow2.f32 %v9136_v5  ;;  %v9137_v21 = vmul.f32 -1.442695, %v1099_v20  ;;  %v9138_v27 = vmul.f32 -1.442695, %v1110_v26  ;;  %v12912_v5 = vpack.c.bf16 %v1412_v61, %v1408_v50  ;;  %v1411_v26 = vld [vmem:[%s15540_s26 + $0xa0] sm:$0xff] }
 0x24c   :  { %v12914_v20 = vpack.c.bf16 %v1414_v3, %v1410_v62  ;;  %v13018_v50 = vpack.c.bf16 %v1436_v59, %v1432_v12  ;;  %v1431_v61 = vld [vmem:[%s15540_s26 + $0x140] sm:$0xff]  ;;  %v1433_v3 = vld [vmem:[%s15540_s26 + $0x150] sm:$0xff]  ;;  %v13090_v12 = vpack.c.bf16 %v1452_v52, %v1448_v14  ;;  %v15551_v52 = vcombine.low %v12702_v24, %v12708_v28 }
 0x24d   :  { %11560 = vpow2.f32 %v9137_v21  ;;  %v1407_v21 = vld [vmem:[%s15540_s26 + $0x80] sm:$0xff] }
 0x24e   :  { %11562 = vpow2.f32 %v9138_v27  ;;  %v1409_v27 = vld [vmem:[%s15540_s26 + $0x90] sm:$0xff]  ;;  %v1435_v62 = vld [vmem:[%s15540_s26 + $0x160] sm:$0xff] }
 0x24f   :  { %v1447_v59 = vld [vmem:[%s15540_s26 + $0x1c0] sm:$0xff] }
 0x255   :  { %v11559_v45 = vpop.eup %11558 }
 0x256   :  { %v1095_v55 = vadd.f32 1.0, %v11559_v45  ;;  %v12926_v45 = vpack.c.bf16 %v1411_v26, %v1407_v21  ;;  %v13030_v21 = vpack.c.bf16 %v1438_v34, %v1434_v33  ;;  %v1437_v26 = vld [vmem:[%s15540_s26 + $0x170] sm:$0xff]  ;;  %v1451_v33 = vld [vmem:[%s15540_s26 + $0x1e0] sm:$0xff]  ;;  %v13099_v34 = vpack.c.bf16 %v1454_v29, %v1450_v35 }
 0x257   :  { %v11561_v56 = vpop.eup %11560 }
 0x258   :  { %11564 = vrcp.f32 %v1095_v55  ;;  %v1104_v9 = vadd.f32 1.0, %v11561_v56  ;;  %v11563_v10 = vpop.eup %11562  ;;  %v1416_v55 = vld [vmem:[%s15540_s26 + $0xc8] sm:$0xff] }
 0x259   :  { %11566 = vtanh.f32 %v1107_v48  ;;  %v1115_v32 = vadd.f32 1.0, %v11563_v10  ;;  %v1413_v48 = vld [vmem:[%s15540_s26 + $0xb0] sm:$0xff]  ;;  %v1420_v56 = vld [vmem:[%s15540_s26 + $0xe8] sm:$0xff] }
 0x25a   :  { %11568 = vrcp.f32 %v1104_v9  ;;  %v12939_v9 = vpack.c.bf16 %v1413_v48, %v1409_v27  ;;  %v12941_v10 = vpack.c.bf16 %v1420_v56, %v1416_v55  ;;  %v1440_v27 = vld [vmem:[%s15540_s26 + $0x188] sm:$0xff]  ;;  %v1442_v55 = vld [vmem:[%s15540_s26 + $0x198] sm:$0xff] }
 0x25b   :  { %11570 = vrcp.f32 %v1115_v32  ;;  %v1444_v48 = vld [vmem:[%s15540_s26 + $0x1a8] sm:$0xff]  ;;  %v1446_v56 = vld [vmem:[%s15540_s26 + $0x1b8] sm:$0xff] }
 0x262   :  { %v11565_v15 = vpop.eup %11564 }
 0x263   :  { %v11567_v18 = vpop.eup %11566 }
 0x264   :  { %v11569_v31 = vpop.eup %11568  ;;  %v1119_v37 = vmul.f32 %v11567_v18, %v11565_v15  ;;  %v1418_v15 = vld [vmem:[%s15540_s26 + $0xd8] sm:$0xff] }
 0x265   :  { %v1118_v36 = vmul.f32 %v11569_v31, %v12783_v11  ;;  %v11571_v44 = vpop.eup %11570  ;;  %v1404_v11 = vld [vmem:[%s15540_s26 + $0x68] sm:$0xff]  ;;  %v1422_v18 = vld [vmem:[%s15540_s26 + $0xf8] sm:$0xff]  ;;  %v1415_v31 = vld [vmem:[%s15540_s26 + $0xc0] sm:$0xff] }
 0x266   :  { %v12874_v49 = vpack.c.bf16 %v1404_v11, %v1400_v17  ;;  %v12952_v32 = vpack.c.bf16 %v1422_v18, %v1418_v15  ;;  %v1425_v17 = vld [vmem:[%s15540_s26 + $0x110] sm:$0xff]  ;;  %v13048_v15 = vpack.c.bf16 %v1435_v62, %v1431_v61  ;;  %v13052_v18 = vpack.c.bf16 %v1437_v26, %v1433_v3 }
 0x267   :  { %v12824_v43 = vadd.f32 %v1119_v37, %v1118_v36  ;;  %v1419_v36 = vld [vmem:[%s15540_s26 + $0xe0] sm:$0xff]  ;;  %v1417_v37 = vld [vmem:[%s15540_s26 + $0xd0] sm:$0xff]  ;;  %v13108_v3 = vpack.c.bf16 %v1451_v33, %v1447_v59 }
 0x268   :  { %v1429_v11 = vld [vmem:[%s15540_s26 + $0x130] sm:$0xff] }
 0x269   :  { %11572 = vtanh.f32 %v12824_v43  ;;  %v13016_v47 = vpack.c.bf16 %v1429_v11, %v1425_v17  ;;  %v1449_v61 = vld [vmem:[%s15540_s26 + $0x1d0] sm:$0xff] }
 0x26a   :  { %v1453_v62 = vld [vmem:[%s15540_s26 + $0x1f0] sm:$0xff] }
 0x26b   :  { %v13112_v26 = vpack.c.bf16 %v1453_v62, %v1449_v61 }
 0x273   :  { %v11573_v23 = vpop.eup %11572 }
 0x274   :  { %v1122_v25 = vmul.f32 %v11573_v23, %v11571_v44  ;;  %v1421_v44 = vld [vmem:[%s15540_s26 + $0xf0] sm:$0xff]  ;;  %v12964_v23 = vpack.c.bf16 %v1419_v36, %v1415_v31  ;;  %v13054_v31 = vpack.c.bf16 %v1444_v48, %v1440_v27  ;;  %v1439_v36 = vld [vmem:[%s15540_s26 + $0x180] sm:$0xff] }
 0x275   :  { %v12977_v60 = vpack.c.bf16 %v1421_v44, %v1417_v37  ;;  %v1443_v37 = vld [vmem:[%s15540_s26 + $0x1a0] sm:$0xff]  ;;  %v1441_v44 = vld [vmem:[%s15540_s26 + $0x190] sm:$0xff] }
 0x276   :  { %1124 = vst [vmem:[#allocation3 + $0x2] sm:$0x3] %v1122_v25  ;;  %1256 = vmatmul.mubr.f32.vlgmr.msra.gmra.mrb[12].mxu0 %v1122_v25  ;;  %1327 = vmatmul.mubr.f32.vlgmr.msra.gmra.mrb[12].mxu1 %v1122_v25  ;;  %v1424_v25 = vld [vmem:[%s15540_s26 + $0x108] sm:$0xff]  ;;  %v13084_v17 = vpack.c.bf16 %v1443_v37, %v1439_v36 }
 0x277   :  { %1519 = vmatprep.mubr.f32.mxu0 %v15549_v58  ;;  %1590 = vmatprep.mubr.f32.mxu1 %v15549_v58  ;;  %v12979_v13 = vpack.c.bf16 %v1428_v54, %v1424_v25  ;;  %v13066_v25 = vpack.c.bf16 %v1446_v56, %v1442_v55  ;;  %v1445_v54 = vld [vmem:[%s15540_s26 + $0x1b0] sm:$0xff] }
 0x278   :  { %9523 = vmatpush1.bf16.msra.mxu0 %v12851_v57  ;;  %9555 = vmatpush1.bf16.msra.mxu1 %v12860_v53  ;;  %v13088_v11 = vpack.c.bf16 %v1445_v54, %v1441_v44 }
 0x279   :  { %9525 = vmatprep.subr.bf16.mxu0 %v12874_v49  ;;  %9557 = vmatprep.subr.bf16.mxu1 %v12885_v38 }
 0x27c   :  { %9527 = vmatpush1.bf16.msra.mxu0 %v12887_v39  ;;  %9559 = vmatpush1.bf16.msra.mxu1 %v12899_v51 }
 0x27d   :  { %9529 = vmatprep.subr.bf16.mxu0 %v12912_v5  ;;  %9561 = vmatprep.subr.bf16.mxu1 %v12914_v20 }
 0x280   :  { %9531 = vmatpush1.bf16.msra.mxu0 %v12926_v45  ;;  %9563 = vmatpush1.bf16.msra.mxu1 %v12939_v9 }
 0x281   :  { %9533 = vmatprep.subr.bf16.mxu0 %v12941_v10  ;;  %9565 = vmatprep.subr.bf16.mxu1 %v12952_v32 }
 0x284   :  { %9535 = vmatpush1.bf16.msra.mxu0 %v12964_v23  ;;  %9567 = vmatpush1.bf16.msra.mxu1 %v12977_v60 }
 0x285   :  { %9537 = vmatprep.subr.bf16.mxu0 %v12979_v13  ;;  %9569 = vmatprep.subr.bf16.mxu1 %v12991_v1 }
 0x288   :  { %9539 = vmatpush1.bf16.msra.mxu0 %v13012_v46  ;;  %9571 = vmatpush1.bf16.msra.mxu1 %v13016_v47 }
 0x289   :  { %9541 = vmatprep.subr.bf16.mxu0 %v13018_v50  ;;  %9573 = vmatprep.subr.bf16.mxu1 %v13030_v21 }
 0x28c   :  { %9543 = vmatpush1.bf16.msra.mxu0 %v13048_v15  ;;  %9575 = vmatpush1.bf16.msra.mxu1 %v13052_v18 }
 0x28d   :  { %9545 = vmatprep.subr.bf16.mxu0 %v13054_v31  ;;  %9577 = vmatprep.subr.bf16.mxu1 %v13066_v25 }
 0x290   :  { %9547 = vmatpush1.bf16.msra.mxu0 %v13084_v17  ;;  %9579 = vmatpush1.bf16.msra.mxu1 %v13088_v11 }
 0x291   :  { %9549 = vmatprep.subr.bf16.mxu0 %v13090_v12  ;;  %9581 = vmatprep.subr.bf16.mxu1 %v13099_v34 }
 0x294   :  { %9551 = vmatpush1.bf16.msra.mxu0 %v13108_v3  ;;  %9583 = vmatpush1.bf16.msra.mxu1 %v13112_v26 }
 0x295   :  { %9585 = vmatprep.subr.bf16.mxu0 %v12838_v19  ;;  %9617 = vmatprep.subr.bf16.mxu1 %v12849_v22 }
 0x349   :  { %v1257_v27 = vpop.f32.mrb[12].mxu0  ;;  %v1328_v48 = vpop.f32.mrb[12].mxu1 }
 0x34a   :  { %v1259_v55 = vpop.f32.mrb[13].mxu0  ;;  %v1330_v56 = vpop.f32.mrb[13].mxu1 }
 0x34b   :  { %v1337_v36 = vcombine.low %v1257_v27, %v1259_v55  ;;  %v1338_v37 = vcombine.low %v1328_v48, %v1330_v56 }
 0x34d   :  { %v1345_v44 = vrot.slane %v1337_v36, %v12298_v16  ;;  %v1352_v54 = vrot.slane %v1338_v37, %v12298_v16 }
 0x34f   :  { %v1353_v14 = vcombine.low %v1345_v44, %v1352_v54 }
 0x351   :  { %v1355_v35 = vadd.f32 %v1353_v14, %v15551_v52 }
 0x353   :  { %v9139_v29 = vmul.f32 -1.442695, %v1355_v35  ;;  %v1363_v59 = vrot.slane %v1355_v35, 2  ;;  %v1374_v61 = vrot.slane %v1355_v35, 6  ;;  %v1371_v0 = vrot.slane %v1355_v35, 4 }
 0x355   :  { %11574 = vpow2.f32 %v9139_v29  ;;  %v9140_v33 = vmul.f32 -1.442695, %v1363_v59  ;;  %v9141_v62 = vmul.f32 -1.442695, %v1374_v61 }
 0x357   :  { %11576 = vpow2.f32 %v9140_v33 }
 0x358   :  { %11578 = vpow2.f32 %v9141_v62 }
 0x35f   :  { %v11575_v30 = vpop.eup %11574 }
 0x360   :  { %v1359_v27 = vadd.f32 1.0, %v11575_v30 }
 0x361   :  { %v11577_v48 = vpop.eup %11576 }
 0x362   :  { %11580 = vrcp.f32 %v1359_v27  ;;  %v1368_v55 = vadd.f32 1.0, %v11577_v48  ;;  %v11579_v56 = vpop.eup %11578 }
 0x363   :  { %11582 = vtanh.f32 %v1371_v0  ;;  %v1379_v54 = vadd.f32 1.0, %v11579_v56 }
 0x364   :  { %11584 = vrcp.f32 %v1368_v55 }
 0x365   :  { %11586 = vrcp.f32 %v1379_v54 }
 0x36c   :  { %v11581_v36 = vpop.eup %11580 }
 0x36d   :  { %v11583_v37 = vpop.eup %11582 }
 0x36e   :  { %v11585_v44 = vpop.eup %11584  ;;  %v1383_v52 = vmul.f32 %v11583_v37, %v11581_v36  ;;  %v15552_v36 = vcombine.high %v12702_v24, %v12708_v28 }
 0x36f   :  { %v1382_v14 = vmul.f32 %v11585_v44, %v12824_v43  ;;  %v11587_v30 = vpop.eup %11586 }
 0x371   :  { %v13125_v29 = vadd.f32 %v1383_v52, %v1382_v14 }
 0x373   :  { %11588 = vtanh.f32 %v13125_v29 }
 0x37d   :  { %v11589_v35 = vpop.eup %11588 }
 0x37e   :  { %v1386_v59 = vmul.f32 %v11589_v35, %v11587_v30 }
 0x380   :  { %1388 = vst [vmem:[#allocation3 + $0x4] sm:$0x3] %v1386_v59  ;;  %1520 = vmatmul.mubr.f32.vlgmr.msra.gmra.mrb[14].mxu0 %v1386_v59  ;;  %1591 = vmatmul.mubr.f32.vlgmr.msra.gmra.mrb[14].mxu1 %v1386_v59 }
 0x381   :  { %9587 = vmatpush1.bf16.msra.mxu0 %v12851_v57  ;;  %9619 = vmatpush1.bf16.msra.mxu1 %v12860_v53 }
 0x382   :  { %9589 = vmatprep.subr.bf16.mxu0 %v12874_v49  ;;  %9621 = vmatprep.subr.bf16.mxu1 %v12885_v38 }
 0x383   :  { %1783 = vmatprep.mubr.f32.mxu0 %v15549_v58  ;;  %1854 = vmatprep.mubr.f32.mxu1 %v15549_v58 }
 0x385   :  { %9591 = vmatpush1.bf16.msra.mxu0 %v12887_v39  ;;  %9623 = vmatpush1.bf16.msra.mxu1 %v12899_v51 }
 0x386   :  { %9593 = vmatprep.subr.bf16.mxu0 %v12912_v5  ;;  %9625 = vmatprep.subr.bf16.mxu1 %v12914_v20 }
 0x389   :  { %9595 = vmatpush1.bf16.msra.mxu0 %v12926_v45  ;;  %9627 = vmatpush1.bf16.msra.mxu1 %v12939_v9 }
 0x38a   :  { %9597 = vmatprep.subr.bf16.mxu0 %v12941_v10  ;;  %9629 = vmatprep.subr.bf16.mxu1 %v12952_v32 }
 0x38d   :  { %9599 = vmatpush1.bf16.msra.mxu0 %v12964_v23  ;;  %9631 = vmatpush1.bf16.msra.mxu1 %v12977_v60 }
 0x38e   :  { %9601 = vmatprep.subr.bf16.mxu0 %v12979_v13  ;;  %9633 = vmatprep.subr.bf16.mxu1 %v12991_v1 }
 0x391   :  { %9603 = vmatpush1.bf16.msra.mxu0 %v13012_v46  ;;  %9635 = vmatpush1.bf16.msra.mxu1 %v13016_v47 }
 0x392   :  { %9605 = vmatprep.subr.bf16.mxu0 %v13018_v50  ;;  %9637 = vmatprep.subr.bf16.mxu1 %v13030_v21 }
 0x395   :  { %9607 = vmatpush1.bf16.msra.mxu0 %v13048_v15  ;;  %9639 = vmatpush1.bf16.msra.mxu1 %v13052_v18 }
 0x396   :  { %9609 = vmatprep.subr.bf16.mxu0 %v13054_v31  ;;  %9641 = vmatprep.subr.bf16.mxu1 %v13066_v25 }
 0x399   :  { %9611 = vmatpush1.bf16.msra.mxu0 %v13084_v17  ;;  %9643 = vmatpush1.bf16.msra.mxu1 %v13088_v11 }
 0x39a   :  { %9613 = vmatprep.subr.bf16.mxu0 %v13090_v12  ;;  %9645 = vmatprep.subr.bf16.mxu1 %v13099_v34 }
 0x39d   :  { %9615 = vmatpush1.bf16.msra.mxu0 %v13108_v3  ;;  %9647 = vmatpush1.bf16.msra.mxu1 %v13112_v26 }
 0x39e   :  { %9649 = vmatprep.subr.bf16.mxu0 %v12838_v19  ;;  %9681 = vmatprep.subr.bf16.mxu1 %v12849_v22 }
 0x453   :  { %v1521_v0 = vpop.f32.mrb[14].mxu0  ;;  %v1592_v43 = vpop.f32.mrb[14].mxu1 }
 0x454   :  { %v1523_v33 = vpop.f32.mrb[15].mxu0  ;;  %v1594_v61 = vpop.f32.mrb[15].mxu1 }
 0x455   :  { %v1601_v62 = vcombine.low %v1521_v0, %v1523_v33  ;;  %v1602_v27 = vcombine.low %v1592_v43, %v1594_v61 }
 0x457   :  { %v1609_v48 = vrot.slane %v1601_v62, %v12298_v16  ;;  %v1616_v55 = vrot.slane %v1602_v27, %v12298_v16 }
 0x459   :  { %v1617_v56 = vcombine.low %v1609_v48, %v1616_v55 }
 0x45b   :  { %v1619_v37 = vadd.f32 %v1617_v56, %v15552_v36 }
 0x45d   :  { %v9142_v44 = vmul.f32 -1.442695, %v1619_v37  ;;  %v1627_v54 = vrot.slane %v1619_v37, 2  ;;  %v1638_v52 = vrot.slane %v1619_v37, 6  ;;  %v1635_v59 = vrot.slane %v1619_v37, 4 }
 0x45f   :  { %11590 = vpow2.f32 %v9142_v44  ;;  %v9143_v14 = vmul.f32 -1.442695, %v1627_v54  ;;  %v9144_v30 = vmul.f32 -1.442695, %v1638_v52 }
 0x461   :  { %11592 = vpow2.f32 %v9143_v14 }
 0x462   :  { %11594 = vpow2.f32 %v9144_v30 }
 0x469   :  { %v11591_v35 = vpop.eup %11590 }
 0x46a   :  { %v1623_v0 = vadd.f32 1.0, %v11591_v35 }
 0x46b   :  { %v11593_v43 = vpop.eup %11592 }
 0x46c   :  { %11596 = vrcp.f32 %v1623_v0  ;;  %v1632_v33 = vadd.f32 1.0, %v11593_v43  ;;  %v11595_v61 = vpop.eup %11594 }
 0x46d   :  { %11598 = vtanh.f32 %v1635_v59  ;;  %v1643_v27 = vadd.f32 1.0, %v11595_v61 }
 0x46e   :  { %11600 = vrcp.f32 %v1632_v33  ;;  %v15553_v33 = vcombine.low %v12719_v40, %v12725_v42 }
 0x46f   :  { %11602 = vrcp.f32 %v1643_v27 }
 0x476   :  { %v11597_v62 = vpop.eup %11596 }
 0x477   :  { %v11599_v24 = vpop.eup %11598 }
 0x478   :  { %v11601_v28 = vpop.eup %11600  ;;  %v1647_v55 = vmul.f32 %v11599_v24, %v11597_v62 }
 0x479   :  { %v1646_v48 = vmul.f32 %v11601_v28, %v13125_v29  ;;  %v11603_v36 = vpop.eup %11602 }
 0x47b   :  { %v13168_v56 = vadd.f32 %v1647_v55, %v1646_v48 }
 0x47d   :  { %11604 = vtanh.f32 %v13168_v56 }
 0x487   :  { %v11605_v37 = vpop.eup %11604 }
 0x488   :  { %v1650_v44 = vmul.f32 %v11605_v37, %v11603_v36 }
 0x48a   :  { %1652 = vst [vmem:[#allocation3 + $0x6] sm:$0x3] %v1650_v44  ;;  %1784 = vmatmul.mubr.f32.vlgmr.msra.gmra.mrb[16].mxu0 %v1650_v44  ;;  %1855 = vmatmul.mubr.f32.vlgmr.msra.gmra.mrb[16].mxu1 %v1650_v44 }
 0x48b   :  { %9651 = vmatpush1.bf16.msra.mxu0 %v12851_v57  ;;  %9683 = vmatpush1.bf16.msra.mxu1 %v12860_v53 }
 0x48c   :  { %9653 = vmatprep.subr.bf16.mxu0 %v12874_v49  ;;  %9685 = vmatprep.subr.bf16.mxu1 %v12885_v38 }
 0x48d   :  { %2047 = vmatprep.mubr.f32.mxu0 %v15549_v58  ;;  %2118 = vmatprep.mubr.f32.mxu1 %v15549_v58 }
 0x48f   :  { %9655 = vmatpush1.bf16.msra.mxu0 %v12887_v39  ;;  %9687 = vmatpush1.bf16.msra.mxu1 %v12899_v51 }
 0x490   :  { %9657 = vmatprep.subr.bf16.mxu0 %v12912_v5  ;;  %9689 = vmatprep.subr.bf16.mxu1 %v12914_v20 }
 0x493   :  { %9659 = vmatpush1.bf16.msra.mxu0 %v12926_v45  ;;  %9691 = vmatpush1.bf16.msra.mxu1 %v12939_v9 }
 0x494   :  { %9661 = vmatprep.subr.bf16.mxu0 %v12941_v10  ;;  %9693 = vmatprep.subr.bf16.mxu1 %v12952_v32 }
 0x497   :  { %9663 = vmatpush1.bf16.msra.mxu0 %v12964_v23  ;;  %9695 = vmatpush1.bf16.msra.mxu1 %v12977_v60 }
 0x498   :  { %9665 = vmatprep.subr.bf16.mxu0 %v12979_v13  ;;  %9697 = vmatprep.subr.bf16.mxu1 %v12991_v1 }
 0x49b   :  { %9667 = vmatpush1.bf16.msra.mxu0 %v13012_v46  ;;  %9699 = vmatpush1.bf16.msra.mxu1 %v13016_v47 }
 0x49c   :  { %9669 = vmatprep.subr.bf16.mxu0 %v13018_v50  ;;  %9701 = vmatprep.subr.bf16.mxu1 %v13030_v21 }
 0x49f   :  { %9671 = vmatpush1.bf16.msra.mxu0 %v13048_v15  ;;  %9703 = vmatpush1.bf16.msra.mxu1 %v13052_v18 }
 0x4a0   :  { %9673 = vmatprep.subr.bf16.mxu0 %v13054_v31  ;;  %9705 = vmatprep.subr.bf16.mxu1 %v13066_v25 }
 0x4a3   :  { %9675 = vmatpush1.bf16.msra.mxu0 %v13084_v17  ;;  %9707 = vmatpush1.bf16.msra.mxu1 %v13088_v11 }
 0x4a4   :  { %9677 = vmatprep.subr.bf16.mxu0 %v13090_v12  ;;  %9709 = vmatprep.subr.bf16.mxu1 %v13099_v34 }
 0x4a7   :  { %9679 = vmatpush1.bf16.msra.mxu0 %v13108_v3  ;;  %9711 = vmatpush1.bf16.msra.mxu1 %v13112_v26 }
 0x4a8   :  { %9713 = vmatprep.subr.bf16.mxu0 %v12838_v19  ;;  %9745 = vmatprep.subr.bf16.mxu1 %v12849_v22 }
 0x55d   :  { %v1785_v29 = vpop.f32.mrb[16].mxu0  ;;  %v1856_v54 = vpop.f32.mrb[16].mxu1 }
 0x55e   :  { %v1787_v14 = vpop.f32.mrb[17].mxu0  ;;  %v1858_v52 = vpop.f32.mrb[17].mxu1 }
 0x55f   :  { %v1865_v30 = vcombine.low %v1785_v29, %v1787_v14  ;;  %v1866_v35 = vcombine.low %v1856_v54, %v1858_v52 }
 0x561   :  { %v1873_v59 = vrot.slane %v1865_v30, %v12298_v16  ;;  %v1880_v0 = vrot.slane %v1866_v35, %v12298_v16 }
 0x563   :  { %v1881_v43 = vcombine.low %v1873_v59, %v1880_v0 }
 0x565   :  { %v1883_v61 = vadd.f32 %v1881_v43, %v15553_v33 }
 0x567   :  { %v9145_v62 = vmul.f32 -1.442695, %v1883_v61  ;;  %v1891_v24 = vrot.slane %v1883_v61, 2  ;;  %v1902_v22 = vrot.slane %v1883_v61, 6  ;;  %v1899_v48 = vrot.slane %v1883_v61, 4  ;;  %v2452_v61 = vld [vmem:[%s15540_s26 + $0x28] sm:$0xff] }
 0x569   :  { %11606 = vpow2.f32 %v9145_v62  ;;  %v9146_v19 = vmul.f32 -1.442695, %v1891_v24  ;;  %v9147_v28 = vmul.f32 -1.442695, %v1902_v22  ;;  %v2450_v62 = vld [vmem:[%s15540_s26 + $0x18] sm:$0xff]  ;;  %v2447_v22 = vld [vmem:[%s15540_s26] sm:$0xff] }
 0x56b   :  { %11608 = vpow2.f32 %v9146_v19  ;;  %v2454_v19 = vld [vmem:[%s15540_s26 + $0x38] sm:$0xff] }
 0x56c   :  { %11610 = vpow2.f32 %v9147_v28  ;;  %v2451_v28 = vld [vmem:[%s15540_s26 + $0x20] sm:$0xff] }
 0x573   :  { %v11607_v27 = vpop.eup %11606 }
 0x574   :  { %v1887_v55 = vadd.f32 1.0, %v11607_v27  ;;  %v13277_v27 = vpack.c.bf16 %v2454_v19, %v2450_v62  ;;  %v2481_v62 = vld [vmem:[%s15540_s26 + $0x110] sm:$0xff] }
 0x575   :  { %v11609_v36 = vpop.eup %11608  ;;  %v2485_v19 = vld [vmem:[%s15540_s26 + $0x130] sm:$0xff] }
 0x576   :  { %11612 = vrcp.f32 %v1887_v55  ;;  %v1896_v37 = vadd.f32 1.0, %v11609_v36  ;;  %v11611_v44 = vpop.eup %11610  ;;  %v2449_v55 = vld [vmem:[%s15540_s26 + $0x10] sm:$0xff] }
 0x577   :  { %11614 = vtanh.f32 %v1899_v48  ;;  %v1907_v52 = vadd.f32 1.0, %v11611_v44  ;;  %v13279_v48 = vpack.c.bf16 %v2451_v28, %v2447_v22  ;;  %v2453_v36 = vld [vmem:[%s15540_s26 + $0x30] sm:$0xff]  ;;  %v2456_v44 = vld [vmem:[%s15540_s26 + $0x48] sm:$0xff] }
 0x578   :  { %11616 = vrcp.f32 %v1896_v37  ;;  %v13288_v37 = vpack.c.bf16 %v2453_v36, %v2449_v55  ;;  %v2488_v22 = vld [vmem:[%s15540_s26 + $0x148] sm:$0xff]  ;;  %v2490_v55 = vld [vmem:[%s15540_s26 + $0x158] sm:$0xff] }
 0x579   :  { %11618 = vrcp.f32 %v1907_v52  ;;  %v2462_v52 = vld [vmem:[%s15540_s26 + $0x78] sm:$0xff]  ;;  %v2492_v28 = vld [vmem:[%s15540_s26 + $0x168] sm:$0xff] }
 0x57a   :  { %v2494_v36 = vld [vmem:[%s15540_s26 + $0x178] sm:$0xff] }
 0x580   :  { %v11613_v29 = vpop.eup %11612 }
 0x581   :  { %v11615_v54 = vpop.eup %11614 }
 0x582   :  { %v11617_v14 = vpop.eup %11616  ;;  %v1911_v35 = vmul.f32 %v11615_v54, %v11613_v29  ;;  %v2460_v29 = vld [vmem:[%s15540_s26 + $0x68] sm:$0xff]  ;;  %v2458_v54 = vld [vmem:[%s15540_s26 + $0x58] sm:$0xff] }
 0x583   :  { %v1910_v30 = vmul.f32 %v11617_v14, %v13168_v56  ;;  %v11619_v0 = vpop.eup %11618  ;;  %v2448_v56 = vld [vmem:[%s15540_s26 + $0x8] sm:$0xff]  ;;  %v13302_v14 = vpack.c.bf16 %v2460_v29, %v2456_v44  ;;  %v13444_v29 = vpack.c.bf16 %v2485_v19, %v2481_v62  ;;  %v2505_v62 = vld [vmem:[%s15540_s26 + $0x1d0] sm:$0xff] }
 0x584   :  { %v13266_v24 = vpack.c.bf16 %v2452_v61, %v2448_v56  ;;  %v2483_v56 = vld [vmem:[%s15540_s26 + $0x120] sm:$0xff]  ;;  %v2509_v19 = vld [vmem:[%s15540_s26 + $0x1f0] sm:$0xff] }
 0x585   :  { %v13211_v59 = vadd.f32 %v1911_v35, %v1910_v30  ;;  %v2455_v30 = vld [vmem:[%s15540_s26 + $0x40] sm:$0xff] }
 0x586   :  { %v2459_v35 = vld [vmem:[%s15540_s26 + $0x60] sm:$0xff] }
 0x587   :  { %11620 = vtanh.f32 %v13211_v59 }
 0x591   :  { %v11621_v43 = vpop.eup %11620 }
 0x592   :  { %v1914_v33 = vmul.f32 %v11621_v43, %v11619_v0  ;;  %v13315_v0 = vpack.c.bf16 %v2459_v35, %v2455_v30  ;;  %v2457_v43 = vld [vmem:[%s15540_s26 + $0x50] sm:$0xff]  ;;  %v2491_v30 = vld [vmem:[%s15540_s26 + $0x160] sm:$0xff] }
 0x593   :  { %v2489_v35 = vld [vmem:[%s15540_s26 + $0x150] sm:$0xff] }
 0x594   :  { %1916 = vst [vmem:[#allocation3 + $0x8] sm:$0x3] %v1914_v33  ;;  %2048 = vmatmul.mubr.f32.vlgmr.msra.gmra.mrb[18].mxu0 %v1914_v33  ;;  %2119 = vmatmul.mubr.f32.vlgmr.msra.gmra.mrb[18].mxu1 %v1914_v33  ;;  %v2461_v33 = vld [vmem:[%s15540_s26 + $0x70] sm:$0xff] }
 0x595   :  { %9715 = vmatpush1.bf16.msra.mxu0 %v12851_v57  ;;  %9747 = vmatpush1.bf16.msra.mxu1 %v12860_v53 }
 0x596   :  { %9717 = vmatprep.subr.bf16.mxu0 %v12874_v49  ;;  %9749 = vmatprep.subr.bf16.mxu1 %v12885_v38 }
 0x597   :  { %2311 = vmatprep.mubr.f32.mxu0 %v15549_v58  ;;  %2382 = vmatprep.mubr.f32.mxu1 %v15549_v58 }
 0x599   :  { %9719 = vmatpush1.bf16.msra.mxu0 %v12887_v39  ;;  %9751 = vmatpush1.bf16.msra.mxu1 %v12899_v51 }
 0x59a   :  { %9721 = vmatprep.subr.bf16.mxu0 %v12912_v5  ;;  %9753 = vmatprep.subr.bf16.mxu1 %v12914_v20 }
 0x59d   :  { %9723 = vmatpush1.bf16.msra.mxu0 %v12926_v45  ;;  %9755 = vmatpush1.bf16.msra.mxu1 %v12939_v9  ;;  %v15554_v9 = vcombine.high %v12719_v40, %v12725_v42 }
 0x59e   :  { %9725 = vmatprep.subr.bf16.mxu0 %v12941_v10  ;;  %9757 = vmatprep.subr.bf16.mxu1 %v12952_v32 }
 0x5a1   :  { %9727 = vmatpush1.bf16.msra.mxu0 %v12964_v23  ;;  %9759 = vmatpush1.bf16.msra.mxu1 %v12977_v60 }
 0x5a2   :  { %9729 = vmatprep.subr.bf16.mxu0 %v12979_v13  ;;  %9761 = vmatprep.subr.bf16.mxu1 %v12991_v1 }
 0x5a5   :  { %9731 = vmatpush1.bf16.msra.mxu0 %v13012_v46  ;;  %9763 = vmatpush1.bf16.msra.mxu1 %v13016_v47 }
 0x5a6   :  { %9733 = vmatprep.subr.bf16.mxu0 %v13018_v50  ;;  %9765 = vmatprep.subr.bf16.mxu1 %v13030_v21 }
 0x5a9   :  { %9735 = vmatpush1.bf16.msra.mxu0 %v13048_v15  ;;  %9767 = vmatpush1.bf16.msra.mxu1 %v13052_v18 }
 0x5aa   :  { %9737 = vmatprep.subr.bf16.mxu0 %v13054_v31  ;;  %9769 = vmatprep.subr.bf16.mxu1 %v13066_v25 }
 0x5ad   :  { %9739 = vmatpush1.bf16.msra.mxu0 %v13084_v17  ;;  %9771 = vmatpush1.bf16.msra.mxu1 %v13088_v11 }
 0x5ae   :  { %9741 = vmatprep.subr.bf16.mxu0 %v13090_v12  ;;  %9773 = vmatprep.subr.bf16.mxu1 %v13099_v34 }
 0x5b1   :  { %9743 = vmatpush1.bf16.msra.mxu0 %v13108_v3  ;;  %9775 = vmatpush1.bf16.msra.mxu1 %v13112_v26 }
 0x5b2   :  { %9777 = vmatprep.subr.bf16.mxu0 %v13266_v24  ;;  %9809 = vmatprep.subr.bf16.mxu1 %v13277_v27 }
 0x667   :  { %v2049_v57 = vpop.f32.mrb[18].mxu0  ;;  %v2120_v53 = vpop.f32.mrb[18].mxu1 }
 0x668   :  { %v2051_v49 = vpop.f32.mrb[19].mxu0  ;;  %v2122_v38 = vpop.f32.mrb[19].mxu1 }
 0x669   :  { %v2129_v39 = vcombine.low %v2049_v57, %v2051_v49  ;;  %v2130_v51 = vcombine.low %v2120_v53, %v2122_v38  ;;  %v2464_v57 = vld [vmem:[%s15540_s26 + $0x88] sm:$0xff]  ;;  %v13327_v53 = vpack.c.bf16 %v2461_v33, %v2457_v43  ;;  %v2466_v38 = vld [vmem:[%s15540_s26 + $0x98] sm:$0xff]  ;;  %v13458_v43 = vpack.c.bf16 %v2494_v36, %v2490_v55  ;;  %v2493_v33 = vld [vmem:[%s15540_s26 + $0x170] sm:$0xff] }
 0x66a   :  { %v2468_v49 = vld [vmem:[%s15540_s26 + $0xa8] sm:$0xff] }
 0x66b   :  { %v2137_v5 = vrot.slane %v2129_v39, %v12298_v16  ;;  %v2144_v20 = vrot.slane %v2130_v51, %v12298_v16  ;;  %v2470_v39 = vld [vmem:[%s15540_s26 + $0xb8] sm:$0xff]  ;;  %v13340_v51 = vpack.c.bf16 %v2468_v49, %v2464_v57  ;;  %v2496_v57 = vld [vmem:[%s15540_s26 + $0x188] sm:$0xff] }
 0x66c   :  { %v2500_v49 = vld [vmem:[%s15540_s26 + $0x1a8] sm:$0xff] }
 0x66d   :  { %v2145_v45 = vcombine.low %v2137_v5, %v2144_v20  ;;  %v13342_v5 = vpack.c.bf16 %v2470_v39, %v2466_v38  ;;  %v2463_v20 = vld [vmem:[%s15540_s26 + $0x80] sm:$0xff]  ;;  %v2498_v38 = vld [vmem:[%s15540_s26 + $0x198] sm:$0xff] }
 0x66e   :  { %v2502_v39 = vld [vmem:[%s15540_s26 + $0x1b8] sm:$0xff] }
 0x66f   :  { %v2147_v10 = vadd.f32 %v2145_v45, %v15554_v9  ;;  %v2467_v45 = vld [vmem:[%s15540_s26 + $0xa0] sm:$0xff]  ;;  %v2465_v9 = vld [vmem:[%s15540_s26 + $0x90] sm:$0xff] }
 0x671   :  { %v9148_v32 = vmul.f32 -1.442695, %v2147_v10  ;;  %v2155_v23 = vrot.slane %v2147_v10, 2  ;;  %v2166_v13 = vrot.slane %v2147_v10, 6  ;;  %v2163_v47 = vrot.slane %v2147_v10, 4 }
 0x672   :  { %v13354_v10 = vpack.c.bf16 %v2467_v45, %v2463_v20  ;;  %v13480_v45 = vpack.c.bf16 %v2493_v33, %v2489_v35 }
 0x673   :  { %11622 = vpow2.f32 %v9148_v32  ;;  %v9149_v60 = vmul.f32 -1.442695, %v2155_v23  ;;  %v9150_v1 = vmul.f32 -1.442695, %v2166_v13  ;;  %v2469_v32 = vld [vmem:[%s15540_s26 + $0xb0] sm:$0xff]  ;;  %v2472_v23 = vld [vmem:[%s15540_s26 + $0xc8] sm:$0xff] }
 0x674   :  { %v13367_v13 = vpack.c.bf16 %v2469_v32, %v2465_v9  ;;  %v13482_v9 = vpack.c.bf16 %v2500_v49, %v2496_v57  ;;  %v2495_v32 = vld [vmem:[%s15540_s26 + $0x180] sm:$0xff] }
 0x675   :  { %11624 = vpow2.f32 %v9149_v60  ;;  %v2476_v60 = vld [vmem:[%s15540_s26 + $0xe8] sm:$0xff] }
 0x676   :  { %11626 = vpow2.f32 %v9150_v1  ;;  %v13369_v1 = vpack.c.bf16 %v2476_v60, %v2472_v23  ;;  %v2499_v23 = vld [vmem:[%s15540_s26 + $0x1a0] sm:$0xff]  ;;  %v2497_v60 = vld [vmem:[%s15540_s26 + $0x190] sm:$0xff] }
 0x67d   :  { %v11623_v46 = vpop.eup %11622 }
 0x67e   :  { %v2151_v50 = vadd.f32 1.0, %v11623_v46  ;;  %v2474_v46 = vld [vmem:[%s15540_s26 + $0xd8] sm:$0xff] }
 0x67f   :  { %v11625_v21 = vpop.eup %11624 }
 0x680   :  { %11628 = vrcp.f32 %v2151_v50  ;;  %v2160_v15 = vadd.f32 1.0, %v11625_v21  ;;  %v11627_v18 = vpop.eup %11626  ;;  %v2471_v50 = vld [vmem:[%s15540_s26 + $0xc0] sm:$0xff] }
 0x681   :  { %11630 = vtanh.f32 %v2163_v47  ;;  %v2171_v25 = vadd.f32 1.0, %v11627_v18  ;;  %v2478_v47 = vld [vmem:[%s15540_s26 + $0xf8] sm:$0xff]  ;;  %v2473_v18 = vld [vmem:[%s15540_s26 + $0xd0] sm:$0xff] }
 0x682   :  { %11632 = vrcp.f32 %v2160_v15  ;;  %v13380_v21 = vpack.c.bf16 %v2478_v47, %v2474_v46  ;;  %v2475_v15 = vld [vmem:[%s15540_s26 + $0xe0] sm:$0xff]  ;;  %v13494_v46 = vpack.c.bf16 %v2502_v39, %v2498_v38  ;;  %v2501_v47 = vld [vmem:[%s15540_s26 + $0x1b0] sm:$0xff]  ;;  %v15555_v39 = vcombine.low %v12722_v41, %v12728_v63 }
 0x683   :  { %11634 = vrcp.f32 %v2171_v25  ;;  %v2484_v25 = vld [vmem:[%s15540_s26 + $0x128] sm:$0xff] }
 0x68a   :  { %v11629_v31 = vpop.eup %11628 }
 0x68b   :  { %v11631_v40 = vpop.eup %11630 }
 0x68c   :  { %v11633_v42 = vpop.eup %11632  ;;  %v2175_v11 = vmul.f32 %v11631_v40, %v11629_v31  ;;  %v2477_v31 = vld [vmem:[%s15540_s26 + $0xf0] sm:$0xff]  ;;  %v13392_v40 = vpack.c.bf16 %v2475_v15, %v2471_v50  ;;  %v2504_v50 = vld [vmem:[%s15540_s26 + $0x1c8] sm:$0xff] }
 0x68d   :  { %v2174_v17 = vmul.f32 %v11633_v42, %v13211_v59  ;;  %v11635_v34 = vpop.eup %11634  ;;  %v13313_v59 = vpack.c.bf16 %v2462_v52, %v2458_v54  ;;  %v2480_v42 = vld [vmem:[%s15540_s26 + $0x108] sm:$0xff]  ;;  %v13446_v54 = vpack.c.bf16 %v2492_v28, %v2488_v22  ;;  %v2487_v52 = vld [vmem:[%s15540_s26 + $0x140] sm:$0xff]  ;;  %v13540_v28 = vpack.c.bf16 %v2509_v19, %v2505_v62 }
 0x68e   :  { %v13476_v20 = vpack.c.bf16 %v2491_v30, %v2487_v52  ;;  %v2508_v15 = vld [vmem:[%s15540_s26 + $0x1e8] sm:$0xff] }
 0x68f   :  { %v13252_v12 = vadd.f32 %v2175_v11, %v2174_v17  ;;  %v2482_v17 = vld [vmem:[%s15540_s26 + $0x118] sm:$0xff]  ;;  %v13405_v11 = vpack.c.bf16 %v2477_v31, %v2473_v18 }
 0x690   :  { %v2506_v18 = vld [vmem:[%s15540_s26 + $0x1d8] sm:$0xff] }
 0x691   :  { %11636 = vtanh.f32 %v13252_v12  ;;  %v2510_v31 = vld [vmem:[%s15540_s26 + $0x1f8] sm:$0xff] }
 0x69b   :  { %v11637_v3 = vpop.eup %11636 }
 0x69c   :  { %v2178_v26 = vmul.f32 %v11637_v3, %v11635_v34  ;;  %v13407_v34 = vpack.c.bf16 %v2484_v25, %v2480_v42  ;;  %v2486_v3 = vld [vmem:[%s15540_s26 + $0x138] sm:$0xff]  ;;  %v13512_v42 = vpack.c.bf16 %v2499_v23, %v2495_v32  ;;  %v13516_v25 = vpack.c.bf16 %v2501_v47, %v2497_v60 }
 0x69d   :  { %v13419_v61 = vpack.c.bf16 %v2486_v3, %v2482_v17  ;;  %v13518_v17 = vpack.c.bf16 %v2508_v15, %v2504_v50  ;;  %v2503_v3 = vld [vmem:[%s15540_s26 + $0x1c0] sm:$0xff] }
 0x69e   :  { %2180 = vst [vmem:[#allocation3 + $0xa] sm:$0x3] %v2178_v26  ;;  %2312 = vmatmul.mubr.f32.vlgmr.msra.gmra.mrb[20].mxu0 %v2178_v26  ;;  %2383 = vmatmul.mubr.f32.vlgmr.msra.gmra.mrb[20].mxu1 %v2178_v26  ;;  %v2479_v26 = vld [vmem:[%s15540_s26 + $0x100] sm:$0xff] }
 0x69f   :  { %2575 = vmatprep.mubr.f32.mxu0 %v15549_v58  ;;  %2646 = vmatprep.mubr.f32.mxu1 %v15549_v58  ;;  %v13440_v44 = vpack.c.bf16 %v2483_v56, %v2479_v26  ;;  %v2507_v26 = vld [vmem:[%s15540_s26 + $0x1e0] sm:$0xff]  ;;  %v13527_v56 = vpack.c.bf16 %v2510_v31, %v2506_v18 }
 0x6a0   :  { %9779 = vmatpush1.bf16.msra.mxu0 %v13279_v48  ;;  %9811 = vmatpush1.bf16.msra.mxu1 %v13288_v37  ;;  %v13536_v22 = vpack.c.bf16 %v2507_v26, %v2503_v3 }
 0x6a1   :  { %9781 = vmatprep.subr.bf16.mxu0 %v13302_v14  ;;  %9813 = vmatprep.subr.bf16.mxu1 %v13313_v59 }
 0x6a4   :  { %9783 = vmatpush1.bf16.msra.mxu0 %v13315_v0  ;;  %9815 = vmatpush1.bf16.msra.mxu1 %v13327_v53 }
 0x6a5   :  { %9785 = vmatprep.subr.bf16.mxu0 %v13340_v51  ;;  %9817 = vmatprep.subr.bf16.mxu1 %v13342_v5 }
 0x6a8   :  { %9787 = vmatpush1.bf16.msra.mxu0 %v13354_v10  ;;  %9819 = vmatpush1.bf16.msra.mxu1 %v13367_v13 }
 0x6a9   :  { %9789 = vmatprep.subr.bf16.mxu0 %v13369_v1  ;;  %9821 = vmatprep.subr.bf16.mxu1 %v13380_v21 }
 0x6ac   :  { %9791 = vmatpush1.bf16.msra.mxu0 %v13392_v40  ;;  %9823 = vmatpush1.bf16.msra.mxu1 %v13405_v11 }
 0x6ad   :  { %9793 = vmatprep.subr.bf16.mxu0 %v13407_v34  ;;  %9825 = vmatprep.subr.bf16.mxu1 %v13419_v61 }
 0x6b0   :  { %9795 = vmatpush1.bf16.msra.mxu0 %v13440_v44  ;;  %9827 = vmatpush1.bf16.msra.mxu1 %v13444_v29 }
 0x6b1   :  { %9797 = vmatprep.subr.bf16.mxu0 %v13446_v54  ;;  %9829 = vmatprep.subr.bf16.mxu1 %v13458_v43 }
 0x6b4   :  { %9799 = vmatpush1.bf16.msra.mxu0 %v13476_v20  ;;  %9831 = vmatpush1.bf16.msra.mxu1 %v13480_v45 }
 0x6b5   :  { %9801 = vmatprep.subr.bf16.mxu0 %v13482_v9  ;;  %9833 = vmatprep.subr.bf16.mxu1 %v13494_v46 }
 0x6b8   :  { %9803 = vmatpush1.bf16.msra.mxu0 %v13512_v42  ;;  %9835 = vmatpush1.bf16.msra.mxu1 %v13516_v25 }
 0x6b9   :  { %9805 = vmatprep.subr.bf16.mxu0 %v13518_v17  ;;  %9837 = vmatprep.subr.bf16.mxu1 %v13527_v56 }
 0x6bc   :  { %9807 = vmatpush1.bf16.msra.mxu0 %v13536_v22  ;;  %9839 = vmatpush1.bf16.msra.mxu1 %v13540_v28 }
 0x6bd   :  { %9841 = vmatprep.subr.bf16.mxu0 %v13266_v24  ;;  %9873 = vmatprep.subr.bf16.mxu1 %v13277_v27 }
 0x771   :  { %v2313_v55 = vpop.f32.mrb[20].mxu0  ;;  %v2384_v36 = vpop.f32.mrb[20].mxu1 }
 0x772   :  { %v2315_v52 = vpop.f32.mrb[21].mxu0  ;;  %v2386_v30 = vpop.f32.mrb[21].mxu1 }
 0x773   :  { %v2393_v35 = vcombine.low %v2313_v55, %v2315_v52  ;;  %v2394_v33 = vcombine.low %v2384_v36, %v2386_v30 }
 0x775   :  { %v2401_v57 = vrot.slane %v2393_v35, %v12298_v16  ;;  %v2408_v49 = vrot.slane %v2394_v33, %v12298_v16 }
 0x777   :  { %v2409_v38 = vcombine.low %v2401_v57, %v2408_v49 }
 0x779   :  { %v2411_v32 = vadd.f32 %v2409_v38, %v15555_v39 }
 0x77b   :  { %v9151_v23 = vmul.f32 -1.442695, %v2411_v32  ;;  %v2419_v60 = vrot.slane %v2411_v32, 2  ;;  %v2430_v50 = vrot.slane %v2411_v32, 6  ;;  %v2427_v31 = vrot.slane %v2411_v32, 4 }
 0x77d   :  { %11638 = vpow2.f32 %v9151_v23  ;;  %v9152_v47 = vmul.f32 -1.442695, %v2419_v60  ;;  %v9153_v15 = vmul.f32 -1.442695, %v2430_v50 }
 0x77f   :  { %11640 = vpow2.f32 %v9152_v47 }
 0x780   :  { %11642 = vpow2.f32 %v9153_v15 }
 0x787   :  { %v11639_v18 = vpop.eup %11638 }
 0x788   :  { %v2415_v3 = vadd.f32 1.0, %v11639_v18 }
 0x789   :  { %v11641_v26 = vpop.eup %11640 }
 0x78a   :  { %11644 = vrcp.f32 %v2415_v3  ;;  %v2424_v62 = vadd.f32 1.0, %v11641_v26  ;;  %v11643_v19 = vpop.eup %11642  ;;  %v15556_v3 = vcombine.high %v12722_v41, %v12728_v63 }
 0x78b   :  { %11646 = vtanh.f32 %v2427_v31  ;;  %v2435_v30 = vadd.f32 1.0, %v11643_v19 }
 0x78c   :  { %11648 = vrcp.f32 %v2424_v62 }
 0x78d   :  { %11650 = vrcp.f32 %v2435_v30 }
 0x794   :  { %v11645_v55 = vpop.eup %11644 }
 0x795   :  { %v11647_v36 = vpop.eup %11646 }
 0x796   :  { %v11649_v52 = vpop.eup %11648  ;;  %v2439_v33 = vmul.f32 %v11647_v36, %v11645_v55 }
 0x797   :  { %v2438_v35 = vmul.f32 %v11649_v52, %v13252_v12  ;;  %v11651_v49 = vpop.eup %11650 }
 0x799   :  { %v13553_v57 = vadd.f32 %v2439_v33, %v2438_v35 }
 0x79b   :  { %11652 = vtanh.f32 %v13553_v57 }
 0x7a5   :  { %v11653_v38 = vpop.eup %11652 }
 0x7a6   :  { %v2442_v39 = vmul.f32 %v11653_v38, %v11651_v49 }
 0x7a8   :  { %2444 = vst [vmem:[#allocation3 + $0xc] sm:$0x3] %v2442_v39  ;;  %2576 = vmatmul.mubr.f32.vlgmr.msra.gmra.mrb[22].mxu0 %v2442_v39  ;;  %2647 = vmatmul.mubr.f32.vlgmr.msra.gmra.mrb[22].mxu1 %v2442_v39 }
 0x7a9   :  { %9843 = vmatpush1.bf16.msra.mxu0 %v13279_v48  ;;  %9875 = vmatpush1.bf16.msra.mxu1 %v13288_v37 }
 0x7aa   :  { %9845 = vmatprep.subr.bf16.mxu0 %v13302_v14  ;;  %9877 = vmatprep.subr.bf16.mxu1 %v13313_v59 }
 0x7ab   :  { %2839 = vmatprep.mubr.f32.mxu0 %v15549_v58  ;;  %2910 = vmatprep.mubr.f32.mxu1 %v15549_v58 }
 0x7ad   :  { %9847 = vmatpush1.bf16.msra.mxu0 %v13315_v0  ;;  %9879 = vmatpush1.bf16.msra.mxu1 %v13327_v53 }
 0x7ae   :  { %9849 = vmatprep.subr.bf16.mxu0 %v13340_v51  ;;  %9881 = vmatprep.subr.bf16.mxu1 %v13342_v5 }
 0x7b1   :  { %9851 = vmatpush1.bf16.msra.mxu0 %v13354_v10  ;;  %9883 = vmatpush1.bf16.msra.mxu1 %v13367_v13 }
 0x7b2   :  { %9853 = vmatprep.subr.bf16.mxu0 %v13369_v1  ;;  %9885 = vmatprep.subr.bf16.mxu1 %v13380_v21 }
 0x7b5   :  { %9855 = vmatpush1.bf16.msra.mxu0 %v13392_v40  ;;  %9887 = vmatpush1.bf16.msra.mxu1 %v13405_v11 }
 0x7b6   :  { %9857 = vmatprep.subr.bf16.mxu0 %v13407_v34  ;;  %9889 = vmatprep.subr.bf16.mxu1 %v13419_v61 }
 0x7b9   :  { %9859 = vmatpush1.bf16.msra.mxu0 %v13440_v44  ;;  %9891 = vmatpush1.bf16.msra.mxu1 %v13444_v29 }
 0x7ba   :  { %9861 = vmatprep.subr.bf16.mxu0 %v13446_v54  ;;  %9893 = vmatprep.subr.bf16.mxu1 %v13458_v43 }
 0x7bd   :  { %9863 = vmatpush1.bf16.msra.mxu0 %v13476_v20  ;;  %9895 = vmatpush1.bf16.msra.mxu1 %v13480_v45 }
 0x7be   :  { %9865 = vmatprep.subr.bf16.mxu0 %v13482_v9  ;;  %9897 = vmatprep.subr.bf16.mxu1 %v13494_v46 }
 0x7c1   :  { %9867 = vmatpush1.bf16.msra.mxu0 %v13512_v42  ;;  %9899 = vmatpush1.bf16.msra.mxu1 %v13516_v25 }
 0x7c2   :  { %9869 = vmatprep.subr.bf16.mxu0 %v13518_v17  ;;  %9901 = vmatprep.subr.bf16.mxu1 %v13527_v56 }
 0x7c5   :  { %9871 = vmatpush1.bf16.msra.mxu0 %v13536_v22  ;;  %9903 = vmatpush1.bf16.msra.mxu1 %v13540_v28 }
 0x7c6   :  { %9905 = vmatprep.subr.bf16.mxu0 %v13266_v24  ;;  %9937 = vmatprep.subr.bf16.mxu1 %v13277_v27 }
 0x87b   :  { %v2577_v12 = vpop.f32.mrb[22].mxu0  ;;  %v2648_v32 = vpop.f32.mrb[22].mxu1 }
 0x87c   :  { %v2579_v23 = vpop.f32.mrb[23].mxu0  ;;  %v2650_v60 = vpop.f32.mrb[23].mxu1 }
 0x87d   :  { %v2657_v47 = vcombine.low %v2577_v12, %v2579_v23  ;;  %v2658_v50 = vcombine.low %v2648_v32, %v2650_v60 }
 0x87f   :  { %v2665_v15 = vrot.slane %v2657_v47, %v12298_v16  ;;  %v2672_v18 = vrot.slane %v2658_v50, %v12298_v16 }
 0x881   :  { %v2673_v31 = vcombine.low %v2665_v15, %v2672_v18 }
 0x883   :  { %v2675_v26 = vadd.f32 %v2673_v31, %v15556_v3 }
 0x885   :  { %v9154_v62 = vmul.f32 -1.442695, %v2675_v26  ;;  %v2683_v19 = vrot.slane %v2675_v26, 2  ;;  %v2694_v36 = vrot.slane %v2675_v26, 6  ;;  %v2691_v35 = vrot.slane %v2675_v26, 4 }
 0x887   :  { %11654 = vpow2.f32 %v9154_v62  ;;  %v9155_v55 = vmul.f32 -1.442695, %v2683_v19  ;;  %v9156_v52 = vmul.f32 -1.442695, %v2694_v36 }
 0x889   :  { %11656 = vpow2.f32 %v9155_v55 }
 0x88a   :  { %11658 = vpow2.f32 %v9156_v52 }
 0x891   :  { %v11655_v30 = vpop.eup %11654 }
 0x892   :  { %v2679_v33 = vadd.f32 1.0, %v11655_v30  ;;  %v15557_v30 = vcombine.low %v12739_v2, %v12745_v7 }
 0x893   :  { %v11657_v49 = vpop.eup %11656 }
 0x894   :  { %11660 = vrcp.f32 %v2679_v33  ;;  %v2688_v38 = vadd.f32 1.0, %v11657_v49  ;;  %v11659_v39 = vpop.eup %11658 }
 0x895   :  { %11662 = vtanh.f32 %v2691_v35  ;;  %v2699_v32 = vadd.f32 1.0, %v11659_v39 }
 0x896   :  { %11664 = vrcp.f32 %v2688_v38 }
 0x897   :  { %11666 = vrcp.f32 %v2699_v32 }
 0x89e   :  { %v11661_v12 = vpop.eup %11660 }
 0x89f   :  { %v11663_v41 = vpop.eup %11662 }
 0x8a0   :  { %v11665_v63 = vpop.eup %11664  ;;  %v2703_v60 = vmul.f32 %v11663_v41, %v11661_v12 }
 0x8a1   :  { %v2702_v23 = vmul.f32 %v11665_v63, %v13553_v57  ;;  %v11667_v50 = vpop.eup %11666 }
 0x8a3   :  { %v13596_v47 = vadd.f32 %v2703_v60, %v2702_v23 }
 0x8a5   :  { %11668 = vtanh.f32 %v13596_v47 }
 0x8af   :  { %v11669_v15 = vpop.eup %11668 }
 0x8b0   :  { %v2706_v18 = vmul.f32 %v11669_v15, %v11667_v50 }
 0x8b2   :  { %2708 = vst [vmem:[#allocation3 + $0xe] sm:$0x3] %v2706_v18  ;;  %2840 = vmatmul.mubr.f32.vlgmr.msra.gmra.mrb[24].mxu0 %v2706_v18  ;;  %2911 = vmatmul.mubr.f32.vlgmr.msra.gmra.mrb[24].mxu1 %v2706_v18 }
 0x8b3   :  { %9907 = vmatpush1.bf16.msra.mxu0 %v13279_v48  ;;  %9939 = vmatpush1.bf16.msra.mxu1 %v13288_v37 }
 0x8b4   :  { %9909 = vmatprep.subr.bf16.mxu0 %v13302_v14  ;;  %9941 = vmatprep.subr.bf16.mxu1 %v13313_v59 }
 0x8b5   :  { %3103 = vmatprep.mubr.f32.mxu0 %v15549_v58  ;;  %3174 = vmatprep.mubr.f32.mxu1 %v15549_v58 }
 0x8b7   :  { %9911 = vmatpush1.bf16.msra.mxu0 %v13315_v0  ;;  %9943 = vmatpush1.bf16.msra.mxu1 %v13327_v53 }
 0x8b8   :  { %9913 = vmatprep.subr.bf16.mxu0 %v13340_v51  ;;  %9945 = vmatprep.subr.bf16.mxu1 %v13342_v5 }
 0x8bb   :  { %9915 = vmatpush1.bf16.msra.mxu0 %v13354_v10  ;;  %9947 = vmatpush1.bf16.msra.mxu1 %v13367_v13 }
 0x8bc   :  { %9917 = vmatprep.subr.bf16.mxu0 %v13369_v1  ;;  %9949 = vmatprep.subr.bf16.mxu1 %v13380_v21 }
 0x8bf   :  { %9919 = vmatpush1.bf16.msra.mxu0 %v13392_v40  ;;  %9951 = vmatpush1.bf16.msra.mxu1 %v13405_v11 }
 0x8c0   :  { %9921 = vmatprep.subr.bf16.mxu0 %v13407_v34  ;;  %9953 = vmatprep.subr.bf16.mxu1 %v13419_v61 }
 0x8c3   :  { %9923 = vmatpush1.bf16.msra.mxu0 %v13440_v44  ;;  %9955 = vmatpush1.bf16.msra.mxu1 %v13444_v29 }
 0x8c4   :  { %9925 = vmatprep.subr.bf16.mxu0 %v13446_v54  ;;  %9957 = vmatprep.subr.bf16.mxu1 %v13458_v43 }
 0x8c7   :  { %9927 = vmatpush1.bf16.msra.mxu0 %v13476_v20  ;;  %9959 = vmatpush1.bf16.msra.mxu1 %v13480_v45 }
 0x8c8   :  { %9929 = vmatprep.subr.bf16.mxu0 %v13482_v9  ;;  %9961 = vmatprep.subr.bf16.mxu1 %v13494_v46 }
 0x8cb   :  { %9931 = vmatpush1.bf16.msra.mxu0 %v13512_v42  ;;  %9963 = vmatpush1.bf16.msra.mxu1 %v13516_v25 }
 0x8cc   :  { %9933 = vmatprep.subr.bf16.mxu0 %v13518_v17  ;;  %9965 = vmatprep.subr.bf16.mxu1 %v13527_v56 }
 0x8cf   :  { %9935 = vmatpush1.bf16.msra.mxu0 %v13536_v22  ;;  %9967 = vmatpush1.bf16.msra.mxu1 %v13540_v28 }
 0x8d0   :  { %9969 = vmatprep.subr.bf16.mxu0 %v13266_v24  ;;  %10001 = vmatprep.subr.bf16.mxu1 %v13277_v27 }
 0x985   :  { %v2841_v57 = vpop.f32.mrb[24].mxu0  ;;  %v2912_v31 = vpop.f32.mrb[24].mxu1 }
 0x986   :  { %v2843_v3 = vpop.f32.mrb[25].mxu0  ;;  %v2914_v26 = vpop.f32.mrb[25].mxu1 }
 0x987   :  { %v2921_v62 = vcombine.low %v2841_v57, %v2843_v3  ;;  %v2922_v19 = vcombine.low %v2912_v31, %v2914_v26 }
 0x989   :  { %v2929_v55 = vrot.slane %v2921_v62, %v12298_v16  ;;  %v2936_v36 = vrot.slane %v2922_v19, %v12298_v16 }
 0x98b   :  { %v2937_v52 = vcombine.low %v2929_v55, %v2936_v36  ;;  %v3508_v55 = vld [vmem:[%s15540_s26 + $0x28] sm:$0xff]  ;;  %v3506_v36 = vld [vmem:[%s15540_s26 + $0x18] sm:$0xff] }
 0x98d   :  { %v2939_v35 = vadd.f32 %v2937_v52, %v15557_v30  ;;  %v3510_v30 = vld [vmem:[%s15540_s26 + $0x38] sm:$0xff] }
 0x98f   :  { %v9157_v33 = vmul.f32 -1.442695, %v2939_v35  ;;  %v2947_v49 = vrot.slane %v2939_v35, 2  ;;  %v2958_v27 = vrot.slane %v2939_v35, 6  ;;  %v2955_v12 = vrot.slane %v2939_v35, 4  ;;  %v3503_v35 = vld [vmem:[%s15540_s26] sm:$0xff] }
 0x991   :  { %11670 = vpow2.f32 %v9157_v33  ;;  %v9158_v24 = vmul.f32 -1.442695, %v2947_v49  ;;  %v9159_v38 = vmul.f32 -1.442695, %v2958_v27  ;;  %v3507_v33 = vld [vmem:[%s15540_s26 + $0x20] sm:$0xff]  ;;  %v13705_v49 = vpack.c.bf16 %v3510_v30, %v3506_v36  ;;  %v3505_v27 = vld [vmem:[%s15540_s26 + $0x10] sm:$0xff] }
 0x992   :  { %v3546_v36 = vld [vmem:[%s15540_s26 + $0x158] sm:$0xff] }
 0x993   :  { %11672 = vpow2.f32 %v9158_v24  ;;  %v13707_v24 = vpack.c.bf16 %v3507_v33, %v3503_v35  ;;  %v3550_v30 = vld [vmem:[%s15540_s26 + $0x178] sm:$0xff] }
 0x994   :  { %11674 = vpow2.f32 %v9159_v38  ;;  %v3509_v38 = vld [vmem:[%s15540_s26 + $0x30] sm:$0xff] }
 0x99b   :  { %v11671_v39 = vpop.eup %11670 }
 0x99c   :  { %v2943_v41 = vadd.f32 1.0, %v11671_v39  ;;  %v13716_v39 = vpack.c.bf16 %v3509_v38, %v3505_v27  ;;  %v3543_v38 = vld [vmem:[%s15540_s26 + $0x140] sm:$0xff] }
 0x99d   :  { %v11673_v63 = vpop.eup %11672 }
 0x99e   :  { %11676 = vrcp.f32 %v2943_v41  ;;  %v2952_v32 = vadd.f32 1.0, %v11673_v63  ;;  %v11675_v23 = vpop.eup %11674  ;;  %v3516_v41 = vld [vmem:[%s15540_s26 + $0x68] sm:$0xff]  ;;  %v3514_v63 = vld [vmem:[%s15540_s26 + $0x58] sm:$0xff] }
 0x99f   :  { %11678 = vtanh.f32 %v2955_v12  ;;  %v2963_v18 = vadd.f32 1.0, %v11675_v23  ;;  %v3512_v12 = vld [vmem:[%s15540_s26 + $0x48] sm:$0xff]  ;;  %v3518_v23 = vld [vmem:[%s15540_s26 + $0x78] sm:$0xff] }
 0x9a0   :  { %11680 = vrcp.f32 %v2952_v32  ;;  %v13730_v32 = vpack.c.bf16 %v3516_v41, %v3512_v12  ;;  %v3547_v12 = vld [vmem:[%s15540_s26 + $0x160] sm:$0xff]  ;;  %v3545_v41 = vld [vmem:[%s15540_s26 + $0x150] sm:$0xff] }
 0x9a1   :  { %11682 = vrcp.f32 %v2963_v18 }
 0x9a8   :  { %v11677_v60 = vpop.eup %11676 }
 0x9a9   :  { %v11679_v50 = vpop.eup %11678 }
 0x9aa   :  { %v11681_v15 = vpop.eup %11680  ;;  %v2967_v31 = vmul.f32 %v11679_v50, %v11677_v60  ;;  %v3511_v60 = vld [vmem:[%s15540_s26 + $0x40] sm:$0xff] }
 0x9ab   :  { %v2966_v57 = vmul.f32 %v11681_v15, %v13596_v47  ;;  %v11683_v26 = vpop.eup %11682  ;;  %v3504_v47 = vld [vmem:[%s15540_s26 + $0x8] sm:$0xff]  ;;  %v3515_v50 = vld [vmem:[%s15540_s26 + $0x60] sm:$0xff]  ;;  %v13741_v15 = vpack.c.bf16 %v3518_v23, %v3514_v63  ;;  %v13886_v63 = vpack.c.bf16 %v3550_v30, %v3546_v36  ;;  %v3549_v23 = vld [vmem:[%s15540_s26 + $0x170] sm:$0xff] }
 0x9ac   :  { %v13694_v52 = vpack.c.bf16 %v3508_v55, %v3504_v47  ;;  %v13743_v18 = vpack.c.bf16 %v3515_v50, %v3511_v60  ;;  %v3544_v47 = vld [vmem:[%s15540_s26 + $0x148] sm:$0xff] }
 0x9ad   :  { %v13639_v3 = vadd.f32 %v2967_v31, %v2966_v57  ;;  %v3513_v57 = vld [vmem:[%s15540_s26 + $0x50] sm:$0xff]  ;;  %v3548_v55 = vld [vmem:[%s15540_s26 + $0x168] sm:$0xff] }
 0x9ae   :  { %v3517_v31 = vld [vmem:[%s15540_s26 + $0x70] sm:$0xff]  ;;  %v13874_v27 = vpack.c.bf16 %v3548_v55, %v3544_v47  ;;  %v3552_v60 = vld [vmem:[%s15540_s26 + $0x188] sm:$0xff] }
 0x9af   :  { %11684 = vtanh.f32 %v13639_v3  ;;  %v3556_v50 = vld [vmem:[%s15540_s26 + $0x1a8] sm:$0xff] }
 0x9b9   :  { %v11685_v62 = vpop.eup %11684 }
 0x9ba   :  { %v2970_v19 = vmul.f32 %v11685_v62, %v11683_v26  ;;  %v13755_v26 = vpack.c.bf16 %v3517_v31, %v3513_v57  ;;  %v3524_v62 = vld [vmem:[%s15540_s26 + $0xa8] sm:$0xff]  ;;  %v3554_v57 = vld [vmem:[%s15540_s26 + $0x198] sm:$0xff] }
 0x9bb   :  { %v3558_v31 = vld [vmem:[%s15540_s26 + $0x1b8] sm:$0xff] }
 0x9bc   :  { %2972 = vst [vmem:[#allocation3 + $0x10] sm:$0x3] %v2970_v19  ;;  %3104 = vmatmul.mubr.f32.vlgmr.msra.gmra.mrb[26].mxu0 %v2970_v19  ;;  %3175 = vmatmul.mubr.f32.vlgmr.msra.gmra.mrb[26].mxu1 %v2970_v19  ;;  %v3522_v19 = vld [vmem:[%s15540_s26 + $0x98] sm:$0xff] }
 0x9bd   :  { %9971 = vmatpush1.bf16.msra.mxu0 %v13279_v48  ;;  %10003 = vmatpush1.bf16.msra.mxu1 %v13288_v37 }
 0x9be   :  { %9973 = vmatprep.subr.bf16.mxu0 %v13302_v14  ;;  %10005 = vmatprep.subr.bf16.mxu1 %v13313_v59 }
 0x9bf   :  { %3367 = vmatprep.mubr.f32.mxu0 %v15549_v58  ;;  %3438 = vmatprep.mubr.f32.mxu1 %v15549_v58 }
 0x9c1   :  { %9975 = vmatpush1.bf16.msra.mxu0 %v13315_v0  ;;  %10007 = vmatpush1.bf16.msra.mxu1 %v13327_v53 }
 0x9c2   :  { %9977 = vmatprep.subr.bf16.mxu0 %v13340_v51  ;;  %10009 = vmatprep.subr.bf16.mxu1 %v13342_v5 }
 0x9c5   :  { %9979 = vmatpush1.bf16.msra.mxu0 %v13354_v10  ;;  %10011 = vmatpush1.bf16.msra.mxu1 %v13367_v13  ;;  %v15558_v13 = vcombine.high %v12739_v2, %v12745_v7 }
 0x9c6   :  { %9981 = vmatprep.subr.bf16.mxu0 %v13369_v1  ;;  %10013 = vmatprep.subr.bf16.mxu1 %v13380_v21 }
 0x9c9   :  { %9983 = vmatpush1.bf16.msra.mxu0 %v13392_v40  ;;  %10015 = vmatpush1.bf16.msra.mxu1 %v13405_v11 }
 0x9ca   :  { %9985 = vmatprep.subr.bf16.mxu0 %v13407_v34  ;;  %10017 = vmatprep.subr.bf16.mxu1 %v13419_v61 }
 0x9cd   :  { %9987 = vmatpush1.bf16.msra.mxu0 %v13440_v44  ;;  %10019 = vmatpush1.bf16.msra.mxu1 %v13444_v29 }
 0x9ce   :  { %9989 = vmatprep.subr.bf16.mxu0 %v13446_v54  ;;  %10021 = vmatprep.subr.bf16.mxu1 %v13458_v43 }
 0x9d1   :  { %9991 = vmatpush1.bf16.msra.mxu0 %v13476_v20  ;;  %10023 = vmatpush1.bf16.msra.mxu1 %v13480_v45 }
 0x9d2   :  { %9993 = vmatprep.subr.bf16.mxu0 %v13482_v9  ;;  %10025 = vmatprep.subr.bf16.mxu1 %v13494_v46 }
 0x9d5   :  { %9995 = vmatpush1.bf16.msra.mxu0 %v13512_v42  ;;  %10027 = vmatpush1.bf16.msra.mxu1 %v13516_v25 }
 0x9d6   :  { %9997 = vmatprep.subr.bf16.mxu0 %v13518_v17  ;;  %10029 = vmatprep.subr.bf16.mxu1 %v13527_v56 }
 0x9d9   :  { %9999 = vmatpush1.bf16.msra.mxu0 %v13536_v22  ;;  %10031 = vmatpush1.bf16.msra.mxu1 %v13540_v28 }
 0x9da   :  { %10033 = vmatprep.subr.bf16.mxu0 %v13694_v52  ;;  %10065 = vmatprep.subr.bf16.mxu1 %v13705_v49 }
 0xa8f   :  { %v3105_v48 = vpop.f32.mrb[26].mxu0  ;;  %v3176_v37 = vpop.f32.mrb[26].mxu1 }
 0xa90   :  { %v3107_v14 = vpop.f32.mrb[27].mxu0  ;;  %v3178_v59 = vpop.f32.mrb[27].mxu1 }
 0xa91   :  { %v3185_v0 = vcombine.low %v3105_v48, %v3107_v14  ;;  %v3186_v53 = vcombine.low %v3176_v37, %v3178_v59  ;;  %v3526_v48 = vld [vmem:[%s15540_s26 + $0xb8] sm:$0xff]  ;;  %v3519_v59 = vld [vmem:[%s15540_s26 + $0x80] sm:$0xff] }
 0xa92   :  { %v13770_v14 = vpack.c.bf16 %v3526_v48, %v3522_v19  ;;  %v13910_v19 = vpack.c.bf16 %v3556_v50, %v3552_v60  ;;  %v3551_v48 = vld [vmem:[%s15540_s26 + $0x180] sm:$0xff] }
 0xa93   :  { %v3193_v51 = vrot.slane %v3185_v0, %v12298_v16  ;;  %v3200_v5 = vrot.slane %v3186_v53, %v12298_v16  ;;  %v3523_v0 = vld [vmem:[%s15540_s26 + $0xa0] sm:$0xff]  ;;  %v3521_v53 = vld [vmem:[%s15540_s26 + $0x90] sm:$0xff] }
 0xa95   :  { %v3201_v10 = vcombine.low %v3193_v51, %v3200_v5  ;;  %v13782_v51 = vpack.c.bf16 %v3523_v0, %v3519_v59  ;;  %v3525_v5 = vld [vmem:[%s15540_s26 + $0xb0] sm:$0xff]  ;;  %v3555_v59 = vld [vmem:[%s15540_s26 + $0x1a0] sm:$0xff] }
 0xa96   :  { %v3553_v0 = vld [vmem:[%s15540_s26 + $0x190] sm:$0xff] }
 0xa97   :  { %v3203_v1 = vadd.f32 %v3201_v10, %v15558_v13  ;;  %v3528_v10 = vld [vmem:[%s15540_s26 + $0xc8] sm:$0xff] }
 0xa98   :  { %v3532_v13 = vld [vmem:[%s15540_s26 + $0xe8] sm:$0xff] }
 0xa99   :  { %v9160_v21 = vmul.f32 -1.442695, %v3203_v1  ;;  %v3211_v40 = vrot.slane %v3203_v1, 2  ;;  %v3222_v34 = vrot.slane %v3203_v1, 6  ;;  %v3219_v29 = vrot.slane %v3203_v1, 4 }
 0xa9a   :  { %v13795_v1 = vpack.c.bf16 %v3525_v5, %v3521_v53  ;;  %v13922_v53 = vpack.c.bf16 %v3558_v31, %v3554_v57  ;;  %v3557_v5 = vld [vmem:[%s15540_s26 + $0x1b0] sm:$0xff] }
 0xa9b   :  { %11686 = vpow2.f32 %v9160_v21  ;;  %v9161_v11 = vmul.f32 -1.442695, %v3211_v40  ;;  %v9162_v61 = vmul.f32 -1.442695, %v3222_v34  ;;  %v13797_v21 = vpack.c.bf16 %v3532_v13, %v3528_v10  ;;  %v3530_v40 = vld [vmem:[%s15540_s26 + $0xd8] sm:$0xff]  ;;  %v3527_v34 = vld [vmem:[%s15540_s26 + $0xc0] sm:$0xff] }
 0xa9c   :  { %v3560_v10 = vld [vmem:[%s15540_s26 + $0x1c8] sm:$0xff] }
 0xa9d   :  { %11688 = vpow2.f32 %v9161_v11  ;;  %v3534_v11 = vld [vmem:[%s15540_s26 + $0xf8] sm:$0xff]  ;;  %v3564_v13 = vld [vmem:[%s15540_s26 + $0x1e8] sm:$0xff] }
 0xa9e   :  { %11690 = vpow2.f32 %v9162_v61  ;;  %v13808_v61 = vpack.c.bf16 %v3534_v11, %v3530_v40  ;;  %v3562_v40 = vld [vmem:[%s15540_s26 + $0x1d8] sm:$0xff] }
 0xa9f   :  { %v3566_v11 = vld [vmem:[%s15540_s26 + $0x1f8] sm:$0xff] }
 0xaa5   :  { %v11687_v44 = vpop.eup %11686 }
 0xaa6   :  { %v3207_v54 = vadd.f32 1.0, %v11687_v44  ;;  %v3531_v44 = vld [vmem:[%s15540_s26 + $0xe0] sm:$0xff] }
 0xaa7   :  { %v11689_v43 = vpop.eup %11688 }
 0xaa8   :  { %11692 = vrcp.f32 %v3207_v54  ;;  %v3216_v20 = vadd.f32 1.0, %v11689_v43  ;;  %v11691_v45 = vpop.eup %11690  ;;  %v3533_v54 = vld [vmem:[%s15540_s26 + $0xf0] sm:$0xff]  ;;  %v13820_v43 = vpack.c.bf16 %v3531_v44, %v3527_v34  ;;  %v13940_v34 = vpack.c.bf16 %v3555_v59, %v3551_v48 }
 0xaa9   :  { %11694 = vtanh.f32 %v3219_v29  ;;  %v3227_v46 = vadd.f32 1.0, %v11691_v45  ;;  %v3529_v29 = vld [vmem:[%s15540_s26 + $0xd0] sm:$0xff]  ;;  %v3540_v45 = vld [vmem:[%s15540_s26 + $0x128] sm:$0xff]  ;;  %v13944_v44 = vpack.c.bf16 %v3557_v5, %v3553_v0 }
 0xaaa   :  { %11696 = vrcp.f32 %v3216_v20  ;;  %v3536_v20 = vld [vmem:[%s15540_s26 + $0x108] sm:$0xff] }
 0xaab   :  { %11698 = vrcp.f32 %v3227_v46  ;;  %v3542_v46 = vld [vmem:[%s15540_s26 + $0x138] sm:$0xff] }
 0xab2   :  { %v11693_v9 = vpop.eup %11692 }
 0xab3   :  { %v11695_v2 = vpop.eup %11694 }
 0xab4   :  { %v11697_v7 = vpop.eup %11696  ;;  %v3231_v25 = vmul.f32 %v11695_v2, %v11693_v9  ;;  %v3538_v9 = vld [vmem:[%s15540_s26 + $0x118] sm:$0xff]  ;;  %v13833_v2 = vpack.c.bf16 %v3533_v54, %v3529_v29  ;;  %v13946_v29 = vpack.c.bf16 %v3564_v13, %v3560_v10  ;;  %v3559_v54 = vld [vmem:[%s15540_s26 + $0x1c0] sm:$0xff] }
 0xab5   :  { %v3230_v42 = vmul.f32 %v11697_v7, %v13639_v3  ;;  %v11699_v56 = vpop.eup %11698  ;;  %v3520_v3 = vld [vmem:[%s15540_s26 + $0x88] sm:$0xff]  ;;  %v13835_v7 = vpack.c.bf16 %v3540_v45, %v3536_v20  ;;  %v3563_v20 = vld [vmem:[%s15540_s26 + $0x1e0] sm:$0xff]  ;;  %v13955_v45 = vpack.c.bf16 %v3566_v11, %v3562_v40 }
 0xab6   :  { %v13768_v37 = vpack.c.bf16 %v3524_v62, %v3520_v3  ;;  %v13904_v3 = vpack.c.bf16 %v3547_v12, %v3543_v38  ;;  %v13908_v62 = vpack.c.bf16 %v3549_v23, %v3545_v41  ;;  %v15559_v23 = vcombine.low %v12742_v6, %v12748_v4 }
 0xab7   :  { %v13680_v17 = vadd.f32 %v3231_v25, %v3230_v42  ;;  %v3535_v42 = vld [vmem:[%s15540_s26 + $0x100] sm:$0xff] }
 0xab8   :  { %v3539_v25 = vld [vmem:[%s15540_s26 + $0x120] sm:$0xff] }
 0xab9   :  { %11700 = vtanh.f32 %v13680_v17  ;;  %v13868_v35 = vpack.c.bf16 %v3539_v25, %v3535_v42  ;;  %v13964_v42 = vpack.c.bf16 %v3563_v20, %v3559_v54 }
 0xac3   :  { %v11701_v22 = vpop.eup %11700 }
 0xac4   :  { %v3234_v28 = vmul.f32 %v11701_v22, %v11699_v56  ;;  %v13847_v56 = vpack.c.bf16 %v3542_v46, %v3538_v9  ;;  %v3537_v22 = vld [vmem:[%s15540_s26 + $0x110] sm:$0xff] }
 0xac5   :  { %v3561_v9 = vld [vmem:[%s15540_s26 + $0x1d0] sm:$0xff] }
 0xac6   :  { %3236 = vst [vmem:[#allocation3 + $0x12] sm:$0x3] %v3234_v28  ;;  %3368 = vmatmul.mubr.f32.vlgmr.msra.gmra.mrb[28].mxu0 %v3234_v28  ;;  %3439 = vmatmul.mubr.f32.vlgmr.msra.gmra.mrb[28].mxu1 %v3234_v28  ;;  %v3541_v28 = vld [vmem:[%s15540_s26 + $0x130] sm:$0xff] }
 0xac7   :  { %3631 = vmatprep.mubr.f32.mxu0 %v15549_v58  ;;  %3702 = vmatprep.mubr.f32.mxu1 %v15549_v58  ;;  %v13872_v33 = vpack.c.bf16 %v3541_v28, %v3537_v22  ;;  %v3565_v46 = vld [vmem:[%s15540_s26 + $0x1f0] sm:$0xff] }
 0xac8   :  { %10035 = vmatpush1.bf16.msra.mxu0 %v13707_v24  ;;  %10067 = vmatpush1.bf16.msra.mxu1 %v13716_v39  ;;  %v13968_v25 = vpack.c.bf16 %v3565_v46, %v3561_v9 }
 0xac9   :  { %10037 = vmatprep.subr.bf16.mxu0 %v13730_v32  ;;  %10069 = vmatprep.subr.bf16.mxu1 %v13741_v15 }
 0xacc   :  { %10039 = vmatpush1.bf16.msra.mxu0 %v13743_v18  ;;  %10071 = vmatpush1.bf16.msra.mxu1 %v13755_v26 }
 0xacd   :  { %10041 = vmatprep.subr.bf16.mxu0 %v13768_v37  ;;  %10073 = vmatprep.subr.bf16.mxu1 %v13770_v14 }
 0xad0   :  { %10043 = vmatpush1.bf16.msra.mxu0 %v13782_v51  ;;  %10075 = vmatpush1.bf16.msra.mxu1 %v13795_v1 }
 0xad1   :  { %10045 = vmatprep.subr.bf16.mxu0 %v13797_v21  ;;  %10077 = vmatprep.subr.bf16.mxu1 %v13808_v61 }
 0xad4   :  { %10047 = vmatpush1.bf16.msra.mxu0 %v13820_v43  ;;  %10079 = vmatpush1.bf16.msra.mxu1 %v13833_v2 }
 0xad5   :  { %10049 = vmatprep.subr.bf16.mxu0 %v13835_v7  ;;  %10081 = vmatprep.subr.bf16.mxu1 %v13847_v56 }
 0xad8   :  { %10051 = vmatpush1.bf16.msra.mxu0 %v13868_v35  ;;  %10083 = vmatpush1.bf16.msra.mxu1 %v13872_v33 }
 0xad9   :  { %10053 = vmatprep.subr.bf16.mxu0 %v13874_v27  ;;  %10085 = vmatprep.subr.bf16.mxu1 %v13886_v63 }
 0xadc   :  { %10055 = vmatpush1.bf16.msra.mxu0 %v13904_v3  ;;  %10087 = vmatpush1.bf16.msra.mxu1 %v13908_v62 }
 0xadd   :  { %10057 = vmatprep.subr.bf16.mxu0 %v13910_v19  ;;  %10089 = vmatprep.subr.bf16.mxu1 %v13922_v53 }
 0xae0   :  { %10059 = vmatpush1.bf16.msra.mxu0 %v13940_v34  ;;  %10091 = vmatpush1.bf16.msra.mxu1 %v13944_v44 }
 0xae1   :  { %10061 = vmatprep.subr.bf16.mxu0 %v13946_v29  ;;  %10093 = vmatprep.subr.bf16.mxu1 %v13955_v45 }
 0xae4   :  { %10063 = vmatpush1.bf16.msra.mxu0 %v13964_v42  ;;  %10095 = vmatpush1.bf16.msra.mxu1 %v13968_v25 }
 0xae5   :  { %10097 = vmatprep.subr.bf16.mxu0 %v13694_v52  ;;  %10129 = vmatprep.subr.bf16.mxu1 %v13705_v49 }
 0xb99   :  { %v3369_v22 = vpop.f32.mrb[28].mxu0  ;;  %v3440_v28 = vpop.f32.mrb[28].mxu1 }
 0xb9a   :  { %v3371_v47 = vpop.f32.mrb[29].mxu0  ;;  %v3442_v55 = vpop.f32.mrb[29].mxu1 }
 0xb9b   :  { %v3449_v36 = vcombine.low %v3369_v22, %v3371_v47  ;;  %v3450_v30 = vcombine.low %v3440_v28, %v3442_v55 }
 0xb9d   :  { %v3457_v38 = vrot.slane %v3449_v36, %v12298_v16  ;;  %v3464_v12 = vrot.slane %v3450_v30, %v12298_v16 }
 0xb9f   :  { %v3465_v41 = vcombine.low %v3457_v38, %v3464_v12 }
 0xba1   :  { %v3467_v60 = vadd.f32 %v3465_v41, %v15559_v23 }
 0xba3   :  { %v9163_v50 = vmul.f32 -1.442695, %v3467_v60  ;;  %v3475_v57 = vrot.slane %v3467_v60, 2  ;;  %v3486_v48 = vrot.slane %v3467_v60, 6  ;;  %v3483_v5 = vrot.slane %v3467_v60, 4 }
 0xba5   :  { %11702 = vpow2.f32 %v9163_v50  ;;  %v9164_v31 = vmul.f32 -1.442695, %v3475_v57  ;;  %v9165_v59 = vmul.f32 -1.442695, %v3486_v48  ;;  %v15560_v48 = vcombine.high %v12742_v6, %v12748_v4 }
 0xba7   :  { %11704 = vpow2.f32 %v9164_v31 }
 0xba8   :  { %11706 = vpow2.f32 %v9165_v59 }
 0xbaf   :  { %v11703_v0 = vpop.eup %11702 }
 0xbb0   :  { %v3471_v10 = vadd.f32 1.0, %v11703_v0 }
 0xbb1   :  { %v11705_v13 = vpop.eup %11704 }
 0xbb2   :  { %11708 = vrcp.f32 %v3471_v10  ;;  %v3480_v40 = vadd.f32 1.0, %v11705_v13  ;;  %v11707_v11 = vpop.eup %11706 }
 0xbb3   :  { %11710 = vtanh.f32 %v3483_v5  ;;  %v3491_v46 = vadd.f32 1.0, %v11707_v11 }
 0xbb4   :  { %11712 = vrcp.f32 %v3480_v40 }
 0xbb5   :  { %11714 = vrcp.f32 %v3491_v46 }
 0xbbc   :  { %v11709_v54 = vpop.eup %11708 }
 0xbbd   :  { %v11711_v20 = vpop.eup %11710 }
 0xbbe   :  { %v11713_v9 = vpop.eup %11712  ;;  %v3495_v28 = vmul.f32 %v11711_v20, %v11709_v54 }
 0xbbf   :  { %v3494_v22 = vmul.f32 %v11713_v9, %v13680_v17  ;;  %v11715_v55 = vpop.eup %11714 }
 0xbc1   :  { %v13981_v47 = vadd.f32 %v3495_v28, %v3494_v22 }
 0xbc3   :  { %11716 = vtanh.f32 %v13981_v47 }
 0xbcd   :  { %v11717_v36 = vpop.eup %11716 }
 0xbce   :  { %v3498_v30 = vmul.f32 %v11717_v36, %v11715_v55 }
 0xbd0   :  { %3500 = vst [vmem:[#allocation3 + $0x14] sm:$0x3] %v3498_v30  ;;  %3632 = vmatmul.mubr.f32.vlgmr.msra.gmra.mrb[30].mxu0 %v3498_v30  ;;  %3703 = vmatmul.mubr.f32.vlgmr.msra.gmra.mrb[30].mxu1 %v3498_v30 }
 0xbd1   :  { %10099 = vmatpush1.bf16.msra.mxu0 %v13707_v24  ;;  %10131 = vmatpush1.bf16.msra.mxu1 %v13716_v39 }
 0xbd2   :  { %10101 = vmatprep.subr.bf16.mxu0 %v13730_v32  ;;  %10133 = vmatprep.subr.bf16.mxu1 %v13741_v15 }
 0xbd3   :  { %3895 = vmatprep.mubr.f32.mxu0 %v15549_v58  ;;  %3966 = vmatprep.mubr.f32.mxu1 %v15549_v58 }
 0xbd5   :  { %10103 = vmatpush1.bf16.msra.mxu0 %v13743_v18  ;;  %10135 = vmatpush1.bf16.msra.mxu1 %v13755_v26 }
 0xbd6   :  { %10105 = vmatprep.subr.bf16.mxu0 %v13768_v37  ;;  %10137 = vmatprep.subr.bf16.mxu1 %v13770_v14 }
 0xbd9   :  { %10107 = vmatpush1.bf16.msra.mxu0 %v13782_v51  ;;  %10139 = vmatpush1.bf16.msra.mxu1 %v13795_v1 }
 0xbda   :  { %10109 = vmatprep.subr.bf16.mxu0 %v13797_v21  ;;  %10141 = vmatprep.subr.bf16.mxu1 %v13808_v61 }
 0xbdd   :  { %10111 = vmatpush1.bf16.msra.mxu0 %v13820_v43  ;;  %10143 = vmatpush1.bf16.msra.mxu1 %v13833_v2 }
 0xbde   :  { %10113 = vmatprep.subr.bf16.mxu0 %v13835_v7  ;;  %10145 = vmatprep.subr.bf16.mxu1 %v13847_v56 }
 0xbe1   :  { %10115 = vmatpush1.bf16.msra.mxu0 %v13868_v35  ;;  %10147 = vmatpush1.bf16.msra.mxu1 %v13872_v33 }
 0xbe2   :  { %10117 = vmatprep.subr.bf16.mxu0 %v13874_v27  ;;  %10149 = vmatprep.subr.bf16.mxu1 %v13886_v63 }
 0xbe5   :  { %10119 = vmatpush1.bf16.msra.mxu0 %v13904_v3  ;;  %10151 = vmatpush1.bf16.msra.mxu1 %v13908_v62 }
 0xbe6   :  { %10121 = vmatprep.subr.bf16.mxu0 %v13910_v19  ;;  %10153 = vmatprep.subr.bf16.mxu1 %v13922_v53 }
 0xbe9   :  { %10123 = vmatpush1.bf16.msra.mxu0 %v13940_v34  ;;  %10155 = vmatpush1.bf16.msra.mxu1 %v13944_v44 }
 0xbea   :  { %10125 = vmatprep.subr.bf16.mxu0 %v13946_v29  ;;  %10157 = vmatprep.subr.bf16.mxu1 %v13955_v45 }
 0xbed   :  { %10127 = vmatpush1.bf16.msra.mxu0 %v13964_v42  ;;  %10159 = vmatpush1.bf16.msra.mxu1 %v13968_v25 }
 0xbee   :  { %10161 = vmatprep.subr.bf16.mxu0 %v13694_v52  ;;  %10193 = vmatprep.subr.bf16.mxu1 %v13705_v49 }
 0xca3   :  { %v3633_v17 = vpop.f32.mrb[30].mxu0  ;;  %v3704_v38 = vpop.f32.mrb[30].mxu1 }
 0xca4   :  { %v3635_v12 = vpop.f32.mrb[31].mxu0  ;;  %v3706_v41 = vpop.f32.mrb[31].mxu1 }
 0xca5   :  { %v3713_v23 = vcombine.low %v3633_v17, %v3635_v12  ;;  %v3714_v60 = vcombine.low %v3704_v38, %v3706_v41 }
 0xca7   :  { %v3721_v50 = vrot.slane %v3713_v23, %v12298_v16  ;;  %v3728_v57 = vrot.slane %v3714_v60, %v12298_v16 }
 0xca9   :  { %v3729_v31 = vcombine.low %v3721_v50, %v3728_v57 }
 0xcab   :  { %v3731_v59 = vadd.f32 %v3729_v31, %v15560_v48 }
 0xcad   :  { %v9166_v0 = vmul.f32 -1.442695, %v3731_v59  ;;  %v3739_v5 = vrot.slane %v3731_v59, 2  ;;  %v3750_v13 = vrot.slane %v3731_v59, 6  ;;  %v3747_v54 = vrot.slane %v3731_v59, 4 }
 0xcaf   :  { %11718 = vpow2.f32 %v9166_v0  ;;  %v9167_v10 = vmul.f32 -1.442695, %v3739_v5  ;;  %v9168_v40 = vmul.f32 -1.442695, %v3750_v13  ;;  %v15561_v5 = vld [vmem:[#allocation17_spill] sm:$0xff] }
 0xcb1   :  { %11720 = vpow2.f32 %v9167_v10  ;;  %v15562_v10 = vcombine.low %v12759_v8, %v15561_v5 }
 0xcb2   :  { %11722 = vpow2.f32 %v9168_v40 }
 0xcb9   :  { %v11719_v11 = vpop.eup %11718 }
 0xcba   :  { %v3735_v20 = vadd.f32 1.0, %v11719_v11 }
 0xcbb   :  { %v11721_v9 = vpop.eup %11720 }
 0xcbc   :  { %11724 = vrcp.f32 %v3735_v20  ;;  %v3744_v46 = vadd.f32 1.0, %v11721_v9  ;;  %v11723_v22 = vpop.eup %11722 }
 0xcbd   :  { %11726 = vtanh.f32 %v3747_v54  ;;  %v3755_v55 = vadd.f32 1.0, %v11723_v22 }
 0xcbe   :  { %11728 = vrcp.f32 %v3744_v46 }
 0xcbf   :  { %11730 = vrcp.f32 %v3755_v55 }
 0xcc6   :  { %v11725_v28 = vpop.eup %11724 }
 0xcc7   :  { %v11727_v4 = vpop.eup %11726 }
 0xcc8   :  { %v11729_v6 = vpop.eup %11728  ;;  %v3759_v30 = vmul.f32 %v11727_v4, %v11725_v28 }
 0xcc9   :  { %v3758_v36 = vmul.f32 %v11729_v6, %v13981_v47  ;;  %v11731_v38 = vpop.eup %11730 }
 0xccb   :  { %v14024_v17 = vadd.f32 %v3759_v30, %v3758_v36 }
 0xccd   :  { %11732 = vtanh.f32 %v14024_v17 }
 0xcd7   :  { %v11733_v12 = vpop.eup %11732 }
 0xcd8   :  { %v3762_v41 = vmul.f32 %v11733_v12, %v11731_v38 }
 0xcda   :  { %3764 = vst [vmem:[#allocation3 + $0x16] sm:$0x3] %v3762_v41  ;;  %3896 = vmatmul.mubr.f32.vlgmr.msra.gmra.mrb[32].mxu0 %v3762_v41  ;;  %3967 = vmatmul.mubr.f32.vlgmr.msra.gmra.mrb[32].mxu1 %v3762_v41 }
 0xcdb   :  { %10163 = vmatpush1.bf16.msra.mxu0 %v13707_v24  ;;  %10195 = vmatpush1.bf16.msra.mxu1 %v13716_v39 }
 0xcdc   :  { %10165 = vmatprep.subr.bf16.mxu0 %v13730_v32  ;;  %10197 = vmatprep.subr.bf16.mxu1 %v13741_v15 }
 0xcdd   :  { %4159 = vmatprep.mubr.f32.mxu0 %v15549_v58  ;;  %4230 = vmatprep.mubr.f32.mxu1 %v15549_v58 }
 0xcdf   :  { %10167 = vmatpush1.bf16.msra.mxu0 %v13743_v18  ;;  %10199 = vmatpush1.bf16.msra.mxu1 %v13755_v26 }
 0xce0   :  { %10169 = vmatprep.subr.bf16.mxu0 %v13768_v37  ;;  %10201 = vmatprep.subr.bf16.mxu1 %v13770_v14 }
 0xce3   :  { %10171 = vmatpush1.bf16.msra.mxu0 %v13782_v51  ;;  %10203 = vmatpush1.bf16.msra.mxu1 %v13795_v1 }
 0xce4   :  { %10173 = vmatprep.subr.bf16.mxu0 %v13797_v21  ;;  %10205 = vmatprep.subr.bf16.mxu1 %v13808_v61 }
 0xce7   :  { %10175 = vmatpush1.bf16.msra.mxu0 %v13820_v43  ;;  %10207 = vmatpush1.bf16.msra.mxu1 %v13833_v2 }
 0xce8   :  { %10177 = vmatprep.subr.bf16.mxu0 %v13835_v7  ;;  %10209 = vmatprep.subr.bf16.mxu1 %v13847_v56 }
 0xceb   :  { %10179 = vmatpush1.bf16.msra.mxu0 %v13868_v35  ;;  %10211 = vmatpush1.bf16.msra.mxu1 %v13872_v33 }
 0xcec   :  { %10181 = vmatprep.subr.bf16.mxu0 %v13874_v27  ;;  %10213 = vmatprep.subr.bf16.mxu1 %v13886_v63 }
 0xcef   :  { %10183 = vmatpush1.bf16.msra.mxu0 %v13904_v3  ;;  %10215 = vmatpush1.bf16.msra.mxu1 %v13908_v62 }
 0xcf0   :  { %10185 = vmatprep.subr.bf16.mxu0 %v13910_v19  ;;  %10217 = vmatprep.subr.bf16.mxu1 %v13922_v53 }
 0xcf3   :  { %10187 = vmatpush1.bf16.msra.mxu0 %v13940_v34  ;;  %10219 = vmatpush1.bf16.msra.mxu1 %v13944_v44 }
 0xcf4   :  { %10189 = vmatprep.subr.bf16.mxu0 %v13946_v29  ;;  %10221 = vmatprep.subr.bf16.mxu1 %v13955_v45 }
 0xcf7   :  { %10191 = vmatpush1.bf16.msra.mxu0 %v13964_v42  ;;  %10223 = vmatpush1.bf16.msra.mxu1 %v13968_v25 }
 0xcf8   :  { %10225 = vmatprep.subr.bf16.mxu0 %v13694_v52  ;;  %10257 = vmatprep.subr.bf16.mxu1 %v13705_v49 }
 0xdad   :  { %v3897_v47 = vpop.f32.mrb[32].mxu0  ;;  %v3968_v23 = vpop.f32.mrb[32].mxu1 }
 0xdae   :  { %v3899_v60 = vpop.f32.mrb[33].mxu0  ;;  %v3970_v50 = vpop.f32.mrb[33].mxu1 }
 0xdaf   :  { %v3977_v57 = vcombine.low %v3897_v47, %v3899_v60  ;;  %v3978_v31 = vcombine.low %v3968_v23, %v3970_v50  ;;  %v4560_v50 = vld [vmem:[%s15540_s26 + $0x8] sm:$0xff] }
 0xdb1   :  { %v3985_v48 = vrot.slane %v3977_v57, %v12298_v16  ;;  %v3992_v59 = vrot.slane %v3978_v31, %v12298_v16  ;;  %v4564_v57 = vld [vmem:[%s15540_s26 + $0x28] sm:$0xff]  ;;  %v4562_v31 = vld [vmem:[%s15540_s26 + $0x18] sm:$0xff] }
 0xdb3   :  { %v3993_v0 = vcombine.low %v3985_v48, %v3992_v59  ;;  %v10288_v48 = vpack.c.bf16 %v4564_v57, %v4560_v50  ;;  %v4566_v59 = vld [vmem:[%s15540_s26 + $0x38] sm:$0xff] }
 0xdb4   :  { %v4606_v57 = vld [vmem:[%s15540_s26 + $0x178] sm:$0xff] }
 0xdb5   :  { %v3995_v13 = vadd.f32 %v3993_v0, %v15562_v10  ;;  %v4559_v0 = vld [vmem:[%s15540_s26] sm:$0xff]  ;;  %v10320_v10 = vpack.c.bf16 %v4566_v59, %v4562_v31 }
 0xdb6   :  { %v4599_v59 = vld [vmem:[%s15540_s26 + $0x140] sm:$0xff] }
 0xdb7   :  { %v9169_v40 = vmul.f32 -1.442695, %v3995_v13  ;;  %v4003_v11 = vrot.slane %v3995_v13, 2  ;;  %v4014_v49 = vrot.slane %v3995_v13, 6  ;;  %v4011_v9 = vrot.slane %v3995_v13, 4 }
 0xdb9   :  { %11734 = vpow2.f32 %v9169_v40  ;;  %v9170_v52 = vmul.f32 -1.442695, %v4003_v11  ;;  %v9171_v54 = vmul.f32 -1.442695, %v4014_v49  ;;  %v4561_v40 = vld [vmem:[%s15540_s26 + $0x10] sm:$0xff]  ;;  %v4568_v49 = vld [vmem:[%s15540_s26 + $0x48] sm:$0xff] }
 0xdba   :  { %v4565_v11 = vld [vmem:[%s15540_s26 + $0x30] sm:$0xff] }
 0xdbb   :  { %11736 = vpow2.f32 %v9170_v52  ;;  %v10322_v52 = vpack.c.bf16 %v4565_v11, %v4561_v40  ;;  %v4608_v40 = vld [vmem:[%s15540_s26 + $0x188] sm:$0xff] }
 0xdbc   :  { %11738 = vpow2.f32 %v9171_v54  ;;  %v4572_v54 = vld [vmem:[%s15540_s26 + $0x68] sm:$0xff] }
 0xdbd   :  { %v4612_v11 = vld [vmem:[%s15540_s26 + $0x1a8] sm:$0xff] }
 0xdc3   :  { %v11735_v20 = vpop.eup %11734 }
 0xdc4   :  { %v3999_v46 = vadd.f32 1.0, %v11735_v20  ;;  %v4570_v20 = vld [vmem:[%s15540_s26 + $0x58] sm:$0xff] }
 0xdc5   :  { %v11737_v22 = vpop.eup %11736 }
 0xdc6   :  { %11740 = vrcp.f32 %v3999_v46  ;;  %v4008_v28 = vadd.f32 1.0, %v11737_v22  ;;  %v11739_v4 = vpop.eup %11738  ;;  %v4574_v46 = vld [vmem:[%s15540_s26 + $0x78] sm:$0xff]  ;;  %v4567_v22 = vld [vmem:[%s15540_s26 + $0x40] sm:$0xff] }
 0xdc7   :  { %11742 = vtanh.f32 %v4011_v9  ;;  %v4019_v30 = vadd.f32 1.0, %v11739_v4  ;;  %v10292_v9 = vpack.c.bf16 %v4572_v54, %v4568_v49  ;;  %v10324_v4 = vpack.c.bf16 %v4574_v46, %v4570_v20  ;;  %v4614_v49 = vld [vmem:[%s15540_s26 + $0x1b8] sm:$0xff]  ;;  %v4607_v46 = vld [vmem:[%s15540_s26 + $0x180] sm:$0xff] }
 0xdc8   :  { %11744 = vrcp.f32 %v4008_v28  ;;  %v4571_v28 = vld [vmem:[%s15540_s26 + $0x60] sm:$0xff] }
 0xdc9   :  { %11746 = vrcp.f32 %v4019_v30 }
 0xdd0   :  { %v11741_v6 = vpop.eup %11740 }
 0xdd1   :  { %v11743_v55 = vpop.eup %11742 }
 0xdd2   :  { %v11745_v36 = vpop.eup %11744  ;;  %v4023_v12 = vmul.f32 %v11743_v55, %v11741_v6  ;;  %v10294_v6 = vpack.c.bf16 %v4571_v28, %v4567_v22  ;;  %v4569_v55 = vld [vmem:[%s15540_s26 + $0x50] sm:$0xff]  ;;  %v4611_v22 = vld [vmem:[%s15540_s26 + $0x1a0] sm:$0xff] }
 0xdd3   :  { %v4022_v38 = vmul.f32 %v11745_v36, %v14024_v17  ;;  %v11747_v47 = vpop.eup %11746  ;;  %v4573_v36 = vld [vmem:[%s15540_s26 + $0x70] sm:$0xff] }
 0xdd4   :  { %v10326_v30 = vpack.c.bf16 %v4573_v36, %v4569_v55  ;;  %v4609_v28 = vld [vmem:[%s15540_s26 + $0x190] sm:$0xff]  ;;  %v4616_v55 = vld [vmem:[%s15540_s26 + $0x1c8] sm:$0xff] }
 0xdd5   :  { %v14067_v41 = vadd.f32 %v4023_v12, %v4022_v38  ;;  %v4576_v38 = vld [vmem:[%s15540_s26 + $0x88] sm:$0xff] }
 0xdd6   :  { %v4580_v12 = vld [vmem:[%s15540_s26 + $0xa8] sm:$0xff] }
 0xdd7   :  { %11748 = vtanh.f32 %v14067_v41  ;;  %v4620_v36 = vld [vmem:[%s15540_s26 + $0x1e8] sm:$0xff] }
 0xde1   :  { %v11749_v23 = vpop.eup %11748 }
 0xde2   :  { %v4026_v60 = vmul.f32 %v11749_v23, %v11747_v47  ;;  %v10296_v47 = vpack.c.bf16 %v4580_v12, %v4576_v38  ;;  %v4582_v23 = vld [vmem:[%s15540_s26 + $0xb8] sm:$0xff]  ;;  %v10314_v12 = vpack.c.bf16 %v4611_v22, %v4607_v46  ;;  %v4850_v46 = vld [vmem:[#allocation4 + $0x68] sm:$0xff] }
 0xde3   :  { %v4622_v38 = vld [vmem:[%s15540_s26 + $0x1f8] sm:$0xff] }
 0xde4   :  { %4028 = vst [vmem:[#allocation3 + $0x18] sm:$0x3] %v4026_v60  ;;  %4160 = vmatmul.mubr.f32.vlgmr.msra.gmra.mrb[34].mxu0 %v4026_v60  ;;  %4231 = vmatmul.mubr.f32.vlgmr.msra.gmra.mrb[34].mxu1 %v4026_v60  ;;  %v4575_v60 = vld [vmem:[%s15540_s26 + $0x80] sm:$0xff]  ;;  %v4848_v22 = vld [vmem:[#allocation4 + $0x58] sm:$0xff] }
 0xde5   :  { %10227 = vmatpush1.bf16.msra.mxu0 %v13707_v24  ;;  %10259 = vmatpush1.bf16.msra.mxu1 %v13716_v39 }
 0xde6   :  { %10229 = vmatprep.subr.bf16.mxu0 %v13730_v32  ;;  %10261 = vmatprep.subr.bf16.mxu1 %v13741_v15 }
 0xde7   :  { %4423 = vmatprep.mubr.f32.mxu0 %v15549_v58  ;;  %4494 = vmatprep.mubr.f32.mxu1 %v15549_v58 }
 0xde9   :  { %10231 = vmatpush1.bf16.msra.mxu0 %v13743_v18  ;;  %10263 = vmatpush1.bf16.msra.mxu1 %v13755_v26 }
 0xdea   :  { %10233 = vmatprep.subr.bf16.mxu0 %v13768_v37  ;;  %10265 = vmatprep.subr.bf16.mxu1 %v13770_v14 }
 0xded   :  { %10235 = vmatpush1.bf16.msra.mxu0 %v13782_v51  ;;  %10267 = vmatpush1.bf16.msra.mxu1 %v13795_v1  ;;  %v15563_v1 = vcombine.high %v12759_v8, %v15561_v5  ;;  %v4563_v5 = vld [vmem:[%s15540_s26 + $0x20] sm:$0xff] }
 0xdee   :  { %10237 = vmatprep.subr.bf16.mxu0 %v13797_v21  ;;  %10269 = vmatprep.subr.bf16.mxu1 %v13808_v61  ;;  %v10290_v13 = vpack.c.bf16 %v4563_v5, %v4559_v0  ;;  %v4603_v0 = vld [vmem:[%s15540_s26 + $0x160] sm:$0xff]  ;;  %v4601_v5 = vld [vmem:[%s15540_s26 + $0x150] sm:$0xff] }
 0xdef   :  { %v10310_v54 = vpack.c.bf16 %v4603_v0, %v4599_v59 }
 0xdf1   :  { %10239 = vmatpush1.bf16.msra.mxu0 %v13820_v43  ;;  %10271 = vmatpush1.bf16.msra.mxu1 %v13833_v2 }
 0xdf2   :  { %10241 = vmatprep.subr.bf16.mxu0 %v13835_v7  ;;  %10273 = vmatprep.subr.bf16.mxu1 %v13847_v56 }
 0xdf5   :  { %10243 = vmatpush1.bf16.msra.mxu0 %v13868_v35  ;;  %10275 = vmatpush1.bf16.msra.mxu1 %v13872_v33 }
 0xdf6   :  { %10245 = vmatprep.subr.bf16.mxu0 %v13874_v27  ;;  %10277 = vmatprep.subr.bf16.mxu1 %v13886_v63 }
 0xdf9   :  { %10247 = vmatpush1.bf16.msra.mxu0 %v13904_v3  ;;  %10279 = vmatpush1.bf16.msra.mxu1 %v13908_v62 }
 0xdfa   :  { %10249 = vmatprep.subr.bf16.mxu0 %v13910_v19  ;;  %10281 = vmatprep.subr.bf16.mxu1 %v13922_v53 }
 0xdfd   :  { %10251 = vmatpush1.bf16.msra.mxu0 %v13940_v34  ;;  %10283 = vmatpush1.bf16.msra.mxu1 %v13944_v44 }
 0xdfe   :  { %10253 = vmatprep.subr.bf16.mxu0 %v13946_v29  ;;  %10285 = vmatprep.subr.bf16.mxu1 %v13955_v45 }
 0xe01   :  { %10255 = vmatpush1.bf16.msra.mxu0 %v13964_v42  ;;  %10287 = vmatpush1.bf16.msra.mxu1 %v13968_v25 }
 0xe02   :  { %10289 = vmatprep.subr.bf16.mxu0 %v10288_v48  ;;  %10321 = vmatprep.subr.bf16.mxu1 %v10320_v10 }
 0xeb7   :  { %v4161_v24 = vpop.f32.mrb[34].mxu0  ;;  %v4232_v39 = vpop.f32.mrb[34].mxu1 }
 0xeb8   :  { %v4163_v32 = vpop.f32.mrb[35].mxu0  ;;  %v4234_v15 = vpop.f32.mrb[35].mxu1 }
 0xeb9   :  { %v4241_v18 = vcombine.low %v4161_v24, %v4163_v32  ;;  %v4242_v26 = vcombine.low %v4232_v39, %v4234_v15  ;;  %v4579_v24 = vld [vmem:[%s15540_s26 + $0xa0] sm:$0xff]  ;;  %v4577_v15 = vld [vmem:[%s15540_s26 + $0x90] sm:$0xff] }
 0xeba   :  { %v10298_v32 = vpack.c.bf16 %v4579_v24, %v4575_v60  ;;  %v4619_v60 = vld [vmem:[%s15540_s26 + $0x1e0] sm:$0xff]  ;;  %v4617_v24 = vld [vmem:[%s15540_s26 + $0x1d0] sm:$0xff] }
 0xebb   :  { %v4249_v37 = vrot.slane %v4241_v18, %v12298_v16  ;;  %v4256_v14 = vrot.slane %v4242_v26, %v12298_v16  ;;  %v4581_v18 = vld [vmem:[%s15540_s26 + $0xb0] sm:$0xff]  ;;  %v4584_v26 = vld [vmem:[%s15540_s26 + $0xc8] sm:$0xff] }
 0xebd   :  { %v4257_v51 = vcombine.low %v4249_v37, %v4256_v14  ;;  %v10330_v37 = vpack.c.bf16 %v4581_v18, %v4577_v15  ;;  %v4588_v14 = vld [vmem:[%s15540_s26 + $0xe8] sm:$0xff] }
 0xebe   :  { %v4838_v15 = vld [vmem:[#allocation4 + $0x8] sm:$0xff] }
 0xebf   :  { %v4259_v21 = vadd.f32 %v4257_v51, %v15563_v1  ;;  %v4586_v51 = vld [vmem:[%s15540_s26 + $0xd8] sm:$0xff]  ;;  %v4842_v18 = vld [vmem:[#allocation4 + $0x28] sm:$0xff] }
 0xec0   :  { %v4590_v1 = vld [vmem:[%s15540_s26 + $0xf8] sm:$0xff] }
 0xec1   :  { %v9172_v61 = vmul.f32 -1.442695, %v4259_v21  ;;  %v4267_v43 = vrot.slane %v4259_v21, 2  ;;  %v4278_v7 = vrot.slane %v4259_v21, 6  ;;  %v4275_v33 = vrot.slane %v4259_v21, 4 }
 0xec2   :  { %v10300_v21 = vpack.c.bf16 %v4588_v14, %v4584_v26  ;;  %v4840_v26 = vld [vmem:[#allocation4 + $0x18] sm:$0xff] }
 0xec3   :  { %11750 = vpow2.f32 %v9172_v61  ;;  %v9173_v2 = vmul.f32 -1.442695, %v4267_v43  ;;  %v9174_v56 = vmul.f32 -1.442695, %v4278_v7  ;;  %v10332_v61 = vpack.c.bf16 %v4590_v1, %v4586_v51  ;;  %v4583_v43 = vld [vmem:[%s15540_s26 + $0xc0] sm:$0xff]  ;;  %v4585_v7 = vld [vmem:[%s15540_s26 + $0xd0] sm:$0xff] }
 0xec4   :  { %v10352_v1 = vpack.c.bf16 %v4842_v18, %v4838_v15 }
 0xec5   :  { %11752 = vpow2.f32 %v9173_v2  ;;  %v4587_v2 = vld [vmem:[%s15540_s26 + $0xe0] sm:$0xff] }
 0xec6   :  { %11754 = vpow2.f32 %v9174_v56  ;;  %v10302_v56 = vpack.c.bf16 %v4587_v2, %v4583_v43 }
 0xecd   :  { %v11751_v35 = vpop.eup %11750 }
 0xece   :  { %v4263_v27 = vadd.f32 1.0, %v11751_v35  ;;  %v4589_v35 = vld [vmem:[%s15540_s26 + $0xf0] sm:$0xff] }
 0xecf   :  { %v11753_v63 = vpop.eup %11752 }
 0xed0   :  { %11756 = vrcp.f32 %v4263_v27  ;;  %v4272_v3 = vadd.f32 1.0, %v11753_v63  ;;  %v11755_v62 = vpop.eup %11754  ;;  %v4596_v27 = vld [vmem:[%s15540_s26 + $0x128] sm:$0xff]  ;;  %v10334_v63 = vpack.c.bf16 %v4589_v35, %v4585_v7 }
 0xed1   :  { %11758 = vtanh.f32 %v4275_v33  ;;  %v4283_v34 = vadd.f32 1.0, %v11755_v62  ;;  %v4592_v33 = vld [vmem:[%s15540_s26 + $0x108] sm:$0xff]  ;;  %v4594_v62 = vld [vmem:[%s15540_s26 + $0x118] sm:$0xff] }
 0xed2   :  { %11760 = vrcp.f32 %v4272_v3  ;;  %v10304_v3 = vpack.c.bf16 %v4596_v27, %v4592_v33 }
 0xed3   :  { %11762 = vrcp.f32 %v4283_v34  ;;  %v4595_v34 = vld [vmem:[%s15540_s26 + $0x120] sm:$0xff] }
 0xeda   :  { %v11757_v19 = vpop.eup %11756 }
 0xedb   :  { %v11759_v8 = vpop.eup %11758 }
 0xedc   :  { %v11761_v53 = vpop.eup %11760  ;;  %v4287_v29 = vmul.f32 %v11759_v8, %v11757_v19  ;;  %v4598_v19 = vld [vmem:[%s15540_s26 + $0x138] sm:$0xff]  ;;  %v4591_v8 = vld [vmem:[%s15540_s26 + $0x100] sm:$0xff] }
 0xedd   :  { %v4286_v44 = vmul.f32 %v11761_v53, %v14067_v41  ;;  %v11763_v42 = vpop.eup %11762  ;;  %v4578_v41 = vld [vmem:[%s15540_s26 + $0x98] sm:$0xff]  ;;  %v10336_v53 = vpack.c.bf16 %v4598_v19, %v4594_v62  ;;  %v10306_v50 = vpack.c.bf16 %v4595_v34, %v4591_v8  ;;  %v15565_v62 = vld [vmem:[#allocation18_spill] sm:$0xff] }
 0xede   :  { %v10328_v39 = vpack.c.bf16 %v4582_v23, %v4578_v41  ;;  %v4615_v23 = vld [vmem:[%s15540_s26 + $0x1c0] sm:$0xff] }
 0xedf   :  { %v14108_v45 = vadd.f32 %v4287_v29, %v4286_v44  ;;  %v4593_v44 = vld [vmem:[%s15540_s26 + $0x110] sm:$0xff]  ;;  %v10318_v14 = vpack.c.bf16 %v4619_v60, %v4615_v23  ;;  %v4854_v60 = vld [vmem:[#allocation4 + $0x88] sm:$0xff] }
 0xee0   :  { %v4597_v29 = vld [vmem:[%s15540_s26 + $0x130] sm:$0xff] }
 0xee1   :  { %11764 = vtanh.f32 %v14108_v45  ;;  %v10338_v31 = vpack.c.bf16 %v4597_v29, %v4593_v44  ;;  %v4851_v23 = vld [vmem:[#allocation4 + $0x70] sm:$0xff] }
 0xeeb   :  { %v11765_v25 = vpop.eup %11764 }
 0xeec   :  { %v4290_v17 = vmul.f32 %v11765_v25, %v11763_v42  ;;  %v4600_v42 = vld [vmem:[%s15540_s26 + $0x148] sm:$0xff] }
 0xeed   :  { %v4604_v25 = vld [vmem:[%s15540_s26 + $0x168] sm:$0xff] }
 0xeee   :  { %4292 = vst [vmem:[#allocation3 + $0x1a] sm:$0x3] %v4290_v17  ;;  %4424 = vmatmul.mubr.f32.vlgmr.msra.gmra.mrb[36].mxu0 %v4290_v17  ;;  %4495 = vmatmul.mubr.f32.vlgmr.msra.gmra.mrb[36].mxu1 %v4290_v17  ;;  %v4602_v17 = vld [vmem:[%s15540_s26 + $0x158] sm:$0xff]  ;;  %v10308_v48 = vpack.c.bf16 %v4604_v25, %v4600_v42 }
 0xeef   :  { %4687 = vmatprep.mubr.f32.mxu0 %v15549_v58  ;;  %4758 = vmatprep.mubr.f32.mxu1 %v15549_v58  ;;  %v10340_v10 = vpack.c.bf16 %v4606_v57, %v4602_v17 }
 0xef0   :  { %10291 = vmatpush1.bf16.msra.mxu0 %v10290_v13  ;;  %10323 = vmatpush1.bf16.msra.mxu1 %v10322_v52  ;;  %v4605_v13 = vld [vmem:[%s15540_s26 + $0x170] sm:$0xff]  ;;  %v4610_v52 = vld [vmem:[%s15540_s26 + $0x198] sm:$0xff] }
 0xef1   :  { %10293 = vmatprep.subr.bf16.mxu0 %v10292_v9  ;;  %10325 = vmatprep.subr.bf16.mxu1 %v10324_v4  ;;  %v10342_v20 = vpack.c.bf16 %v4605_v13, %v4601_v5  ;;  %v10312_v9 = vpack.c.bf16 %v4612_v11, %v4608_v40  ;;  %v10344_v4 = vpack.c.bf16 %v4614_v49, %v4610_v52  ;;  %v4837_v52 = vld [vmem:[#allocation4] sm:$0xff] }
 0xef2   :  { %v4841_v49 = vld [vmem:[#allocation4 + $0x20] sm:$0xff] }
 0xef4   :  { %10295 = vmatpush1.bf16.msra.mxu0 %v10294_v6  ;;  %10327 = vmatpush1.bf16.msra.mxu1 %v10326_v30  ;;  %v4613_v6 = vld [vmem:[%s15540_s26 + $0x1b0] sm:$0xff]  ;;  %v4618_v30 = vld [vmem:[%s15540_s26 + $0x1d8] sm:$0xff] }
 0xef5   :  { %10297 = vmatprep.subr.bf16.mxu0 %v10296_v47  ;;  %10329 = vmatprep.subr.bf16.mxu1 %v10328_v39  ;;  %v10346_v41 = vpack.c.bf16 %v4613_v6, %v4609_v28  ;;  %v10316_v47 = vpack.c.bf16 %v4620_v36, %v4616_v55  ;;  %v10348_v39 = vpack.c.bf16 %v4622_v38, %v4618_v30  ;;  %v4852_v28 = vld [vmem:[#allocation4 + $0x78] sm:$0xff]  ;;  %v4845_v30 = vld [vmem:[#allocation4 + $0x40] sm:$0xff] }
 0xef6   :  { %v10354_v55 = vpack.c.bf16 %v4841_v49, %v4837_v52 }
 0xef8   :  { %10299 = vmatpush1.bf16.msra.mxu0 %v10298_v32  ;;  %10331 = vmatpush1.bf16.msra.mxu1 %v10330_v37  ;;  %v4621_v32 = vld [vmem:[%s15540_s26 + $0x1f0] sm:$0xff]  ;;  %v4844_v37 = vld [vmem:[#allocation4 + $0x38] sm:$0xff] }
 0xef9   :  { %10301 = vmatprep.subr.bf16.mxu0 %v10300_v21  ;;  %10333 = vmatprep.subr.bf16.mxu1 %v10332_v61  ;;  %v10350_v51 = vpack.c.bf16 %v4621_v32, %v4617_v24  ;;  %v10384_v21 = vpack.c.bf16 %v4844_v37, %v4840_v26  ;;  %v4858_v24 = vld [vmem:[#allocation4 + $0xa8] sm:$0xff]  ;;  %v4860_v32 = vld [vmem:[#allocation4 + $0xb8] sm:$0xff]  ;;  %v4853_v26 = vld [vmem:[#allocation4 + $0x80] sm:$0xff] }
 0xefa   :  { %v4857_v37 = vld [vmem:[#allocation4 + $0xa0] sm:$0xff] }
 0xefc   :  { %10303 = vmatpush1.bf16.msra.mxu0 %v10302_v56  ;;  %10335 = vmatpush1.bf16.msra.mxu1 %v10334_v63 }
 0xefd   :  { %10305 = vmatprep.subr.bf16.mxu0 %v10304_v3  ;;  %10337 = vmatprep.subr.bf16.mxu1 %v10336_v53  ;;  %v15564_v3 = vld [vmem:[#allocation16_spill] sm:$0xff] }
 0xefe   :  { %v15566_v19 = vcombine.low %v15564_v3, %v15565_v62 }
 0xf00   :  { %10307 = vmatpush1.bf16.msra.mxu0 %v10306_v50  ;;  %10339 = vmatpush1.bf16.msra.mxu1 %v10338_v31 }
 0xf01   :  { %10309 = vmatprep.subr.bf16.mxu0 %v10308_v48  ;;  %10341 = vmatprep.subr.bf16.mxu1 %v10340_v10 }
 0xf04   :  { %10311 = vmatpush1.bf16.msra.mxu0 %v10310_v54  ;;  %10343 = vmatpush1.bf16.msra.mxu1 %v10342_v20  ;;  %v4839_v54 = vld [vmem:[#allocation4 + $0x10] sm:$0xff] }
 0xf05   :  { %10313 = vmatprep.subr.bf16.mxu0 %v10312_v9  ;;  %10345 = vmatprep.subr.bf16.mxu1 %v10344_v4  ;;  %v4843_v20 = vld [vmem:[#allocation4 + $0x30] sm:$0xff]  ;;  %v4846_v9 = vld [vmem:[#allocation4 + $0x48] sm:$0xff] }
 0xf06   :  { %v10386_v36 = vpack.c.bf16 %v4843_v20, %v4839_v54  ;;  %v4877_v54 = vld [vmem:[#allocation4 + $0x140] sm:$0xff] }
 0xf07   :  { %v4881_v20 = vld [vmem:[#allocation4 + $0x160] sm:$0xff] }
 0xf08   :  { %10315 = vmatpush1.bf16.msra.mxu0 %v10314_v12  ;;  %10347 = vmatpush1.bf16.msra.mxu1 %v10346_v41  ;;  %v10356_v12 = vpack.c.bf16 %v4850_v46, %v4846_v9  ;;  %v10388_v41 = vpack.c.bf16 %v4852_v28, %v4848_v22  ;;  %v4879_v22 = vld [vmem:[#allocation4 + $0x150] sm:$0xff] }
 0xf09   :  { %10317 = vmatprep.subr.bf16.mxu0 %v10316_v47  ;;  %10349 = vmatprep.subr.bf16.mxu1 %v10348_v39  ;;  %v4847_v47 = vld [vmem:[#allocation4 + $0x50] sm:$0xff]  ;;  %v4856_v39 = vld [vmem:[#allocation4 + $0x98] sm:$0xff] }
 0xf0a   :  { %v10390_v18 = vpack.c.bf16 %v4851_v23, %v4847_v47  ;;  %v4883_v28 = vld [vmem:[#allocation4 + $0x170] sm:$0xff] }
 0xf0c   :  { %10319 = vmatpush1.bf16.msra.mxu0 %v10318_v14  ;;  %10351 = vmatpush1.bf16.msra.mxu1 %v10350_v51  ;;  %v10360_v14 = vpack.c.bf16 %v4858_v24, %v4854_v60  ;;  %v10392_v51 = vpack.c.bf16 %v4860_v32, %v4856_v39  ;;  %v4887_v60 = vld [vmem:[#allocation4 + $0x190] sm:$0xff]  ;;  %v4894_v39 = vld [vmem:[#allocation4 + $0x1c8] sm:$0xff] }
 0xf0d   :  { %10353 = vmatprep.subr.bf16.mxu0 %v10352_v1  ;;  %10385 = vmatprep.subr.bf16.mxu1 %v10384_v21  ;;  %v4855_v1 = vld [vmem:[#allocation4 + $0x90] sm:$0xff]  ;;  %v4898_v32 = vld [vmem:[#allocation4 + $0x1e8] sm:$0xff] }
 0xf0e   :  { %v4859_v21 = vld [vmem:[#allocation4 + $0xb0] sm:$0xff] }
 0xf0f   :  { %v4891_v24 = vld [vmem:[#allocation4 + $0x1b0] sm:$0xff] }
 0xfc1   :  { %v4425_v61 = vpop.f32.mrb[36].mxu0  ;;  %v4496_v43 = vpop.f32.mrb[36].mxu1 }
 0xfc2   :  { %v4427_v2 = vpop.f32.mrb[37].mxu0  ;;  %v4498_v7 = vpop.f32.mrb[37].mxu1 }
 0xfc3   :  { %v4505_v56 = vcombine.low %v4425_v61, %v4427_v2  ;;  %v4506_v35 = vcombine.low %v4496_v43, %v4498_v7  ;;  %v4862_v61 = vld [vmem:[#allocation4 + $0xc8] sm:$0xff]  ;;  %v4864_v2 = vld [vmem:[#allocation4 + $0xd8] sm:$0xff] }
 0xfc4   :  { %v4866_v43 = vld [vmem:[#allocation4 + $0xe8] sm:$0xff]  ;;  %v4868_v7 = vld [vmem:[#allocation4 + $0xf8] sm:$0xff] }
 0xfc5   :  { %v4513_v33 = vrot.slane %v4505_v56, %v12298_v16  ;;  %v4520_v27 = vrot.slane %v4506_v35, %v12298_v16  ;;  %v10362_v56 = vpack.c.bf16 %v4857_v37, %v4853_v26  ;;  %v10394_v35 = vpack.c.bf16 %v4859_v21, %v4855_v1  ;;  %v4823_v1 = vld [vmem:[#allocation3 + $0x4] sm:$0x3] }
 0xfc6   :  { %v10410_v37 = vpack.c.bf16 %v4891_v24, %v4887_v60  ;;  %v10380_v21 = vpack.c.bf16 %v4898_v32, %v4894_v39  ;;  %v5390_v60 = vld [vmem:[#allocation7 + $0x40] sm:$0xff] }
 0xfc7   :  { %v4521_v63 = vcombine.low %v4513_v33, %v4520_v27  ;;  %v4861_v33 = vld [vmem:[#allocation4 + $0xc0] sm:$0xff] }
 0xfc8   :  { %v4865_v27 = vld [vmem:[#allocation4 + $0xe0] sm:$0xff] }
 0xfc9   :  { %v4523_v8 = vadd.f32 %v4521_v63, %v15566_v19  ;;  %v10364_v63 = vpack.c.bf16 %v4866_v43, %v4862_v61  ;;  %v10396_v19 = vpack.c.bf16 %v4868_v7, %v4864_v2  ;;  %v4897_v43 = vld [vmem:[#allocation4 + $0x1e0] sm:$0xff]  ;;  %v4895_v2 = vld [vmem:[#allocation4 + $0x1d0] sm:$0xff] }
 0xfca   :  { %v4899_v7 = vld [vmem:[#allocation4 + $0x1f0] sm:$0xff]  ;;  %v5394_v24 = vld [vmem:[#allocation7 + $0x60] sm:$0xff] }
 0xfcb   :  { %v9175_v53 = vmul.f32 -1.442695, %v4523_v8  ;;  %v4531_v34 = vrot.slane %v4523_v8, 2  ;;  %v4542_v29 = vrot.slane %v4523_v8, 6  ;;  %v4539_v17 = vrot.slane %v4523_v8, 4  ;;  %v4863_v8 = vld [vmem:[#allocation4 + $0xd0] sm:$0xff] }
 0xfcc   :  { %v14344_v32 = vpack.c.bf16 %v5394_v24, %v5390_v60  ;;  %v5431_v60 = vld [vmem:[#allocation7 + $0x188] sm:$0xff] }
 0xfcd   :  { %11766 = vpow2.f32 %v9175_v53  ;;  %v9176_v44 = vmul.f32 -1.442695, %v4531_v34  ;;  %v9177_v42 = vmul.f32 -1.442695, %v4542_v29  ;;  %v4867_v53 = vld [vmem:[#allocation4 + $0xf0] sm:$0xff]  ;;  %v4870_v34 = vld [vmem:[#allocation4 + $0x108] sm:$0xff] }
 0xfce   :  { %v4872_v29 = vld [vmem:[#allocation4 + $0x118] sm:$0xff]  ;;  %v5435_v24 = vld [vmem:[#allocation7 + $0x1a8] sm:$0xff] }
 0xfcf   :  { %11768 = vpow2.f32 %v9176_v44  ;;  %v4874_v44 = vld [vmem:[#allocation4 + $0x128] sm:$0xff] }
 0xfd0   :  { %11770 = vpow2.f32 %v9177_v42  ;;  %v4876_v42 = vld [vmem:[#allocation4 + $0x138] sm:$0xff] }
 0xfd7   :  { %v11767_v25 = vpop.eup %11766 }
 0xfd8   :  { %v4527_v50 = vadd.f32 1.0, %v11767_v25  ;;  %v10366_v25 = vpack.c.bf16 %v4865_v27, %v4861_v33  ;;  %v4828_v33 = vld [vmem:[#allocation3 + $0xe] sm:$0x3] }
 0xfd9   :  { %v11769_v57 = vpop.eup %11768 }
 0xfda   :  { %11772 = vrcp.f32 %v4527_v50  ;;  %v4536_v31 = vadd.f32 1.0, %v11769_v57  ;;  %v11771_v48 = vpop.eup %11770  ;;  %v4869_v50 = vld [vmem:[#allocation4 + $0x100] sm:$0xff] }
 0xfdb   :  { %11774 = vtanh.f32 %v4539_v17  ;;  %v4547_v10 = vadd.f32 1.0, %v11771_v48  ;;  %v10398_v17 = vpack.c.bf16 %v4867_v53, %v4863_v8  ;;  %v4873_v57 = vld [vmem:[#allocation4 + $0x120] sm:$0xff]  ;;  %v10400_v48 = vpack.c.bf16 %v4876_v42, %v4872_v29  ;;  %v4826_v8 = vld [vmem:[#allocation3 + $0xa] sm:$0x3]  ;;  %v4827_v53 = vld [vmem:[#allocation3 + $0xc] sm:$0x3] }
 0xfdc   :  { %11776 = vrcp.f32 %v4536_v31  ;;  %v10368_v31 = vpack.c.bf16 %v4874_v44, %v4870_v34  ;;  %v10370_v52 = vpack.c.bf16 %v4873_v57, %v4869_v50  ;;  %v4957_v44 = vcombine.low %v4827_v53, %v4828_v33  ;;  %v4825_v29 = vld [vmem:[#allocation3 + $0x8] sm:$0x3]  ;;  %v4832_v42 = vld [vmem:[#allocation3 + $0x16] sm:$0x3]  ;;  %v4830_v50 = vld [vmem:[#allocation3 + $0x12] sm:$0x3] }
 0xfdd   :  { %11778 = vrcp.f32 %v4547_v10  ;;  %v4882_v10 = vld [vmem:[#allocation4 + $0x168] sm:$0xff]  ;;  %v4831_v57 = vld [vmem:[#allocation3 + $0x14] sm:$0x3]  ;;  %v5413_v53 = vld [vmem:[#allocation7 + $0xf8] sm:$0xff] }
 0xfe4   :  { %v11773_v59 = vpop.eup %11772 }
 0xfe5   :  { %v11775_v0 = vpop.eup %11774 }
 0xfe6   :  { %v11777_v5 = vpop.eup %11776  ;;  %v4551_v40 = vmul.f32 %v11775_v0, %v11773_v59  ;;  %v4871_v59 = vld [vmem:[#allocation4 + $0x110] sm:$0xff] }
 0xfe7   :  { %v4550_v13 = vmul.f32 %v11777_v5, %v14108_v45  ;;  %v11779_v4 = vpop.eup %11778  ;;  %v4849_v45 = vld [vmem:[#allocation4 + $0x60] sm:$0xff]  ;;  %v4875_v0 = vld [vmem:[#allocation4 + $0x130] sm:$0xff]  ;;  %v4878_v5 = vld [vmem:[#allocation4 + $0x148] sm:$0xff] }
 0xfe8   :  { %v10358_v15 = vpack.c.bf16 %v4849_v45, %v4845_v30  ;;  %v10402_v49 = vpack.c.bf16 %v4875_v0, %v4871_v59  ;;  %v10372_v9 = vpack.c.bf16 %v4882_v10, %v4878_v5  ;;  %v10374_v30 = vpack.c.bf16 %v4881_v20, %v4877_v54  ;;  %v4829_v0 = vld [vmem:[#allocation3 + $0x10] sm:$0x3]  ;;  %v5383_v54 = vld [vmem:[#allocation7 + $0x8] sm:$0xff] }
 0xfe9   :  { %v14311_v11 = vadd.f32 %v4551_v40, %v4550_v13  ;;  %v4880_v13 = vld [vmem:[#allocation4 + $0x158] sm:$0xff]  ;;  %v10406_v45 = vpack.c.bf16 %v4883_v28, %v4879_v22  ;;  %v4974_v59 = vcombine.low %v4831_v57, %v4832_v42  ;;  %v4973_v10 = vcombine.low %v4829_v0, %v4830_v50  ;;  %v5387_v20 = vld [vmem:[#allocation7 + $0x28] sm:$0xff]  ;;  %v5382_v28 = vld [vmem:[#allocation7] sm:$0xff] }
 0xfea   :  { %v4884_v40 = vld [vmem:[#allocation4 + $0x178] sm:$0xff]  ;;  %v5415_v50 = vld [vmem:[#allocation7 + $0x108] sm:$0xff] }
 0xfeb   :  { %11780 = vtanh.f32 %v14311_v11  ;;  %v10404_v46 = vpack.c.bf16 %v4884_v40, %v4880_v13  ;;  %v4988_v40 = vrot.slane %v4974_v59, %v12298_v16  ;;  %v5389_v22 = vld [vmem:[#allocation7 + $0x38] sm:$0xff] }
 0xfec   :  { %v5421_v59 = vld [vmem:[#allocation7 + $0x138] sm:$0xff] }
 0xff5   :  { %v11781_v6 = vpop.eup %11780 }
 0xff6   :  { %v4554_v38 = vmul.f32 %v11781_v6, %v11779_v4  ;;  %v4886_v4 = vld [vmem:[#allocation4 + $0x188] sm:$0xff] }
 0xff7   :  { %v4890_v6 = vld [vmem:[#allocation4 + $0x1a8] sm:$0xff] }
 0xff8   :  { %4556 = vst [vmem:[#allocation3 + $0x1c] sm:$0x3] %v4554_v38  ;;  %4688 = vmatmul.mubr.f32.vlgmr.msra.gmra.mrb[38].mxu0 %v4554_v38  ;;  %4759 = vmatmul.mubr.f32.vlgmr.msra.gmra.mrb[38].mxu1 %v4554_v38  ;;  %v4885_v38 = vld [vmem:[#allocation4 + $0x180] sm:$0xff]  ;;  %v10376_v47 = vpack.c.bf16 %v4890_v6, %v4886_v4 }
 0xff9   :  { %10355 = vmatpush1.bf16.msra.mxu0 %v10354_v55  ;;  %10387 = vmatpush1.bf16.msra.mxu1 %v10386_v36  ;;  %v4888_v55 = vld [vmem:[#allocation4 + $0x198] sm:$0xff]  ;;  %v5386_v4 = vld [vmem:[#allocation7 + $0x20] sm:$0xff] }
 0xffa   :  { %10357 = vmatprep.subr.bf16.mxu0 %v10356_v12  ;;  %10389 = vmatprep.subr.bf16.mxu1 %v10388_v41  ;;  %v4892_v36 = vld [vmem:[#allocation4 + $0x1b8] sm:$0xff]  ;;  %v4889_v12 = vld [vmem:[#allocation4 + $0x1a0] sm:$0xff] }
 0xffb   :  { %5075 = vmatprep.mubr.f32.mxu0 %v15549_v58  ;;  %5164 = vmatprep.mubr.f32.mxu1 %v15549_v58  ;;  %v4824_v41 = vld [vmem:[#allocation3 + $0x6] sm:$0x3]  ;;  %v10408_v23 = vpack.c.bf16 %v4892_v36, %v4888_v55  ;;  %v10378_v26 = vpack.c.bf16 %v4889_v12, %v4885_v38  ;;  %v14332_v55 = vpack.c.bf16 %v5386_v4, %v5382_v28  ;;  %v5384_v36 = vld [vmem:[#allocation7 + $0x10] sm:$0xff]  ;;  %v5391_v38 = vld [vmem:[#allocation7 + $0x48] sm:$0xff] }
 0xffc   :  { %v5395_v12 = vld [vmem:[#allocation7 + $0x68] sm:$0xff]  ;;  %v5425_v28 = vld [vmem:[#allocation7 + $0x158] sm:$0xff] }
 0xffd   :  { %10359 = vmatpush1.bf16.msra.mxu0 %v10358_v15  ;;  %10391 = vmatpush1.bf16.msra.mxu1 %v10390_v18  ;;  %v4896_v15 = vld [vmem:[#allocation4 + $0x1d8] sm:$0xff] }
 0xffe   :  { %10361 = vmatprep.subr.bf16.mxu0 %v10360_v14  ;;  %10393 = vmatprep.subr.bf16.mxu1 %v10392_v51  ;;  %v4900_v18 = vld [vmem:[#allocation4 + $0x1f8] sm:$0xff]  ;;  %v4893_v14 = vld [vmem:[#allocation4 + $0x1c0] sm:$0xff] }
 0xfff   :  { %v4822_v51 = vld [vmem:[#allocation3 + $0x2] sm:$0x3]  ;;  %v10412_v61 = vpack.c.bf16 %v4900_v18, %v4896_v15  ;;  %v5392_v15 = vld [vmem:[#allocation7 + $0x50] sm:$0xff]  ;;  %v5429_v4 = vld [vmem:[#allocation7 + $0x178] sm:$0xff] }
0x1000   :  { %v5396_v18 = vld [vmem:[#allocation7 + $0x70] sm:$0xff] }
0x1001   :  { %10363 = vmatpush1.bf16.msra.mxu0 %v10362_v56  ;;  %10395 = vmatpush1.bf16.msra.mxu1 %v10394_v35  ;;  %v4940_v56 = vcombine.low %v4823_v1, %v4824_v41  ;;  %v4821_v35 = vld [vmem:[#allocation3] sm:$0x3]  ;;  %v5393_v41 = vld [vmem:[#allocation7 + $0x58] sm:$0xff] }
0x1002   :  { %10365 = vmatprep.subr.bf16.mxu0 %v10364_v63  ;;  %10397 = vmatprep.subr.bf16.mxu1 %v10396_v19  ;;  %v4939_v27 = vcombine.low %v4821_v35, %v4822_v51  ;;  %v10382_v63 = vpack.c.bf16 %v4897_v43, %v4893_v14  ;;  %v10414_v19 = vpack.c.bf16 %v4899_v7, %v4895_v2  ;;  %v5403_v14 = vld [vmem:[#allocation7 + $0xa8] sm:$0xff]  ;;  %v5401_v51 = vld [vmem:[#allocation7 + $0x98] sm:$0xff]  ;;  %v5402_v43 = vld [vmem:[#allocation7 + $0xa0] sm:$0xff] }
0x1003   :  { %v4954_v34 = vrot.slane %v4940_v56, %v12298_v16  ;;  %v5400_v56 = vld [vmem:[#allocation7 + $0x90] sm:$0xff] }
0x1004   :  { %v5404_v35 = vld [vmem:[#allocation7 + $0xb0] sm:$0xff] }
0x1005   :  { %10367 = vmatpush1.bf16.msra.mxu0 %v10366_v25  ;;  %10399 = vmatpush1.bf16.msra.mxu1 %v10398_v17  ;;  %v4947_v25 = vrot.slane %v4939_v27, %v12298_v16  ;;  %v4956_v17 = vcombine.low %v4825_v29, %v4826_v8  ;;  %v14359_v33 = vpack.c.bf16 %v5404_v35, %v5400_v56  ;;  %v5407_v27 = vld [vmem:[#allocation7 + $0xc8] sm:$0xff]  ;;  %v5436_v56 = vld [vmem:[#allocation7 + $0x1b0] sm:$0xff] }
0x1006   :  { %10369 = vmatprep.subr.bf16.mxu0 %v10368_v31  ;;  %10401 = vmatprep.subr.bf16.mxu1 %v10400_v48  ;;  %v4971_v48 = vrot.slane %v4957_v44, %v12298_v16  ;;  %v5410_v44 = vld [vmem:[#allocation7 + $0xe0] sm:$0xff] }
0x1007   :  { %v4955_v31 = vcombine.low %v4947_v25, %v4954_v34  ;;  %v4964_v5 = vrot.slane %v4956_v17, %v12298_v16  ;;  %v5406_v34 = vld [vmem:[#allocation7 + $0xc0] sm:$0xff]  ;;  %v5408_v25 = vld [vmem:[#allocation7 + $0xd0] sm:$0xff] }
0x1008   :  { %v14368_v42 = vpack.c.bf16 %v5410_v44, %v5406_v34  ;;  %v5412_v17 = vld [vmem:[#allocation7 + $0xf0] sm:$0xff]  ;;  %v5445_v44 = vld [vmem:[#allocation7 + $0x1f8] sm:$0xff] }
0x1009   :  { %10371 = vmatpush1.bf16.msra.mxu0 %v10370_v52  ;;  %10403 = vmatpush1.bf16.msra.mxu1 %v10402_v49  ;;  %v4972_v13 = vcombine.low %v4964_v5, %v4971_v48  ;;  %v4981_v52 = vrot.slane %v4973_v10, %v12298_v16  ;;  %v14371_v57 = vpack.c.bf16 %v5412_v17, %v5408_v25  ;;  %v5417_v48 = vld [vmem:[#allocation7 + $0x118] sm:$0xff]  ;;  %v5414_v10 = vld [vmem:[#allocation7 + $0x100] sm:$0xff] }
0x100a   :  { %10373 = vmatprep.subr.bf16.mxu0 %v10372_v9  ;;  %10405 = vmatprep.subr.bf16.mxu1 %v10404_v46  ;;  %v5385_v9 = vld [vmem:[#allocation7 + $0x18] sm:$0xff]  ;;  %v14328_v46 = vpack.c.bf16 %v5387_v20, %v5383_v54  ;;  %v14377_v5 = vpack.c.bf16 %v5421_v59, %v5417_v48  ;;  %v5423_v54 = vld [vmem:[#allocation7 + $0x148] sm:$0xff]  ;;  %v5438_v25 = vld [vmem:[#allocation7 + $0x1c0] sm:$0xff] }
0x100b   :  { %v4989_v49 = vcombine.low %v4981_v52, %v4988_v40  ;;  %v14330_v6 = vpack.c.bf16 %v5389_v22, %v5385_v9  ;;  %v5416_v40 = vld [vmem:[#allocation7 + $0x110] sm:$0xff]  ;;  %v5427_v20 = vld [vmem:[#allocation7 + $0x168] sm:$0xff]  ;;  %v5442_v17 = vld [vmem:[#allocation7 + $0x1e0] sm:$0xff] }
0x100c   :  { %v14386_v22 = vpack.c.bf16 %v5427_v20, %v5423_v54  ;;  %v5440_v48 = vld [vmem:[#allocation7 + $0x1d0] sm:$0xff] }
0x100d   :  { %10375 = vmatpush1.bf16.msra.mxu0 %v10374_v30  ;;  %10407 = vmatpush1.bf16.msra.mxu1 %v10406_v45  ;;  %v5388_v30 = vld [vmem:[#allocation7 + $0x30] sm:$0xff] }
0x100e   :  { %10377 = vmatprep.subr.bf16.mxu0 %v10376_v47  ;;  %10409 = vmatprep.subr.bf16.mxu1 %v10408_v23  ;;  %v14335_v45 = vpack.c.bf16 %v5388_v30, %v5384_v36  ;;  %v14340_v47 = vpack.c.bf16 %v5395_v12, %v5391_v38  ;;  %v5397_v23 = vld [vmem:[#allocation7 + $0x78] sm:$0xff]  ;;  %v5422_v36 = vld [vmem:[#allocation7 + $0x140] sm:$0xff]  ;;  %v14388_v30 = vpack.c.bf16 %v5429_v4, %v5425_v28  ;;  %v5424_v12 = vld [vmem:[#allocation7 + $0x150] sm:$0xff] }
0x100f   :  { %v14342_v39 = vpack.c.bf16 %v5397_v23, %v5393_v41  ;;  %v5426_v38 = vld [vmem:[#allocation7 + $0x160] sm:$0xff]  ;;  %v5428_v41 = vld [vmem:[#allocation7 + $0x170] sm:$0xff] }
0x1010   :  { %v14391_v23 = vpack.c.bf16 %v5426_v38, %v5422_v36  ;;  %v5444_v59 = vld [vmem:[#allocation7 + $0x1f0] sm:$0xff] }
0x1011   :  { %10379 = vmatpush1.bf16.msra.mxu0 %v10378_v26  ;;  %10411 = vmatpush1.bf16.msra.mxu1 %v10410_v37  ;;  %v14347_v26 = vpack.c.bf16 %v5396_v18, %v5392_v15  ;;  %v5399_v37 = vld [vmem:[#allocation7 + $0x88] sm:$0xff]  ;;  %v5433_v15 = vld [vmem:[#allocation7 + $0x198] sm:$0xff]  ;;  %v14395_v18 = vpack.c.bf16 %v5428_v41, %v5424_v12  ;;  %v15567_v12 = vcombine.high %v15564_v3, %v15565_v62  ;;  %v4901_v3 = vld [vmem:[%s15485_s6] sm:$0xf] }
0x1012   :  { %10381 = vmatprep.subr.bf16.mxu0 %v10380_v21  ;;  %10413 = vmatprep.subr.bf16.mxu1 %v10412_v61  ;;  %v14352_v1 = vpack.c.bf16 %v5403_v14, %v5399_v37  ;;  %v5405_v21 = vld [vmem:[#allocation7 + $0xb8] sm:$0xff]  ;;  %v5398_v61 = vld [vmem:[#allocation7 + $0x80] sm:$0xff]  ;;  %v14397_v37 = vpack.c.bf16 %v5435_v24, %v5431_v60  ;;  %v15568_v62 = vld [vmem:[#allocation14_spill] sm:$0xff] }
0x1013   :  { %v14354_v2 = vpack.c.bf16 %v5405_v21, %v5401_v51  ;;  %v14356_v7 = vpack.c.bf16 %v5402_v43, %v5398_v61  ;;  %v5437_v14 = vld [vmem:[#allocation7 + $0x1b8] sm:$0xff]  ;;  %v5430_v51 = vld [vmem:[#allocation7 + $0x180] sm:$0xff]  ;;  %v5432_v43 = vld [vmem:[#allocation7 + $0x190] sm:$0xff] }
0x1014   :  { %v5434_v21 = vld [vmem:[#allocation7 + $0x1a0] sm:$0xff]  ;;  %v14400_v61 = vpack.c.bf16 %v5437_v14, %v5433_v15 }
0x1015   :  { %10383 = vmatpush1.bf16.msra.mxu0 %v10382_v63  ;;  %10415 = vmatpush1.bf16.msra.mxu1 %v10414_v19  ;;  %v5411_v63 = vld [vmem:[#allocation7 + $0xe8] sm:$0xff]  ;;  %v5409_v19 = vld [vmem:[#allocation7 + $0xd8] sm:$0xff]  ;;  %v14403_v35 = vpack.c.bf16 %v5434_v21, %v5430_v51 }
0x1016   :  { %10417 = vmatprep.subr.bf16.mxu0 %v14328_v46  ;;  %10449 = vmatprep.subr.bf16.mxu1 %v14330_v6  ;;  %v14364_v8 = vpack.c.bf16 %v5411_v63, %v5407_v27  ;;  %v14366_v29 = vpack.c.bf16 %v5413_v53, %v5409_v19  ;;  %v14407_v27 = vpack.c.bf16 %v5436_v56, %v5432_v43  ;;  %v5439_v63 = vld [vmem:[#allocation7 + $0x1c8] sm:$0xff]  ;;  %v5441_v53 = vld [vmem:[#allocation7 + $0x1d8] sm:$0xff] }
0x1017   :  { %v5443_v19 = vld [vmem:[#allocation7 + $0x1e8] sm:$0xff] }
0x1018   :  { %5076 = vmatmul.mubr.f32.vlgmr.msra.gmra.mrb[40].mxu0 %v4955_v31  ;;  %5165 = vmatmul.mubr.f32.vlgmr.msra.gmra.mrb[40].mxu1 %v4955_v31  ;;  %v5419_v31 = vld [vmem:[#allocation7 + $0x128] sm:$0xff]  ;;  %v14411_v34 = vpack.c.bf16 %v5443_v19, %v5439_v63 }
0x1019   :  { %5081 = vmatprep.mubr.f32.mxu0 %v15549_v58  ;;  %5170 = vmatprep.mubr.f32.mxu1 %v15549_v58  ;;  %v14375_v0 = vpack.c.bf16 %v5419_v31, %v5415_v50  ;;  %v14414_v50 = vpack.c.bf16 %v5445_v44, %v5441_v53  ;;  %v14416_v31 = vpack.c.bf16 %v5442_v17, %v5438_v25  ;;  %v15569_v44 = vld [vmem:[#allocation13_spill] sm:$0xff] }
0x101a   :  { %10419 = vmatpush1.bf16.msra.mxu0 %v14332_v55  ;;  %10451 = vmatpush1.bf16.msra.mxu1 %v14335_v45  ;;  %v14435_v53 = vrot.slane %v4901_v3, %v15568_v62  ;;  %v15570_v25 = vsub.s32 2, %v15569_v44 }
0x101b   :  { %10421 = vmatprep.subr.bf16.mxu0 %v14340_v47  ;;  %10453 = vmatprep.subr.bf16.mxu1 %v14342_v39 }
0x101c   :  { %5082 = vmatmul.mubr.f32.gmra.mrb[42].mxu0 %v4972_v13  ;;  %5171 = vmatmul.mubr.f32.gmra.mrb[42].mxu1 %v4972_v13  ;;  %v5418_v13 = vld [vmem:[#allocation7 + $0x120] sm:$0xff]  ;;  %v14439_v17 = vrot.slane %v4901_v3, %v15570_v25 }
0x101d   :  { %5087 = vmatprep.mubr.f32.mxu0 %v15549_v58  ;;  %5176 = vmatprep.mubr.f32.mxu1 %v15549_v58  ;;  %v14380_v52 = vpack.c.bf16 %v5418_v13, %v5414_v10  ;;  %v14419_v10 = vpack.c.bf16 %v5444_v59, %v5440_v48  ;;  %v15571_v48 = vld [vmem:[#allocation15_spill] sm:$0xff] }
0x101e   :  { %10423 = vmatpush1.bf16.msra.mxu0 %v14344_v32  ;;  %10455 = vmatpush1.bf16.msra.mxu1 %v14347_v26  ;;  %v14442_v59 = vrot.slane %v4901_v3, %v15571_v48 }
0x101f   :  { %10425 = vmatprep.subr.bf16.mxu0 %v14352_v1  ;;  %10457 = vmatprep.subr.bf16.mxu1 %v14354_v2 }
0x1020   :  { %5088 = vmatmul.mubr.f32.gmra.mrb[44].mxu0 %v4989_v49  ;;  %5177 = vmatmul.mubr.f32.gmra.mrb[44].mxu1 %v4989_v49  ;;  %v5420_v49 = vld [vmem:[#allocation7 + $0x130] sm:$0xff] }
0x1021   :  { %5093 = vmatprep.mubr.f32.mxu0 %v15549_v58  ;;  %5182 = vmatprep.mubr.f32.mxu1 %v15549_v58  ;;  %v14384_v9 = vpack.c.bf16 %v5420_v49, %v5416_v40 }
0x1022   :  { %10427 = vmatpush1.bf16.msra.mxu0 %v14356_v7  ;;  %10459 = vmatpush1.bf16.msra.mxu1 %v14359_v33 }
0x1023   :  { %10429 = vmatprep.subr.bf16.mxu0 %v14364_v8  ;;  %10461 = vmatprep.subr.bf16.mxu1 %v14366_v29 }
0x1026   :  { %10431 = vmatpush1.bf16.msra.mxu0 %v14368_v42  ;;  %10463 = vmatpush1.bf16.msra.mxu1 %v14371_v57 }
0x1027   :  { %10433 = vmatprep.subr.bf16.mxu0 %v14375_v0  ;;  %10465 = vmatprep.subr.bf16.mxu1 %v14377_v5 }
0x102a   :  { %10435 = vmatpush1.bf16.msra.mxu0 %v14380_v52  ;;  %10467 = vmatpush1.bf16.msra.mxu1 %v14384_v9 }
0x102b   :  { %10437 = vmatprep.subr.bf16.mxu0 %v14386_v22  ;;  %10469 = vmatprep.subr.bf16.mxu1 %v14388_v30 }
0x102e   :  { %10439 = vmatpush1.bf16.msra.mxu0 %v14391_v23  ;;  %10471 = vmatpush1.bf16.msra.mxu1 %v14395_v18 }
0x102f   :  { %10441 = vmatprep.subr.bf16.mxu0 %v14397_v37  ;;  %10473 = vmatprep.subr.bf16.mxu1 %v14400_v61 }
0x1032   :  { %10443 = vmatpush1.bf16.msra.mxu0 %v14403_v35  ;;  %10475 = vmatpush1.bf16.msra.mxu1 %v14407_v27 }
0x1033   :  { %10445 = vmatprep.subr.bf16.mxu0 %v14411_v34  ;;  %10477 = vmatprep.subr.bf16.mxu1 %v14414_v50 }
0x1036   :  { %10447 = vmatpush1.bf16.msra.mxu0 %v14416_v31  ;;  %10479 = vmatpush1.bf16.msra.mxu1 %v14419_v10 }
0x1037   :  { %10481 = vmatprep.subr.bf16.mxu0 %v14328_v46  ;;  %10513 = vmatprep.subr.bf16.mxu1 %v14330_v6 }
0x10cb   :  { %v4689_v13 = vpop.f32.mrb[38].mxu0  ;;  %v4760_v40 = vpop.f32.mrb[38].mxu1 }
0x10cc   :  { %v4691_v49 = vpop.f32.mrb[39].mxu0  ;;  %v4762_v54 = vpop.f32.mrb[39].mxu1 }
0x10cd   :  { %v4769_v20 = vcombine.low %v4689_v13, %v4691_v49  ;;  %v4770_v28 = vcombine.low %v4760_v40, %v4762_v54  ;;  %v15572_v13 = vsub.s32 3, %v15569_v44 }
0x10cf   :  { %v4777_v4 = vrot.slane %v4769_v20, %v12298_v16  ;;  %v4784_v36 = vrot.slane %v4770_v28, %v12298_v16  ;;  %v14446_v40 = vrot.slane %v4901_v3, %v15572_v13 }
0x10d1   :  { %v4785_v38 = vcombine.low %v4777_v4, %v4784_v36 }
0x10d3   :  { %v4787_v41 = vadd.f32 %v4785_v38, %v15567_v12 }
0x10d5   :  { %v9178_v60 = vmul.f32 -1.442695, %v4787_v41  ;;  %v4795_v24 = vrot.slane %v4787_v41, 2  ;;  %v4806_v14 = vrot.slane %v4787_v41, 6  ;;  %v4803_v43 = vrot.slane %v4787_v41, 4 }
0x10d7   :  { %11782 = vpow2.f32 %v9178_v60  ;;  %v9179_v15 = vmul.f32 -1.442695, %v4795_v24  ;;  %v9180_v51 = vmul.f32 -1.442695, %v4806_v14 }
0x10d9   :  { %11784 = vpow2.f32 %v9179_v15 }
0x10da   :  { %11786 = vpow2.f32 %v9180_v51 }
0x10e1   :  { %v11783_v21 = vpop.eup %11782 }
0x10e2   :  { %v4791_v56 = vadd.f32 1.0, %v11783_v21 }
0x10e3   :  { %v11785_v63 = vpop.eup %11784 }
0x10e4   :  { %11788 = vrcp.f32 %v4791_v56  ;;  %v4800_v19 = vadd.f32 1.0, %v11785_v63  ;;  %v11787_v20 = vpop.eup %11786 }
0x10e5   :  { %11790 = vtanh.f32 %v4803_v43  ;;  %v4811_v15 = vadd.f32 1.0, %v11787_v20 }
0x10e6   :  { %11792 = vrcp.f32 %v4800_v19 }
0x10e7   :  { %11794 = vrcp.f32 %v4811_v15 }
0x10eb   :  { %v5077_v49 = vpop.f32.mrb[40].mxu0  ;;  %v5166_v54 = vpop.f32.mrb[40].mxu1 }
0x10ec   :  { %v5078_v28 = vadd.f32 %v5077_v49, %v14435_v53  ;;  %v5167_v4 = vadd.f32 %v5166_v54, %v14439_v17  ;;  %v5079_v36 = vpop.f32.mrb[41].mxu0  ;;  %v5168_v38 = vpop.f32.mrb[41].mxu1 }
0x10ed   :  { %v5080_v12 = vadd.f32 %v5079_v36, %v14442_v59  ;;  %v5169_v41 = vadd.f32 %v5168_v38, %v14446_v40 }
0x10ee   :  { %v11789_v60 = vpop.eup %11788 }
0x10ef   :  { %v11791_v24 = vpop.eup %11790  ;;  %v5205_v14 = vcombine.low %v5078_v28, %v5080_v12  ;;  %v5206_v51 = vcombine.high %v5078_v28, %v5080_v12  ;;  %v5207_v21 = vcombine.low %v5167_v4, %v5169_v41  ;;  %v5083_v43 = vpop.f32.mrb[42].mxu0  ;;  %v5208_v3 = vcombine.high %v5167_v4, %v5169_v41 }
0x10f0   :  { %v5172_v56 = vpop.f32.mrb[42].mxu1  ;;  %v11793_v63 = vpop.eup %11792  ;;  %v4815_v19 = vmul.f32 %v11791_v24, %v11789_v60  ;;  %v5084_v44 = vadd.f32 %v5083_v43, %v14435_v53 }
0x10f1   :  { %v5173_v25 = vadd.f32 %v5172_v56, %v14439_v17  ;;  %v5085_v13 = vpop.f32.mrb[43].mxu0  ;;  %v5174_v49 = vpop.f32.mrb[43].mxu1  ;;  %v4814_v54 = vmul.f32 %v11793_v63, %v14311_v11  ;;  %v14456_v36 = vrot.slane %v5205_v14, %v12298_v16  ;;  %v14459_v20 = vrot.slane %v5206_v51, %v12298_v16 }
0x10f2   :  { %v14462_v28 = vrot.slane %v5207_v21, %v12298_v16  ;;  %v14465_v38 = vrot.slane %v5208_v3, %v12298_v16  ;;  %v5086_v4 = vadd.f32 %v5085_v13, %v14442_v59  ;;  %v5175_v12 = vadd.f32 %v5174_v49, %v14446_v40 }
0x10f3   :  { %v4816_v41 = vadd.f32 %v4815_v19, %v4814_v54  ;;  %v5089_v24 = vpop.f32.mrb[44].mxu0  ;;  %v5178_v14 = vpop.f32.mrb[44].mxu1 }
0x10f4   :  { %v5241_v43 = vcombine.low %v5084_v44, %v5086_v4  ;;  %v5242_v56 = vcombine.high %v5084_v44, %v5086_v4  ;;  %v5091_v63 = vpop.f32.mrb[45].mxu0  ;;  %v5180_v3 = vpop.f32.mrb[45].mxu1  ;;  %v5243_v15 = vcombine.low %v5173_v25, %v5175_v12  ;;  %v5244_v19 = vcombine.high %v5173_v25, %v5175_v12 }
0x10f5   :  { %11796 = vtanh.f32 %v4816_v41  ;;  %v5090_v13 = vadd.f32 %v5089_v24, %v14435_v53  ;;  %v5179_v51 = vadd.f32 %v5178_v14, %v14439_v17  ;;  %v5092_v60 = vadd.f32 %v5091_v63, %v14442_v59  ;;  %v4833_v24 = vld [vmem:[#allocation3 + $0x18] sm:$0x3]  ;;  %v4835_v41 = vld [vmem:[#allocation3 + $0x1c] sm:$0x3] }
0x10f6   :  { %v14479_v49 = vrot.slane %v5241_v43, %v12298_v16  ;;  %v14482_v54 = vrot.slane %v5242_v56, %v12298_v16  ;;  %v14487_v21 = vrot.slane %v5243_v15, %v12298_v16  ;;  %v14490_v44 = vrot.slane %v5244_v19, %v12298_v16 }
0x10f7   :  { %v5181_v25 = vadd.f32 %v5180_v3, %v14446_v40  ;;  %v5277_v4 = vcombine.low %v5090_v13, %v5092_v60  ;;  %v5278_v12 = vcombine.high %v5090_v13, %v5092_v60  ;;  %v11795_v13 = vpop.eup %11794 }
0x10f9   :  { %v14502_v56 = vrot.slane %v5277_v4, %v12298_v16  ;;  %v14505_v63 = vrot.slane %v5278_v12, %v12298_v16  ;;  %v5279_v3 = vcombine.low %v5179_v51, %v5181_v25  ;;  %v5280_v60 = vcombine.high %v5179_v51, %v5181_v25 }
0x10fb   :  { %15573 = vst [vmem:[#allocation17_spill] sm:$0xff] %v14505_v63  ;;  %v14508_v15 = vrot.slane %v5279_v3, %v12298_v16  ;;  %v14511_v19 = vrot.slane %v5280_v60, %v12298_v16  ;;  %v4834_v3 = vld [vmem:[#allocation3 + $0x1a] sm:$0x3] }
0x10fc   :  { %v4990_v60 = vcombine.low %v4833_v24, %v4834_v3 }
0x10fd   :  { %15574 = vst [vmem:[#allocation16_spill] sm:$0xff] %v14508_v15  ;;  %15575 = vst [vmem:[#allocation18_spill] sm:$0xff] %v14511_v19 }
0x10fe   :  { %v4998_v14 = vrot.slane %v4990_v60, %v12298_v16 }
0x10ff   :  { %v11797_v51 = vpop.eup %11796 }
0x1100   :  { %v4818_v25 = vmul.f32 %v11797_v51, %v11795_v13 }
0x1102   :  { %4820 = vst [vmem:[#allocation3 + $0x1e] sm:$0x3] %v4818_v25 }
0x1109   :  { %v4836_v11 = vld [vmem:[#allocation3 + $0x1e] sm:$0x3] }
0x110a   :  { %v4991_v48 = vcombine.low %v4835_v41, %v4836_v11 }
0x110c   :  { %v5005_v62 = vrot.slane %v4991_v48, %v12298_v16 }
0x110e   :  { %v5006_v43 = vcombine.low %v4998_v14, %v5005_v62 }
0x1110   :  { %5094 = vmatmul.mubr.f32.gmra.mrb[46].mxu0 %v5006_v43  ;;  %5183 = vmatmul.mubr.f32.gmra.mrb[46].mxu1 %v5006_v43 }
0x1111   :  { %5510 = vmatprep.mubr.f32.mxu0 %v15549_v58  ;;  %5581 = vmatprep.mubr.f32.mxu1 %v15549_v58 }
0x1114   :  { %5511 = vmatmul.mubr.f32.vlgmr.msra.gmra.mrb[48].mxu0 %v15549_v58  ;;  %5582 = vmatmul.mubr.f32.vlgmr.msra.gmra.mrb[48].mxu1 %v15549_v58 }
0x1115   :  { %10483 = vmatpush1.bf16.msra.mxu0 %v14332_v55  ;;  %10515 = vmatpush1.bf16.msra.mxu1 %v14335_v45 }
0x1116   :  { %10485 = vmatprep.subr.bf16.mxu0 %v14340_v47  ;;  %10517 = vmatprep.subr.bf16.mxu1 %v14342_v39 }
0x1117   :  { %5707 = vmatprep.mubr.f32.mxu0 %v15549_v58  ;;  %5778 = vmatprep.mubr.f32.mxu1 %v15549_v58 }
0x1119   :  { %10487 = vmatpush1.bf16.msra.mxu0 %v14344_v32  ;;  %10519 = vmatpush1.bf16.msra.mxu1 %v14347_v26 }
0x111a   :  { %10489 = vmatprep.subr.bf16.mxu0 %v14352_v1  ;;  %10521 = vmatprep.subr.bf16.mxu1 %v14354_v2 }
0x111d   :  { %10491 = vmatpush1.bf16.msra.mxu0 %v14356_v7  ;;  %10523 = vmatpush1.bf16.msra.mxu1 %v14359_v33 }
0x111e   :  { %10493 = vmatprep.subr.bf16.mxu0 %v14364_v8  ;;  %10525 = vmatprep.subr.bf16.mxu1 %v14366_v29 }
0x1121   :  { %10495 = vmatpush1.bf16.msra.mxu0 %v14368_v42  ;;  %10527 = vmatpush1.bf16.msra.mxu1 %v14371_v57 }
0x1122   :  { %10497 = vmatprep.subr.bf16.mxu0 %v14375_v0  ;;  %10529 = vmatprep.subr.bf16.mxu1 %v14377_v5 }
0x1125   :  { %10499 = vmatpush1.bf16.msra.mxu0 %v14380_v52  ;;  %10531 = vmatpush1.bf16.msra.mxu1 %v14384_v9 }
0x1126   :  { %10501 = vmatprep.subr.bf16.mxu0 %v14386_v22  ;;  %10533 = vmatprep.subr.bf16.mxu1 %v14388_v30 }
0x1129   :  { %10503 = vmatpush1.bf16.msra.mxu0 %v14391_v23  ;;  %10535 = vmatpush1.bf16.msra.mxu1 %v14395_v18 }
0x112a   :  { %10505 = vmatprep.subr.bf16.mxu0 %v14397_v37  ;;  %10537 = vmatprep.subr.bf16.mxu1 %v14400_v61 }
0x112d   :  { %10507 = vmatpush1.bf16.msra.mxu0 %v14403_v35  ;;  %10539 = vmatpush1.bf16.msra.mxu1 %v14407_v27 }
0x112e   :  { %10509 = vmatprep.subr.bf16.mxu0 %v14411_v34  ;;  %10541 = vmatprep.subr.bf16.mxu1 %v14414_v50 }
0x1131   :  { %10511 = vmatpush1.bf16.msra.mxu0 %v14416_v31  ;;  %10543 = vmatpush1.bf16.msra.mxu1 %v14419_v10 }
0x1132   :  { %10545 = vmatprep.subr.bf16.mxu0 %v14328_v46  ;;  %10577 = vmatprep.subr.bf16.mxu1 %v14330_v6 }
0x11e3   :  { %v5095_v62 = vpop.f32.mrb[46].mxu0  ;;  %v5184_v48 = vpop.f32.mrb[46].mxu1 }
0x11e4   :  { %v5096_v11 = vadd.f32 %v5095_v62, %v14435_v53  ;;  %v5185_v41 = vadd.f32 %v5184_v48, %v14439_v17  ;;  %v5097_v24 = vpop.f32.mrb[47].mxu0  ;;  %v5186_v14 = vpop.f32.mrb[47].mxu1 }
0x11e5   :  { %v5098_v43 = vadd.f32 %v5097_v24, %v14442_v59  ;;  %v5187_v13 = vadd.f32 %v5186_v14, %v14446_v40 }
0x11e7   :  { %v5313_v51 = vcombine.low %v5096_v11, %v5098_v43  ;;  %v5314_v25 = vcombine.high %v5096_v11, %v5098_v43  ;;  %v5315_v3 = vcombine.low %v5185_v41, %v5187_v13  ;;  %v5316_v60 = vcombine.high %v5185_v41, %v5187_v13  ;;  %v5512_v12 = vpop.f32.mrb[48].mxu0  ;;  %v5583_v4 = vpop.f32.mrb[48].mxu1 }
0x11e8   :  { %v5514_v19 = vpop.f32.mrb[49].mxu0  ;;  %v5585_v63 = vpop.f32.mrb[49].mxu1 }
0x11e9   :  { %v14566_v15 = vrot.slane %v5313_v51, %v12298_v16  ;;  %v14569_v53 = vrot.slane %v5314_v25, %v12298_v16  ;;  %v14572_v17 = vrot.slane %v5315_v3, %v12298_v16  ;;  %v14575_v59 = vrot.slane %v5316_v60, %v12298_v16 }
0x11ea   :  { %v5592_v40 = vcombine.low %v5512_v12, %v5514_v19  ;;  %v5593_v62 = vcombine.low %v5583_v4, %v5585_v63  ;;  %v15578_v63 = vcombine.low %v14456_v36, %v14462_v28 }
0x11eb   :  { %15576 = vst [vmem:[#allocation13_spill] sm:$0xff] %v14569_v53  ;;  %15577 = vst [vmem:[#allocation19_spill] sm:$0xff] %v14575_v59 }
0x11ec   :  { %v5600_v14 = vrot.slane %v5592_v40, %v12298_v16  ;;  %v5607_v43 = vrot.slane %v5593_v62, %v12298_v16 }
0x11ee   :  { %v5608_v13 = vcombine.low %v5600_v14, %v5607_v43 }
0x11f0   :  { %v5610_v19 = vadd.f32 %v5608_v13, %v15578_v63 }
0x11f2   :  { %v9181_v4 = vmul.f32 -1.442695, %v5610_v19  ;;  %v5618_v12 = vrot.slane %v5610_v19, 2  ;;  %v5629_v25 = vrot.slane %v5610_v19, 6  ;;  %v5626_v41 = vrot.slane %v5610_v19, 4 }
0x11f4   :  { %11798 = vpow2.f32 %v9181_v4  ;;  %v9182_v51 = vmul.f32 -1.442695, %v5618_v12  ;;  %v9183_v3 = vmul.f32 -1.442695, %v5629_v25 }
0x11f6   :  { %11800 = vpow2.f32 %v9182_v51 }
0x11f7   :  { %11802 = vpow2.f32 %v9183_v3 }
0x11fe   :  { %v11799_v60 = vpop.eup %11798 }
0x11ff   :  { %v5614_v11 = vadd.f32 1.0, %v11799_v60 }
0x1200   :  { %v11801_v24 = vpop.eup %11800 }
0x1201   :  { %11804 = vrcp.f32 %v5614_v11  ;;  %v5623_v40 = vadd.f32 1.0, %v11801_v24  ;;  %v11803_v62 = vpop.eup %11802 }
0x1202   :  { %11806 = vtanh.f32 %v5626_v41  ;;  %v5634_v63 = vadd.f32 1.0, %v11803_v62 }
0x1203   :  { %11808 = vrcp.f32 %v5623_v40 }
0x1204   :  { %11810 = vrcp.f32 %v5634_v63 }
0x120b   :  { %v11805_v14 = vpop.eup %11804 }
0x120c   :  { %v11807_v43 = vpop.eup %11806 }
0x120d   :  { %v11809_v13 = vpop.eup %11808  ;;  %v5638_v4 = vmul.f32 %v11807_v43, %v11805_v14  ;;  %v15579_v43 = vcombine.high %v14456_v36, %v14462_v28 }
0x120e   :  { %v5637_v48 = vmul.f32 0.0, %v11809_v13  ;;  %v11811_v19 = vpop.eup %11810 }
0x1210   :  { %v14590_v12 = vadd.f32 %v5638_v4, %v5637_v48 }
0x1212   :  { %11812 = vtanh.f32 %v14590_v12 }
0x121c   :  { %v11813_v51 = vpop.eup %11812 }
0x121d   :  { %v5641_v25 = vmul.f32 %v11813_v51, %v11811_v19 }
0x121f   :  { %5708 = vmatmul.mubr.f32.vlgmr.msra.gmra.mrb[50].mxu0 %v5641_v25  ;;  %5779 = vmatmul.mubr.f32.vlgmr.msra.gmra.mrb[50].mxu1 %v5641_v25 }
0x1220   :  { %10547 = vmatpush1.bf16.msra.mxu0 %v14332_v55  ;;  %10579 = vmatpush1.bf16.msra.mxu1 %v14335_v45 }
0x1221   :  { %10549 = vmatprep.subr.bf16.mxu0 %v14340_v47  ;;  %10581 = vmatprep.subr.bf16.mxu1 %v14342_v39 }
0x1222   :  { %5904 = vmatprep.mubr.f32.mxu0 %v15549_v58  ;;  %5975 = vmatprep.mubr.f32.mxu1 %v15549_v58 }
0x1224   :  { %10551 = vmatpush1.bf16.msra.mxu0 %v14344_v32  ;;  %10583 = vmatpush1.bf16.msra.mxu1 %v14347_v26 }
0x1225   :  { %10553 = vmatprep.subr.bf16.mxu0 %v14352_v1  ;;  %10585 = vmatprep.subr.bf16.mxu1 %v14354_v2 }
0x1228   :  { %10555 = vmatpush1.bf16.msra.mxu0 %v14356_v7  ;;  %10587 = vmatpush1.bf16.msra.mxu1 %v14359_v33 }
0x1229   :  { %10557 = vmatprep.subr.bf16.mxu0 %v14364_v8  ;;  %10589 = vmatprep.subr.bf16.mxu1 %v14366_v29 }
0x122c   :  { %10559 = vmatpush1.bf16.msra.mxu0 %v14368_v42  ;;  %10591 = vmatpush1.bf16.msra.mxu1 %v14371_v57 }
0x122d   :  { %10561 = vmatprep.subr.bf16.mxu0 %v14375_v0  ;;  %10593 = vmatprep.subr.bf16.mxu1 %v14377_v5 }
0x1230   :  { %10563 = vmatpush1.bf16.msra.mxu0 %v14380_v52  ;;  %10595 = vmatpush1.bf16.msra.mxu1 %v14384_v9 }
0x1231   :  { %10565 = vmatprep.subr.bf16.mxu0 %v14386_v22  ;;  %10597 = vmatprep.subr.bf16.mxu1 %v14388_v30 }
0x1234   :  { %10567 = vmatpush1.bf16.msra.mxu0 %v14391_v23  ;;  %10599 = vmatpush1.bf16.msra.mxu1 %v14395_v18 }
0x1235   :  { %10569 = vmatprep.subr.bf16.mxu0 %v14397_v37  ;;  %10601 = vmatprep.subr.bf16.mxu1 %v14400_v61 }
0x1238   :  { %10571 = vmatpush1.bf16.msra.mxu0 %v14403_v35  ;;  %10603 = vmatpush1.bf16.msra.mxu1 %v14407_v27 }
0x1239   :  { %10573 = vmatprep.subr.bf16.mxu0 %v14411_v34  ;;  %10605 = vmatprep.subr.bf16.mxu1 %v14414_v50 }
0x123c   :  { %10575 = vmatpush1.bf16.msra.mxu0 %v14416_v31  ;;  %10607 = vmatpush1.bf16.msra.mxu1 %v14419_v10 }
0x123d   :  { %10609 = vmatprep.subr.bf16.mxu0 %v14328_v46  ;;  %10641 = vmatprep.subr.bf16.mxu1 %v14330_v6 }
0x12f2   :  { %v5709_v48 = vpop.f32.mrb[50].mxu0  ;;  %v5780_v11 = vpop.f32.mrb[50].mxu1 }
0x12f3   :  { %v5711_v41 = vpop.f32.mrb[51].mxu0  ;;  %v5782_v24 = vpop.f32.mrb[51].mxu1 }
0x12f4   :  { %v5789_v3 = vcombine.low %v5709_v48, %v5711_v41  ;;  %v5790_v60 = vcombine.low %v5780_v11, %v5782_v24 }
0x12f6   :  { %v5797_v40 = vrot.slane %v5789_v3, %v12298_v16  ;;  %v5804_v62 = vrot.slane %v5790_v60, %v12298_v16 }
0x12f8   :  { %v5805_v14 = vcombine.low %v5797_v40, %v5804_v62 }
0x12fa   :  { %v5807_v13 = vadd.f32 %v5805_v14, %v15579_v43 }
0x12fc   :  { %v9184_v63 = vmul.f32 -1.442695, %v5807_v13  ;;  %v5815_v4 = vrot.slane %v5807_v13, 2  ;;  %v5826_v51 = vrot.slane %v5807_v13, 6  ;;  %v5823_v53 = vrot.slane %v5807_v13, 4 }
0x12fe   :  { %11814 = vpow2.f32 %v9184_v63  ;;  %v9185_v19 = vmul.f32 -1.442695, %v5815_v4  ;;  %v9186_v25 = vmul.f32 -1.442695, %v5826_v51 }
0x1300   :  { %11816 = vpow2.f32 %v9185_v19 }
0x1301   :  { %11818 = vpow2.f32 %v9186_v25 }
0x1308   :  { %v11815_v59 = vpop.eup %11814 }
0x1309   :  { %v5811_v48 = vadd.f32 1.0, %v11815_v59 }
0x130a   :  { %v11817_v11 = vpop.eup %11816 }
0x130b   :  { %11820 = vrcp.f32 %v5811_v48  ;;  %v5820_v41 = vadd.f32 1.0, %v11817_v11  ;;  %v11819_v24 = vpop.eup %11818 }
0x130c   :  { %11822 = vtanh.f32 %v5823_v53  ;;  %v5831_v60 = vadd.f32 1.0, %v11819_v24 }
0x130d   :  { %11824 = vrcp.f32 %v5820_v41  ;;  %v15580_v41 = vcombine.low %v14459_v20, %v14465_v38 }
0x130e   :  { %11826 = vrcp.f32 %v5831_v60 }
0x1315   :  { %v11821_v3 = vpop.eup %11820 }
0x1316   :  { %v11823_v36 = vpop.eup %11822 }
0x1317   :  { %v11825_v28 = vpop.eup %11824  ;;  %v5835_v62 = vmul.f32 %v11823_v36, %v11821_v3 }
0x1318   :  { %v5834_v40 = vmul.f32 %v11825_v28, %v14590_v12  ;;  %v11827_v59 = vpop.eup %11826 }
0x131a   :  { %v14633_v14 = vadd.f32 %v5835_v62, %v5834_v40 }
0x131c   :  { %11828 = vtanh.f32 %v14633_v14 }
0x1326   :  { %v11829_v43 = vpop.eup %11828 }
0x1327   :  { %v5838_v13 = vmul.f32 %v11829_v43, %v11827_v59 }
0x1329   :  { %5905 = vmatmul.mubr.f32.vlgmr.msra.gmra.mrb[52].mxu0 %v5838_v13  ;;  %5976 = vmatmul.mubr.f32.vlgmr.msra.gmra.mrb[52].mxu1 %v5838_v13 }
0x132a   :  { %10611 = vmatpush1.bf16.msra.mxu0 %v14332_v55  ;;  %10643 = vmatpush1.bf16.msra.mxu1 %v14335_v45 }
0x132b   :  { %10613 = vmatprep.subr.bf16.mxu0 %v14340_v47  ;;  %10645 = vmatprep.subr.bf16.mxu1 %v14342_v39 }
0x132c   :  { %6101 = vmatprep.mubr.f32.mxu0 %v15549_v58  ;;  %6172 = vmatprep.mubr.f32.mxu1 %v15549_v58 }
0x132e   :  { %10615 = vmatpush1.bf16.msra.mxu0 %v14344_v32  ;;  %10647 = vmatpush1.bf16.msra.mxu1 %v14347_v26 }
0x132f   :  { %10617 = vmatprep.subr.bf16.mxu0 %v14352_v1  ;;  %10649 = vmatprep.subr.bf16.mxu1 %v14354_v2 }
0x1332   :  { %10619 = vmatpush1.bf16.msra.mxu0 %v14356_v7  ;;  %10651 = vmatpush1.bf16.msra.mxu1 %v14359_v33 }
0x1333   :  { %10621 = vmatprep.subr.bf16.mxu0 %v14364_v8  ;;  %10653 = vmatprep.subr.bf16.mxu1 %v14366_v29 }
0x1336   :  { %10623 = vmatpush1.bf16.msra.mxu0 %v14368_v42  ;;  %10655 = vmatpush1.bf16.msra.mxu1 %v14371_v57 }
0x1337   :  { %10625 = vmatprep.subr.bf16.mxu0 %v14375_v0  ;;  %10657 = vmatprep.subr.bf16.mxu1 %v14377_v5 }
0x133a   :  { %10627 = vmatpush1.bf16.msra.mxu0 %v14380_v52  ;;  %10659 = vmatpush1.bf16.msra.mxu1 %v14384_v9 }
0x133b   :  { %10629 = vmatprep.subr.bf16.mxu0 %v14386_v22  ;;  %10661 = vmatprep.subr.bf16.mxu1 %v14388_v30 }
0x133e   :  { %10631 = vmatpush1.bf16.msra.mxu0 %v14391_v23  ;;  %10663 = vmatpush1.bf16.msra.mxu1 %v14395_v18 }
0x133f   :  { %10633 = vmatprep.subr.bf16.mxu0 %v14397_v37  ;;  %10665 = vmatprep.subr.bf16.mxu1 %v14400_v61 }
0x1342   :  { %10635 = vmatpush1.bf16.msra.mxu0 %v14403_v35  ;;  %10667 = vmatpush1.bf16.msra.mxu1 %v14407_v27 }
0x1343   :  { %10637 = vmatprep.subr.bf16.mxu0 %v14411_v34  ;;  %10669 = vmatprep.subr.bf16.mxu1 %v14414_v50 }
0x1346   :  { %10639 = vmatpush1.bf16.msra.mxu0 %v14416_v31  ;;  %10671 = vmatpush1.bf16.msra.mxu1 %v14419_v10 }
0x1347   :  { %10673 = vmatprep.subr.bf16.mxu0 %v14328_v46  ;;  %10705 = vmatprep.subr.bf16.mxu1 %v14330_v6 }
0x13fc   :  { %v5906_v53 = vpop.f32.mrb[52].mxu0  ;;  %v5977_v12 = vpop.f32.mrb[52].mxu1 }
0x13fd   :  { %v5908_v63 = vpop.f32.mrb[53].mxu0  ;;  %v5979_v4 = vpop.f32.mrb[53].mxu1 }
0x13fe   :  { %v5986_v19 = vcombine.low %v5906_v53, %v5908_v63  ;;  %v5987_v51 = vcombine.low %v5977_v12, %v5979_v4 }
0x1400   :  { %v5994_v25 = vrot.slane %v5986_v19, %v12298_v16  ;;  %v6001_v48 = vrot.slane %v5987_v51, %v12298_v16 }
0x1402   :  { %v6002_v11 = vcombine.low %v5994_v25, %v6001_v48 }
0x1404   :  { %v6004_v24 = vadd.f32 %v6002_v11, %v15580_v41 }
0x1406   :  { %v9187_v3 = vmul.f32 -1.442695, %v6004_v24  ;;  %v6012_v36 = vrot.slane %v6004_v24, 2  ;;  %v6023_v60 = vrot.slane %v6004_v24, 6  ;;  %v6020_v59 = vrot.slane %v6004_v24, 4 }
0x1408   :  { %11830 = vpow2.f32 %v9187_v3  ;;  %v9188_v28 = vmul.f32 -1.442695, %v6012_v36  ;;  %v9189_v40 = vmul.f32 -1.442695, %v6023_v60 }
0x140a   :  { %11832 = vpow2.f32 %v9188_v28 }
0x140b   :  { %11834 = vpow2.f32 %v9189_v40 }
0x1412   :  { %v11831_v62 = vpop.eup %11830 }
0x1413   :  { %v6008_v43 = vadd.f32 1.0, %v11831_v62 }
0x1414   :  { %v11833_v13 = vpop.eup %11832 }
0x1415   :  { %11836 = vrcp.f32 %v6008_v43  ;;  %v6017_v53 = vadd.f32 1.0, %v11833_v13  ;;  %v11835_v12 = vpop.eup %11834 }
0x1416   :  { %11838 = vtanh.f32 %v6020_v59  ;;  %v6028_v51 = vadd.f32 1.0, %v11835_v12 }
0x1417   :  { %11840 = vrcp.f32 %v6017_v53  ;;  %v15581_v53 = vcombine.high %v14459_v20, %v14465_v38 }
0x1418   :  { %11842 = vrcp.f32 %v6028_v51 }
0x141f   :  { %v11837_v63 = vpop.eup %11836 }
0x1420   :  { %v11839_v4 = vpop.eup %11838 }
0x1421   :  { %v11841_v19 = vpop.eup %11840  ;;  %v6032_v48 = vmul.f32 %v11839_v4, %v11837_v63 }
0x1422   :  { %v6031_v25 = vmul.f32 %v11841_v19, %v14633_v14  ;;  %v11843_v41 = vpop.eup %11842 }
0x1424   :  { %v14676_v11 = vadd.f32 %v6032_v48, %v6031_v25 }
0x1426   :  { %11844 = vtanh.f32 %v14676_v11 }
0x1430   :  { %v11845_v24 = vpop.eup %11844 }
0x1431   :  { %v6035_v3 = vmul.f32 %v11845_v24, %v11843_v41 }
0x1433   :  { %6102 = vmatmul.mubr.f32.vlgmr.msra.gmra.mrb[54].mxu0 %v6035_v3  ;;  %6173 = vmatmul.mubr.f32.vlgmr.msra.gmra.mrb[54].mxu1 %v6035_v3 }
0x1434   :  { %10675 = vmatpush1.bf16.msra.mxu0 %v14332_v55  ;;  %10707 = vmatpush1.bf16.msra.mxu1 %v14335_v45 }
0x1435   :  { %10677 = vmatprep.subr.bf16.mxu0 %v14340_v47  ;;  %10709 = vmatprep.subr.bf16.mxu1 %v14342_v39 }
0x1436   :  { %6298 = vmatprep.mubr.f32.mxu0 %v15549_v58  ;;  %6369 = vmatprep.mubr.f32.mxu1 %v15549_v58 }
0x1438   :  { %10679 = vmatpush1.bf16.msra.mxu0 %v14344_v32  ;;  %10711 = vmatpush1.bf16.msra.mxu1 %v14347_v26 }
0x1439   :  { %10681 = vmatprep.subr.bf16.mxu0 %v14352_v1  ;;  %10713 = vmatprep.subr.bf16.mxu1 %v14354_v2 }
0x143c   :  { %10683 = vmatpush1.bf16.msra.mxu0 %v14356_v7  ;;  %10715 = vmatpush1.bf16.msra.mxu1 %v14359_v33 }
0x143d   :  { %10685 = vmatprep.subr.bf16.mxu0 %v14364_v8  ;;  %10717 = vmatprep.subr.bf16.mxu1 %v14366_v29 }
0x1440   :  { %10687 = vmatpush1.bf16.msra.mxu0 %v14368_v42  ;;  %10719 = vmatpush1.bf16.msra.mxu1 %v14371_v57 }
0x1441   :  { %10689 = vmatprep.subr.bf16.mxu0 %v14375_v0  ;;  %10721 = vmatprep.subr.bf16.mxu1 %v14377_v5 }
0x1444   :  { %10691 = vmatpush1.bf16.msra.mxu0 %v14380_v52  ;;  %10723 = vmatpush1.bf16.msra.mxu1 %v14384_v9 }
0x1445   :  { %10693 = vmatprep.subr.bf16.mxu0 %v14386_v22  ;;  %10725 = vmatprep.subr.bf16.mxu1 %v14388_v30 }
0x1448   :  { %10695 = vmatpush1.bf16.msra.mxu0 %v14391_v23  ;;  %10727 = vmatpush1.bf16.msra.mxu1 %v14395_v18 }
0x1449   :  { %10697 = vmatprep.subr.bf16.mxu0 %v14397_v37  ;;  %10729 = vmatprep.subr.bf16.mxu1 %v14400_v61 }
0x144c   :  { %10699 = vmatpush1.bf16.msra.mxu0 %v14403_v35  ;;  %10731 = vmatpush1.bf16.msra.mxu1 %v14407_v27 }
0x144d   :  { %10701 = vmatprep.subr.bf16.mxu0 %v14411_v34  ;;  %10733 = vmatprep.subr.bf16.mxu1 %v14414_v50 }
0x1450   :  { %10703 = vmatpush1.bf16.msra.mxu0 %v14416_v31  ;;  %10735 = vmatpush1.bf16.msra.mxu1 %v14419_v10 }
0x1451   :  { %10737 = vmatprep.subr.bf16.mxu0 %v14328_v46  ;;  %10769 = vmatprep.subr.bf16.mxu1 %v14330_v6 }
0x1506   :  { %v6103_v14 = vpop.f32.mrb[54].mxu0  ;;  %v6174_v36 = vpop.f32.mrb[54].mxu1 }
0x1507   :  { %v6105_v28 = vpop.f32.mrb[55].mxu0  ;;  %v6176_v60 = vpop.f32.mrb[55].mxu1 }
0x1508   :  { %v6183_v40 = vcombine.low %v6103_v14, %v6105_v28  ;;  %v6184_v62 = vcombine.low %v6174_v36, %v6176_v60 }
0x150a   :  { %v6191_v59 = vrot.slane %v6183_v40, %v12298_v16  ;;  %v6198_v43 = vrot.slane %v6184_v62, %v12298_v16 }
0x150c   :  { %v6199_v13 = vcombine.low %v6191_v59, %v6198_v43 }
0x150e   :  { %v6201_v12 = vadd.f32 %v6199_v13, %v15581_v53 }
0x1510   :  { %v9190_v63 = vmul.f32 -1.442695, %v6201_v12  ;;  %v6209_v4 = vrot.slane %v6201_v12, 2  ;;  %v6220_v51 = vrot.slane %v6201_v12, 6  ;;  %v6217_v41 = vrot.slane %v6201_v12, 4 }
0x1512   :  { %11846 = vpow2.f32 %v9190_v63  ;;  %v9191_v19 = vmul.f32 -1.442695, %v6209_v4  ;;  %v9192_v25 = vmul.f32 -1.442695, %v6220_v51 }
0x1514   :  { %11848 = vpow2.f32 %v9191_v19 }
0x1515   :  { %11850 = vpow2.f32 %v9192_v25 }
0x151c   :  { %v11847_v48 = vpop.eup %11846 }
0x151d   :  { %v6205_v24 = vadd.f32 1.0, %v11847_v48 }
0x151e   :  { %v11849_v3 = vpop.eup %11848 }
0x151f   :  { %11852 = vrcp.f32 %v6205_v24  ;;  %v6214_v14 = vadd.f32 1.0, %v11849_v3  ;;  %v11851_v36 = vpop.eup %11850  ;;  %v15582_v24 = vcombine.low %v14479_v49, %v14487_v21 }
0x1520   :  { %11854 = vtanh.f32 %v6217_v41  ;;  %v6225_v60 = vadd.f32 1.0, %v11851_v36 }
0x1521   :  { %11856 = vrcp.f32 %v6214_v14 }
0x1522   :  { %11858 = vrcp.f32 %v6225_v60 }
0x1529   :  { %v11853_v28 = vpop.eup %11852 }
0x152a   :  { %v11855_v20 = vpop.eup %11854 }
0x152b   :  { %v11857_v38 = vpop.eup %11856  ;;  %v6229_v62 = vmul.f32 %v11855_v20, %v11853_v28 }
0x152c   :  { %v6228_v40 = vmul.f32 %v11857_v38, %v14676_v11  ;;  %v11859_v43 = vpop.eup %11858 }
0x152e   :  { %v14719_v59 = vadd.f32 %v6229_v62, %v6228_v40 }
0x1530   :  { %11860 = vtanh.f32 %v14719_v59 }
0x153a   :  { %v11861_v13 = vpop.eup %11860 }
0x153b   :  { %v6232_v53 = vmul.f32 %v11861_v13, %v11859_v43 }
0x153d   :  { %6299 = vmatmul.mubr.f32.vlgmr.msra.gmra.mrb[56].mxu0 %v6232_v53  ;;  %6370 = vmatmul.mubr.f32.vlgmr.msra.gmra.mrb[56].mxu1 %v6232_v53 }
0x153e   :  { %10739 = vmatpush1.bf16.msra.mxu0 %v14332_v55  ;;  %10771 = vmatpush1.bf16.msra.mxu1 %v14335_v45 }
0x153f   :  { %10741 = vmatprep.subr.bf16.mxu0 %v14340_v47  ;;  %10773 = vmatprep.subr.bf16.mxu1 %v14342_v39 }
0x1540   :  { %6495 = vmatprep.mubr.f32.mxu0 %v15549_v58  ;;  %6566 = vmatprep.mubr.f32.mxu1 %v15549_v58 }
0x1542   :  { %10743 = vmatpush1.bf16.msra.mxu0 %v14344_v32  ;;  %10775 = vmatpush1.bf16.msra.mxu1 %v14347_v26 }
0x1543   :  { %10745 = vmatprep.subr.bf16.mxu0 %v14352_v1  ;;  %10777 = vmatprep.subr.bf16.mxu1 %v14354_v2 }
0x1546   :  { %10747 = vmatpush1.bf16.msra.mxu0 %v14356_v7  ;;  %10779 = vmatpush1.bf16.msra.mxu1 %v14359_v33 }
0x1547   :  { %10749 = vmatprep.subr.bf16.mxu0 %v14364_v8  ;;  %10781 = vmatprep.subr.bf16.mxu1 %v14366_v29 }
0x154a   :  { %10751 = vmatpush1.bf16.msra.mxu0 %v14368_v42  ;;  %10783 = vmatpush1.bf16.msra.mxu1 %v14371_v57 }
0x154b   :  { %10753 = vmatprep.subr.bf16.mxu0 %v14375_v0  ;;  %10785 = vmatprep.subr.bf16.mxu1 %v14377_v5 }
0x154e   :  { %10755 = vmatpush1.bf16.msra.mxu0 %v14380_v52  ;;  %10787 = vmatpush1.bf16.msra.mxu1 %v14384_v9 }
0x154f   :  { %10757 = vmatprep.subr.bf16.mxu0 %v14386_v22  ;;  %10789 = vmatprep.subr.bf16.mxu1 %v14388_v30 }
0x1552   :  { %10759 = vmatpush1.bf16.msra.mxu0 %v14391_v23  ;;  %10791 = vmatpush1.bf16.msra.mxu1 %v14395_v18 }
0x1553   :  { %10761 = vmatprep.subr.bf16.mxu0 %v14397_v37  ;;  %10793 = vmatprep.subr.bf16.mxu1 %v14400_v61 }
0x1556   :  { %10763 = vmatpush1.bf16.msra.mxu0 %v14403_v35  ;;  %10795 = vmatpush1.bf16.msra.mxu1 %v14407_v27 }
0x1557   :  { %10765 = vmatprep.subr.bf16.mxu0 %v14411_v34  ;;  %10797 = vmatprep.subr.bf16.mxu1 %v14414_v50 }
0x155a   :  { %10767 = vmatpush1.bf16.msra.mxu0 %v14416_v31  ;;  %10799 = vmatpush1.bf16.msra.mxu1 %v14419_v10 }
0x155b   :  { %10801 = vmatprep.subr.bf16.mxu0 %v14328_v46  ;;  %10833 = vmatprep.subr.bf16.mxu1 %v14330_v6 }
0x1610   :  { %v6300_v11 = vpop.f32.mrb[56].mxu0  ;;  %v6371_v12 = vpop.f32.mrb[56].mxu1 }
0x1611   :  { %v6302_v63 = vpop.f32.mrb[57].mxu0  ;;  %v6373_v4 = vpop.f32.mrb[57].mxu1 }
0x1612   :  { %v6380_v19 = vcombine.low %v6300_v11, %v6302_v63  ;;  %v6381_v51 = vcombine.low %v6371_v12, %v6373_v4 }
0x1614   :  { %v6388_v25 = vrot.slane %v6380_v19, %v12298_v16  ;;  %v6395_v48 = vrot.slane %v6381_v51, %v12298_v16 }
0x1616   :  { %v6396_v41 = vcombine.low %v6388_v25, %v6395_v48 }
0x1618   :  { %v6398_v3 = vadd.f32 %v6396_v41, %v15582_v24 }
0x161a   :  { %v9193_v14 = vmul.f32 -1.442695, %v6398_v3  ;;  %v6406_v36 = vrot.slane %v6398_v3, 2  ;;  %v6417_v20 = vrot.slane %v6398_v3, 6  ;;  %v6414_v40 = vrot.slane %v6398_v3, 4 }
0x161c   :  { %11862 = vpow2.f32 %v9193_v14  ;;  %v9194_v28 = vmul.f32 -1.442695, %v6406_v36  ;;  %v9195_v38 = vmul.f32 -1.442695, %v6417_v20 }
0x161e   :  { %11864 = vpow2.f32 %v9194_v28 }
0x161f   :  { %11866 = vpow2.f32 %v9195_v38 }
0x1626   :  { %v11863_v60 = vpop.eup %11862 }
0x1627   :  { %v6402_v62 = vadd.f32 1.0, %v11863_v60 }
0x1628   :  { %v11865_v43 = vpop.eup %11864 }
0x1629   :  { %11868 = vrcp.f32 %v6402_v62  ;;  %v6411_v13 = vadd.f32 1.0, %v11865_v43  ;;  %v11867_v53 = vpop.eup %11866  ;;  %v15583_v62 = vcombine.high %v14479_v49, %v14487_v21 }
0x162a   :  { %11870 = vtanh.f32 %v6414_v40  ;;  %v6422_v4 = vadd.f32 1.0, %v11867_v53 }
0x162b   :  { %11872 = vrcp.f32 %v6411_v13 }
0x162c   :  { %11874 = vrcp.f32 %v6422_v4 }
0x1633   :  { %v11869_v11 = vpop.eup %11868 }
0x1634   :  { %v11871_v12 = vpop.eup %11870 }
0x1635   :  { %v11873_v63 = vpop.eup %11872  ;;  %v6426_v51 = vmul.f32 %v11871_v12, %v11869_v11 }
0x1636   :  { %v6425_v19 = vmul.f32 %v11873_v63, %v14719_v59  ;;  %v11875_v48 = vpop.eup %11874 }
0x1638   :  { %v14762_v25 = vadd.f32 %v6426_v51, %v6425_v19 }
0x163a   :  { %11876 = vtanh.f32 %v14762_v25 }
0x1644   :  { %v11877_v41 = vpop.eup %11876 }
0x1645   :  { %v6429_v24 = vmul.f32 %v11877_v41, %v11875_v48 }
0x1647   :  { %6496 = vmatmul.mubr.f32.vlgmr.msra.gmra.mrb[58].mxu0 %v6429_v24  ;;  %6567 = vmatmul.mubr.f32.vlgmr.msra.gmra.mrb[58].mxu1 %v6429_v24 }
0x1648   :  { %10803 = vmatpush1.bf16.msra.mxu0 %v14332_v55  ;;  %10835 = vmatpush1.bf16.msra.mxu1 %v14335_v45 }
0x1649   :  { %10805 = vmatprep.subr.bf16.mxu0 %v14340_v47  ;;  %10837 = vmatprep.subr.bf16.mxu1 %v14342_v39 }
0x164a   :  { %6692 = vmatprep.mubr.f32.mxu0 %v15549_v58  ;;  %6763 = vmatprep.mubr.f32.mxu1 %v15549_v58 }
0x164c   :  { %10807 = vmatpush1.bf16.msra.mxu0 %v14344_v32  ;;  %10839 = vmatpush1.bf16.msra.mxu1 %v14347_v26 }
0x164d   :  { %10809 = vmatprep.subr.bf16.mxu0 %v14352_v1  ;;  %10841 = vmatprep.subr.bf16.mxu1 %v14354_v2 }
0x1650   :  { %10811 = vmatpush1.bf16.msra.mxu0 %v14356_v7  ;;  %10843 = vmatpush1.bf16.msra.mxu1 %v14359_v33 }
0x1651   :  { %10813 = vmatprep.subr.bf16.mxu0 %v14364_v8  ;;  %10845 = vmatprep.subr.bf16.mxu1 %v14366_v29 }
0x1654   :  { %10815 = vmatpush1.bf16.msra.mxu0 %v14368_v42  ;;  %10847 = vmatpush1.bf16.msra.mxu1 %v14371_v57 }
0x1655   :  { %10817 = vmatprep.subr.bf16.mxu0 %v14375_v0  ;;  %10849 = vmatprep.subr.bf16.mxu1 %v14377_v5 }
0x1658   :  { %10819 = vmatpush1.bf16.msra.mxu0 %v14380_v52  ;;  %10851 = vmatpush1.bf16.msra.mxu1 %v14384_v9 }
0x1659   :  { %10821 = vmatprep.subr.bf16.mxu0 %v14386_v22  ;;  %10853 = vmatprep.subr.bf16.mxu1 %v14388_v30 }
0x165c   :  { %10823 = vmatpush1.bf16.msra.mxu0 %v14391_v23  ;;  %10855 = vmatpush1.bf16.msra.mxu1 %v14395_v18 }
0x165d   :  { %10825 = vmatprep.subr.bf16.mxu0 %v14397_v37  ;;  %10857 = vmatprep.subr.bf16.mxu1 %v14400_v61 }
0x1660   :  { %10827 = vmatpush1.bf16.msra.mxu0 %v14403_v35  ;;  %10859 = vmatpush1.bf16.msra.mxu1 %v14407_v27 }
0x1661   :  { %10829 = vmatprep.subr.bf16.mxu0 %v14411_v34  ;;  %10861 = vmatprep.subr.bf16.mxu1 %v14414_v50 }
0x1664   :  { %10831 = vmatpush1.bf16.msra.mxu0 %v14416_v31  ;;  %10863 = vmatpush1.bf16.msra.mxu1 %v14419_v10 }
0x1665   :  { %10865 = vmatprep.subr.bf16.mxu0 %v14328_v46  ;;  %10897 = vmatprep.subr.bf16.mxu1 %v14330_v6 }
0x171a   :  { %v6497_v59 = vpop.f32.mrb[58].mxu0  ;;  %v6568_v3 = vpop.f32.mrb[58].mxu1 }
0x171b   :  { %v6499_v14 = vpop.f32.mrb[59].mxu0  ;;  %v6570_v36 = vpop.f32.mrb[59].mxu1 }
0x171c   :  { %v6577_v28 = vcombine.low %v6497_v59, %v6499_v14  ;;  %v6578_v20 = vcombine.low %v6568_v3, %v6570_v36 }
0x171e   :  { %v6585_v38 = vrot.slane %v6577_v28, %v12298_v16  ;;  %v6592_v60 = vrot.slane %v6578_v20, %v12298_v16 }
0x1720   :  { %v6593_v40 = vcombine.low %v6585_v38, %v6592_v60 }
0x1722   :  { %v6595_v43 = vadd.f32 %v6593_v40, %v15583_v62 }
0x1724   :  { %v9196_v13 = vmul.f32 -1.442695, %v6595_v43  ;;  %v6603_v53 = vrot.slane %v6595_v43, 2  ;;  %v6614_v12 = vrot.slane %v6595_v43, 6  ;;  %v6611_v19 = vrot.slane %v6595_v43, 4 }
0x1726   :  { %11878 = vpow2.f32 %v9196_v13  ;;  %v9197_v11 = vmul.f32 -1.442695, %v6603_v53  ;;  %v9198_v63 = vmul.f32 -1.442695, %v6614_v12 }
0x1728   :  { %11880 = vpow2.f32 %v9197_v11 }
0x1729   :  { %11882 = vpow2.f32 %v9198_v63 }
0x1730   :  { %v11879_v4 = vpop.eup %11878 }
0x1731   :  { %v6599_v51 = vadd.f32 1.0, %v11879_v4  ;;  %v15584_v4 = vcombine.low %v14482_v54, %v14490_v44 }
0x1732   :  { %v11881_v48 = vpop.eup %11880 }
0x1733   :  { %11884 = vrcp.f32 %v6599_v51  ;;  %v6608_v41 = vadd.f32 1.0, %v11881_v48  ;;  %v11883_v24 = vpop.eup %11882 }
0x1734   :  { %11886 = vtanh.f32 %v6611_v19  ;;  %v6619_v3 = vadd.f32 1.0, %v11883_v24 }
0x1735   :  { %11888 = vrcp.f32 %v6608_v41 }
0x1736   :  { %11890 = vrcp.f32 %v6619_v3 }
0x173d   :  { %v11885_v59 = vpop.eup %11884 }
0x173e   :  { %v11887_v21 = vpop.eup %11886 }
0x173f   :  { %v11889_v49 = vpop.eup %11888  ;;  %v6623_v36 = vmul.f32 %v11887_v21, %v11885_v59 }
0x1740   :  { %v6622_v14 = vmul.f32 %v11889_v49, %v14762_v25  ;;  %v11891_v20 = vpop.eup %11890 }
0x1742   :  { %v14805_v28 = vadd.f32 %v6623_v36, %v6622_v14 }
0x1744   :  { %11892 = vtanh.f32 %v14805_v28 }
0x174e   :  { %v11893_v38 = vpop.eup %11892 }
0x174f   :  { %v6626_v60 = vmul.f32 %v11893_v38, %v11891_v20 }
0x1751   :  { %6693 = vmatmul.mubr.f32.vlgmr.msra.gmra.mrb[60].mxu0 %v6626_v60  ;;  %6764 = vmatmul.mubr.f32.vlgmr.msra.gmra.mrb[60].mxu1 %v6626_v60 }
0x1752   :  { %10867 = vmatpush1.bf16.msra.mxu0 %v14332_v55  ;;  %10899 = vmatpush1.bf16.msra.mxu1 %v14335_v45 }
0x1753   :  { %10869 = vmatprep.subr.bf16.mxu0 %v14340_v47  ;;  %10901 = vmatprep.subr.bf16.mxu1 %v14342_v39 }
0x1754   :  { %6889 = vmatprep.mubr.f32.mxu0 %v15549_v58  ;;  %6960 = vmatprep.mubr.f32.mxu1 %v15549_v58 }
0x1756   :  { %10871 = vmatpush1.bf16.msra.mxu0 %v14344_v32  ;;  %10903 = vmatpush1.bf16.msra.mxu1 %v14347_v26 }
0x1757   :  { %10873 = vmatprep.subr.bf16.mxu0 %v14352_v1  ;;  %10905 = vmatprep.subr.bf16.mxu1 %v14354_v2 }
0x175a   :  { %10875 = vmatpush1.bf16.msra.mxu0 %v14356_v7  ;;  %10907 = vmatpush1.bf16.msra.mxu1 %v14359_v33 }
0x175b   :  { %10877 = vmatprep.subr.bf16.mxu0 %v14364_v8  ;;  %10909 = vmatprep.subr.bf16.mxu1 %v14366_v29 }
0x175e   :  { %10879 = vmatpush1.bf16.msra.mxu0 %v14368_v42  ;;  %10911 = vmatpush1.bf16.msra.mxu1 %v14371_v57 }
0x175f   :  { %10881 = vmatprep.subr.bf16.mxu0 %v14375_v0  ;;  %10913 = vmatprep.subr.bf16.mxu1 %v14377_v5 }
0x1762   :  { %10883 = vmatpush1.bf16.msra.mxu0 %v14380_v52  ;;  %10915 = vmatpush1.bf16.msra.mxu1 %v14384_v9 }
0x1763   :  { %10885 = vmatprep.subr.bf16.mxu0 %v14386_v22  ;;  %10917 = vmatprep.subr.bf16.mxu1 %v14388_v30 }
0x1766   :  { %10887 = vmatpush1.bf16.msra.mxu0 %v14391_v23  ;;  %10919 = vmatpush1.bf16.msra.mxu1 %v14395_v18 }
0x1767   :  { %10889 = vmatprep.subr.bf16.mxu0 %v14397_v37  ;;  %10921 = vmatprep.subr.bf16.mxu1 %v14400_v61 }
0x176a   :  { %10891 = vmatpush1.bf16.msra.mxu0 %v14403_v35  ;;  %10923 = vmatpush1.bf16.msra.mxu1 %v14407_v27 }
0x176b   :  { %10893 = vmatprep.subr.bf16.mxu0 %v14411_v34  ;;  %10925 = vmatprep.subr.bf16.mxu1 %v14414_v50 }
0x176e   :  { %10895 = vmatpush1.bf16.msra.mxu0 %v14416_v31  ;;  %10927 = vmatpush1.bf16.msra.mxu1 %v14419_v10 }
0x176f   :  { %10929 = vmatprep.subr.bf16.mxu0 %v14328_v46  ;;  %10961 = vmatprep.subr.bf16.mxu1 %v14330_v6 }
0x1824   :  { %v6694_v25 = vpop.f32.mrb[60].mxu0  ;;  %v6765_v40 = vpop.f32.mrb[60].mxu1 }
0x1825   :  { %v6696_v62 = vpop.f32.mrb[61].mxu0  ;;  %v6767_v43 = vpop.f32.mrb[61].mxu1 }
0x1826   :  { %v6774_v13 = vcombine.low %v6694_v25, %v6696_v62  ;;  %v6775_v53 = vcombine.low %v6765_v40, %v6767_v43 }
0x1828   :  { %v6782_v11 = vrot.slane %v6774_v13, %v12298_v16  ;;  %v6789_v12 = vrot.slane %v6775_v53, %v12298_v16 }
0x182a   :  { %v6790_v63 = vcombine.low %v6782_v11, %v6789_v12 }
0x182c   :  { %v6792_v19 = vadd.f32 %v6790_v63, %v15584_v4 }
0x182e   :  { %v9199_v51 = vmul.f32 -1.442695, %v6792_v19  ;;  %v6800_v48 = vrot.slane %v6792_v19, 2  ;;  %v6811_v24 = vrot.slane %v6792_v19, 6  ;;  %v6808_v49 = vrot.slane %v6792_v19, 4 }
0x1830   :  { %11894 = vpow2.f32 %v9199_v51  ;;  %v9200_v41 = vmul.f32 -1.442695, %v6800_v48  ;;  %v9201_v59 = vmul.f32 -1.442695, %v6811_v24 }
0x1832   :  { %11896 = vpow2.f32 %v9200_v41 }
0x1833   :  { %11898 = vpow2.f32 %v9201_v59 }
0x183a   :  { %v11895_v21 = vpop.eup %11894 }
0x183b   :  { %v6796_v3 = vadd.f32 1.0, %v11895_v21  ;;  %v15585_v21 = vcombine.high %v14482_v54, %v14490_v44 }
0x183c   :  { %v11897_v14 = vpop.eup %11896 }
0x183d   :  { %11900 = vrcp.f32 %v6796_v3  ;;  %v6805_v36 = vadd.f32 1.0, %v11897_v14  ;;  %v11899_v20 = vpop.eup %11898 }
0x183e   :  { %11902 = vtanh.f32 %v6808_v49  ;;  %v6816_v40 = vadd.f32 1.0, %v11899_v20 }
0x183f   :  { %11904 = vrcp.f32 %v6805_v36 }
0x1840   :  { %11906 = vrcp.f32 %v6816_v40 }
0x1847   :  { %v11901_v38 = vpop.eup %11900 }
0x1848   :  { %v11903_v60 = vpop.eup %11902 }
0x1849   :  { %v11905_v25 = vpop.eup %11904  ;;  %v6820_v43 = vmul.f32 %v11903_v60, %v11901_v38 }
0x184a   :  { %v6819_v62 = vmul.f32 %v11905_v25, %v14805_v28  ;;  %v11907_v53 = vpop.eup %11906 }
0x184c   :  { %v14848_v13 = vadd.f32 %v6820_v43, %v6819_v62 }
0x184e   :  { %11908 = vtanh.f32 %v14848_v13 }
0x1858   :  { %v11909_v11 = vpop.eup %11908 }
0x1859   :  { %v6823_v12 = vmul.f32 %v11909_v11, %v11907_v53 }
0x185b   :  { %6890 = vmatmul.mubr.f32.vlgmr.msra.gmra.mrb[62].mxu0 %v6823_v12  ;;  %6961 = vmatmul.mubr.f32.vlgmr.msra.gmra.mrb[62].mxu1 %v6823_v12 }
0x185c   :  { %10931 = vmatpush1.bf16.msra.mxu0 %v14332_v55  ;;  %10963 = vmatpush1.bf16.msra.mxu1 %v14335_v45 }
0x185d   :  { %10933 = vmatprep.subr.bf16.mxu0 %v14340_v47  ;;  %10965 = vmatprep.subr.bf16.mxu1 %v14342_v39 }
0x185e   :  { %7086 = vmatprep.mubr.f32.mxu0 %v15549_v58  ;;  %7157 = vmatprep.mubr.f32.mxu1 %v15549_v58 }
0x1860   :  { %10935 = vmatpush1.bf16.msra.mxu0 %v14344_v32  ;;  %10967 = vmatpush1.bf16.msra.mxu1 %v14347_v26 }
0x1861   :  { %10937 = vmatprep.subr.bf16.mxu0 %v14352_v1  ;;  %10969 = vmatprep.subr.bf16.mxu1 %v14354_v2 }
0x1864   :  { %10939 = vmatpush1.bf16.msra.mxu0 %v14356_v7  ;;  %10971 = vmatpush1.bf16.msra.mxu1 %v14359_v33 }
0x1865   :  { %10941 = vmatprep.subr.bf16.mxu0 %v14364_v8  ;;  %10973 = vmatprep.subr.bf16.mxu1 %v14366_v29 }
0x1868   :  { %10943 = vmatpush1.bf16.msra.mxu0 %v14368_v42  ;;  %10975 = vmatpush1.bf16.msra.mxu1 %v14371_v57 }
0x1869   :  { %10945 = vmatprep.subr.bf16.mxu0 %v14375_v0  ;;  %10977 = vmatprep.subr.bf16.mxu1 %v14377_v5 }
0x186c   :  { %10947 = vmatpush1.bf16.msra.mxu0 %v14380_v52  ;;  %10979 = vmatpush1.bf16.msra.mxu1 %v14384_v9 }
0x186d   :  { %10949 = vmatprep.subr.bf16.mxu0 %v14386_v22  ;;  %10981 = vmatprep.subr.bf16.mxu1 %v14388_v30 }
0x1870   :  { %10951 = vmatpush1.bf16.msra.mxu0 %v14391_v23  ;;  %10983 = vmatpush1.bf16.msra.mxu1 %v14395_v18 }
0x1871   :  { %10953 = vmatprep.subr.bf16.mxu0 %v14397_v37  ;;  %10985 = vmatprep.subr.bf16.mxu1 %v14400_v61 }
0x1874   :  { %10955 = vmatpush1.bf16.msra.mxu0 %v14403_v35  ;;  %10987 = vmatpush1.bf16.msra.mxu1 %v14407_v27 }
0x1875   :  { %10957 = vmatprep.subr.bf16.mxu0 %v14411_v34  ;;  %10989 = vmatprep.subr.bf16.mxu1 %v14414_v50 }
0x1878   :  { %10959 = vmatpush1.bf16.msra.mxu0 %v14416_v31  ;;  %10991 = vmatpush1.bf16.msra.mxu1 %v14419_v10 }
0x1879   :  { %10993 = vmatprep.subr.bf16.mxu0 %v14328_v46  ;;  %11025 = vmatprep.subr.bf16.mxu1 %v14330_v6 }
0x192e   :  { %v6891_v28 = vpop.f32.mrb[62].mxu0  ;;  %v6962_v63 = vpop.f32.mrb[62].mxu1 }
0x192f   :  { %v6893_v4 = vpop.f32.mrb[63].mxu0  ;;  %v6964_v19 = vpop.f32.mrb[63].mxu1 }
0x1930   :  { %v6971_v51 = vcombine.low %v6891_v28, %v6893_v4  ;;  %v6972_v48 = vcombine.low %v6962_v63, %v6964_v19 }
0x1932   :  { %v6979_v41 = vrot.slane %v6971_v51, %v12298_v16  ;;  %v6986_v24 = vrot.slane %v6972_v48, %v12298_v16 }
0x1934   :  { %v6987_v59 = vcombine.low %v6979_v41, %v6986_v24 }
0x1936   :  { %v6989_v49 = vadd.f32 %v6987_v59, %v15585_v21 }
0x1938   :  { %v9202_v3 = vmul.f32 -1.442695, %v6989_v49  ;;  %v6997_v14 = vrot.slane %v6989_v49, 2  ;;  %v7008_v20 = vrot.slane %v6989_v49, 6  ;;  %v7005_v25 = vrot.slane %v6989_v49, 4 }
0x193a   :  { %11910 = vpow2.f32 %v9202_v3  ;;  %v9203_v36 = vmul.f32 -1.442695, %v6997_v14  ;;  %v9204_v38 = vmul.f32 -1.442695, %v7008_v20  ;;  %v15586_v20 = vld [vmem:[#allocation16_spill] sm:$0xff] }
0x193c   :  { %11912 = vpow2.f32 %v9203_v36 }
0x193d   :  { %11914 = vpow2.f32 %v9204_v38  ;;  %v15587_v38 = vcombine.low %v14502_v56, %v15586_v20 }
0x1944   :  { %v11911_v60 = vpop.eup %11910 }
0x1945   :  { %v6993_v40 = vadd.f32 1.0, %v11911_v60 }
0x1946   :  { %v11913_v62 = vpop.eup %11912 }
0x1947   :  { %11916 = vrcp.f32 %v6993_v40  ;;  %v7002_v43 = vadd.f32 1.0, %v11913_v62  ;;  %v11915_v53 = vpop.eup %11914 }
0x1948   :  { %11918 = vtanh.f32 %v7005_v25  ;;  %v7013_v12 = vadd.f32 1.0, %v11915_v53 }
0x1949   :  { %11920 = vrcp.f32 %v7002_v43 }
0x194a   :  { %11922 = vrcp.f32 %v7013_v12 }
0x1951   :  { %v11917_v11 = vpop.eup %11916 }
0x1952   :  { %v11919_v54 = vpop.eup %11918 }
0x1953   :  { %v11921_v44 = vpop.eup %11920  ;;  %v7017_v63 = vmul.f32 %v11919_v54, %v11917_v11 }
0x1954   :  { %v7016_v28 = vmul.f32 %v11921_v44, %v14848_v13  ;;  %v11923_v19 = vpop.eup %11922 }
0x1956   :  { %v14891_v4 = vadd.f32 %v7017_v63, %v7016_v28 }
0x1958   :  { %11924 = vtanh.f32 %v14891_v4 }
0x1962   :  { %v11925_v51 = vpop.eup %11924 }
0x1963   :  { %v7020_v48 = vmul.f32 %v11925_v51, %v11923_v19 }
0x1965   :  { %7087 = vmatmul.mubr.f32.vlgmr.msra.gmra.mrb[64].mxu0 %v7020_v48  ;;  %7158 = vmatmul.mubr.f32.vlgmr.msra.gmra.mrb[64].mxu1 %v7020_v48 }
0x1966   :  { %10995 = vmatpush1.bf16.msra.mxu0 %v14332_v55  ;;  %11027 = vmatpush1.bf16.msra.mxu1 %v14335_v45 }
0x1967   :  { %10997 = vmatprep.subr.bf16.mxu0 %v14340_v47  ;;  %11029 = vmatprep.subr.bf16.mxu1 %v14342_v39 }
0x1968   :  { %7283 = vmatprep.mubr.f32.mxu0 %v15549_v58  ;;  %7354 = vmatprep.mubr.f32.mxu1 %v15549_v58 }
0x196a   :  { %10999 = vmatpush1.bf16.msra.mxu0 %v14344_v32  ;;  %11031 = vmatpush1.bf16.msra.mxu1 %v14347_v26 }
0x196b   :  { %11001 = vmatprep.subr.bf16.mxu0 %v14352_v1  ;;  %11033 = vmatprep.subr.bf16.mxu1 %v14354_v2 }
0x196e   :  { %11003 = vmatpush1.bf16.msra.mxu0 %v14356_v7  ;;  %11035 = vmatpush1.bf16.msra.mxu1 %v14359_v33 }
0x196f   :  { %11005 = vmatprep.subr.bf16.mxu0 %v14364_v8  ;;  %11037 = vmatprep.subr.bf16.mxu1 %v14366_v29 }
0x1972   :  { %11007 = vmatpush1.bf16.msra.mxu0 %v14368_v42  ;;  %11039 = vmatpush1.bf16.msra.mxu1 %v14371_v57 }
0x1973   :  { %11009 = vmatprep.subr.bf16.mxu0 %v14375_v0  ;;  %11041 = vmatprep.subr.bf16.mxu1 %v14377_v5 }
0x1976   :  { %11011 = vmatpush1.bf16.msra.mxu0 %v14380_v52  ;;  %11043 = vmatpush1.bf16.msra.mxu1 %v14384_v9 }
0x1977   :  { %11013 = vmatprep.subr.bf16.mxu0 %v14386_v22  ;;  %11045 = vmatprep.subr.bf16.mxu1 %v14388_v30 }
0x197a   :  { %11015 = vmatpush1.bf16.msra.mxu0 %v14391_v23  ;;  %11047 = vmatpush1.bf16.msra.mxu1 %v14395_v18 }
0x197b   :  { %11017 = vmatprep.subr.bf16.mxu0 %v14397_v37  ;;  %11049 = vmatprep.subr.bf16.mxu1 %v14400_v61 }
0x197e   :  { %11019 = vmatpush1.bf16.msra.mxu0 %v14403_v35  ;;  %11051 = vmatpush1.bf16.msra.mxu1 %v14407_v27 }
0x197f   :  { %11021 = vmatprep.subr.bf16.mxu0 %v14411_v34  ;;  %11053 = vmatprep.subr.bf16.mxu1 %v14414_v50 }
0x1982   :  { %11023 = vmatpush1.bf16.msra.mxu0 %v14416_v31  ;;  %11055 = vmatpush1.bf16.msra.mxu1 %v14419_v10 }
0x1983   :  { %11057 = vmatprep.subr.bf16.mxu0 %v14328_v46  ;;  %11089 = vmatprep.subr.bf16.mxu1 %v14330_v6 }
0x1a38   :  { %v7088_v13 = vpop.f32.mrb[64].mxu0  ;;  %v7159_v41 = vpop.f32.mrb[64].mxu1 }
0x1a39   :  { %v7090_v24 = vpop.f32.mrb[65].mxu0  ;;  %v7161_v59 = vpop.f32.mrb[65].mxu1 }
0x1a3a   :  { %v7168_v21 = vcombine.low %v7088_v13, %v7090_v24  ;;  %v7169_v49 = vcombine.low %v7159_v41, %v7161_v59 }
0x1a3c   :  { %v7176_v3 = vrot.slane %v7168_v21, %v12298_v16  ;;  %v7183_v14 = vrot.slane %v7169_v49, %v12298_v16 }
0x1a3e   :  { %v7184_v36 = vcombine.low %v7176_v3, %v7183_v14 }
0x1a40   :  { %v7186_v60 = vadd.f32 %v7184_v36, %v15587_v38 }
0x1a42   :  { %v9205_v25 = vmul.f32 -1.442695, %v7186_v60  ;;  %v7194_v40 = vrot.slane %v7186_v60, 2  ;;  %v7205_v43 = vrot.slane %v7186_v60, 6  ;;  %v7202_v54 = vrot.slane %v7186_v60, 4 }
0x1a44   :  { %11926 = vpow2.f32 %v9205_v25  ;;  %v9206_v62 = vmul.f32 -1.442695, %v7194_v40  ;;  %v9207_v53 = vmul.f32 -1.442695, %v7205_v43 }
0x1a46   :  { %11928 = vpow2.f32 %v9206_v62 }
0x1a47   :  { %11930 = vpow2.f32 %v9207_v53  ;;  %v15588_v53 = vcombine.high %v14502_v56, %v15586_v20 }
0x1a4e   :  { %v11927_v11 = vpop.eup %11926 }
0x1a4f   :  { %v7190_v44 = vadd.f32 1.0, %v11927_v11 }
0x1a50   :  { %v11929_v12 = vpop.eup %11928 }
0x1a51   :  { %11932 = vrcp.f32 %v7190_v44  ;;  %v7199_v28 = vadd.f32 1.0, %v11929_v12  ;;  %v11931_v63 = vpop.eup %11930 }
0x1a52   :  { %11934 = vtanh.f32 %v7202_v54  ;;  %v7210_v13 = vadd.f32 1.0, %v11931_v63 }
0x1a53   :  { %11936 = vrcp.f32 %v7199_v28 }
0x1a54   :  { %11938 = vrcp.f32 %v7210_v13 }
0x1a5b   :  { %v11933_v19 = vpop.eup %11932 }
0x1a5c   :  { %v11935_v51 = vpop.eup %11934 }
0x1a5d   :  { %v11937_v48 = vpop.eup %11936  ;;  %v7214_v24 = vmul.f32 %v11935_v51, %v11933_v19 }
0x1a5e   :  { %v7213_v41 = vmul.f32 %v11937_v48, %v14891_v4  ;;  %v11939_v21 = vpop.eup %11938 }
0x1a60   :  { %v14934_v59 = vadd.f32 %v7214_v24, %v7213_v41 }
0x1a62   :  { %11940 = vtanh.f32 %v14934_v59 }
0x1a6c   :  { %v11941_v49 = vpop.eup %11940 }
0x1a6d   :  { %v7217_v3 = vmul.f32 %v11941_v49, %v11939_v21 }
0x1a6f   :  { %7284 = vmatmul.mubr.f32.vlgmr.msra.gmra.mrb[66].mxu0 %v7217_v3  ;;  %7355 = vmatmul.mubr.f32.vlgmr.msra.gmra.mrb[66].mxu1 %v7217_v3 }
0x1a70   :  { %11059 = vmatpush1.bf16.msra.mxu0 %v14332_v55  ;;  %11091 = vmatpush1.bf16.msra.mxu1 %v14335_v45 }
0x1a71   :  { %11061 = vmatprep.subr.bf16.mxu0 %v14340_v47  ;;  %11093 = vmatprep.subr.bf16.mxu1 %v14342_v39 }
0x1a72   :  { %7480 = vmatprep.mubr.f32.mxu0 %v15549_v58  ;;  %7551 = vmatprep.mubr.f32.mxu1 %v15549_v58 }
0x1a74   :  { %11063 = vmatpush1.bf16.msra.mxu0 %v14344_v32  ;;  %11095 = vmatpush1.bf16.msra.mxu1 %v14347_v26 }
0x1a75   :  { %11065 = vmatprep.subr.bf16.mxu0 %v14352_v1  ;;  %11097 = vmatprep.subr.bf16.mxu1 %v14354_v2 }
0x1a78   :  { %11067 = vmatpush1.bf16.msra.mxu0 %v14356_v7  ;;  %11099 = vmatpush1.bf16.msra.mxu1 %v14359_v33 }
0x1a79   :  { %11069 = vmatprep.subr.bf16.mxu0 %v14364_v8  ;;  %11101 = vmatprep.subr.bf16.mxu1 %v14366_v29 }
0x1a7c   :  { %11071 = vmatpush1.bf16.msra.mxu0 %v14368_v42  ;;  %11103 = vmatpush1.bf16.msra.mxu1 %v14371_v57 }
0x1a7d   :  { %11073 = vmatprep.subr.bf16.mxu0 %v14375_v0  ;;  %11105 = vmatprep.subr.bf16.mxu1 %v14377_v5 }
0x1a80   :  { %11075 = vmatpush1.bf16.msra.mxu0 %v14380_v52  ;;  %11107 = vmatpush1.bf16.msra.mxu1 %v14384_v9 }
0x1a81   :  { %11077 = vmatprep.subr.bf16.mxu0 %v14386_v22  ;;  %11109 = vmatprep.subr.bf16.mxu1 %v14388_v30 }
0x1a84   :  { %11079 = vmatpush1.bf16.msra.mxu0 %v14391_v23  ;;  %11111 = vmatpush1.bf16.msra.mxu1 %v14395_v18 }
0x1a85   :  { %11081 = vmatprep.subr.bf16.mxu0 %v14397_v37  ;;  %11113 = vmatprep.subr.bf16.mxu1 %v14400_v61 }
0x1a88   :  { %11083 = vmatpush1.bf16.msra.mxu0 %v14403_v35  ;;  %11115 = vmatpush1.bf16.msra.mxu1 %v14407_v27 }
0x1a89   :  { %11085 = vmatprep.subr.bf16.mxu0 %v14411_v34  ;;  %11117 = vmatprep.subr.bf16.mxu1 %v14414_v50 }
0x1a8c   :  { %11087 = vmatpush1.bf16.msra.mxu0 %v14416_v31  ;;  %11119 = vmatpush1.bf16.msra.mxu1 %v14419_v10 }
0x1a8d   :  { %11121 = vmatprep.subr.bf16.mxu0 %v14328_v46  ;;  %11153 = vmatprep.subr.bf16.mxu1 %v14330_v6 }
0x1b42   :  { %v7285_v4 = vpop.f32.mrb[66].mxu0  ;;  %v7356_v14 = vpop.f32.mrb[66].mxu1 }
0x1b43   :  { %v7287_v36 = vpop.f32.mrb[67].mxu0  ;;  %v7358_v38 = vpop.f32.mrb[67].mxu1 }
0x1b44   :  { %v7365_v60 = vcombine.low %v7285_v4, %v7287_v36  ;;  %v7366_v25 = vcombine.low %v7356_v14, %v7358_v38 }
0x1b46   :  { %v7373_v40 = vrot.slane %v7365_v60, %v12298_v16  ;;  %v7380_v62 = vrot.slane %v7366_v25, %v12298_v16 }
0x1b48   :  { %v7381_v43 = vcombine.low %v7373_v40, %v7380_v62 }
0x1b4a   :  { %v7383_v11 = vadd.f32 %v7381_v43, %v15588_v53 }
0x1b4c   :  { %v9208_v54 = vmul.f32 -1.442695, %v7383_v11  ;;  %v7391_v44 = vrot.slane %v7383_v11, 2  ;;  %v7402_v28 = vrot.slane %v7383_v11, 6  ;;  %v7399_v51 = vrot.slane %v7383_v11, 4 }
0x1b4e   :  { %11942 = vpow2.f32 %v9208_v54  ;;  %v9209_v12 = vmul.f32 -1.442695, %v7391_v44  ;;  %v9210_v63 = vmul.f32 -1.442695, %v7402_v28  ;;  %v15590_v28 = vld [vmem:[#allocation18_spill] sm:$0xff] }
0x1b50   :  { %11944 = vpow2.f32 %v9209_v12  ;;  %v15589_v12 = vld [vmem:[#allocation17_spill] sm:$0xff] }
0x1b51   :  { %11946 = vpow2.f32 %v9210_v63  ;;  %v15591_v63 = vcombine.low %v15589_v12, %v15590_v28 }
0x1b58   :  { %v11943_v19 = vpop.eup %11942 }
0x1b59   :  { %v7387_v48 = vadd.f32 1.0, %v11943_v19 }
0x1b5a   :  { %v11945_v13 = vpop.eup %11944 }
0x1b5b   :  { %11948 = vrcp.f32 %v7387_v48  ;;  %v7396_v41 = vadd.f32 1.0, %v11945_v13  ;;  %v11947_v24 = vpop.eup %11946 }
0x1b5c   :  { %11950 = vtanh.f32 %v7399_v51  ;;  %v7407_v49 = vadd.f32 1.0, %v11947_v24 }
0x1b5d   :  { %11952 = vrcp.f32 %v7396_v41 }
0x1b5e   :  { %11954 = vrcp.f32 %v7407_v49 }
0x1b65   :  { %v11949_v21 = vpop.eup %11948 }
0x1b66   :  { %v11951_v56 = vpop.eup %11950 }
0x1b67   :  { %v11953_v20 = vpop.eup %11952  ;;  %v7411_v4 = vmul.f32 %v11951_v56, %v11949_v21 }
0x1b68   :  { %v7410_v3 = vmul.f32 %v11953_v20, %v14934_v59  ;;  %v11955_v36 = vpop.eup %11954 }
0x1b6a   :  { %v14977_v14 = vadd.f32 %v7411_v4, %v7410_v3 }
0x1b6c   :  { %11956 = vtanh.f32 %v14977_v14 }
0x1b76   :  { %v11957_v38 = vpop.eup %11956 }
0x1b77   :  { %v7414_v60 = vmul.f32 %v11957_v38, %v11955_v36 }
0x1b79   :  { %7481 = vmatmul.mubr.f32.vlgmr.msra.gmra.mrb[68].mxu0 %v7414_v60  ;;  %7552 = vmatmul.mubr.f32.vlgmr.msra.gmra.mrb[68].mxu1 %v7414_v60 }
0x1b7a   :  { %11123 = vmatpush1.bf16.msra.mxu0 %v14332_v55  ;;  %11155 = vmatpush1.bf16.msra.mxu1 %v14335_v45 }
0x1b7b   :  { %11125 = vmatprep.subr.bf16.mxu0 %v14340_v47  ;;  %11157 = vmatprep.subr.bf16.mxu1 %v14342_v39 }
0x1b7c   :  { %7677 = vmatprep.mubr.f32.mxu0 %v15549_v58  ;;  %7748 = vmatprep.mubr.f32.mxu1 %v15549_v58 }
0x1b7e   :  { %11127 = vmatpush1.bf16.msra.mxu0 %v14344_v32  ;;  %11159 = vmatpush1.bf16.msra.mxu1 %v14347_v26 }
0x1b7f   :  { %11129 = vmatprep.subr.bf16.mxu0 %v14352_v1  ;;  %11161 = vmatprep.subr.bf16.mxu1 %v14354_v2 }
0x1b82   :  { %11131 = vmatpush1.bf16.msra.mxu0 %v14356_v7  ;;  %11163 = vmatpush1.bf16.msra.mxu1 %v14359_v33 }
0x1b83   :  { %11133 = vmatprep.subr.bf16.mxu0 %v14364_v8  ;;  %11165 = vmatprep.subr.bf16.mxu1 %v14366_v29 }
0x1b86   :  { %11135 = vmatpush1.bf16.msra.mxu0 %v14368_v42  ;;  %11167 = vmatpush1.bf16.msra.mxu1 %v14371_v57 }
0x1b87   :  { %11137 = vmatprep.subr.bf16.mxu0 %v14375_v0  ;;  %11169 = vmatprep.subr.bf16.mxu1 %v14377_v5 }
0x1b8a   :  { %11139 = vmatpush1.bf16.msra.mxu0 %v14380_v52  ;;  %11171 = vmatpush1.bf16.msra.mxu1 %v14384_v9 }
0x1b8b   :  { %11141 = vmatprep.subr.bf16.mxu0 %v14386_v22  ;;  %11173 = vmatprep.subr.bf16.mxu1 %v14388_v30 }
0x1b8e   :  { %11143 = vmatpush1.bf16.msra.mxu0 %v14391_v23  ;;  %11175 = vmatpush1.bf16.msra.mxu1 %v14395_v18 }
0x1b8f   :  { %11145 = vmatprep.subr.bf16.mxu0 %v14397_v37  ;;  %11177 = vmatprep.subr.bf16.mxu1 %v14400_v61 }
0x1b92   :  { %11147 = vmatpush1.bf16.msra.mxu0 %v14403_v35  ;;  %11179 = vmatpush1.bf16.msra.mxu1 %v14407_v27 }
0x1b93   :  { %11149 = vmatprep.subr.bf16.mxu0 %v14411_v34  ;;  %11181 = vmatprep.subr.bf16.mxu1 %v14414_v50 }
0x1b96   :  { %11151 = vmatpush1.bf16.msra.mxu0 %v14416_v31  ;;  %11183 = vmatpush1.bf16.msra.mxu1 %v14419_v10 }
0x1b97   :  { %11185 = vmatprep.subr.bf16.mxu0 %v14328_v46  ;;  %11217 = vmatprep.subr.bf16.mxu1 %v14330_v6 }
0x1c4c   :  { %v7482_v59 = vpop.f32.mrb[68].mxu0  ;;  %v7553_v25 = vpop.f32.mrb[68].mxu1 }
0x1c4d   :  { %v7484_v40 = vpop.f32.mrb[69].mxu0  ;;  %v7555_v62 = vpop.f32.mrb[69].mxu1 }
0x1c4e   :  { %v7562_v43 = vcombine.low %v7482_v59, %v7484_v40  ;;  %v7563_v53 = vcombine.low %v7553_v25, %v7555_v62 }
0x1c50   :  { %v7570_v11 = vrot.slane %v7562_v43, %v12298_v16  ;;  %v7577_v54 = vrot.slane %v7563_v53, %v12298_v16 }
0x1c52   :  { %v7578_v44 = vcombine.low %v7570_v11, %v7577_v54 }
0x1c54   :  { %v7580_v19 = vadd.f32 %v7578_v44, %v15591_v63 }
0x1c56   :  { %v9211_v51 = vmul.f32 -1.442695, %v7580_v19  ;;  %v7588_v48 = vrot.slane %v7580_v19, 2  ;;  %v7599_v41 = vrot.slane %v7580_v19, 6  ;;  %v7596_v56 = vrot.slane %v7580_v19, 4 }
0x1c58   :  { %11958 = vpow2.f32 %v9211_v51  ;;  %v9212_v13 = vmul.f32 -1.442695, %v7588_v48  ;;  %v9213_v24 = vmul.f32 -1.442695, %v7599_v41 }
0x1c5a   :  { %11960 = vpow2.f32 %v9212_v13 }
0x1c5b   :  { %11962 = vpow2.f32 %v9213_v24  ;;  %v15592_v24 = vcombine.high %v15589_v12, %v15590_v28 }
0x1c62   :  { %v11959_v21 = vpop.eup %11958 }
0x1c63   :  { %v7584_v20 = vadd.f32 1.0, %v11959_v21 }
0x1c64   :  { %v11961_v49 = vpop.eup %11960 }
0x1c65   :  { %11964 = vrcp.f32 %v7584_v20  ;;  %v7593_v3 = vadd.f32 1.0, %v11961_v49  ;;  %v11963_v4 = vpop.eup %11962 }
0x1c66   :  { %11966 = vtanh.f32 %v7596_v56  ;;  %v7604_v59 = vadd.f32 1.0, %v11963_v4 }
0x1c67   :  { %11968 = vrcp.f32 %v7593_v3 }
0x1c68   :  { %11970 = vrcp.f32 %v7604_v59 }
0x1c6f   :  { %v11965_v36 = vpop.eup %11964 }
0x1c70   :  { %v11967_v38 = vpop.eup %11966 }
0x1c71   :  { %v11969_v60 = vpop.eup %11968  ;;  %v7608_v40 = vmul.f32 %v11967_v38, %v11965_v36 }
0x1c72   :  { %v7607_v25 = vmul.f32 %v11969_v60, %v14977_v14  ;;  %v11971_v43 = vpop.eup %11970 }
0x1c74   :  { %v15020_v62 = vadd.f32 %v7608_v40, %v7607_v25 }
0x1c76   :  { %11972 = vtanh.f32 %v15020_v62 }
0x1c80   :  { %v11973_v53 = vpop.eup %11972 }
0x1c81   :  { %v7611_v11 = vmul.f32 %v11973_v53, %v11971_v43 }
0x1c83   :  { %7678 = vmatmul.mubr.f32.vlgmr.msra.gmra.mrb[70].mxu0 %v7611_v11  ;;  %7749 = vmatmul.mubr.f32.vlgmr.msra.gmra.mrb[70].mxu1 %v7611_v11 }
0x1c84   :  { %11187 = vmatpush1.bf16.msra.mxu0 %v14332_v55  ;;  %11219 = vmatpush1.bf16.msra.mxu1 %v14335_v45 }
0x1c85   :  { %11189 = vmatprep.subr.bf16.mxu0 %v14340_v47  ;;  %11221 = vmatprep.subr.bf16.mxu1 %v14342_v39 }
0x1c86   :  { %7874 = vmatprep.mubr.f32.mxu0 %v15549_v58  ;;  %7945 = vmatprep.mubr.f32.mxu1 %v15549_v58 }
0x1c88   :  { %11191 = vmatpush1.bf16.msra.mxu0 %v14344_v32  ;;  %11223 = vmatpush1.bf16.msra.mxu1 %v14347_v26 }
0x1c89   :  { %11193 = vmatprep.subr.bf16.mxu0 %v14352_v1  ;;  %11225 = vmatprep.subr.bf16.mxu1 %v14354_v2 }
0x1c8c   :  { %11195 = vmatpush1.bf16.msra.mxu0 %v14356_v7  ;;  %11227 = vmatpush1.bf16.msra.mxu1 %v14359_v33 }
0x1c8d   :  { %11197 = vmatprep.subr.bf16.mxu0 %v14364_v8  ;;  %11229 = vmatprep.subr.bf16.mxu1 %v14366_v29 }
0x1c90   :  { %11199 = vmatpush1.bf16.msra.mxu0 %v14368_v42  ;;  %11231 = vmatpush1.bf16.msra.mxu1 %v14371_v57 }
0x1c91   :  { %11201 = vmatprep.subr.bf16.mxu0 %v14375_v0  ;;  %11233 = vmatprep.subr.bf16.mxu1 %v14377_v5 }
0x1c94   :  { %11203 = vmatpush1.bf16.msra.mxu0 %v14380_v52  ;;  %11235 = vmatpush1.bf16.msra.mxu1 %v14384_v9 }
0x1c95   :  { %11205 = vmatprep.subr.bf16.mxu0 %v14386_v22  ;;  %11237 = vmatprep.subr.bf16.mxu1 %v14388_v30 }
0x1c98   :  { %11207 = vmatpush1.bf16.msra.mxu0 %v14391_v23  ;;  %11239 = vmatpush1.bf16.msra.mxu1 %v14395_v18 }
0x1c99   :  { %11209 = vmatprep.subr.bf16.mxu0 %v14397_v37  ;;  %11241 = vmatprep.subr.bf16.mxu1 %v14400_v61 }
0x1c9c   :  { %11211 = vmatpush1.bf16.msra.mxu0 %v14403_v35  ;;  %11243 = vmatpush1.bf16.msra.mxu1 %v14407_v27 }
0x1c9d   :  { %11213 = vmatprep.subr.bf16.mxu0 %v14411_v34  ;;  %11245 = vmatprep.subr.bf16.mxu1 %v14414_v50 }
0x1ca0   :  { %11215 = vmatpush1.bf16.msra.mxu0 %v14416_v31  ;;  %11247 = vmatpush1.bf16.msra.mxu1 %v14419_v10 }
0x1ca1   :  { %11249 = vmatprep.subr.bf16.mxu0 %v14328_v46  ;;  %11281 = vmatprep.subr.bf16.mxu1 %v14330_v6 }
0x1d56   :  { %v7679_v14 = vpop.f32.mrb[70].mxu0  ;;  %v7750_v54 = vpop.f32.mrb[70].mxu1 }
0x1d57   :  { %v7681_v44 = vpop.f32.mrb[71].mxu0  ;;  %v7752_v63 = vpop.f32.mrb[71].mxu1 }
0x1d58   :  { %v7759_v19 = vcombine.low %v7679_v14, %v7681_v44  ;;  %v7760_v51 = vcombine.low %v7750_v54, %v7752_v63 }
0x1d5a   :  { %v7767_v48 = vrot.slane %v7759_v19, %v12298_v16  ;;  %v7774_v13 = vrot.slane %v7760_v51, %v12298_v16 }
0x1d5c   :  { %v7775_v41 = vcombine.low %v7767_v48, %v7774_v13 }
0x1d5e   :  { %v7777_v21 = vadd.f32 %v7775_v41, %v15592_v24 }
0x1d60   :  { %v9214_v56 = vmul.f32 -1.442695, %v7777_v21  ;;  %v7785_v20 = vrot.slane %v7777_v21, 2  ;;  %v7796_v3 = vrot.slane %v7777_v21, 6  ;;  %v7793_v38 = vrot.slane %v7777_v21, 4 }
0x1d62   :  { %11974 = vpow2.f32 %v9214_v56  ;;  %v9215_v49 = vmul.f32 -1.442695, %v7785_v20  ;;  %v9216_v4 = vmul.f32 -1.442695, %v7796_v3 }
0x1d64   :  { %11976 = vpow2.f32 %v9215_v49  ;;  %v15593_v49 = vcombine.low %v14566_v15, %v14572_v17 }
0x1d65   :  { %11978 = vpow2.f32 %v9216_v4 }
0x1d6c   :  { %v11975_v36 = vpop.eup %11974 }
0x1d6d   :  { %v7781_v60 = vadd.f32 1.0, %v11975_v36 }
0x1d6e   :  { %v11977_v59 = vpop.eup %11976 }
0x1d6f   :  { %11980 = vrcp.f32 %v7781_v60  ;;  %v7790_v25 = vadd.f32 1.0, %v11977_v59  ;;  %v11979_v40 = vpop.eup %11978 }
0x1d70   :  { %11982 = vtanh.f32 %v7793_v38  ;;  %v7801_v53 = vadd.f32 1.0, %v11979_v40 }
0x1d71   :  { %11984 = vrcp.f32 %v7790_v25 }
0x1d72   :  { %11986 = vrcp.f32 %v7801_v53 }
0x1d79   :  { %v11981_v43 = vpop.eup %11980 }
0x1d7a   :  { %v11983_v12 = vpop.eup %11982 }
0x1d7b   :  { %v11985_v28 = vpop.eup %11984  ;;  %v7805_v14 = vmul.f32 %v11983_v12, %v11981_v43 }
0x1d7c   :  { %v7804_v11 = vmul.f32 %v11985_v28, %v15020_v62  ;;  %v11987_v44 = vpop.eup %11986 }
0x1d7e   :  { %v15063_v54 = vadd.f32 %v7805_v14, %v7804_v11 }
0x1d80   :  { %11988 = vtanh.f32 %v15063_v54 }
0x1d8a   :  { %v11989_v63 = vpop.eup %11988 }
0x1d8b   :  { %v7808_v19 = vmul.f32 %v11989_v63, %v11987_v44 }
0x1d8d   :  { %7875 = vmatmul.mubr.f32.vlgmr.msra.gmra.mrb[72].mxu0 %v7808_v19  ;;  %7946 = vmatmul.mubr.f32.vlgmr.msra.gmra.mrb[72].mxu1 %v7808_v19 }
0x1d8e   :  { %11251 = vmatpush1.bf16.msra.mxu0 %v14332_v55  ;;  %11283 = vmatpush1.bf16.msra.mxu1 %v14335_v45 }
0x1d8f   :  { %11253 = vmatprep.subr.bf16.mxu0 %v14340_v47  ;;  %11285 = vmatprep.subr.bf16.mxu1 %v14342_v39 }
0x1d90   :  { %8071 = vmatprep.mubr.f32.mxu0 %v15549_v58  ;;  %8142 = vmatprep.mubr.f32.mxu1 %v15549_v58 }
0x1d92   :  { %11255 = vmatpush1.bf16.msra.mxu0 %v14344_v32  ;;  %11287 = vmatpush1.bf16.msra.mxu1 %v14347_v26 }
0x1d93   :  { %11257 = vmatprep.subr.bf16.mxu0 %v14352_v1  ;;  %11289 = vmatprep.subr.bf16.mxu1 %v14354_v2 }
0x1d96   :  { %11259 = vmatpush1.bf16.msra.mxu0 %v14356_v7  ;;  %11291 = vmatpush1.bf16.msra.mxu1 %v14359_v33 }
0x1d97   :  { %11261 = vmatprep.subr.bf16.mxu0 %v14364_v8  ;;  %11293 = vmatprep.subr.bf16.mxu1 %v14366_v29 }
0x1d9a   :  { %11263 = vmatpush1.bf16.msra.mxu0 %v14368_v42  ;;  %11295 = vmatpush1.bf16.msra.mxu1 %v14371_v57 }
0x1d9b   :  { %11265 = vmatprep.subr.bf16.mxu0 %v14375_v0  ;;  %11297 = vmatprep.subr.bf16.mxu1 %v14377_v5 }
0x1d9e   :  { %11267 = vmatpush1.bf16.msra.mxu0 %v14380_v52  ;;  %11299 = vmatpush1.bf16.msra.mxu1 %v14384_v9 }
0x1d9f   :  { %11269 = vmatprep.subr.bf16.mxu0 %v14386_v22  ;;  %11301 = vmatprep.subr.bf16.mxu1 %v14388_v30 }
0x1da2   :  { %11271 = vmatpush1.bf16.msra.mxu0 %v14391_v23  ;;  %11303 = vmatpush1.bf16.msra.mxu1 %v14395_v18 }
0x1da3   :  { %11273 = vmatprep.subr.bf16.mxu0 %v14397_v37  ;;  %11305 = vmatprep.subr.bf16.mxu1 %v14400_v61 }
0x1da6   :  { %11275 = vmatpush1.bf16.msra.mxu0 %v14403_v35  ;;  %11307 = vmatpush1.bf16.msra.mxu1 %v14407_v27 }
0x1da7   :  { %11277 = vmatprep.subr.bf16.mxu0 %v14411_v34  ;;  %11309 = vmatprep.subr.bf16.mxu1 %v14414_v50 }
0x1daa   :  { %11279 = vmatpush1.bf16.msra.mxu0 %v14416_v31  ;;  %11311 = vmatpush1.bf16.msra.mxu1 %v14419_v10 }
0x1dab   :  { %11313 = vmatprep.subr.bf16.mxu0 %v14328_v46  ;;  %11345 = vmatprep.subr.bf16.mxu1 %v14330_v6 }
0x1e60   :  { %v7876_v62 = vpop.f32.mrb[72].mxu0  ;;  %v7947_v51 = vpop.f32.mrb[72].mxu1 }
0x1e61   :  { %v7878_v48 = vpop.f32.mrb[73].mxu0  ;;  %v7949_v13 = vpop.f32.mrb[73].mxu1 }
0x1e62   :  { %v7956_v41 = vcombine.low %v7876_v62, %v7878_v48  ;;  %v7957_v24 = vcombine.low %v7947_v51, %v7949_v13 }
0x1e64   :  { %v7964_v21 = vrot.slane %v7956_v41, %v12298_v16  ;;  %v7971_v56 = vrot.slane %v7957_v24, %v12298_v16 }
0x1e66   :  { %v7972_v20 = vcombine.low %v7964_v21, %v7971_v56 }
0x1e68   :  { %v7974_v3 = vadd.f32 %v7972_v20, %v15593_v49 }
0x1e6a   :  { %v9217_v4 = vmul.f32 -1.442695, %v7974_v3  ;;  %v7982_v36 = vrot.slane %v7974_v3, 2  ;;  %v7993_v60 = vrot.slane %v7974_v3, 6  ;;  %v7990_v40 = vrot.slane %v7974_v3, 4 }
0x1e6c   :  { %11990 = vpow2.f32 %v9217_v4  ;;  %v9218_v38 = vmul.f32 -1.442695, %v7982_v36  ;;  %v9219_v59 = vmul.f32 -1.442695, %v7993_v60 }
0x1e6e   :  { %11992 = vpow2.f32 %v9218_v38  ;;  %v15594_v38 = vcombine.high %v14566_v15, %v14572_v17 }
0x1e6f   :  { %11994 = vpow2.f32 %v9219_v59 }
0x1e76   :  { %v11991_v25 = vpop.eup %11990 }
0x1e77   :  { %v7978_v43 = vadd.f32 1.0, %v11991_v25 }
0x1e78   :  { %v11993_v12 = vpop.eup %11992 }
0x1e79   :  { %11996 = vrcp.f32 %v7978_v43  ;;  %v7987_v28 = vadd.f32 1.0, %v11993_v12  ;;  %v11995_v53 = vpop.eup %11994 }
0x1e7a   :  { %11998 = vtanh.f32 %v7990_v40  ;;  %v7998_v63 = vadd.f32 1.0, %v11995_v53 }
0x1e7b   :  { %12000 = vrcp.f32 %v7987_v28 }
0x1e7c   :  { %12002 = vrcp.f32 %v7998_v63 }
0x1e83   :  { %v11997_v11 = vpop.eup %11996 }
0x1e84   :  { %v11999_v14 = vpop.eup %11998 }
0x1e85   :  { %v12001_v44 = vpop.eup %12000  ;;  %v8002_v62 = vmul.f32 %v11999_v14, %v11997_v11 }
0x1e86   :  { %v8001_v19 = vmul.f32 %v12001_v44, %v15063_v54  ;;  %v12003_v48 = vpop.eup %12002 }
0x1e88   :  { %v15106_v51 = vadd.f32 %v8002_v62, %v8001_v19 }
0x1e8a   :  { %12004 = vtanh.f32 %v15106_v51 }
0x1e94   :  { %v12005_v13 = vpop.eup %12004 }
0x1e95   :  { %v8005_v41 = vmul.f32 %v12005_v13, %v12003_v48 }
0x1e97   :  { %8072 = vmatmul.mubr.f32.vlgmr.msra.gmra.mrb[74].mxu0 %v8005_v41  ;;  %8143 = vmatmul.mubr.f32.vlgmr.msra.gmra.mrb[74].mxu1 %v8005_v41 }
0x1e98   :  { %11315 = vmatpush1.bf16.msra.mxu0 %v14332_v55  ;;  %11347 = vmatpush1.bf16.msra.mxu1 %v14335_v45 }
0x1e99   :  { %11317 = vmatprep.subr.bf16.mxu0 %v14340_v47  ;;  %11349 = vmatprep.subr.bf16.mxu1 %v14342_v39 }
0x1e9a   :  { %8268 = vmatprep.mubr.f32.mxu0 %v15549_v58  ;;  %8339 = vmatprep.mubr.f32.mxu1 %v15549_v58 }
0x1e9c   :  { %11319 = vmatpush1.bf16.msra.mxu0 %v14344_v32  ;;  %11351 = vmatpush1.bf16.msra.mxu1 %v14347_v26 }
0x1e9d   :  { %11321 = vmatprep.subr.bf16.mxu0 %v14352_v1  ;;  %11353 = vmatprep.subr.bf16.mxu1 %v14354_v2 }
0x1ea0   :  { %11323 = vmatpush1.bf16.msra.mxu0 %v14356_v7  ;;  %11355 = vmatpush1.bf16.msra.mxu1 %v14359_v33 }
0x1ea1   :  { %11325 = vmatprep.subr.bf16.mxu0 %v14364_v8  ;;  %11357 = vmatprep.subr.bf16.mxu1 %v14366_v29 }
0x1ea4   :  { %11327 = vmatpush1.bf16.msra.mxu0 %v14368_v42  ;;  %11359 = vmatpush1.bf16.msra.mxu1 %v14371_v57 }
0x1ea5   :  { %11329 = vmatprep.subr.bf16.mxu0 %v14375_v0  ;;  %11361 = vmatprep.subr.bf16.mxu1 %v14377_v5 }
0x1ea8   :  { %11331 = vmatpush1.bf16.msra.mxu0 %v14380_v52  ;;  %11363 = vmatpush1.bf16.msra.mxu1 %v14384_v9 }
0x1ea9   :  { %11333 = vmatprep.subr.bf16.mxu0 %v14386_v22  ;;  %11365 = vmatprep.subr.bf16.mxu1 %v14388_v30 }
0x1eac   :  { %11335 = vmatpush1.bf16.msra.mxu0 %v14391_v23  ;;  %11367 = vmatpush1.bf16.msra.mxu1 %v14395_v18 }
0x1ead   :  { %11337 = vmatprep.subr.bf16.mxu0 %v14397_v37  ;;  %11369 = vmatprep.subr.bf16.mxu1 %v14400_v61 }
0x1eb0   :  { %11339 = vmatpush1.bf16.msra.mxu0 %v14403_v35  ;;  %11371 = vmatpush1.bf16.msra.mxu1 %v14407_v27 }
0x1eb1   :  { %11341 = vmatprep.subr.bf16.mxu0 %v14411_v34  ;;  %11373 = vmatprep.subr.bf16.mxu1 %v14414_v50 }
0x1eb4   :  { %11343 = vmatpush1.bf16.msra.mxu0 %v14416_v31  ;;  %11375 = vmatpush1.bf16.msra.mxu1 %v14419_v10 }
0x1eb5   :  { %11377 = vmatprep.subr.bf16.mxu0 %v14328_v46  ;;  %11409 = vmatprep.subr.bf16.mxu1 %v14330_v6 }
0x1f6a   :  { %v8073_v54 = vpop.f32.mrb[74].mxu0  ;;  %v8144_v24 = vpop.f32.mrb[74].mxu1 }
0x1f6b   :  { %v8075_v21 = vpop.f32.mrb[75].mxu0  ;;  %v8146_v56 = vpop.f32.mrb[75].mxu1 }
0x1f6c   :  { %v8153_v20 = vcombine.low %v8073_v54, %v8075_v21  ;;  %v8154_v49 = vcombine.low %v8144_v24, %v8146_v56 }
0x1f6e   :  { %v8161_v3 = vrot.slane %v8153_v20, %v12298_v16  ;;  %v8168_v4 = vrot.slane %v8154_v49, %v12298_v16  ;;  %v8598_v49 = vld [vmem:[%s15487_s8] sm:$0xff] }
0x1f70   :  { %v8169_v36 = vcombine.low %v8161_v3, %v8168_v4  ;;  %v8599_v3 = vld [vmem:[%s15487_s8 + $0x8] sm:$0xff]  ;;  %v8691_v4 = vld [vmem:[%s15490_s11] sm:$0xff] }
0x1f72   :  { %v8171_v60 = vadd.f32 %v8169_v36, %v15594_v38  ;;  %v8693_v36 = vld [vmem:[%s15490_s11 + $0x10] sm:$0xff] }
0x1f74   :  { %v9220_v59 = vmul.f32 -1.442695, %v8171_v60  ;;  %v8179_v25 = vrot.slane %v8171_v60, 2  ;;  %v8190_v6 = vrot.slane %v8171_v60, 6  ;;  %v8187_v12 = vrot.slane %v8171_v60, 4  ;;  %v8696_v60 = vld [vmem:[%s15490_s11 + $0x28] sm:$0xff] }
0x1f76   :  { %12006 = vpow2.f32 %v9220_v59  ;;  %v9221_v46 = vmul.f32 -1.442695, %v8179_v25  ;;  %v9222_v40 = vmul.f32 -1.442695, %v8190_v6  ;;  %v8698_v59 = vld [vmem:[%s15490_s11 + $0x38] sm:$0xff] }
0x1f78   :  { %12008 = vpow2.f32 %v9221_v46  ;;  %v11441_v46 = vpack.c.bf16 %v8599_v3, %v8598_v49  ;;  %v8832_v49 = vld [vmem:[%s15493_s14 + $0x60] sm:$0xff]  ;;  %v8833_v3 = vld [vmem:[%s15493_s14 + $0x68] sm:$0xff] }
0x1f79   :  { %12010 = vpow2.f32 %v9222_v40  ;;  %v11445_v40 = vpack.c.bf16 %v8693_v36, %v8691_v4  ;;  %v11486_v4 = vpack.c.bf16 %v8833_v3, %v8832_v49  ;;  %v8834_v36 = vld [vmem:[%s15493_s14 + $0x70] sm:$0xff] }
0x1f80   :  { %v12007_v43 = vpop.eup %12006 }
0x1f81   :  { %v8175_v28 = vadd.f32 1.0, %v12007_v43  ;;  %v11447_v43 = vpack.c.bf16 %v8698_v59, %v8696_v60 }
0x1f82   :  { %v12009_v53 = vpop.eup %12008 }
0x1f83   :  { %12012 = vrcp.f32 %v8175_v28  ;;  %v8184_v11 = vadd.f32 1.0, %v12009_v53  ;;  %v12011_v14 = vpop.eup %12010  ;;  %v8697_v28 = vld [vmem:[%s15490_s11 + $0x30] sm:$0xff]  ;;  %v8700_v53 = vld [vmem:[%s15490_s11 + $0x48] sm:$0xff] }
0x1f84   :  { %12014 = vtanh.f32 %v8187_v12  ;;  %v8195_v63 = vadd.f32 1.0, %v12011_v14  ;;  %v8695_v12 = vld [vmem:[%s15490_s11 + $0x20] sm:$0xff] }
0x1f85   :  { %12016 = vrcp.f32 %v8184_v11  ;;  %v8702_v11 = vld [vmem:[%s15490_s11 + $0x58] sm:$0xff]  ;;  %v8597_v14 = vld [vmem:[%s15486_s7] sm:$0x3] }
0x1f86   :  { %12018 = vrcp.f32 %v8195_v63  ;;  %v8701_v63 = vld [vmem:[%s15490_s11 + $0x50] sm:$0xff] }
0x1f8d   :  { %v12013_v44 = vpop.eup %12012 }
0x1f8e   :  { %v12015_v15 = vpop.eup %12014 }
0x1f8f   :  { %v12017_v17 = vpop.eup %12016  ;;  %v8199_v62 = vmul.f32 %v12015_v15, %v12013_v44  ;;  %v11449_v44 = vpack.c.bf16 %v8697_v28, %v8695_v12  ;;  %v11451_v15 = vpack.c.bf16 %v8702_v11, %v8700_v53  ;;  %v9230_v12 = vld [vmem:[%s15488_s9] ss:$0 sm:$0xff] }
0x1f90   :  { %v8198_v19 = vmul.f32 %v12017_v17, %v15106_v51  ;;  %v12019_v13 = vpop.eup %12018  ;;  %v8699_v17 = vld [vmem:[%s15490_s11 + $0x40] sm:$0xff] }
0x1f92   :  { %v15149_v48 = vadd.f32 %v8199_v62, %v8198_v19  ;;  %v8704_v19 = vld [vmem:[%s15490_s11 + $0x68] sm:$0xff]  ;;  %v8706_v62 = vld [vmem:[%s15490_s11 + $0x78] sm:$0xff] }
0x1f94   :  { %12020 = vtanh.f32 %v15149_v48 }
0x1f9e   :  { %v12021_v41 = vpop.eup %12020 }
0x1f9f   :  { %v8202_v54 = vmul.f32 %v12021_v41, %v12019_v13  ;;  %v11455_v13 = vpack.c.bf16 %v8706_v62, %v8704_v19  ;;  %v8703_v41 = vld [vmem:[%s15490_s11 + $0x60] sm:$0xff] }
0x1fa1   :  { %8269 = vmatmul.mubr.f32.vlgmr.msra.gmra.mrb[76].mxu0 %v8202_v54  ;;  %8340 = vmatmul.mubr.f32.vlgmr.msra.gmra.mrb[76].mxu1 %v8202_v54  ;;  %v8705_v54 = vld [vmem:[%s15490_s11 + $0x70] sm:$0xff] }
0x1fa2   :  { %11379 = vmatpush1.bf16.msra.mxu0 %v14332_v55  ;;  %11411 = vmatpush1.bf16.msra.mxu1 %v14335_v45  ;;  %v12132_v55 = vmov 0.0|0.0   ;;  %v8692_v45 = vld [vmem:[%s15490_s11 + $0x8] sm:$0xff] }
0x1fa3   :  { %11381 = vmatprep.subr.bf16.mxu0 %v14340_v47  ;;  %11413 = vmatprep.subr.bf16.mxu1 %v14342_v39  ;;  %v8694_v47 = vld [vmem:[%s15490_s11 + $0x18] sm:$0xff] }
0x1fa4   :  { %8465 = vmatprep.mubr.f32.mxu0 %v15549_v58  ;;  %8536 = vmatprep.mubr.f32.mxu1 %v15549_v58  ;;  %v11443_v39 = vpack.c.bf16 %v8694_v47, %v8692_v45  ;;  %v11457_v45 = vpack.c.bf16 %v8705_v54, %v8703_v41  ;;  %v8708_v47 = vld [vmem:[%s15490_s11 + $0x88] sm:$0xff]  ;;  %v8933_v54 = vld [vmem:[%s15496_s17 + $0x10] sm:$0xff] }
0x1fa6   :  { %11383 = vmatpush1.bf16.msra.mxu0 %v14344_v32  ;;  %11415 = vmatpush1.bf16.msra.mxu1 %v14347_v26 }
0x1fa7   :  { %11385 = vmatprep.subr.bf16.mxu0 %v14352_v1  ;;  %11417 = vmatprep.subr.bf16.mxu1 %v14354_v2 }
0x1faa   :  { %11387 = vmatpush1.bf16.msra.mxu0 %v14356_v7  ;;  %11419 = vmatpush1.bf16.msra.mxu1 %v14359_v33 }
0x1fab   :  { %11389 = vmatprep.subr.bf16.mxu0 %v14364_v8  ;;  %11421 = vmatprep.subr.bf16.mxu1 %v14366_v29 }
0x1fae   :  { %11391 = vmatpush1.bf16.msra.mxu0 %v14368_v42  ;;  %11423 = vmatpush1.bf16.msra.mxu1 %v14371_v57  ;;  %v15595_v57 = vld [vmem:[#allocation13_spill] sm:$0xff] }
0x1faf   :  { %11393 = vmatprep.subr.bf16.mxu0 %v14375_v0  ;;  %11425 = vmatprep.subr.bf16.mxu1 %v14377_v5  ;;  %v15596_v0 = vld [vmem:[#allocation19_spill] sm:$0xff] }
0x1fb0   :  { %v15597_v5 = vcombine.low %v15595_v57, %v15596_v0 }
0x1fb2   :  { %11395 = vmatpush1.bf16.msra.mxu0 %v14380_v52  ;;  %11427 = vmatpush1.bf16.msra.mxu1 %v14384_v9 }
0x1fb3   :  { %11397 = vmatprep.subr.bf16.mxu0 %v14386_v22  ;;  %11429 = vmatprep.subr.bf16.mxu1 %v14388_v30 }
0x1fb6   :  { %11399 = vmatpush1.bf16.msra.mxu0 %v14391_v23  ;;  %11431 = vmatpush1.bf16.msra.mxu1 %v14395_v18 }
0x1fb7   :  { %11401 = vmatprep.subr.bf16.mxu0 %v14397_v37  ;;  %11433 = vmatprep.subr.bf16.mxu1 %v14400_v61 }
0x1fba   :  { %11403 = vmatpush1.bf16.msra.mxu0 %v14403_v35  ;;  %11435 = vmatpush1.bf16.msra.mxu1 %v14407_v27 }
0x1fbb   :  { %11405 = vmatprep.subr.bf16.mxu0 %v14411_v34  ;;  %11437 = vmatprep.subr.bf16.mxu1 %v14414_v50 }
0x1fbe   :  { %11407 = vmatpush1.bf16.msra.mxu0 %v14416_v31  ;;  %11439 = vmatpush1.bf16.msra.mxu1 %v14419_v10 }
0x1fbf   :  { %11440 = vmatprep.subr.bf16.mxu0 %v12132_v55  ;;  %11444 = vmatprep.subr.bf16.mxu1 %v11443_v39  ;;  %v8710_v39 = vld [vmem:[%s15490_s11 + $0x98] sm:$0xff] }
0x2074   :  { %v8270_v32 = vpop.f32.mrb[76].mxu0  ;;  %v8341_v26 = vpop.f32.mrb[76].mxu1 }
0x2075   :  { %v8272_v1 = vpop.f32.mrb[77].mxu0  ;;  %v8343_v2 = vpop.f32.mrb[77].mxu1 }
0x2076   :  { %v8350_v7 = vcombine.low %v8270_v32, %v8272_v1  ;;  %v8351_v33 = vcombine.low %v8341_v26, %v8343_v2  ;;  %v11459_v32 = vpack.c.bf16 %v8710_v39, %v8708_v47  ;;  %v8707_v26 = vld [vmem:[%s15490_s11 + $0x80] sm:$0xff]  ;;  %v8709_v1 = vld [vmem:[%s15490_s11 + $0x90] sm:$0xff] }
0x2077   :  { %v11461_v2 = vpack.c.bf16 %v8709_v1, %v8707_v26 }
0x2078   :  { %v8358_v8 = vrot.slane %v8350_v7, %v12298_v16  ;;  %v8365_v29 = vrot.slane %v8351_v33, %v12298_v16  ;;  %v8712_v7 = vld [vmem:[%s15490_s11 + $0xa8] sm:$0xff]  ;;  %v8714_v33 = vld [vmem:[%s15490_s11 + $0xb8] sm:$0xff] }
0x207a   :  { %v8366_v42 = vcombine.low %v8358_v8, %v8365_v29  ;;  %v11463_v8 = vpack.c.bf16 %v8714_v33, %v8712_v7  ;;  %v8711_v29 = vld [vmem:[%s15490_s11 + $0xa0] sm:$0xff]  ;;  %v8937_v7 = vld [vmem:[%s15496_s17 + $0x30] sm:$0xff]  ;;  %v8938_v33 = vld [vmem:[%s15496_s17 + $0x38] sm:$0xff] }
0x207c   :  { %v8368_v52 = vadd.f32 %v8366_v42, %v15597_v5  ;;  %v8713_v42 = vld [vmem:[%s15490_s11 + $0xb0] sm:$0xff]  ;;  %s9115_s11 = sshll.u32 %s12134_s1, 4  ;;  %s9116_s11 = int_to_ptr.vmem [resolvable:$true] %s9115_s11 }
0x207d   :  { %v11465_v5 = vpack.c.bf16 %v8713_v42, %v8711_v29  ;;  %v11519_v29 = vpack.c.bf16 %v8938_v33, %v8937_v7  ;;  %v8939_v42 = vld [vmem:[%s15496_s17 + $0x40] sm:$0xff]  ;;  %v8952_v33 = vld [vmem:[%s15497_s18 + $0x28] sm:$0xff]  ;;  %p12103_p3 = scmp.lt.s32.totalorder %s9116_s11, %s9116_s11 }
0x207e   :  { %v9223_v9 = vmul.f32 -1.442695, %v8368_v52  ;;  %v8376_v22 = vrot.slane %v8368_v52, 2  ;;  %v8387_v23 = vrot.slane %v8368_v52, 6  ;;  %v8384_v61 = vrot.slane %v8368_v52, 4  ;;  %v8820_v52 = vld [vmem:[%s15493_s14] sm:$0xff] }
0x207f   :  { %v8951_v7 = vld [vmem:[%s15497_s18 + $0x20] sm:$0xff] }
0x2080   :  { %12022 = vpow2.f32 %v9223_v9  ;;  %v9224_v30 = vmul.f32 -1.442695, %v8376_v22  ;;  %v9225_v18 = vmul.f32 -1.442695, %v8387_v23  ;;  %v8821_v9 = vld [vmem:[%s15493_s14 + $0x8] sm:$0xff]  ;;  %v8822_v22 = vld [vmem:[%s15493_s14 + $0x10] sm:$0xff] }
0x2081   :  { %v8823_v23 = vld [vmem:[%s15493_s14 + $0x18] sm:$0xff] }
0x2082   :  { %12024 = vpow2.f32 %v9224_v30  ;;  %v11468_v30 = vpack.c.bf16 %v8821_v9, %v8820_v52 }
0x2083   :  { %12026 = vpow2.f32 %v9225_v18  ;;  %v11471_v18 = vpack.c.bf16 %v8823_v23, %v8822_v22 }
0x208a   :  { %v12023_v37 = vpop.eup %12022 }
0x208b   :  { %v8372_v35 = vadd.f32 1.0, %v12023_v37  ;;  %v8824_v37 = vld [vmem:[%s15493_s14 + $0x20] sm:$0xff] }
0x208c   :  { %v12025_v27 = vpop.eup %12024 }
0x208d   :  { %12028 = vrcp.f32 %v8372_v35  ;;  %v8381_v34 = vadd.f32 1.0, %v12025_v27  ;;  %v12027_v50 = vpop.eup %12026  ;;  %v8826_v27 = vld [vmem:[%s15493_s14 + $0x30] sm:$0xff] }
0x208e   :  { %12030 = vtanh.f32 %v8384_v61  ;;  %v8392_v24 = vadd.f32 1.0, %v12027_v50  ;;  %v8825_v61 = vld [vmem:[%s15493_s14 + $0x28] sm:$0xff] }
0x208f   :  { %12032 = vrcp.f32 %v8381_v34  ;;  %v11474_v35 = vpack.c.bf16 %v8825_v61, %v8824_v37  ;;  %v8827_v34 = vld [vmem:[%s15493_s14 + $0x38] sm:$0xff]  ;;  %v8941_v37 = vld [vmem:[%s15496_s17 + $0x50] sm:$0xff] }
0x2090   :  { %12034 = vrcp.f32 %v8392_v24  ;;  %v11477_v50 = vpack.c.bf16 %v8827_v34, %v8826_v27  ;;  %v8830_v24 = vld [vmem:[%s15493_s14 + $0x50] sm:$0xff]  ;;  %v8942_v61 = vld [vmem:[%s15496_s17 + $0x58] sm:$0xff]  ;;  %v8943_v27 = vld [vmem:[%s15496_s17 + $0x60] sm:$0xff] }
0x2091   :  { %v8944_v34 = vld [vmem:[%s15496_s17 + $0x68] sm:$0xff] }
0x2097   :  { %v12029_v31 = vpop.eup %12028 }
0x2098   :  { %v12031_v10 = vpop.eup %12030 }
0x2099   :  { %v12033_v51 = vpop.eup %12032  ;;  %v8396_v56 = vmul.f32 %v12031_v10, %v12029_v31  ;;  %v8828_v31 = vld [vmem:[%s15493_s14 + $0x40] sm:$0xff]  ;;  %v8829_v10 = vld [vmem:[%s15493_s14 + $0x48] sm:$0xff] }
0x209a   :  { %v8395_v21 = vmul.f32 %v12033_v51, %v15149_v48  ;;  %v12035_v38 = vpop.eup %12034  ;;  %v11453_v48 = vpack.c.bf16 %v8701_v63, %v8699_v17  ;;  %v11480_v51 = vpack.c.bf16 %v8829_v10, %v8828_v31  ;;  %v8931_v17 = vld [vmem:[%s15496_s17] sm:$0xff]  ;;  %v8932_v63 = vld [vmem:[%s15496_s17 + $0x8] sm:$0xff]  ;;  %v8945_v31 = vld [vmem:[%s15496_s17 + $0x70] sm:$0xff] }
0x209b   :  { %v8946_v10 = vld [vmem:[%s15496_s17 + $0x78] sm:$0xff] }
0x209c   :  { %v15197_v20 = vadd.f32 %v8396_v56, %v8395_v21  ;;  %v8831_v21 = vld [vmem:[%s15493_s14 + $0x58] sm:$0xff] }
0x209d   :  { %v11483_v56 = vpack.c.bf16 %v8831_v21, %v8830_v24 }
0x209e   :  { %12036 = vtanh.f32 %v15197_v20 }
0x20a8   :  { %v12037_v25 = vpop.eup %12036 }
0x20a9   :  { %v8399_v6 = vmul.f32 %v12037_v25, %v12035_v38  ;;  %v8835_v38 = vld [vmem:[%s15493_s14 + $0x78] sm:$0xff] }
0x20aa   :  { %v11489_v60 = vpack.c.bf16 %v8835_v38, %v8834_v36 }
0x20ab   :  { %8466 = vmatmul.mubr.f32.vlgmr.msra.gmra.mrb[78].mxu0 %v8399_v6  ;;  %8537 = vmatmul.mubr.f32.vlgmr.msra.gmra.mrb[78].mxu1 %v8399_v6 }
0x20ac   :  { %11442 = vmatpush3.bf16.msra.mxu0 %v11441_v46  ;;  %9271 = vmatprep.mubr.msk.f32.mxu0 %vm12133_vm1, %v15549_v58 }
0x20ad   :  { %11446 = vmatpush1.bf16.msra.mxu1 %v11445_v40  ;;  %8783 = vmatprep.mubr.f32.mxu1 %v15549_v58 }
0x20ae   :  { %11448 = vmatprep.subr.bf16.mxu1 %v11447_v43  ;;  %11467 = vmatprep.subr.bf16.mxu0 %v12132_v55 }
0x20af   :  { %9272 = vmatmul.mubr.msk.f32.vlgmr.msra.gmra.mrb[80].mxu0 %vm8600_vm2, %v8597_v14  ;;  %v9231_v14 = vld [vmem:[%s15489_s10] ss:$0 sm:$0xff] }
0x20b0   :  { %11469 = vmatpush1.bf16.msra.mxu0 %v11468_v30 }
0x20b1   :  { %11450 = vmatpush1.bf16.msra.mxu1 %v11449_v44  ;;  %11470 = vmatprep.subr.bf16.mxu0 %v12132_v55 }
0x20b2   :  { %11452 = vmatprep.subr.bf16.mxu1 %v11451_v15 }
0x20b4   :  { %11472 = vmatpush1.bf16.msra.mxu0 %v11471_v18 }
0x20b5   :  { %11454 = vmatpush1.bf16.msra.mxu1 %v11453_v48  ;;  %11473 = vmatprep.subr.bf16.mxu0 %v12132_v55 }
0x20b6   :  { %11456 = vmatprep.subr.bf16.mxu1 %v11455_v13  ;;  %v11510_v13 = vpack.c.bf16 %v8932_v63, %v8931_v17 }
0x20b8   :  { %11475 = vmatpush1.bf16.msra.mxu0 %v11474_v35  ;;  %v11525_v35 = vpack.c.bf16 %v8942_v61, %v8941_v37  ;;  %v9237_v37 = vld [vmem:[%s15498_s19] ss:$0 sm:$0xff] }
0x20b9   :  { %11458 = vmatpush1.bf16.msra.mxu1 %v11457_v45  ;;  %11476 = vmatprep.subr.bf16.mxu0 %v12132_v55  ;;  %v8934_v45 = vld [vmem:[%s15496_s17 + $0x18] sm:$0xff] }
0x20ba   :  { %11460 = vmatprep.subr.bf16.mxu1 %v11459_v32  ;;  %v11513_v26 = vpack.c.bf16 %v8934_v45, %v8933_v54  ;;  %v8948_v54 = vld [vmem:[%s15497_s18 + $0x8] sm:$0xff] }
0x20bc   :  { %11478 = vmatpush1.bf16.msra.mxu0 %v11477_v50  ;;  %v11528_v50 = vpack.c.bf16 %v8944_v34, %v8943_v27 }
0x20bd   :  { %11462 = vmatpush1.bf16.msra.mxu1 %v11461_v2  ;;  %11479 = vmatprep.subr.bf16.mxu0 %v12132_v55 }
0x20be   :  { %11464 = vmatprep.subr.bf16.mxu1 %v11463_v8 }
0x20c0   :  { %11481 = vmatpush1.bf16.msra.mxu0 %v11480_v51 }
0x20c1   :  { %11466 = vmatpush1.bf16.msra.mxu1 %v11465_v5  ;;  %11482 = vmatprep.subr.bf16.mxu0 %v12132_v55  ;;  %v8940_v5 = vld [vmem:[%s15496_s17 + $0x48] sm:$0xff] }
0x20c2   :  { %11509 = vmatprep.subr.bf16.mxu1 %v12132_v55  ;;  %v11522_v23 = vpack.c.bf16 %v8940_v5, %v8939_v42  ;;  %v9234_v5 = vld [vmem:[%s15494_s15] ss:$0 sm:$0xff]  ;;  %s12098_s15 = scalar_lea.vmem %s9116_s11, 32 }
0x20c3   :  { %p12099_p2 = scmp.ne.s32.totalorder %s9116_s11, %s12098_s15  ;;  %p12104_p4 = scmp.lt.s32.totalorder %s12098_s15, %s12098_s15 }
0x20c4   :  { %11484 = vmatpush1.bf16.msra.mxu0 %v11483_v56  ;;  %v11531_v56 = vpack.c.bf16 %v8946_v10, %v8945_v31 }
0x20c5   :  { %11485 = vmatprep.subr.bf16.mxu0 %v12132_v55  ;;  %p12105_p5 = por %p12104_p4, %p12103_p3 }
0x20c7   :  { %p12106_p6 = pnand %p12105_p5, %p12099_p2 }
0x20c8   :  { %11487 = vmatpush1.bf16.msra.mxu0 %v11486_v4 }
0x20c9   :  { %11488 = vmatprep.subr.bf16.mxu0 %v12132_v55 }
0x20cc   :  { %11490 = vmatpush1.bf16.msra.mxu0 %v11489_v60 }
0x20cd   :  { %11491 = vmatprep.subr.bf16.mxu0 %v12132_v55 }
0x217e   :  { %v8467_v59 = vpop.f32.mrb[78].mxu0  ;;  %v8538_v25 = vpop.f32.mrb[78].mxu1 }
0x217f   :  { %v8469_v46 = vpop.f32.mrb[79].mxu0  ;;  %v8540_v6 = vpop.f32.mrb[79].mxu1 }
0x2180   :  { %v8547_v40 = vcombine.low %v8467_v59, %v8469_v46  ;;  %v8548_v43 = vcombine.low %v8538_v25, %v8540_v6  ;;  %v8836_v46 = vld [vmem:[%s15493_s14 + $0x80] sm:$0xff]  ;;  %v8837_v6 = vld [vmem:[%s15493_s14 + $0x88] sm:$0xff] }
0x2182   :  { %v8555_v28 = vrot.slane %v8547_v40, %v12298_v16  ;;  %v8562_v53 = vrot.slane %v8548_v43, %v12298_v16  ;;  %v8670_v11 = vpop.f32.mrb[80].mxu0  ;;  %v15598_v16 = vcombine.high %v15595_v57, %v15596_v0  ;;  %v8935_v57 = vld [vmem:[%s15496_s17 + $0x20] sm:$0xff]  ;;  %v8936_v0 = vld [vmem:[%s15496_s17 + $0x28] sm:$0xff]  ;;  %v11492_v40 = vpack.c.bf16 %v8837_v6, %v8836_v46  ;;  %v8839_v43 = vld [vmem:[%s15493_s14 + $0x98] sm:$0xff] }
0x2183   :  { %v8681_v44 = vmul.f32 %v9230_v12, %v8670_v11  ;;  %v9273_v15 = vpop.f32.mrb[81].mxu0  ;;  %v11516_v2 = vpack.c.bf16 %v8936_v0, %v8935_v57  ;;  %v15599_v11 = vld [vmem:[#allocation14_spill] sm:$0xff]  ;;  %v8950_v57 = vld [vmem:[%s15497_s18 + $0x18] sm:$0xff] }
0x2184   :  { %v8563_v19 = vcombine.low %v8555_v28, %v8562_v53  ;;  %11493 = vmatpush1.bf16.msra.mxu0 %v11492_v40  ;;  %v8790_v28 = vld [vmem:[%s15491_s12] sm:$0x3] }
0x2185   :  { %v8689_v62 = vadd.f32 %v9231_v14, %v8681_v44  ;;  %11494 = vmatprep.subr.bf16.mxu0 %v12132_v55  ;;  %v8804_v53 = vld [vmem:[%s15492_s13] sm:$0x3]  ;;  %v8795_v14 = vrot.slane %v8790_v28, %v15599_v11  ;;  %v15600_v44 = vld [vmem:[#allocation15_spill] sm:$0xff] }
0x2186   :  { %v8565_v48 = vadd.f32 %v8563_v19, %v15598_v16  ;;  %v8799_v15 = vrot.slane %v8790_v28, %v15600_v44  ;;  %v8809_v17 = vrot.slane %v8804_v53, %v15599_v11  ;;  %v8813_v19 = vrot.slane %v8804_v53, %v15600_v44 }
0x2187   :  { %v8690_v41 = vmax.f32 %v8689_v62, 0.0 }
0x2188   :  { %v9226_v47 = vmul.f32 -1.442695, %v8565_v48  ;;  %v8573_v39 = vrot.slane %v8565_v48, 2  ;;  %v8584_v1 = vrot.slane %v8565_v48, 6  ;;  %v8581_v9 = vrot.slane %v8565_v48, 4 }
0x2189   :  { %9232 = vmatmul.mubr.msk.f32.vlgmr.msra.gmra.mrb[80].mxu1 %vm8715_vm3, %v8690_v41  ;;  %v8947_v41 = vld [vmem:[%s15497_s18] sm:$0xff] }
0x218a   :  { %12038 = vpow2.f32 %v9226_v47  ;;  %v9227_v32 = vmul.f32 -1.442695, %v8573_v39  ;;  %11511 = vmatpush3.bf16.msra.mxu1 %v11510_v13  ;;  %9325 = vmatprep.mubr.msk.f32.mxu1 %vm12133_vm1, %v15549_v58  ;;  %v9228_v8 = vmul.f32 -1.442695, %v8584_v1  ;;  %v11498_v39 = vpack.c.bf16 %v8948_v54, %v8947_v41 }
0x218b   :  { %11512 = vmatprep.subr.bf16.mxu1 %v12132_v55 }
0x218c   :  { %12040 = vpow2.f32 %v9227_v32 }
0x218d   :  { %12042 = vpow2.f32 %v9228_v8  ;;  %v11504_v8 = vpack.c.bf16 %v8952_v33, %v8951_v7 }
0x218e   :  { %11514 = vmatpush3.bf16.msra.mxu1 %v11513_v26  ;;  %v8949_v26 = vld [vmem:[%s15497_s18 + $0x10] sm:$0xff] }
0x218f   :  { %11515 = vmatprep.subr.bf16.mxu1 %v12132_v55  ;;  %v11501_v0 = vpack.c.bf16 %v8950_v57, %v8949_v26 }
0x2192   :  { %11517 = vmatpush3.bf16.msra.mxu1 %v11516_v2 }
0x2193   :  { %11518 = vmatprep.subr.bf16.mxu1 %v12132_v55 }
0x2194   :  { %v12039_v52 = vpop.eup %12038 }
0x2195   :  { %v8569_v22 = vadd.f32 1.0, %v12039_v52 }
0x2196   :  { %v12041_v30 = vpop.eup %12040  ;;  %11520 = vmatpush3.bf16.msra.mxu1 %v11519_v29  ;;  %v8954_v29 = vld [vmem:[%s15497_s18 + $0x38] sm:$0xff] }
0x2197   :  { %12044 = vrcp.f32 %v8569_v22  ;;  %v8578_v18 = vadd.f32 1.0, %v12041_v30  ;;  %11521 = vmatprep.subr.bf16.mxu1 %v12132_v55  ;;  %v12043_v51 = vpop.eup %12042 }
0x2198   :  { %12046 = vtanh.f32 %v8581_v9  ;;  %v8589_v3 = vadd.f32 1.0, %v12043_v51  ;;  %v9235_v9 = vld [vmem:[%s15495_s16] ss:$0 sm:$0xff] }
0x2199   :  { %12048 = vrcp.f32 %v8578_v18 }
0x219a   :  { %11523 = vmatpush3.bf16.msra.mxu1 %v11522_v23  ;;  %12050 = vrcp.f32 %v8589_v3 }
0x219b   :  { %11524 = vmatprep.subr.bf16.mxu1 %v12132_v55 }
0x219e   :  { %11526 = vmatpush3.bf16.msra.mxu1 %v11525_v35 }
0x219f   :  { %11527 = vmatprep.subr.bf16.mxu1 %v12132_v55 }
0x21a1   :  { %v12045_v24 = vpop.eup %12044 }
0x21a2   :  { %v12047_v21 = vpop.eup %12046  ;;  %11529 = vmatpush3.bf16.msra.mxu1 %v11528_v50 }
0x21a3   :  { %v12049_v49 = vpop.eup %12048  ;;  %11530 = vmatprep.subr.bf16.mxu1 %v12132_v55  ;;  %v8593_v36 = vmul.f32 %v12047_v21, %v12045_v24 }
0x21a4   :  { %v8592_v4 = vmul.f32 %v12049_v49, %v15197_v20  ;;  %v12051_v60 = vpop.eup %12050  ;;  %v8838_v20 = vld [vmem:[%s15493_s14 + $0x90] sm:$0xff] }
0x21a5   :  { %v11495_v12 = vpack.c.bf16 %v8839_v43, %v8838_v20 }
0x21a6   :  { %11532 = vmatpush3.bf16.msra.mxu1 %v11531_v56  ;;  %v8594_v38 = vadd.f32 %v8593_v36, %v8592_v4 }
0x21a7   :  { %11496 = vmatpush1.bf16.msra.mxu0 %v11495_v12 }
0x21a8   :  { %12052 = vtanh.f32 %v8594_v38  ;;  %11497 = vmatprep.subr.bf16.mxu0 %v12132_v55 }
0x21b2   :  { %v12053_v59 = vpop.eup %12052 }
0x21b3   :  { %v8596_v25 = vmul.f32 %v12053_v59, %v12051_v60 }
0x21b5   :  { %9326 = vmatmul.mubr.f32.vlgmr.msra.gmra.mrb[82].mxu1 %v8596_v25 }
0x225c   :  { %v8785_v63 = vpop.f32.mrb[80].mxu1 }
0x225d   :  { %v8802_v62 = vmul.f32 %v8795_v14, %v8785_v63  ;;  %v8787_v16 = vpop.f32.mrb[81].mxu1 }
0x225e   :  { %v8803_v48 = vmul.f32 %v8799_v15, %v8787_v16 }
0x225f   :  { %v8816_v13 = vadd.f32 %v8809_v17, %v8802_v62 }
0x2260   :  { %v8817_v45 = vadd.f32 %v8813_v19, %v8803_v48 }
0x2261   :  { %v8818_v32 = vmax.f32 %v8816_v13, 0.0 }
0x2262   :  { %v8819_v47 = vmax.f32 %v8817_v45, 0.0 }
0x2264   :  { %9233 = vmatprep.mubr.msk.f32.mxu0 %vm8840_vm4, %v8819_v47 }
0x2265   :  { %8909 = vmatmul.mubr.f32.vlgmr.msra.gmra.mrb[82].mxu0 %v8818_v32 }
0x2266   :  { %11499 = vmatpush3.bf16.msra.mxu0 %v11498_v39  ;;  %9290 = vmatprep.mubr.msk.f32.mxu0 %vm12133_vm1, %v15549_v58  ;;  %v8953_v58 = vld [vmem:[%s15497_s18 + $0x30] sm:$0xff] }
0x2267   :  { %11500 = vmatprep.subr.bf16.mxu0 %v12132_v55  ;;  %v11507_v42 = vpack.c.bf16 %v8954_v29, %v8953_v58 }
0x226a   :  { %11502 = vmatpush3.bf16.msra.mxu0 %v11501_v0 }
0x226b   :  { %11503 = vmatprep.subr.bf16.mxu0 %v12132_v55 }
0x226e   :  { %11505 = vmatpush3.bf16.msra.mxu0 %v11504_v8 }
0x226f   :  { %11506 = vmatprep.subr.bf16.mxu0 %v12132_v55 }
0x2272   :  { %11508 = vmatpush3.bf16.msra.mxu0 %v11507_v42 }
0x2288   :  { %v9095_v1 = vpop.f32.mrb[82].mxu1 }
0x2289   :  { %v9327_v2 = vpop.f32.mrb[83].mxu1 }
0x2338   :  { %v8910_v52 = vpop.f32.mrb[82].mxu0 }
0x2339   :  { %v8921_v55 = vmul.f32 %v9234_v5, %v8910_v52  ;;  %v8912_v22 = vpop.f32.mrb[83].mxu0 }
0x233b   :  { %v8929_v30 = vadd.f32 %v9235_v9, %v8921_v55 }
0x233d   :  { %v8930_v23 = vmax.f32 %v8929_v30, 0.0 }
0x233f   :  { %9291 = vmatmul.mubr.msk.f32.vlgmr.msra.gmra.mrb[84].mxu0 %vm8955_vm5, %v8930_v23 }
0x2412   :  { %v9025_v18 = vpop.f32.mrb[84].mxu0 }
0x2413   :  { %v9096_v61 = vadd.f32 %v9095_v1, %v9025_v18  ;;  %v9292_v35 = vpop.f32.mrb[85].mxu0 }
0x2415   :  { %v9106_v27 = vadd.f32 %v9237_v37, %v9096_v61 }
0x2417   :  { %9108 = vst.msk [vmem:[#allocation9] sm:$0x3] %vm9107_vm6, %v9106_v27 }
0x2418   :  { %12109 = shalt.err (!%p12106_p6)
}
0x2419   :  { %s15601_s24 = sld [smem:[#allocation25_spill]] }
0x241f   :  { %s12110_s25 = scalar_lea.hbm %s15601_s24, 32 }
0x2420   :  { %p12111_p7 = scmp.ne.s32.totalorder %s15601_s24, %s12110_s25  ;;  %p12114_p8 = scmp.lt.u32.totalorder %s12110_s25, %s15601_s24 }
0x2422   :  { %p12116_p9 = pnand %p12114_p8, %p12111_p7 }
0x2424   :  { %12119 = shalt.err (!%p12116_p9)
}
0x2425   :  { %9118 = dma.vmem_to_hbm [thread:$0]  %s9116_s11, 32, %s15601_s24, [#allocation6]  }
0x2426   :  { %12124 = dma.done.wait [#allocation6], 32  }
0x2427   :  { %12125 = vsyncadd [#allocation6], 4294967264 }
0x2428   :  { %9122 = vsyncpa [#allocation5], 1 }
0x2429   :  { %9123 = vsyncpa [#allocation8], 1 }
0x242a   :  { %9124 = vsyncpa [#allocation6], 1 }

</bundles_post_ra>
